<compile_context>
chip_gen: v7x
topology: tpu7x:2x2x1
jax: 0.10.0
libtpu: 0.0.40
codegen_flags: <defaults>
</compile_context>

<pallas_src>
import jax
import jax.numpy as jnp
from jax import lax
from jax.experimental import pallas as pl
from jax.experimental.pallas import tpu as pltpu

EPS = 1e-5        # ChannelNorm epsilon in CPC_audio
CP = 128          # lane-dense (padded) channel width used inside the kernel

# Scaled-down CPC encoder: the real model uses C=512, H=256; toy config uses 32/32.
ENC_C = 32
GRU_H = 32
# (Cin, Cout, kernel, stride, padding) — same geometry as CPCEncoder (160x downsample)
CONV_CFG = [(1, ENC_C, 10, 5, 3),
            (ENC_C, ENC_C, 8, 4, 2),
            (ENC_C, ENC_C, 4, 2, 1),
            (ENC_C, ENC_C, 4, 2, 1),
            (ENC_C, ENC_C, 4, 2, 1)]


# ----------------------------------------------------------------------------
# Single fused kernel: 5 x (Conv1d + ChannelNorm + ReLU)  +  GRU
# ----------------------------------------------------------------------------
def _cpc_fused_kernel(p0_ref, w0_ref, convw_ref, normp_ref,
                      sel1_ref, sel2_ref, sel3_ref, sel4_ref,
                      wih_ref, bih_ref, whh_ref, bhh_ref,
                      enc_ref, c_ref,
                      act_ref, z_ref):
    f32 = jnp.float32
    # Channel mask: first ENC_C lanes hold real channels, the rest are zero padding.
    ch_mask = (lax.broadcasted_iota(jnp.int32, (1, CP), 1) < ENC_C).astype(f32)

    def channel_norm_relu(y, li):
        gamma = normp_ref[3 * li + 1:3 * li + 2, :]
        beta = normp_ref[3 * li + 2:3 * li + 3, :]
        # Stats over the real channels only (torch.var default: unbiased, /(C-1)).
        mean = jnp.sum(y * ch_mask, axis=-1, keepdims=True) * (1.0 / ENC_C)
        d = (y - mean) * ch_mask
        var = jnp.sum(d * d, axis=-1, keepdims=True) * (1.0 / (ENC_C - 1))
        yn = d * lax.rsqrt(var + EPS)
        return jnp.maximum(yn * gamma + beta, 0.0)

    # ---- layer 0: (L0, K0) waveform patches @ (K0, CP)  (Cin = 1) ----
    y = jnp.dot(p0_ref[...], w0_ref[...],
                preferred_element_type=f32) + normp_ref[0:1, :]
    out = channel_norm_relu(y, 0)                       # (L0, CP)

    # ---- layers 1..4: in-kernel im2col (tap slices) + stride via selection matmul ----
    sel_refs = (sel1_ref, sel2_ref, sel3_ref, sel4_ref)
    w_off = 0
    for li in range(1, 5):
        _, _, K, s, pad = CONV_CFG[li]
        sel = sel_refs[li - 1]
        L_in = out.shape[0]
        L_out, D = sel.shape                            # D = (L_out - 1) * s + 1
        Tp = L_in + 2 * pad

        # Zero-padded input activation for this layer (stays resident in VMEM).
        act_ref[0:Tp, :] = jnp.zeros((Tp, CP), f32)
        act_ref[pad:pad + L_in, :] = out

        # Dense (stride-1) conv over the D needed positions, accumulated in VMEM.
        z_ref[0:D, :] = jnp.broadcast_to(normp_ref[3 * li:3 * li + 1, :], (D, CP))
        for k in range(K):                               # static, fully unrolled
            xk = act_ref[k:k + D, :]                                   # (D, CP)
            wk = convw_ref[w_off + k * CP:w_off + (k + 1) * CP, :]     # (CP, CP)
            z_ref[0:D, :] += jnp.dot(xk, wk, preferred_element_type=f32)
        w_off += K * CP

        # Apply the stride as a matmul with a constant 0/1 selection matrix.
        y = jnp.dot(sel[...], z_ref[0:D, :], preferred_element_type=f32)
        out = channel_norm_relu(y, li)                  # (L_out, CP)

    enc_ref[...] = out                                  # encoder output (T', CP)

    # ---- GRU (gAR): zero initial hidden, PyTorch gate order [r, z, n] ----
    T_out = out.shape[0]
    gx = jnp.dot(out, wih_ref[...], preferred_element_type=f32) + bih_ref[...]  # (T', 3*CP)
    h = jnp.zeros((1, CP), f32)                         # hidden state stays in vregs
    row_id = lax.broadcasted_iota(jnp.int32, (T_out, CP), 0)
    c_val = jnp.zeros((T_out, CP), f32)
    for t in range(T_out):                              # fully unrolled (T' = 8)
        gh = jnp.dot(h, whh_ref[...], preferred_element_type=f32) + bhh_ref[...]
        gx_t = gx[t:t + 1, :]
        r = jax.nn.sigmoid(gx_t[:, 0:CP] + gh[:, 0:CP])
        zg = jax.nn.sigmoid(gx_t[:, CP:2 * CP] + gh[:, CP:2 * CP])
        n = jnp.tanh(gx_t[:, 2 * CP:3 * CP] + r * gh[:, 2 * CP:3 * CP])
        h = (1.0 - zg) * n + zg * h
        c_val = jnp.where(row_id == t, h, c_val)        # assemble output in vregs
    c_ref[...] = c_val                                  # one full-tile store


# ----------------------------------------------------------------------------
# Parameter setup (deterministic, synthetic) and lane-dense repacking
# ----------------------------------------------------------------------------
def init_params(key):
    params = {"encoder": [], "gru": {}}
    for (cin, cout, k, s, p) in CONV_CFG:
        key, k1, k2 = jax.random.split(key, 3)
        params["encoder"].append({
            "w": 0.1 * jax.random.normal(k1, (cout, cin, k), jnp.float32),
            "b": 0.1 * jax.random.normal(k2, (cout,), jnp.float32),
            "gamma": jnp.ones((cout,), jnp.float32),
            "beta": jnp.zeros((cout,), jnp.float32),
            "stride": s, "padding": p,
        })
    key, k1, k2, k3, k4 = jax.random.split(key, 5)
    params["gru"] = {
        "w_ih": 0.1 * jax.random.normal(k1, (3 * GRU_H, ENC_C), jnp.float32),
        "b_ih": 0.1 * jax.random.normal(k2, (3 * GRU_H,), jnp.float32),
        "w_hh": 0.1 * jax.random.normal(k3, (3 * GRU_H, GRU_H), jnp.float32),
        "b_hh": 0.1 * jax.random.normal(k4, (3 * GRU_H,), jnp.float32),
    }
    return params


def pack_params(params):
    """Repack torch-layout weights into zero-padded, lane-dense kernel operands."""
    f32 = jnp.float32
    enc_layers = params["encoder"]

    # layer-0 weight (Cout, 1, K0) -> (K0, CP)
    w0 = enc_layers[0]["w"]
    c0, _, k0 = w0.shape
    w0_mat = jnp.zeros((k0, CP), f32).at[:, :c0].set(w0[:, 0, :].T)

    # layers 1..4: per-tap (Cin, Cout) blocks zero-padded to (CP, CP), row-stacked
    blocks = []
    for layer in enc_layers[1:]:
        w = layer["w"]                                  # (Cout, Cin, K)
        cout, cin, k = w.shape
        for tap in range(k):
            blocks.append(jnp.zeros((CP, CP), f32).at[:cin, :cout].set(w[:, :, tap].T))
    convw = jnp.concatenate(blocks, axis=0)             # (sum(K)*CP, CP)

    # per-layer [bias, gamma, beta] rows, zero-padded to CP lanes
    rows = []
    for layer in enc_layers:
        c = layer["b"].shape[0]
        for name in ("b", "gamma", "beta"):
            rows.append(jnp.zeros((1, CP), f32).at[0, :c].set(layer[name]))
    normp = jnp.concatenate(rows, axis=0)               # (15, CP)

    # GRU: torch layout (3H, in)/(3H, H), gate order [r, z, n]; each gate block is
    # transposed and padded into its own 128-lane aligned slot.
    g = params["gru"]
    h = g["w_hh"].shape[1]
    cin = g["w_ih"].shape[1]
    wih = jnp.zeros((CP, 3 * CP), f32)
    whh = jnp.zeros((CP, 3 * CP), f32)
    bih = jnp.zeros((1, 3 * CP), f32)
    bhh = jnp.zeros((1, 3 * CP), f32)
    for gi in range(3):
        wih = wih.at[:cin, gi * CP:gi * CP + h].set(g["w_ih"][gi * h:(gi + 1) * h, :].T)
        whh = whh.at[:h, gi * CP:gi * CP + h].set(g["w_hh"][gi * h:(gi + 1) * h, :].T)
        bih = bih.at[0, gi * CP:gi * CP + h].set(g["b_ih"][gi * h:(gi + 1) * h])
        bhh = bhh.at[0, gi * CP:gi * CP + h].set(g["b_hh"][gi * h:(gi + 1) * h])

    return {"w0": w0_mat, "convw": convw, "normp": normp,
            "wih": wih, "bih": bih, "whh": whh, "bhh": bhh}


# ----------------------------------------------------------------------------
# Forward pass (single fused pallas_call)
# ----------------------------------------------------------------------------
def pretrained_cpc_forward(packed, x):
    """Mirrors PretrainedCPCModel.forward (inference, single call)."""
    f32 = jnp.float32
    wav = x.reshape(-1).astype(f32)                     # x.view(1, 1, -1)
    T = wav.shape[0]

    # Layer-0 window extraction stays outside the kernel: Cin=1, so it is a cheap
    # 1-D strided view of the waveform (no transposes) feeding one in-kernel matmul.
    _, _, K0, s0, p0 = CONV_CFG[0]
    L = (T + 2 * p0 - K0) // s0 + 1
    wav_pad = jnp.pad(wav, (p0, p0))
    idx = jnp.arange(L)[:, None] * s0 + jnp.arange(K0)[None, :]
    patches0 = wav_pad[idx]                             # (L0, K0)

    seq = [L]
    for (_, _, K, s, p) in CONV_CFG[1:]:
        L = (L + 2 * p - K) // s + 1
        seq.append(L)

    # Constant 0/1 downsampling matrices (L_out, D) for layers 1..4.
    sels = []
    for li in range(1, 5):
        _, _, K, s, p = CONV_CFG[li]
        L_out = seq[li]
        D = (L_out - 1) * s + 1
        sels.append((jnp.arange(D)[None, :] ==
                     (s * jnp.arange(L_out))[:, None]).astype(f32))

    # VMEM scratch sizing (rounded up to full sublane tiles).
    act_rows = max(seq[li - 1] + 2 * CONV_CFG[li][4] for li in range(1, 5))
    z_rows = max((seq[li] - 1) * CONV_CFG[li][3] + 1 for li in range(1, 5))
    act_rows = ((act_rows + 7) // 8) * 8
    z_rows = ((z_rows + 7) // 8) * 8
    T_out = seq[-1]

    vmem = pl.BlockSpec(memory_space=pltpu.MemorySpace.VMEM)
    enc_p, c_p = pl.pallas_call(
        _cpc_fused_kernel,
        out_shape=(jax.ShapeDtypeStruct((T_out, CP), f32),
                   jax.ShapeDtypeStruct((T_out, CP), f32)),
        in_specs=[vmem] * 12,
        out_specs=(vmem, vmem),
        scratch_shapes=[pltpu.VMEM((act_rows, CP), f32),   # padded layer input
                        pltpu.VMEM((z_rows, CP), f32)],    # dense conv accumulator
    )(patches0, packed["w0"], packed["convw"], packed["normp"],
      sels[0], sels[1], sels[2], sels[3],
      packed["wih"], packed["bih"], packed["whh"], packed["bhh"])

    enc = enc_p[:, :ENC_C]                              # drop lane padding
    c = c_p[:, :GRU_H]
    encoded_data = enc.T[None, :, :]                    # (1, C, T')
    c_feature = c.T[None, :, :]                         # (1, H, T')
    # TODO(synk): gAR.keepHidden persists the GRU hidden state across forward
    # calls; this models a single call starting from hidden=None (zeros).
    return encoded_data, c_feature, None


# ----------------------------------------------------------------------------
# Pure-JAX reference (for verification)
# ----------------------------------------------------------------------------
def cpc_forward_reference(params, x):
    hp = jax.lax.Precision.HIGHEST
    h = x.reshape(1, -1).astype(jnp.float32)            # (Cin=1, T)
    for layer in params["encoder"]:
        w, b = layer["w"], layer["b"]
        s, p = layer["stride"], layer["padding"]
        cout, cin, k = w.shape
        t = h.shape[1]
        xpad = jnp.pad(h, ((0, 0), (p, p)))
        L = (t + 2 * p - k) // s + 1
        idx = jnp.arange(L)[:, None] * s + jnp.arange(k)[None, :]
        patches = jnp.transpose(xpad[:, idx], (1, 0, 2)).reshape(L, cin * k)
        y = jnp.dot(patches, w.reshape(cout, cin * k).T, precision=hp) + b
        mean = jnp.mean(y, axis=-1, keepdims=True)
        var = jnp.sum((y - mean) ** 2, axis=-1, keepdims=True) / (cout - 1)
        y = (y - mean) * jax.lax.rsqrt(var + EPS) * layer["gamma"] + layer["beta"]
        h = jnp.maximum(y, 0.0).T                       # (Cout, L)
    enc = h.T                                           # (T', C)

    g = params["gru"]
    H = g["w_hh"].shape[1]

    def step(hprev, xt):
        gx = jnp.dot(g["w_ih"], xt, precision=hp) + g["b_ih"]
        gh = jnp.dot(g["w_hh"], hprev, precision=hp) + g["b_hh"]
        r = jax.nn.sigmoid(gx[:H] + gh[:H])
        z = jax.nn.sigmoid(gx[H:2 * H] + gh[H:2 * H])
        n = jnp.tanh(gx[2 * H:] + r * gh[2 * H:])
        hnew = (1.0 - z) * n + z * hprev
        return hnew, hnew

    _, c = lax.scan(step, jnp.zeros((H,), jnp.float32), enc)
    return enc.T[None, :, :], c.T[None, :, :], None


if __name__ == "__main__":
    key = jax.random.PRNGKey(0)
    pkey, xkey = jax.random.split(key)
    params = init_params(pkey)
    packed = pack_params(params)

    # 1280 raw audio samples -> encoder downsamples by 160 -> T' = 8
    x = jax.random.normal(xkey, (1, 1280), jnp.float32)

    fwd = jax.jit(pretrained_cpc_forward)
    encoded, cfeat, extra = fwd(packed, x)
    jax.block_until_ready(encoded)
    jax.block_until_ready(cfeat)

    assert encoded.shape == (1, ENC_C, 8), encoded.shape
    assert cfeat.shape == (1, GRU_H, 8), cfeat.shape
    assert extra is None
    assert bool(jnp.all(jnp.isfinite(encoded))) and bool(jnp.all(jnp.isfinite(cfeat)))

    # Verify against a pure-JAX reference of the same module.
    enc_ref, c_ref, _ = cpc_forward_reference(params, x)
    enc_err = float(jnp.max(jnp.abs(encoded - enc_ref)))
    c_err = float(jnp.max(jnp.abs(cfeat - c_ref)))
    assert enc_err < 5e-2, f"encoder mismatch: {enc_err}"
    assert c_err < 5e-2, f"GRU mismatch: {c_err}"
    print("KERNEL_OK")
</pallas_src>

<mosaic_0001>
module attributes {stable_mosaic.version = 11 : i64} {
  func.func private @main(%arg0: i32) attributes {dimension_semantics = [#tpu.dimension_semantics<core_parallel>], iteration_bounds = array<i64: 2>, tpu.core_type = #tpu.core_type<sc_scalar_subcore>, window_params = []} {
    return
  }
}

module attributes {stable_mosaic.version = 11 : i64} {
  func.func private @main(%arg0: i32) attributes {dimension_semantics = [#tpu.dimension_semantics<core_parallel>], iteration_bounds = array<i64: 2>, tpu.core_type = #tpu.core_type<sc_scalar_subcore>, window_params = []} {
    return
  }
}

module attributes {stable_mosaic.version = 11 : i64} {
  func.func @_cpc_fused_kernel(%arg0: memref<256x10xf32, #tpu.memory_space<vmem>>, %arg1: memref<10x128xf32, #tpu.memory_space<vmem>>, %arg2: memref<2560x128xf32, #tpu.memory_space<vmem>>, %arg3: memref<15x128xf32, #tpu.memory_space<vmem>>, %arg4: memref<64x253xf32, #tpu.memory_space<vmem>>, %arg5: memref<32x63xf32, #tpu.memory_space<vmem>>, %arg6: memref<16x31xf32, #tpu.memory_space<vmem>>, %arg7: memref<8x15xf32, #tpu.memory_space<vmem>>, %arg8: memref<128x384xf32, #tpu.memory_space<vmem>>, %arg9: memref<1x384xf32, #tpu.memory_space<vmem>>, %arg10: memref<128x384xf32, #tpu.memory_space<vmem>>, %arg11: memref<1x384xf32, #tpu.memory_space<vmem>>, %arg12: memref<8x128xf32, #tpu.memory_space<vmem>>, %arg13: memref<8x128xf32, #tpu.memory_space<vmem>>, %arg14: memref<264x128xf32, #tpu.memory_space<vmem>>, %arg15: memref<256x128xf32, #tpu.memory_space<vmem>>) attributes {dimension_semantics = [], scalar_prefetch = 0 : i64, scratch_operands = 2 : i64, tpu.core_type = #tpu.core_type<tc>} {
    %0 = tpu.iota {dimensions = array<i32: 1>} : vector<1x128xi32>
    %c32_i32 = arith.constant 32 : i32
    %1 = vector.broadcast %c32_i32 : i32 to vector<1x128xi32>
    %2 = arith.cmpi slt, %0, %1 : vector<1x128xi32>
    %3 = arith.extui %2 : vector<1x128xi1> to vector<1x128xi32>
    %4 = arith.sitofp %3 : vector<1x128xi32> to vector<1x128xf32>
    %c0 = arith.constant 0 : index
    %c0_0 = arith.constant 0 : index
    %5 = vector.load %arg0[%c0, %c0_0] : memref<256x10xf32, #tpu.memory_space<vmem>>, vector<256x10xf32>
    %c0_1 = arith.constant 0 : index
    %c0_2 = arith.constant 0 : index
    %6 = vector.load %arg1[%c0_1, %c0_2] : memref<10x128xf32, #tpu.memory_space<vmem>>, vector<10x128xf32>
    %cst = arith.constant dense<0.000000e+00> : vector<256x128xf32>
    %7 = tpu.matmul %5, %6, %cst {dimension_numbers = #tpu.dot_dimension_numbers<[1], [0], [0], [1], [0, 0, 1, 1], [], []>} : vector<256x10xf32>, vector<10x128xf32>, vector<256x128xf32> -> vector<256x128xf32>
    %c0_3 = arith.constant 0 : index
    %c0_4 = arith.constant 0 : index
    %8 = vector.load %arg3[%c0_3, %c0_4] : memref<15x128xf32, #tpu.memory_space<vmem>>, vector<1x128xf32>
    %9 = vector.broadcast %8 : vector<1x128xf32> to vector<256x128xf32>
    %10 = arith.addf %7, %9 : vector<256x128xf32>
    %c1 = arith.constant 1 : index
    %c0_5 = arith.constant 0 : index
    %11 = vector.load %arg3[%c1, %c0_5] : memref<15x128xf32, #tpu.memory_space<vmem>>, vector<1x128xf32>
    %c2 = arith.constant 2 : index
    %c0_6 = arith.constant 0 : index
    %12 = vector.load %arg3[%c2, %c0_6] : memref<15x128xf32, #tpu.memory_space<vmem>>, vector<1x128xf32>
    %13 = vector.broadcast %4 : vector<1x128xf32> to vector<256x128xf32>
    %14 = arith.mulf %10, %13 : vector<256x128xf32>
    %cst_7 = arith.constant dense<0.000000e+00> : vector<256xf32>
    %15 = vector.multi_reduction <add>, %14, %cst_7 [1] : vector<256x128xf32> to vector<256xf32>
    %16 = vector.shape_cast %15 : vector<256xf32> to vector<256x1xf32>
    %cst_8 = arith.constant 3.125000e-02 : f32
    %17 = vector.broadcast %cst_8 : f32 to vector<256x1xf32>
    %18 = arith.mulf %16, %17 : vector<256x1xf32>
    %19 = vector.broadcast %18 : vector<256x1xf32> to vector<256x128xf32>
    %20 = arith.subf %10, %19 : vector<256x128xf32>
    %21 = vector.broadcast %4 : vector<1x128xf32> to vector<256x128xf32>
    %22 = arith.mulf %20, %21 : vector<256x128xf32>
    %23 = arith.mulf %22, %22 : vector<256x128xf32>
    %cst_9 = arith.constant dense<0.000000e+00> : vector<256xf32>
    %24 = vector.multi_reduction <add>, %23, %cst_9 [1] : vector<256x128xf32> to vector<256xf32>
    %25 = vector.shape_cast %24 : vector<256xf32> to vector<256x1xf32>
    %cst_10 = arith.constant 0.0322580636 : f32
    %26 = vector.broadcast %cst_10 : f32 to vector<256x1xf32>
    %27 = arith.mulf %25, %26 : vector<256x1xf32>
    %cst_11 = arith.constant 9.99999974E-6 : f32
    %28 = vector.broadcast %cst_11 : f32 to vector<256x1xf32>
    %29 = arith.addf %27, %28 : vector<256x1xf32>
    %30 = math.rsqrt %29 : vector<256x1xf32>
    %31 = vector.broadcast %30 : vector<256x1xf32> to vector<256x128xf32>
    %32 = arith.mulf %22, %31 : vector<256x128xf32>
    %33 = vector.broadcast %11 : vector<1x128xf32> to vector<256x128xf32>
    %34 = arith.mulf %32, %33 : vector<256x128xf32>
    %35 = vector.broadcast %12 : vector<1x128xf32> to vector<256x128xf32>
    %36 = arith.addf %34, %35 : vector<256x128xf32>
    %cst_12 = arith.constant 0.000000e+00 : f32
    %37 = vector.broadcast %cst_12 : f32 to vector<256x128xf32>
    %38 = arith.maximumf %36, %37 : vector<256x128xf32>
    %cst_13 = arith.constant 0.000000e+00 : f32
    %39 = vector.broadcast %cst_13 : f32 to vector<260x128xf32>
    %c0_14 = arith.constant 0 : index
    %c0_15 = arith.constant 0 : index
    %40 = vector.load %arg14[%c0_14, %c0_15] : memref<264x128xf32, #tpu.memory_space<vmem>>, vector<260x128xf32>
    tpu.vector_store %arg14[%c0_14, %c0_15], %39 {strides = array<i32>} : memref<264x128xf32, #tpu.memory_space<vmem>>, vector<260x128xf32>,
    %c2_16 = arith.constant 2 : index
    %c0_17 = arith.constant 0 : index
    %41 = vector.load %arg14[%c2_16, %c0_17] : memref<264x128xf32, #tpu.memory_space<vmem>>, vector<256x128xf32>
    tpu.vector_store %arg14[%c2_16, %c0_17], %38 {strides = array<i32>} : memref<264x128xf32, #tpu.memory_space<vmem>>, vector<256x128xf32>,
    %c3 = arith.constant 3 : index
    %c0_18 = arith.constant 0 : index
    %42 = vector.load %arg3[%c3, %c0_18] : memref<15x128xf32, #tpu.memory_space<vmem>>, vector<1x128xf32>
    %43 = vector.shape_cast %42 : vector<1x128xf32> to vector<1x128xf32>
    %44 = vector.broadcast %43 : vector<1x128xf32> to vector<253x128xf32>
    %c0_19 = arith.constant 0 : index
    %c0_20 = arith.constant 0 : index
    %45 = vector.load %arg15[%c0_19, %c0_20] : memref<256x128xf32, #tpu.memory_space<vmem>>, vector<253x128xf32>
    tpu.vector_store %arg15[%c0_19, %c0_20], %44 {strides = array<i32>} : memref<256x128xf32, #tpu.memory_space<vmem>>, vector<253x128xf32>,
    %c0_21 = arith.constant 0 : index
    %c0_22 = arith.constant 0 : index
    %46 = vector.load %arg14[%c0_21, %c0_22] : memref<264x128xf32, #tpu.memory_space<vmem>>, vector<253x128xf32>
    %c0_23 = arith.constant 0 : index
    %c0_24 = arith.constant 0 : index
    %47 = vector.load %arg2[%c0_23, %c0_24] : memref<2560x128xf32, #tpu.memory_space<vmem>>, vector<128x128xf32>
    %c0_25 = arith.constant 0 : index
    %c0_26 = arith.constant 0 : index
    %48 = vector.load %arg15[%c0_25, %c0_26] : memref<256x128xf32, #tpu.memory_space<vmem>>, vector<253x128xf32>
    %cst_27 = arith.constant dense<0.000000e+00> : vector<253x128xf32>
    %49 = tpu.matmul %46, %47, %cst_27 {dimension_numbers = #tpu.dot_dimension_numbers<[1], [0], [0], [1], [0, 0, 1, 1], [], []>} : vector<253x128xf32>, vector<128x128xf32>, vector<253x128xf32> -> vector<253x128xf32>
    %50 = arith.addf %48, %49 : vector<253x128xf32>
    %c0_28 = arith.constant 0 : index
    %c0_29 = arith.constant 0 : index
    %51 = vector.load %arg15[%c0_28, %c0_29] : memref<256x128xf32, #tpu.memory_space<vmem>>, vector<253x128xf32>
    tpu.vector_store %arg15[%c0_28, %c0_29], %50 {strides = array<i32>} : memref<256x128xf32, #tpu.memory_space<vmem>>, vector<253x128xf32>,
    %c1_30 = arith.constant 1 : index
    %c0_31 = arith.constant 0 : index
    %52 = vector.load %arg14[%c1_30, %c0_31] : memref<264x128xf32, #tpu.memory_space<vmem>>, vector<253x128xf32>
    %c128 = arith.constant 128 : index
    %c0_32 = arith.constant 0 : index
    %53 = vector.load %arg2[%c128, %c0_32] : memref<2560x128xf32, #tpu.memory_space<vmem>>, vector<128x128xf32>
    %c0_33 = arith.constant 0 : index
    %c0_34 = arith.constant 0 : index
    %54 = vector.load %arg15[%c0_33, %c0_34] : memref<256x128xf32, #tpu.memory_space<vmem>>, vector<253x128xf32>
    %cst_35 = arith.constant dense<0.000000e+00> : vector<253x128xf32>
    %55 = tpu.matmul %52, %53, %cst_35 {dimension_numbers = #tpu.dot_dimension_numbers<[1], [0], [0], [1], [0, 0, 1, 1], [], []>} : vector<253x128xf32>, vector<128x128xf32>, vector<253x128xf32> -> vector<253x128xf32>
    %56 = arith.addf %54, %55 : vector<253x128xf32>
    %c0_36 = arith.constant 0 : index
    %c0_37 = arith.constant 0 : index
    %57 = vector.load %arg15[%c0_36, %c0_37] : memref<256x128xf32, #tpu.memory_space<vmem>>, vector<253x128xf32>
    tpu.vector_store %arg15[%c0_36, %c0_37], %56 {strides = array<i32>} : memref<256x128xf32, #tpu.memory_space<vmem>>, vector<253x128xf32>,
    %c2_38 = arith.constant 2 : index
    %c0_39 = arith.constant 0 : index
    %58 = vector.load %arg14[%c2_38, %c0_39] : memref<264x128xf32, #tpu.memory_space<vmem>>, vector<253x128xf32>
    %c256 = arith.constant 256 : index
    %c0_40 = arith.constant 0 : index
    %59 = vector.load %arg2[%c256, %c0_40] : memref<2560x128xf32, #tpu.memory_space<vmem>>, vector<128x128xf32>
    %c0_41 = arith.constant 0 : index
    %c0_42 = arith.constant 0 : index
    %60 = vector.load %arg15[%c0_41, %c0_42] : memref<256x128xf32, #tpu.memory_space<vmem>>, vector<253x128xf32>
    %cst_43 = arith.constant dense<0.000000e+00> : vector<253x128xf32>
    %61 = tpu.matmul %58, %59, %cst_43 {dimension_numbers = #tpu.dot_dimension_numbers<[1], [0], [0], [1], [0, 0, 1, 1], [], []>} : vector<253x128xf32>, vector<128x128xf32>, vector<253x128xf32> -> vector<253x128xf32>
    %62 = arith.addf %60, %61 : vector<253x128xf32>
    %c0_44 = arith.constant 0 : index
    %c0_45 = arith.constant 0 : index
    %63 = vector.load %arg15[%c0_44, %c0_45] : memref<256x128xf32, #tpu.memory_space<vmem>>, vector<253x128xf32>
    tpu.vector_store %arg15[%c0_44, %c0_45], %62 {strides = array<i32>} : memref<256x128xf32, #tpu.memory_space<vmem>>, vector<253x128xf32>,
    %c3_46 = arith.constant 3 : index
    %c0_47 = arith.constant 0 : index
    %64 = vector.load %arg14[%c3_46, %c0_47] : memref<264x128xf32, #tpu.memory_space<vmem>>, vector<253x128xf32>
    %c384 = arith.constant 384 : index
    %c0_48 = arith.constant 0 : index
    %65 = vector.load %arg2[%c384, %c0_48] : memref<2560x128xf32, #tpu.memory_space<vmem>>, vector<128x128xf32>
    %c0_49 = arith.constant 0 : index
    %c0_50 = arith.constant 0 : index
    %66 = vector.load %arg15[%c0_49, %c0_50] : memref<256x128xf32, #tpu.memory_space<vmem>>, vector<253x128xf32>
    %cst_51 = arith.constant dense<0.000000e+00> : vector<253x128xf32>
    %67 = tpu.matmul %64, %65, %cst_51 {dimension_numbers = #tpu.dot_dimension_numbers<[1], [0], [0], [1], [0, 0, 1, 1], [], []>} : vector<253x128xf32>, vector<128x128xf32>, vector<253x128xf32> -> vector<253x128xf32>
    %68 = arith.addf %66, %67 : vector<253x128xf32>
    %c0_52 = arith.constant 0 : index
    %c0_53 = arith.constant 0 : index
    %69 = vector.load %arg15[%c0_52, %c0_53] : memref<256x128xf32, #tpu.memory_space<vmem>>, vector<253x128xf32>
    tpu.vector_store %arg15[%c0_52, %c0_53], %68 {strides = array<i32>} : memref<256x128xf32, #tpu.memory_space<vmem>>, vector<253x128xf32>,
    %c4 = arith.constant 4 : index
    %c0_54 = arith.constant 0 : index
    %70 = vector.load %arg14[%c4, %c0_54] : memref<264x128xf32, #tpu.memory_space<vmem>>, vector<253x128xf32>
    %c512 = arith.constant 512 : index
    %c0_55 = arith.constant 0 : index
    %71 = vector.load %arg2[%c512, %c0_55] : memref<2560x128xf32, #tpu.memory_space<vmem>>, vector<128x128xf32>
    %c0_56 = arith.constant 0 : index
    %c0_57 = arith.constant 0 : index
    %72 = vector.load %arg15[%c0_56, %c0_57] : memref<256x128xf32, #tpu.memory_space<vmem>>, vector<253x128xf32>
    %cst_58 = arith.constant dense<0.000000e+00> : vector<253x128xf32>
    %73 = tpu.matmul %70, %71, %cst_58 {dimension_numbers = #tpu.dot_dimension_numbers<[1], [0], [0], [1], [0, 0, 1, 1], [], []>} : vector<253x128xf32>, vector<128x128xf32>, vector<253x128xf32> -> vector<253x128xf32>
    %74 = arith.addf %72, %73 : vector<253x128xf32>
    %c0_59 = arith.constant 0 : index
    %c0_60 = arith.constant 0 : index
    %75 = vector.load %arg15[%c0_59, %c0_60] : memref<256x128xf32, #tpu.memory_space<vmem>>, vector<253x128xf32>
    tpu.vector_store %arg15[%c0_59, %c0_60], %74 {strides = array<i32>} : memref<256x128xf32, #tpu.memory_space<vmem>>, vector<253x128xf32>,
    %c5 = arith.constant 5 : index
    %c0_61 = arith.constant 0 : index
    %76 = vector.load %arg14[%c5, %c0_61] : memref<264x128xf32, #tpu.memory_space<vmem>>, vector<253x128xf32>
    %c640 = arith.constant 640 : index
    %c0_62 = arith.constant 0 : index
    %77 = vector.load %arg2[%c640, %c0_62] : memref<2560x128xf32, #tpu.memory_space<vmem>>, vector<128x128xf32>
    %c0_63 = arith.constant 0 : index
    %c0_64 = arith.constant 0 : index
    %78 = vector.load %arg15[%c0_63, %c0_64] : memref<256x128xf32, #tpu.memory_space<vmem>>, vector<253x128xf32>
    %cst_65 = arith.constant dense<0.000000e+00> : vector<253x128xf32>
    %79 = tpu.matmul %76, %77, %cst_65 {dimension_numbers = #tpu.dot_dimension_numbers<[1], [0], [0], [1], [0, 0, 1, 1], [], []>} : vector<253x128xf32>, vector<128x128xf32>, vector<253x128xf32> -> vector<253x128xf32>
    %80 = arith.addf %78, %79 : vector<253x128xf32>
    %c0_66 = arith.constant 0 : index
    %c0_67 = arith.constant 0 : index
    %81 = vector.load %arg15[%c0_66, %c0_67] : memref<256x128xf32, #tpu.memory_space<vmem>>, vector<253x128xf32>
    tpu.vector_store %arg15[%c0_66, %c0_67], %80 {strides = array<i32>} : memref<256x128xf32, #tpu.memory_space<vmem>>, vector<253x128xf32>,
    %c6 = arith.constant 6 : index
    %c0_68 = arith.constant 0 : index
    %82 = vector.load %arg14[%c6, %c0_68] : memref<264x128xf32, #tpu.memory_space<vmem>>, vector<253x128xf32>
    %c768 = arith.constant 768 : index
    %c0_69 = arith.constant 0 : index
    %83 = vector.load %arg2[%c768, %c0_69] : memref<2560x128xf32, #tpu.memory_space<vmem>>, vector<128x128xf32>
    %c0_70 = arith.constant 0 : index
    %c0_71 = arith.constant 0 : index
    %84 = vector.load %arg15[%c0_70, %c0_71] : memref<256x128xf32, #tpu.memory_space<vmem>>, vector<253x128xf32>
    %cst_72 = arith.constant dense<0.000000e+00> : vector<253x128xf32>
    %85 = tpu.matmul %82, %83, %cst_72 {dimension_numbers = #tpu.dot_dimension_numbers<[1], [0], [0], [1], [0, 0, 1, 1], [], []>} : vector<253x128xf32>, vector<128x128xf32>, vector<253x128xf32> -> vector<253x128xf32>
    %86 = arith.addf %84, %85 : vector<253x128xf32>
    %c0_73 = arith.constant 0 : index
    %c0_74 = arith.constant 0 : index
    %87 = vector.load %arg15[%c0_73, %c0_74] : memref<256x128xf32, #tpu.memory_space<vmem>>, vector<253x128xf32>
    tpu.vector_store %arg15[%c0_73, %c0_74], %86 {strides = array<i32>} : memref<256x128xf32, #tpu.memory_space<vmem>>, vector<253x128xf32>,
    %c7 = arith.constant 7 : index
    %c0_75 = arith.constant 0 : index
    %88 = vector.load %arg14[%c7, %c0_75] : memref<264x128xf32, #tpu.memory_space<vmem>>, vector<253x128xf32>
    %c896 = arith.constant 896 : index
    %c0_76 = arith.constant 0 : index
    %89 = vector.load %arg2[%c896, %c0_76] : memref<2560x128xf32, #tpu.memory_space<vmem>>, vector<128x128xf32>
    %c0_77 = arith.constant 0 : index
    %c0_78 = arith.constant 0 : index
    %90 = vector.load %arg15[%c0_77, %c0_78] : memref<256x128xf32, #tpu.memory_space<vmem>>, vector<253x128xf32>
    %cst_79 = arith.constant dense<0.000000e+00> : vector<253x128xf32>
    %91 = tpu.matmul %88, %89, %cst_79 {dimension_numbers = #tpu.dot_dimension_numbers<[1], [0], [0], [1], [0, 0, 1, 1], [], []>} : vector<253x128xf32>, vector<128x128xf32>, vector<253x128xf32> -> vector<253x128xf32>
    %92 = arith.addf %90, %91 : vector<253x128xf32>
    %c0_80 = arith.constant 0 : index
    %c0_81 = arith.constant 0 : index
    %93 = vector.load %arg15[%c0_80, %c0_81] : memref<256x128xf32, #tpu.memory_space<vmem>>, vector<253x128xf32>
    tpu.vector_store %arg15[%c0_80, %c0_81], %92 {strides = array<i32>} : memref<256x128xf32, #tpu.memory_space<vmem>>, vector<253x128xf32>,
    %c0_82 = arith.constant 0 : index
    %c0_83 = arith.constant 0 : index
    %94 = vector.load %arg4[%c0_82, %c0_83] : memref<64x253xf32, #tpu.memory_space<vmem>>, vector<64x253xf32>
    %c0_84 = arith.constant 0 : index
    %c0_85 = arith.constant 0 : index
    %95 = vector.load %arg15[%c0_84, %c0_85] : memref<256x128xf32, #tpu.memory_space<vmem>>, vector<253x128xf32>
    %cst_86 = arith.constant dense<0.000000e+00> : vector<64x128xf32>
    %96 = tpu.matmul %94, %95, %cst_86 {dimension_numbers = #tpu.dot_dimension_numbers<[1], [0], [0], [1], [0, 0, 1, 1], [], []>} : vector<64x253xf32>, vector<253x128xf32>, vector<64x128xf32> -> vector<64x128xf32>
    %c4_87 = arith.constant 4 : index
    %c0_88 = arith.constant 0 : index
    %97 = vector.load %arg3[%c4_87, %c0_88] : memref<15x128xf32, #tpu.memory_space<vmem>>, vector<1x128xf32>
    %c5_89 = arith.constant 5 : index
    %c0_90 = arith.constant 0 : index
    %98 = vector.load %arg3[%c5_89, %c0_90] : memref<15x128xf32, #tpu.memory_space<vmem>>, vector<1x128xf32>
    %99 = vector.broadcast %4 : vector<1x128xf32> to vector<64x128xf32>
    %100 = arith.mulf %96, %99 : vector<64x128xf32>
    %cst_91 = arith.constant dense<0.000000e+00> : vector<64xf32>
    %101 = vector.multi_reduction <add>, %100, %cst_91 [1] : vector<64x128xf32> to vector<64xf32>
    %102 = vector.shape_cast %101 : vector<64xf32> to vector<64x1xf32>
    %cst_92 = arith.constant 3.125000e-02 : f32
    %103 = vector.broadcast %cst_92 : f32 to vector<64x1xf32>
    %104 = arith.mulf %102, %103 : vector<64x1xf32>
    %105 = vector.broadcast %104 : vector<64x1xf32> to vector<64x128xf32>
    %106 = arith.subf %96, %105 : vector<64x128xf32>
    %107 = vector.broadcast %4 : vector<1x128xf32> to vector<64x128xf32>
    %108 = arith.mulf %106, %107 : vector<64x128xf32>
    %109 = arith.mulf %108, %108 : vector<64x128xf32>
    %cst_93 = arith.constant dense<0.000000e+00> : vector<64xf32>
    %110 = vector.multi_reduction <add>, %109, %cst_93 [1] : vector<64x128xf32> to vector<64xf32>
    %111 = vector.shape_cast %110 : vector<64xf32> to vector<64x1xf32>
    %cst_94 = arith.constant 0.0322580636 : f32
    %112 = vector.broadcast %cst_94 : f32 to vector<64x1xf32>
    %113 = arith.mulf %111, %112 : vector<64x1xf32>
    %cst_95 = arith.constant 9.99999974E-6 : f32
    %114 = vector.broadcast %cst_95 : f32 to vector<64x1xf32>
    %115 = arith.addf %113, %114 : vector<64x1xf32>
    %116 = math.rsqrt %115 : vector<64x1xf32>
    %117 = vector.broadcast %116 : vector<64x1xf32> to vector<64x128xf32>
    %118 = arith.mulf %108, %117 : vector<64x128xf32>
    %119 = vector.broadcast %97 : vector<1x128xf32> to vector<64x128xf32>
    %120 = arith.mulf %118, %119 : vector<64x128xf32>
    %121 = vector.broadcast %98 : vector<1x128xf32> to vector<64x128xf32>
    %122 = arith.addf %120, %121 : vector<64x128xf32>
    %cst_96 = arith.constant 0.000000e+00 : f32
    %123 = vector.broadcast %cst_96 : f32 to vector<64x128xf32>
    %124 = arith.maximumf %122, %123 : vector<64x128xf32>
    %cst_97 = arith.constant 0.000000e+00 : f32
    %125 = vector.broadcast %cst_97 : f32 to vector<66x128xf32>
    %c0_98 = arith.constant 0 : index
    %c0_99 = arith.constant 0 : index
    %126 = vector.load %arg14[%c0_98, %c0_99] : memref<264x128xf32, #tpu.memory_space<vmem>>, vector<66x128xf32>
    tpu.vector_store %arg14[%c0_98, %c0_99], %125 {strides = array<i32>} : memref<264x128xf32, #tpu.memory_space<vmem>>, vector<66x128xf32>,
    %c1_100 = arith.constant 1 : index
    %c0_101 = arith.constant 0 : index
    %127 = vector.load %arg14[%c1_100, %c0_101] : memref<264x128xf32, #tpu.memory_space<vmem>>, vector<64x128xf32>
    tpu.vector_store %arg14[%c1_100, %c0_101], %124 {strides = array<i32>} : memref<264x128xf32, #tpu.memory_space<vmem>>, vector<64x128xf32>,
    %c6_102 = arith.constant 6 : index
    %c0_103 = arith.constant 0 : index
    %128 = vector.load %arg3[%c6_102, %c0_103] : memref<15x128xf32, #tpu.memory_space<vmem>>, vector<1x128xf32>
    %129 = vector.shape_cast %128 : vector<1x128xf32> to vector<1x128xf32>
    %130 = vector.broadcast %129 : vector<1x128xf32> to vector<63x128xf32>
    %c0_104 = arith.constant 0 : index
    %c0_105 = arith.constant 0 : index
    %131 = vector.load %arg15[%c0_104, %c0_105] : memref<256x128xf32, #tpu.memory_space<vmem>>, vector<63x128xf32>
    tpu.vector_store %arg15[%c0_104, %c0_105], %130 {strides = array<i32>} : memref<256x128xf32, #tpu.memory_space<vmem>>, vector<63x128xf32>,
    %c0_106 = arith.constant 0 : index
    %c0_107 = arith.constant 0 : index
    %132 = vector.load %arg14[%c0_106, %c0_107] : memref<264x128xf32, #tpu.memory_space<vmem>>, vector<63x128xf32>
    %c1024 = arith.constant 1024 : index
    %c0_108 = arith.constant 0 : index
    %133 = vector.load %arg2[%c1024, %c0_108] : memref<2560x128xf32, #tpu.memory_space<vmem>>, vector<128x128xf32>
    %c0_109 = arith.constant 0 : index
    %c0_110 = arith.constant 0 : index
    %134 = vector.load %arg15[%c0_109, %c0_110] : memref<256x128xf32, #tpu.memory_space<vmem>>, vector<63x128xf32>
    %cst_111 = arith.constant dense<0.000000e+00> : vector<63x128xf32>
    %135 = tpu.matmul %132, %133, %cst_111 {dimension_numbers = #tpu.dot_dimension_numbers<[1], [0], [0], [1], [0, 0, 1, 1], [], []>} : vector<63x128xf32>, vector<128x128xf32>, vector<63x128xf32> -> vector<63x128xf32>
    %136 = arith.addf %134, %135 : vector<63x128xf32>
    %c0_112 = arith.constant 0 : index
    %c0_113 = arith.constant 0 : index
    %137 = vector.load %arg15[%c0_112, %c0_113] : memref<256x128xf32, #tpu.memory_space<vmem>>, vector<63x128xf32>
    tpu.vector_store %arg15[%c0_112, %c0_113], %136 {strides = array<i32>} : memref<256x128xf32, #tpu.memory_space<vmem>>, vector<63x128xf32>,
    %c1_114 = arith.constant 1 : index
    %c0_115 = arith.constant 0 : index
    %138 = vector.load %arg14[%c1_114, %c0_115] : memref<264x128xf32, #tpu.memory_space<vmem>>, vector<63x128xf32>
    %c1152 = arith.constant 1152 : index
    %c0_116 = arith.constant 0 : index
    %139 = vector.load %arg2[%c1152, %c0_116] : memref<2560x128xf32, #tpu.memory_space<vmem>>, vector<128x128xf32>
    %c0_117 = arith.constant 0 : index
    %c0_118 = arith.constant 0 : index
    %140 = vector.load %arg15[%c0_117, %c0_118] : memref<256x128xf32, #tpu.memory_space<vmem>>, vector<63x128xf32>
    %cst_119 = arith.constant dense<0.000000e+00> : vector<63x128xf32>
    %141 = tpu.matmul %138, %139, %cst_119 {dimension_numbers = #tpu.dot_dimension_numbers<[1], [0], [0], [1], [0, 0, 1, 1], [], []>} : vector<63x128xf32>, vector<128x128xf32>, vector<63x128xf32> -> vector<63x128xf32>
    %142 = arith.addf %140, %141 : vector<63x128xf32>
    %c0_120 = arith.constant 0 : index
    %c0_121 = arith.constant 0 : index
    %143 = vector.load %arg15[%c0_120, %c0_121] : memref<256x128xf32, #tpu.memory_space<vmem>>, vector<63x128xf32>
    tpu.vector_store %arg15[%c0_120, %c0_121], %142 {strides = array<i32>} : memref<256x128xf32, #tpu.memory_space<vmem>>, vector<63x128xf32>,
    %c2_122 = arith.constant 2 : index
    %c0_123 = arith.constant 0 : index
    %144 = vector.load %arg14[%c2_122, %c0_123] : memref<264x128xf32, #tpu.memory_space<vmem>>, vector<63x128xf32>
    %c1280 = arith.constant 1280 : index
    %c0_124 = arith.constant 0 : index
    %145 = vector.load %arg2[%c1280, %c0_124] : memref<2560x128xf32, #tpu.memory_space<vmem>>, vector<128x128xf32>
    %c0_125 = arith.constant 0 : index
    %c0_126 = arith.constant 0 : index
    %146 = vector.load %arg15[%c0_125, %c0_126] : memref<256x128xf32, #tpu.memory_space<vmem>>, vector<63x128xf32>
    %cst_127 = arith.constant dense<0.000000e+00> : vector<63x128xf32>
    %147 = tpu.matmul %144, %145, %cst_127 {dimension_numbers = #tpu.dot_dimension_numbers<[1], [0], [0], [1], [0, 0, 1, 1], [], []>} : vector<63x128xf32>, vector<128x128xf32>, vector<63x128xf32> -> vector<63x128xf32>
    %148 = arith.addf %146, %147 : vector<63x128xf32>
    %c0_128 = arith.constant 0 : index
    %c0_129 = arith.constant 0 : index
    %149 = vector.load %arg15[%c0_128, %c0_129] : memref<256x128xf32, #tpu.memory_space<vmem>>, vector<63x128xf32>
    tpu.vector_store %arg15[%c0_128, %c0_129], %148 {strides = array<i32>} : memref<256x128xf32, #tpu.memory_space<vmem>>, vector<63x128xf32>,
    %c3_130 = arith.constant 3 : index
    %c0_131 = arith.constant 0 : index
    %150 = vector.load %arg14[%c3_130, %c0_131] : memref<264x128xf32, #tpu.memory_space<vmem>>, vector<63x128xf32>
    %c1408 = arith.constant 1408 : index
    %c0_132 = arith.constant 0 : index
    %151 = vector.load %arg2[%c1408, %c0_132] : memref<2560x128xf32, #tpu.memory_space<vmem>>, vector<128x128xf32>
    %c0_133 = arith.constant 0 : index
    %c0_134 = arith.constant 0 : index
    %152 = vector.load %arg15[%c0_133, %c0_134] : memref<256x128xf32, #tpu.memory_space<vmem>>, vector<63x128xf32>
    %cst_135 = arith.constant dense<0.000000e+00> : vector<63x128xf32>
    %153 = tpu.matmul %150, %151, %cst_135 {dimension_numbers = #tpu.dot_dimension_numbers<[1], [0], [0], [1], [0, 0, 1, 1], [], []>} : vector<63x128xf32>, vector<128x128xf32>, vector<63x128xf32> -> vector<63x128xf32>
    %154 = arith.addf %152, %153 : vector<63x128xf32>
    %c0_136 = arith.constant 0 : index
    %c0_137 = arith.constant 0 : index
    %155 = vector.load %arg15[%c0_136, %c0_137] : memref<256x128xf32, #tpu.memory_space<vmem>>, vector<63x128xf32>
    tpu.vector_store %arg15[%c0_136, %c0_137], %154 {strides = array<i32>} : memref<256x128xf32, #tpu.memory_space<vmem>>, vector<63x128xf32>,
    %c0_138 = arith.constant 0 : index
    %c0_139 = arith.constant 0 : index
    %156 = vector.load %arg5[%c0_138, %c0_139] : memref<32x63xf32, #tpu.memory_space<vmem>>, vector<32x63xf32>
    %c0_140 = arith.constant 0 : index
    %c0_141 = arith.constant 0 : index
    %157 = vector.load %arg15[%c0_140, %c0_141] : memref<256x128xf32, #tpu.memory_space<vmem>>, vector<63x128xf32>
    %cst_142 = arith.constant dense<0.000000e+00> : vector<32x128xf32>
    %158 = tpu.matmul %156, %157, %cst_142 {dimension_numbers = #tpu.dot_dimension_numbers<[1], [0], [0], [1], [0, 0, 1, 1], [], []>} : vector<32x63xf32>, vector<63x128xf32>, vector<32x128xf32> -> vector<32x128xf32>
    %c7_143 = arith.constant 7 : index
    %c0_144 = arith.constant 0 : index
    %159 = vector.load %arg3[%c7_143, %c0_144] : memref<15x128xf32, #tpu.memory_space<vmem>>, vector<1x128xf32>
    %c8 = arith.constant 8 : index
    %c0_145 = arith.constant 0 : index
    %160 = vector.load %arg3[%c8, %c0_145] : memref<15x128xf32, #tpu.memory_space<vmem>>, vector<1x128xf32>
    %161 = vector.broadcast %4 : vector<1x128xf32> to vector<32x128xf32>
    %162 = arith.mulf %158, %161 : vector<32x128xf32>
    %cst_146 = arith.constant dense<0.000000e+00> : vector<32xf32>
    %163 = vector.multi_reduction <add>, %162, %cst_146 [1] : vector<32x128xf32> to vector<32xf32>
    %164 = vector.shape_cast %163 : vector<32xf32> to vector<32x1xf32>
    %cst_147 = arith.constant 3.125000e-02 : f32
    %165 = vector.broadcast %cst_147 : f32 to vector<32x1xf32>
    %166 = arith.mulf %164, %165 : vector<32x1xf32>
    %167 = vector.broadcast %166 : vector<32x1xf32> to vector<32x128xf32>
    %168 = arith.subf %158, %167 : vector<32x128xf32>
    %169 = vector.broadcast %4 : vector<1x128xf32> to vector<32x128xf32>
    %170 = arith.mulf %168, %169 : vector<32x128xf32>
    %171 = arith.mulf %170, %170 : vector<32x128xf32>
    %cst_148 = arith.constant dense<0.000000e+00> : vector<32xf32>
    %172 = vector.multi_reduction <add>, %171, %cst_148 [1] : vector<32x128xf32> to vector<32xf32>
    %173 = vector.shape_cast %172 : vector<32xf32> to vector<32x1xf32>
    %cst_149 = arith.constant 0.0322580636 : f32
    %174 = vector.broadcast %cst_149 : f32 to vector<32x1xf32>
    %175 = arith.mulf %173, %174 : vector<32x1xf32>
    %cst_150 = arith.constant 9.99999974E-6 : f32
    %176 = vector.broadcast %cst_150 : f32 to vector<32x1xf32>
    %177 = arith.addf %175, %176 : vector<32x1xf32>
    %178 = math.rsqrt %177 : vector<32x1xf32>
    %179 = vector.broadcast %178 : vector<32x1xf32> to vector<32x128xf32>
    %180 = arith.mulf %170, %179 : vector<32x128xf32>
    %181 = vector.broadcast %159 : vector<1x128xf32> to vector<32x128xf32>
    %182 = arith.mulf %180, %181 : vector<32x128xf32>
    %183 = vector.broadcast %160 : vector<1x128xf32> to vector<32x128xf32>
    %184 = arith.addf %182, %183 : vector<32x128xf32>
    %cst_151 = arith.constant 0.000000e+00 : f32
    %185 = vector.broadcast %cst_151 : f32 to vector<32x128xf32>
    %186 = arith.maximumf %184, %185 : vector<32x128xf32>
    %cst_152 = arith.constant 0.000000e+00 : f32
    %187 = vector.broadcast %cst_152 : f32 to vector<34x128xf32>
    %c0_153 = arith.constant 0 : index
    %c0_154 = arith.constant 0 : index
    %188 = vector.load %arg14[%c0_153, %c0_154] : memref<264x128xf32, #tpu.memory_space<vmem>>, vector<34x128xf32>
    tpu.vector_store %arg14[%c0_153, %c0_154], %187 {strides = array<i32>} : memref<264x128xf32, #tpu.memory_space<vmem>>, vector<34x128xf32>,
    %c1_155 = arith.constant 1 : index
    %c0_156 = arith.constant 0 : index
    %189 = vector.load %arg14[%c1_155, %c0_156] : memref<264x128xf32, #tpu.memory_space<vmem>>, vector<32x128xf32>
    tpu.vector_store %arg14[%c1_155, %c0_156], %186 {strides = array<i32>} : memref<264x128xf32, #tpu.memory_space<vmem>>, vector<32x128xf32>,
    %c9 = arith.constant 9 : index
    %c0_157 = arith.constant 0 : index
    %190 = vector.load %arg3[%c9, %c0_157] : memref<15x128xf32, #tpu.memory_space<vmem>>, vector<1x128xf32>
    %191 = vector.shape_cast %190 : vector<1x128xf32> to vector<1x128xf32>
    %192 = vector.broadcast %191 : vector<1x128xf32> to vector<31x128xf32>
    %c0_158 = arith.constant 0 : index
    %c0_159 = arith.constant 0 : index
    %193 = vector.load %arg15[%c0_158, %c0_159] : memref<256x128xf32, #tpu.memory_space<vmem>>, vector<31x128xf32>
    tpu.vector_store %arg15[%c0_158, %c0_159], %192 {strides = array<i32>} : memref<256x128xf32, #tpu.memory_space<vmem>>, vector<31x128xf32>,
    %c0_160 = arith.constant 0 : index
    %c0_161 = arith.constant 0 : index
    %194 = vector.load %arg14[%c0_160, %c0_161] : memref<264x128xf32, #tpu.memory_space<vmem>>, vector<31x128xf32>
    %c1536 = arith.constant 1536 : index
    %c0_162 = arith.constant 0 : index
    %195 = vector.load %arg2[%c1536, %c0_162] : memref<2560x128xf32, #tpu.memory_space<vmem>>, vector<128x128xf32>
    %c0_163 = arith.constant 0 : index
    %c0_164 = arith.constant 0 : index
    %196 = vector.load %arg15[%c0_163, %c0_164] : memref<256x128xf32, #tpu.memory_space<vmem>>, vector<31x128xf32>
    %cst_165 = arith.constant dense<0.000000e+00> : vector<31x128xf32>
    %197 = tpu.matmul %194, %195, %cst_165 {dimension_numbers = #tpu.dot_dimension_numbers<[1], [0], [0], [1], [0, 0, 1, 1], [], []>} : vector<31x128xf32>, vector<128x128xf32>, vector<31x128xf32> -> vector<31x128xf32>
    %198 = arith.addf %196, %197 : vector<31x128xf32>
    %c0_166 = arith.constant 0 : index
    %c0_167 = arith.constant 0 : index
    %199 = vector.load %arg15[%c0_166, %c0_167] : memref<256x128xf32, #tpu.memory_space<vmem>>, vector<31x128xf32>
    tpu.vector_store %arg15[%c0_166, %c0_167], %198 {strides = array<i32>} : memref<256x128xf32, #tpu.memory_space<vmem>>, vector<31x128xf32>,
    %c1_168 = arith.constant 1 : index
    %c0_169 = arith.constant 0 : index
    %200 = vector.load %arg14[%c1_168, %c0_169] : memref<264x128xf32, #tpu.memory_space<vmem>>, vector<31x128xf32>
    %c1664 = arith.constant 1664 : index
    %c0_170 = arith.constant 0 : index
    %201 = vector.load %arg2[%c1664, %c0_170] : memref<2560x128xf32, #tpu.memory_space<vmem>>, vector<128x128xf32>
    %c0_171 = arith.constant 0 : index
    %c0_172 = arith.constant 0 : index
    %202 = vector.load %arg15[%c0_171, %c0_172] : memref<256x128xf32, #tpu.memory_space<vmem>>, vector<31x128xf32>
    %cst_173 = arith.constant dense<0.000000e+00> : vector<31x128xf32>
    %203 = tpu.matmul %200, %201, %cst_173 {dimension_numbers = #tpu.dot_dimension_numbers<[1], [0], [0], [1], [0, 0, 1, 1], [], []>} : vector<31x128xf32>, vector<128x128xf32>, vector<31x128xf32> -> vector<31x128xf32>
    %204 = arith.addf %202, %203 : vector<31x128xf32>
    %c0_174 = arith.constant 0 : index
    %c0_175 = arith.constant 0 : index
    %205 = vector.load %arg15[%c0_174, %c0_175] : memref<256x128xf32, #tpu.memory_space<vmem>>, vector<31x128xf32>
    tpu.vector_store %arg15[%c0_174, %c0_175], %204 {strides = array<i32>} : memref<256x128xf32, #tpu.memory_space<vmem>>, vector<31x128xf32>,
    %c2_176 = arith.constant 2 : index
    %c0_177 = arith.constant 0 : index
    %206 = vector.load %arg14[%c2_176, %c0_177] : memref<264x128xf32, #tpu.memory_space<vmem>>, vector<31x128xf32>
    %c1792 = arith.constant 1792 : index
    %c0_178 = arith.constant 0 : index
    %207 = vector.load %arg2[%c1792, %c0_178] : memref<2560x128xf32, #tpu.memory_space<vmem>>, vector<128x128xf32>
    %c0_179 = arith.constant 0 : index
    %c0_180 = arith.constant 0 : index
    %208 = vector.load %arg15[%c0_179, %c0_180] : memref<256x128xf32, #tpu.memory_space<vmem>>, vector<31x128xf32>
    %cst_181 = arith.constant dense<0.000000e+00> : vector<31x128xf32>
    %209 = tpu.matmul %206, %207, %cst_181 {dimension_numbers = #tpu.dot_dimension_numbers<[1], [0], [0], [1], [0, 0, 1, 1], [], []>} : vector<31x128xf32>, vector<128x128xf32>, vector<31x128xf32> -> vector<31x128xf32>
    %210 = arith.addf %208, %209 : vector<31x128xf32>
    %c0_182 = arith.constant 0 : index
    %c0_183 = arith.constant 0 : index
    %211 = vector.load %arg15[%c0_182, %c0_183] : memref<256x128xf32, #tpu.memory_space<vmem>>, vector<31x128xf32>
    tpu.vector_store %arg15[%c0_182, %c0_183], %210 {strides = array<i32>} : memref<256x128xf32, #tpu.memory_space<vmem>>, vector<31x128xf32>,
    %c3_184 = arith.constant 3 : index
    %c0_185 = arith.constant 0 : index
    %212 = vector.load %arg14[%c3_184, %c0_185] : memref<264x128xf32, #tpu.memory_space<vmem>>, vector<31x128xf32>
    %c1920 = arith.constant 1920 : index
    %c0_186 = arith.constant 0 : index
    %213 = vector.load %arg2[%c1920, %c0_186] : memref<2560x128xf32, #tpu.memory_space<vmem>>, vector<128x128xf32>
    %c0_187 = arith.constant 0 : index
    %c0_188 = arith.constant 0 : index
    %214 = vector.load %arg15[%c0_187, %c0_188] : memref<256x128xf32, #tpu.memory_space<vmem>>, vector<31x128xf32>
    %cst_189 = arith.constant dense<0.000000e+00> : vector<31x128xf32>
    %215 = tpu.matmul %212, %213, %cst_189 {dimension_numbers = #tpu.dot_dimension_numbers<[1], [0], [0], [1], [0, 0, 1, 1], [], []>} : vector<31x128xf32>, vector<128x128xf32>, vector<31x128xf32> -> vector<31x128xf32>
    %216 = arith.addf %214, %215 : vector<31x128xf32>
    %c0_190 = arith.constant 0 : index
    %c0_191 = arith.constant 0 : index
    %217 = vector.load %arg15[%c0_190, %c0_191] : memref<256x128xf32, #tpu.memory_space<vmem>>, vector<31x128xf32>
    tpu.vector_store %arg15[%c0_190, %c0_191], %216 {strides = array<i32>} : memref<256x128xf32, #tpu.memory_space<vmem>>, vector<31x128xf32>,
    %c0_192 = arith.constant 0 : index
    %c0_193 = arith.constant 0 : index
    %218 = vector.load %arg6[%c0_192, %c0_193] : memref<16x31xf32, #tpu.memory_space<vmem>>, vector<16x31xf32>
    %c0_194 = arith.constant 0 : index
    %c0_195 = arith.constant 0 : index
    %219 = vector.load %arg15[%c0_194, %c0_195] : memref<256x128xf32, #tpu.memory_space<vmem>>, vector<31x128xf32>
    %cst_196 = arith.constant dense<0.000000e+00> : vector<16x128xf32>
    %220 = tpu.matmul %218, %219, %cst_196 {dimension_numbers = #tpu.dot_dimension_numbers<[1], [0], [0], [1], [0, 0, 1, 1], [], []>} : vector<16x31xf32>, vector<31x128xf32>, vector<16x128xf32> -> vector<16x128xf32>
    %c10 = arith.constant 10 : index
    %c0_197 = arith.constant 0 : index
    %221 = vector.load %arg3[%c10, %c0_197] : memref<15x128xf32, #tpu.memory_space<vmem>>, vector<1x128xf32>
    %c11 = arith.constant 11 : index
    %c0_198 = arith.constant 0 : index
    %222 = vector.load %arg3[%c11, %c0_198] : memref<15x128xf32, #tpu.memory_space<vmem>>, vector<1x128xf32>
    %223 = vector.broadcast %4 : vector<1x128xf32> to vector<16x128xf32>
    %224 = arith.mulf %220, %223 : vector<16x128xf32>
    %cst_199 = arith.constant dense<0.000000e+00> : vector<16xf32>
    %225 = vector.multi_reduction <add>, %224, %cst_199 [1] : vector<16x128xf32> to vector<16xf32>
    %226 = vector.shape_cast %225 : vector<16xf32> to vector<16x1xf32>
    %cst_200 = arith.constant 3.125000e-02 : f32
    %227 = vector.broadcast %cst_200 : f32 to vector<16x1xf32>
    %228 = arith.mulf %226, %227 : vector<16x1xf32>
    %229 = vector.broadcast %228 : vector<16x1xf32> to vector<16x128xf32>
    %230 = arith.subf %220, %229 : vector<16x128xf32>
    %231 = vector.broadcast %4 : vector<1x128xf32> to vector<16x128xf32>
    %232 = arith.mulf %230, %231 : vector<16x128xf32>
    %233 = arith.mulf %232, %232 : vector<16x128xf32>
    %cst_201 = arith.constant dense<0.000000e+00> : vector<16xf32>
    %234 = vector.multi_reduction <add>, %233, %cst_201 [1] : vector<16x128xf32> to vector<16xf32>
    %235 = vector.shape_cast %234 : vector<16xf32> to vector<16x1xf32>
    %cst_202 = arith.constant 0.0322580636 : f32
    %236 = vector.broadcast %cst_202 : f32 to vector<16x1xf32>
    %237 = arith.mulf %235, %236 : vector<16x1xf32>
    %cst_203 = arith.constant 9.99999974E-6 : f32
    %238 = vector.broadcast %cst_203 : f32 to vector<16x1xf32>
    %239 = arith.addf %237, %238 : vector<16x1xf32>
    %240 = math.rsqrt %239 : vector<16x1xf32>
    %241 = vector.broadcast %240 : vector<16x1xf32> to vector<16x128xf32>
    %242 = arith.mulf %232, %241 : vector<16x128xf32>
    %243 = vector.broadcast %221 : vector<1x128xf32> to vector<16x128xf32>
    %244 = arith.mulf %242, %243 : vector<16x128xf32>
    %245 = vector.broadcast %222 : vector<1x128xf32> to vector<16x128xf32>
    %246 = arith.addf %244, %245 : vector<16x128xf32>
    %cst_204 = arith.constant 0.000000e+00 : f32
    %247 = vector.broadcast %cst_204 : f32 to vector<16x128xf32>
    %248 = arith.maximumf %246, %247 : vector<16x128xf32>
    %cst_205 = arith.constant 0.000000e+00 : f32
    %249 = vector.broadcast %cst_205 : f32 to vector<18x128xf32>
    %c0_206 = arith.constant 0 : index
    %c0_207 = arith.constant 0 : index
    %250 = vector.load %arg14[%c0_206, %c0_207] : memref<264x128xf32, #tpu.memory_space<vmem>>, vector<18x128xf32>
    tpu.vector_store %arg14[%c0_206, %c0_207], %249 {strides = array<i32>} : memref<264x128xf32, #tpu.memory_space<vmem>>, vector<18x128xf32>,
    %c1_208 = arith.constant 1 : index
    %c0_209 = arith.constant 0 : index
    %251 = vector.load %arg14[%c1_208, %c0_209] : memref<264x128xf32, #tpu.memory_space<vmem>>, vector<16x128xf32>
    tpu.vector_store %arg14[%c1_208, %c0_209], %248 {strides = array<i32>} : memref<264x128xf32, #tpu.memory_space<vmem>>, vector<16x128xf32>,
    %c12 = arith.constant 12 : index
    %c0_210 = arith.constant 0 : index
    %252 = vector.load %arg3[%c12, %c0_210] : memref<15x128xf32, #tpu.memory_space<vmem>>, vector<1x128xf32>
    %253 = vector.shape_cast %252 : vector<1x128xf32> to vector<1x128xf32>
    %254 = vector.broadcast %253 : vector<1x128xf32> to vector<15x128xf32>
    %c0_211 = arith.constant 0 : index
    %c0_212 = arith.constant 0 : index
    %255 = vector.load %arg15[%c0_211, %c0_212] : memref<256x128xf32, #tpu.memory_space<vmem>>, vector<15x128xf32>
    tpu.vector_store %arg15[%c0_211, %c0_212], %254 {strides = array<i32>} : memref<256x128xf32, #tpu.memory_space<vmem>>, vector<15x128xf32>,
    %c0_213 = arith.constant 0 : index
    %c0_214 = arith.constant 0 : index
    %256 = vector.load %arg14[%c0_213, %c0_214] : memref<264x128xf32, #tpu.memory_space<vmem>>, vector<15x128xf32>
    %c2048 = arith.constant 2048 : index
    %c0_215 = arith.constant 0 : index
    %257 = vector.load %arg2[%c2048, %c0_215] : memref<2560x128xf32, #tpu.memory_space<vmem>>, vector<128x128xf32>
    %c0_216 = arith.constant 0 : index
    %c0_217 = arith.constant 0 : index
    %258 = vector.load %arg15[%c0_216, %c0_217] : memref<256x128xf32, #tpu.memory_space<vmem>>, vector<15x128xf32>
    %cst_218 = arith.constant dense<0.000000e+00> : vector<15x128xf32>
    %259 = tpu.matmul %256, %257, %cst_218 {dimension_numbers = #tpu.dot_dimension_numbers<[1], [0], [0], [1], [0, 0, 1, 1], [], []>} : vector<15x128xf32>, vector<128x128xf32>, vector<15x128xf32> -> vector<15x128xf32>
    %260 = arith.addf %258, %259 : vector<15x128xf32>
    %c0_219 = arith.constant 0 : index
    %c0_220 = arith.constant 0 : index
    %261 = vector.load %arg15[%c0_219, %c0_220] : memref<256x128xf32, #tpu.memory_space<vmem>>, vector<15x128xf32>
    tpu.vector_store %arg15[%c0_219, %c0_220], %260 {strides = array<i32>} : memref<256x128xf32, #tpu.memory_space<vmem>>, vector<15x128xf32>,
    %c1_221 = arith.constant 1 : index
    %c0_222 = arith.constant 0 : index
    %262 = vector.load %arg14[%c1_221, %c0_222] : memref<264x128xf32, #tpu.memory_space<vmem>>, vector<15x128xf32>
    %c2176 = arith.constant 2176 : index
    %c0_223 = arith.constant 0 : index
    %263 = vector.load %arg2[%c2176, %c0_223] : memref<2560x128xf32, #tpu.memory_space<vmem>>, vector<128x128xf32>
    %c0_224 = arith.constant 0 : index
    %c0_225 = arith.constant 0 : index
    %264 = vector.load %arg15[%c0_224, %c0_225] : memref<256x128xf32, #tpu.memory_space<vmem>>, vector<15x128xf32>
    %cst_226 = arith.constant dense<0.000000e+00> : vector<15x128xf32>
    %265 = tpu.matmul %262, %263, %cst_226 {dimension_numbers = #tpu.dot_dimension_numbers<[1], [0], [0], [1], [0, 0, 1, 1], [], []>} : vector<15x128xf32>, vector<128x128xf32>, vector<15x128xf32> -> vector<15x128xf32>
    %266 = arith.addf %264, %265 : vector<15x128xf32>
    %c0_227 = arith.constant 0 : index
    %c0_228 = arith.constant 0 : index
    %267 = vector.load %arg15[%c0_227, %c0_228] : memref<256x128xf32, #tpu.memory_space<vmem>>, vector<15x128xf32>
    tpu.vector_store %arg15[%c0_227, %c0_228], %266 {strides = array<i32>} : memref<256x128xf32, #tpu.memory_space<vmem>>, vector<15x128xf32>,
    %c2_229 = arith.constant 2 : index
    %c0_230 = arith.constant 0 : index
    %268 = vector.load %arg14[%c2_229, %c0_230] : memref<264x128xf32, #tpu.memory_space<vmem>>, vector<15x128xf32>
    %c2304 = arith.constant 2304 : index
    %c0_231 = arith.constant 0 : index
    %269 = vector.load %arg2[%c2304, %c0_231] : memref<2560x128xf32, #tpu.memory_space<vmem>>, vector<128x128xf32>
    %c0_232 = arith.constant 0 : index
    %c0_233 = arith.constant 0 : index
    %270 = vector.load %arg15[%c0_232, %c0_233] : memref<256x128xf32, #tpu.memory_space<vmem>>, vector<15x128xf32>
    %cst_234 = arith.constant dense<0.000000e+00> : vector<15x128xf32>
    %271 = tpu.matmul %268, %269, %cst_234 {dimension_numbers = #tpu.dot_dimension_numbers<[1], [0], [0], [1], [0, 0, 1, 1], [], []>} : vector<15x128xf32>, vector<128x128xf32>, vector<15x128xf32> -> vector<15x128xf32>
    %272 = arith.addf %270, %271 : vector<15x128xf32>
    %c0_235 = arith.constant 0 : index
    %c0_236 = arith.constant 0 : index
    %273 = vector.load %arg15[%c0_235, %c0_236] : memref<256x128xf32, #tpu.memory_space<vmem>>, vector<15x128xf32>
    tpu.vector_store %arg15[%c0_235, %c0_236], %272 {strides = array<i32>} : memref<256x128xf32, #tpu.memory_space<vmem>>, vector<15x128xf32>,
    %c3_237 = arith.constant 3 : index
    %c0_238 = arith.constant 0 : index
    %274 = vector.load %arg14[%c3_237, %c0_238] : memref<264x128xf32, #tpu.memory_space<vmem>>, vector<15x128xf32>
    %c2432 = arith.constant 2432 : index
    %c0_239 = arith.constant 0 : index
    %275 = vector.load %arg2[%c2432, %c0_239] : memref<2560x128xf32, #tpu.memory_space<vmem>>, vector<128x128xf32>
    %c0_240 = arith.constant 0 : index
    %c0_241 = arith.constant 0 : index
    %276 = vector.load %arg15[%c0_240, %c0_241] : memref<256x128xf32, #tpu.memory_space<vmem>>, vector<15x128xf32>
    %cst_242 = arith.constant dense<0.000000e+00> : vector<15x128xf32>
    %277 = tpu.matmul %274, %275, %cst_242 {dimension_numbers = #tpu.dot_dimension_numbers<[1], [0], [0], [1], [0, 0, 1, 1], [], []>} : vector<15x128xf32>, vector<128x128xf32>, vector<15x128xf32> -> vector<15x128xf32>
    %278 = arith.addf %276, %277 : vector<15x128xf32>
    %c0_243 = arith.constant 0 : index
    %c0_244 = arith.constant 0 : index
    %279 = vector.load %arg15[%c0_243, %c0_244] : memref<256x128xf32, #tpu.memory_space<vmem>>, vector<15x128xf32>
    tpu.vector_store %arg15[%c0_243, %c0_244], %278 {strides = array<i32>} : memref<256x128xf32, #tpu.memory_space<vmem>>, vector<15x128xf32>,
    %c0_245 = arith.constant 0 : index
    %c0_246 = arith.constant 0 : index
    %280 = vector.load %arg7[%c0_245, %c0_246] : memref<8x15xf32, #tpu.memory_space<vmem>>, vector<8x15xf32>
    %c0_247 = arith.constant 0 : index
    %c0_248 = arith.constant 0 : index
    %281 = vector.load %arg15[%c0_247, %c0_248] : memref<256x128xf32, #tpu.memory_space<vmem>>, vector<15x128xf32>
    %cst_249 = arith.constant dense<0.000000e+00> : vector<8x128xf32>
    %282 = tpu.matmul %280, %281, %cst_249 {dimension_numbers = #tpu.dot_dimension_numbers<[1], [0], [0], [1], [0, 0, 1, 1], [], []>} : vector<8x15xf32>, vector<15x128xf32>, vector<8x128xf32> -> vector<8x128xf32>
    %c13 = arith.constant 13 : index
    %c0_250 = arith.constant 0 : index
    %283 = vector.load %arg3[%c13, %c0_250] : memref<15x128xf32, #tpu.memory_space<vmem>>, vector<1x128xf32>
    %c14 = arith.constant 14 : index
    %c0_251 = arith.constant 0 : index
    %284 = vector.load %arg3[%c14, %c0_251] : memref<15x128xf32, #tpu.memory_space<vmem>>, vector<1x128xf32>
    %285 = vector.broadcast %4 : vector<1x128xf32> to vector<8x128xf32>
    %286 = arith.mulf %282, %285 : vector<8x128xf32>
    %cst_252 = arith.constant dense<0.000000e+00> : vector<8xf32>
    %287 = vector.multi_reduction <add>, %286, %cst_252 [1] : vector<8x128xf32> to vector<8xf32>
    %288 = vector.shape_cast %287 : vector<8xf32> to vector<8x1xf32>
    %cst_253 = arith.constant 3.125000e-02 : f32
    %289 = vector.broadcast %cst_253 : f32 to vector<8x1xf32>
    %290 = arith.mulf %288, %289 : vector<8x1xf32>
    %291 = vector.broadcast %290 : vector<8x1xf32> to vector<8x128xf32>
    %292 = arith.subf %282, %291 : vector<8x128xf32>
    %293 = vector.broadcast %4 : vector<1x128xf32> to vector<8x128xf32>
    %294 = arith.mulf %292, %293 : vector<8x128xf32>
    %295 = arith.mulf %294, %294 : vector<8x128xf32>
    %cst_254 = arith.constant dense<0.000000e+00> : vector<8xf32>
    %296 = vector.multi_reduction <add>, %295, %cst_254 [1] : vector<8x128xf32> to vector<8xf32>
    %297 = vector.shape_cast %296 : vector<8xf32> to vector<8x1xf32>
    %cst_255 = arith.constant 0.0322580636 : f32
    %298 = vector.broadcast %cst_255 : f32 to vector<8x1xf32>
    %299 = arith.mulf %297, %298 : vector<8x1xf32>
    %cst_256 = arith.constant 9.99999974E-6 : f32
    %300 = vector.broadcast %cst_256 : f32 to vector<8x1xf32>
    %301 = arith.addf %299, %300 : vector<8x1xf32>
    %302 = math.rsqrt %301 : vector<8x1xf32>
    %303 = vector.broadcast %302 : vector<8x1xf32> to vector<8x128xf32>
    %304 = arith.mulf %294, %303 : vector<8x128xf32>
    %305 = vector.broadcast %283 : vector<1x128xf32> to vector<8x128xf32>
    %306 = arith.mulf %304, %305 : vector<8x128xf32>
    %307 = vector.broadcast %284 : vector<1x128xf32> to vector<8x128xf32>
    %308 = arith.addf %306, %307 : vector<8x128xf32>
    %cst_257 = arith.constant 0.000000e+00 : f32
    %309 = vector.broadcast %cst_257 : f32 to vector<8x128xf32>
    %310 = arith.maximumf %308, %309 : vector<8x128xf32>
    %c0_258 = arith.constant 0 : index
    %c0_259 = arith.constant 0 : index
    %311 = vector.load %arg12[%c0_258, %c0_259] : memref<8x128xf32, #tpu.memory_space<vmem>>, vector<8x128xf32>
    tpu.vector_store %arg12[%c0_258, %c0_259], %310 {strides = array<i32>} : memref<8x128xf32, #tpu.memory_space<vmem>>, vector<8x128xf32>,
    %c0_260 = arith.constant 0 : index
    %c0_261 = arith.constant 0 : index
    %312 = vector.load %arg8[%c0_260, %c0_261] : memref<128x384xf32, #tpu.memory_space<vmem>>, vector<128x384xf32>
    %cst_262 = arith.constant dense<0.000000e+00> : vector<8x384xf32>
    %313 = tpu.matmul %310, %312, %cst_262 {dimension_numbers = #tpu.dot_dimension_numbers<[1], [0], [0], [1], [0, 0, 1, 1], [], []>} : vector<8x128xf32>, vector<128x384xf32>, vector<8x384xf32> -> vector<8x384xf32>
    %c0_263 = arith.constant 0 : index
    %c0_264 = arith.constant 0 : index
    %314 = vector.load %arg9[%c0_263, %c0_264] : memref<1x384xf32, #tpu.memory_space<vmem>>, vector<1x384xf32>
    %315 = vector.broadcast %314 : vector<1x384xf32> to vector<8x384xf32>
    %316 = arith.addf %313, %315 : vector<8x384xf32>
    %cst_265 = arith.constant 0.000000e+00 : f32
    %317 = vector.broadcast %cst_265 : f32 to vector<1x128xf32>
    %318 = tpu.iota {dimensions = array<i32: 0>} : vector<8x128xi32>
    %cst_266 = arith.constant 0.000000e+00 : f32
    %319 = vector.broadcast %cst_266 : f32 to vector<8x128xf32>
    %c0_267 = arith.constant 0 : index
    %c0_268 = arith.constant 0 : index
    %320 = vector.load %arg10[%c0_267, %c0_268] : memref<128x384xf32, #tpu.memory_space<vmem>>, vector<128x384xf32>
    %cst_269 = arith.constant dense<0.000000e+00> : vector<1x384xf32>
    %321 = tpu.matmul %317, %320, %cst_269 {dimension_numbers = #tpu.dot_dimension_numbers<[1], [0], [0], [1], [0, 0, 1, 1], [], []>} : vector<1x128xf32>, vector<128x384xf32>, vector<1x384xf32> -> vector<1x384xf32>
    %c0_270 = arith.constant 0 : index
    %c0_271 = arith.constant 0 : index
    %322 = vector.load %arg11[%c0_270, %c0_271] : memref<1x384xf32, #tpu.memory_space<vmem>>, vector<1x384xf32>
    %323 = arith.addf %321, %322 : vector<1x384xf32>
    %324 = vector.extract_strided_slice %316 {offsets = [0, 0], sizes = [1, 384], strides = [1, 1]} : vector<8x384xf32> to vector<1x384xf32>
    %325 = vector.extract_strided_slice %324 {offsets = [0, 0], sizes = [1, 128], strides = [1, 1]} : vector<1x384xf32> to vector<1x128xf32>
    %326 = vector.extract_strided_slice %323 {offsets = [0, 0], sizes = [1, 128], strides = [1, 1]} : vector<1x384xf32> to vector<1x128xf32>
    %327 = arith.addf %325, %326 : vector<1x128xf32>
    %328 = arith.negf %327 : vector<1x128xf32>
    %329 = math.exp %328 : vector<1x128xf32>
    %cst_272 = arith.constant 1.000000e+00 : f32
    %330 = vector.broadcast %cst_272 : f32 to vector<1x128xf32>
    %331 = arith.addf %330, %329 : vector<1x128xf32>
    %332 = arith.divf %330, %331 : vector<1x128xf32>
    %333 = vector.extract_strided_slice %324 {offsets = [0, 128], sizes = [1, 128], strides = [1, 1]} : vector<1x384xf32> to vector<1x128xf32>
    %334 = vector.extract_strided_slice %323 {offsets = [0, 128], sizes = [1, 128], strides = [1, 1]} : vector<1x384xf32> to vector<1x128xf32>
    %335 = arith.addf %333, %334 : vector<1x128xf32>
    %336 = arith.negf %335 : vector<1x128xf32>
    %337 = math.exp %336 : vector<1x128xf32>
    %cst_273 = arith.constant 1.000000e+00 : f32
    %338 = vector.broadcast %cst_273 : f32 to vector<1x128xf32>
    %339 = arith.addf %338, %337 : vector<1x128xf32>
    %340 = arith.divf %338, %339 : vector<1x128xf32>
    %341 = vector.extract_strided_slice %324 {offsets = [0, 256], sizes = [1, 128], strides = [1, 1]} : vector<1x384xf32> to vector<1x128xf32>
    %342 = vector.extract_strided_slice %323 {offsets = [0, 256], sizes = [1, 128], strides = [1, 1]} : vector<1x384xf32> to vector<1x128xf32>
    %343 = arith.mulf %332, %342 : vector<1x128xf32>
    %344 = arith.addf %341, %343 : vector<1x128xf32>
    %345 = math.tanh %344 : vector<1x128xf32>
    %cst_274 = arith.constant 1.000000e+00 : f32
    %346 = vector.broadcast %cst_274 : f32 to vector<1x128xf32>
    %347 = arith.subf %346, %340 : vector<1x128xf32>
    %348 = arith.mulf %347, %345 : vector<1x128xf32>
    %349 = arith.mulf %340, %317 : vector<1x128xf32>
    %350 = arith.addf %348, %349 : vector<1x128xf32>
    %c0_i32 = arith.constant 0 : i32
    %351 = vector.broadcast %c0_i32 : i32 to vector<8x128xi32>
    %352 = arith.cmpi eq, %318, %351 : vector<8x128xi32>
    %353 = vector.shape_cast %350 : vector<1x128xf32> to vector<1x128xf32>
    %354 = vector.broadcast %353 : vector<1x128xf32> to vector<8x128xf32>
    %355 = arith.select %352, %354, %319 : vector<8x128xi1>, vector<8x128xf32>
    %c0_275 = arith.constant 0 : index
    %c0_276 = arith.constant 0 : index
    %356 = vector.load %arg10[%c0_275, %c0_276] : memref<128x384xf32, #tpu.memory_space<vmem>>, vector<128x384xf32>
    %cst_277 = arith.constant dense<0.000000e+00> : vector<1x384xf32>
    %357 = tpu.matmul %350, %356, %cst_277 {dimension_numbers = #tpu.dot_dimension_numbers<[1], [0], [0], [1], [0, 0, 1, 1], [], []>} : vector<1x128xf32>, vector<128x384xf32>, vector<1x384xf32> -> vector<1x384xf32>
    %c0_278 = arith.constant 0 : index
    %c0_279 = arith.constant 0 : index
    %358 = vector.load %arg11[%c0_278, %c0_279] : memref<1x384xf32, #tpu.memory_space<vmem>>, vector<1x384xf32>
    %359 = arith.addf %357, %358 : vector<1x384xf32>
    %360 = vector.extract_strided_slice %316 {offsets = [1, 0], sizes = [1, 384], strides = [1, 1]} : vector<8x384xf32> to vector<1x384xf32>
    %361 = vector.extract_strided_slice %360 {offsets = [0, 0], sizes = [1, 128], strides = [1, 1]} : vector<1x384xf32> to vector<1x128xf32>
    %362 = vector.extract_strided_slice %359 {offsets = [0, 0], sizes = [1, 128], strides = [1, 1]} : vector<1x384xf32> to vector<1x128xf32>
    %363 = arith.addf %361, %362 : vector<1x128xf32>
    %364 = arith.negf %363 : vector<1x128xf32>
    %365 = math.exp %364 : vector<1x128xf32>
    %cst_280 = arith.constant 1.000000e+00 : f32
    %366 = vector.broadcast %cst_280 : f32 to vector<1x128xf32>
    %367 = arith.addf %366, %365 : vector<1x128xf32>
    %368 = arith.divf %366, %367 : vector<1x128xf32>
    %369 = vector.extract_strided_slice %360 {offsets = [0, 128], sizes = [1, 128], strides = [1, 1]} : vector<1x384xf32> to vector<1x128xf32>
    %370 = vector.extract_strided_slice %359 {offsets = [0, 128], sizes = [1, 128], strides = [1, 1]} : vector<1x384xf32> to vector<1x128xf32>
    %371 = arith.addf %369, %370 : vector<1x128xf32>
    %372 = arith.negf %371 : vector<1x128xf32>
    %373 = math.exp %372 : vector<1x128xf32>
    %cst_281 = arith.constant 1.000000e+00 : f32
    %374 = vector.broadcast %cst_281 : f32 to vector<1x128xf32>
    %375 = arith.addf %374, %373 : vector<1x128xf32>
    %376 = arith.divf %374, %375 : vector<1x128xf32>
    %377 = vector.extract_strided_slice %360 {offsets = [0, 256], sizes = [1, 128], strides = [1, 1]} : vector<1x384xf32> to vector<1x128xf32>
    %378 = vector.extract_strided_slice %359 {offsets = [0, 256], sizes = [1, 128], strides = [1, 1]} : vector<1x384xf32> to vector<1x128xf32>
    %379 = arith.mulf %368, %378 : vector<1x128xf32>
    %380 = arith.addf %377, %379 : vector<1x128xf32>
    %381 = math.tanh %380 : vector<1x128xf32>
    %cst_282 = arith.constant 1.000000e+00 : f32
    %382 = vector.broadcast %cst_282 : f32 to vector<1x128xf32>
    %383 = arith.subf %382, %376 : vector<1x128xf32>
    %384 = arith.mulf %383, %381 : vector<1x128xf32>
    %385 = arith.mulf %376, %350 : vector<1x128xf32>
    %386 = arith.addf %384, %385 : vector<1x128xf32>
    %c1_i32 = arith.constant 1 : i32
    %387 = vector.broadcast %c1_i32 : i32 to vector<8x128xi32>
    %388 = arith.cmpi eq, %318, %387 : vector<8x128xi32>
    %389 = vector.shape_cast %386 : vector<1x128xf32> to vector<1x128xf32>
    %390 = vector.broadcast %389 : vector<1x128xf32> to vector<8x128xf32>
    %391 = arith.select %388, %390, %355 : vector<8x128xi1>, vector<8x128xf32>
    %c0_283 = arith.constant 0 : index
    %c0_284 = arith.constant 0 : index
    %392 = vector.load %arg10[%c0_283, %c0_284] : memref<128x384xf32, #tpu.memory_space<vmem>>, vector<128x384xf32>
    %cst_285 = arith.constant dense<0.000000e+00> : vector<1x384xf32>
    %393 = tpu.matmul %386, %392, %cst_285 {dimension_numbers = #tpu.dot_dimension_numbers<[1], [0], [0], [1], [0, 0, 1, 1], [], []>} : vector<1x128xf32>, vector<128x384xf32>, vector<1x384xf32> -> vector<1x384xf32>
    %c0_286 = arith.constant 0 : index
    %c0_287 = arith.constant 0 : index
    %394 = vector.load %arg11[%c0_286, %c0_287] : memref<1x384xf32, #tpu.memory_space<vmem>>, vector<1x384xf32>
    %395 = arith.addf %393, %394 : vector<1x384xf32>
    %396 = vector.extract_strided_slice %316 {offsets = [2, 0], sizes = [1, 384], strides = [1, 1]} : vector<8x384xf32> to vector<1x384xf32>
    %397 = vector.extract_strided_slice %396 {offsets = [0, 0], sizes = [1, 128], strides = [1, 1]} : vector<1x384xf32> to vector<1x128xf32>
    %398 = vector.extract_strided_slice %395 {offsets = [0, 0], sizes = [1, 128], strides = [1, 1]} : vector<1x384xf32> to vector<1x128xf32>
    %399 = arith.addf %397, %398 : vector<1x128xf32>
    %400 = arith.negf %399 : vector<1x128xf32>
    %401 = math.exp %400 : vector<1x128xf32>
    %cst_288 = arith.constant 1.000000e+00 : f32
    %402 = vector.broadcast %cst_288 : f32 to vector<1x128xf32>
    %403 = arith.addf %402, %401 : vector<1x128xf32>
    %404 = arith.divf %402, %403 : vector<1x128xf32>
    %405 = vector.extract_strided_slice %396 {offsets = [0, 128], sizes = [1, 128], strides = [1, 1]} : vector<1x384xf32> to vector<1x128xf32>
    %406 = vector.extract_strided_slice %395 {offsets = [0, 128], sizes = [1, 128], strides = [1, 1]} : vector<1x384xf32> to vector<1x128xf32>
    %407 = arith.addf %405, %406 : vector<1x128xf32>
    %408 = arith.negf %407 : vector<1x128xf32>
    %409 = math.exp %408 : vector<1x128xf32>
    %cst_289 = arith.constant 1.000000e+00 : f32
    %410 = vector.broadcast %cst_289 : f32 to vector<1x128xf32>
    %411 = arith.addf %410, %409 : vector<1x128xf32>
    %412 = arith.divf %410, %411 : vector<1x128xf32>
    %413 = vector.extract_strided_slice %396 {offsets = [0, 256], sizes = [1, 128], strides = [1, 1]} : vector<1x384xf32> to vector<1x128xf32>
    %414 = vector.extract_strided_slice %395 {offsets = [0, 256], sizes = [1, 128], strides = [1, 1]} : vector<1x384xf32> to vector<1x128xf32>
    %415 = arith.mulf %404, %414 : vector<1x128xf32>
    %416 = arith.addf %413, %415 : vector<1x128xf32>
    %417 = math.tanh %416 : vector<1x128xf32>
    %cst_290 = arith.constant 1.000000e+00 : f32
    %418 = vector.broadcast %cst_290 : f32 to vector<1x128xf32>
    %419 = arith.subf %418, %412 : vector<1x128xf32>
    %420 = arith.mulf %419, %417 : vector<1x128xf32>
    %421 = arith.mulf %412, %386 : vector<1x128xf32>
    %422 = arith.addf %420, %421 : vector<1x128xf32>
    %c2_i32 = arith.constant 2 : i32
    %423 = vector.broadcast %c2_i32 : i32 to vector<8x128xi32>
    %424 = arith.cmpi eq, %318, %423 : vector<8x128xi32>
    %425 = vector.shape_cast %422 : vector<1x128xf32> to vector<1x128xf32>
    %426 = vector.broadcast %425 : vector<1x128xf32> to vector<8x128xf32>
    %427 = arith.select %424, %426, %391 : vector<8x128xi1>, vector<8x128xf32>
    %c0_291 = arith.constant 0 : index
    %c0_292 = arith.constant 0 : index
    %428 = vector.load %arg10[%c0_291, %c0_292] : memref<128x384xf32, #tpu.memory_space<vmem>>, vector<128x384xf32>
    %cst_293 = arith.constant dense<0.000000e+00> : vector<1x384xf32>
    %429 = tpu.matmul %422, %428, %cst_293 {dimension_numbers = #tpu.dot_dimension_numbers<[1], [0], [0], [1], [0, 0, 1, 1], [], []>} : vector<1x128xf32>, vector<128x384xf32>, vector<1x384xf32> -> vector<1x384xf32>
    %c0_294 = arith.constant 0 : index
    %c0_295 = arith.constant 0 : index
    %430 = vector.load %arg11[%c0_294, %c0_295] : memref<1x384xf32, #tpu.memory_space<vmem>>, vector<1x384xf32>
    %431 = arith.addf %429, %430 : vector<1x384xf32>
    %432 = vector.extract_strided_slice %316 {offsets = [3, 0], sizes = [1, 384], strides = [1, 1]} : vector<8x384xf32> to vector<1x384xf32>
    %433 = vector.extract_strided_slice %432 {offsets = [0, 0], sizes = [1, 128], strides = [1, 1]} : vector<1x384xf32> to vector<1x128xf32>
    %434 = vector.extract_strided_slice %431 {offsets = [0, 0], sizes = [1, 128], strides = [1, 1]} : vector<1x384xf32> to vector<1x128xf32>
    %435 = arith.addf %433, %434 : vector<1x128xf32>
    %436 = arith.negf %435 : vector<1x128xf32>
    %437 = math.exp %436 : vector<1x128xf32>
    %cst_296 = arith.constant 1.000000e+00 : f32
    %438 = vector.broadcast %cst_296 : f32 to vector<1x128xf32>
    %439 = arith.addf %438, %437 : vector<1x128xf32>
    %440 = arith.divf %438, %439 : vector<1x128xf32>
    %441 = vector.extract_strided_slice %432 {offsets = [0, 128], sizes = [1, 128], strides = [1, 1]} : vector<1x384xf32> to vector<1x128xf32>
    %442 = vector.extract_strided_slice %431 {offsets = [0, 128], sizes = [1, 128], strides = [1, 1]} : vector<1x384xf32> to vector<1x128xf32>
    %443 = arith.addf %441, %442 : vector<1x128xf32>
    %444 = arith.negf %443 : vector<1x128xf32>
    %445 = math.exp %444 : vector<1x128xf32>
    %cst_297 = arith.constant 1.000000e+00 : f32
    %446 = vector.broadcast %cst_297 : f32 to vector<1x128xf32>
    %447 = arith.addf %446, %445 : vector<1x128xf32>
    %448 = arith.divf %446, %447 : vector<1x128xf32>
    %449 = vector.extract_strided_slice %432 {offsets = [0, 256], sizes = [1, 128], strides = [1, 1]} : vector<1x384xf32> to vector<1x128xf32>
    %450 = vector.extract_strided_slice %431 {offsets = [0, 256], sizes = [1, 128], strides = [1, 1]} : vector<1x384xf32> to vector<1x128xf32>
    %451 = arith.mulf %440, %450 : vector<1x128xf32>
    %452 = arith.addf %449, %451 : vector<1x128xf32>
    %453 = math.tanh %452 : vector<1x128xf32>
    %cst_298 = arith.constant 1.000000e+00 : f32
    %454 = vector.broadcast %cst_298 : f32 to vector<1x128xf32>
    %455 = arith.subf %454, %448 : vector<1x128xf32>
    %456 = arith.mulf %455, %453 : vector<1x128xf32>
    %457 = arith.mulf %448, %422 : vector<1x128xf32>
    %458 = arith.addf %456, %457 : vector<1x128xf32>
    %c3_i32 = arith.constant 3 : i32
    %459 = vector.broadcast %c3_i32 : i32 to vector<8x128xi32>
    %460 = arith.cmpi eq, %318, %459 : vector<8x128xi32>
    %461 = vector.shape_cast %458 : vector<1x128xf32> to vector<1x128xf32>
    %462 = vector.broadcast %461 : vector<1x128xf32> to vector<8x128xf32>
    %463 = arith.select %460, %462, %427 : vector<8x128xi1>, vector<8x128xf32>
    %c0_299 = arith.constant 0 : index
    %c0_300 = arith.constant 0 : index
    %464 = vector.load %arg10[%c0_299, %c0_300] : memref<128x384xf32, #tpu.memory_space<vmem>>, vector<128x384xf32>
    %cst_301 = arith.constant dense<0.000000e+00> : vector<1x384xf32>
    %465 = tpu.matmul %458, %464, %cst_301 {dimension_numbers = #tpu.dot_dimension_numbers<[1], [0], [0], [1], [0, 0, 1, 1], [], []>} : vector<1x128xf32>, vector<128x384xf32>, vector<1x384xf32> -> vector<1x384xf32>
    %c0_302 = arith.constant 0 : index
    %c0_303 = arith.constant 0 : index
    %466 = vector.load %arg11[%c0_302, %c0_303] : memref<1x384xf32, #tpu.memory_space<vmem>>, vector<1x384xf32>
    %467 = arith.addf %465, %466 : vector<1x384xf32>
    %468 = vector.extract_strided_slice %316 {offsets = [4, 0], sizes = [1, 384], strides = [1, 1]} : vector<8x384xf32> to vector<1x384xf32>
    %469 = vector.extract_strided_slice %468 {offsets = [0, 0], sizes = [1, 128], strides = [1, 1]} : vector<1x384xf32> to vector<1x128xf32>
    %470 = vector.extract_strided_slice %467 {offsets = [0, 0], sizes = [1, 128], strides = [1, 1]} : vector<1x384xf32> to vector<1x128xf32>
    %471 = arith.addf %469, %470 : vector<1x128xf32>
    %472 = arith.negf %471 : vector<1x128xf32>
    %473 = math.exp %472 : vector<1x128xf32>
    %cst_304 = arith.constant 1.000000e+00 : f32
    %474 = vector.broadcast %cst_304 : f32 to vector<1x128xf32>
    %475 = arith.addf %474, %473 : vector<1x128xf32>
    %476 = arith.divf %474, %475 : vector<1x128xf32>
    %477 = vector.extract_strided_slice %468 {offsets = [0, 128], sizes = [1, 128], strides = [1, 1]} : vector<1x384xf32> to vector<1x128xf32>
    %478 = vector.extract_strided_slice %467 {offsets = [0, 128], sizes = [1, 128], strides = [1, 1]} : vector<1x384xf32> to vector<1x128xf32>
    %479 = arith.addf %477, %478 : vector<1x128xf32>
    %480 = arith.negf %479 : vector<1x128xf32>
    %481 = math.exp %480 : vector<1x128xf32>
    %cst_305 = arith.constant 1.000000e+00 : f32
    %482 = vector.broadcast %cst_305 : f32 to vector<1x128xf32>
    %483 = arith.addf %482, %481 : vector<1x128xf32>
    %484 = arith.divf %482, %483 : vector<1x128xf32>
    %485 = vector.extract_strided_slice %468 {offsets = [0, 256], sizes = [1, 128], strides = [1, 1]} : vector<1x384xf32> to vector<1x128xf32>
    %486 = vector.extract_strided_slice %467 {offsets = [0, 256], sizes = [1, 128], strides = [1, 1]} : vector<1x384xf32> to vector<1x128xf32>
    %487 = arith.mulf %476, %486 : vector<1x128xf32>
    %488 = arith.addf %485, %487 : vector<1x128xf32>
    %489 = math.tanh %488 : vector<1x128xf32>
    %cst_306 = arith.constant 1.000000e+00 : f32
    %490 = vector.broadcast %cst_306 : f32 to vector<1x128xf32>
    %491 = arith.subf %490, %484 : vector<1x128xf32>
    %492 = arith.mulf %491, %489 : vector<1x128xf32>
    %493 = arith.mulf %484, %458 : vector<1x128xf32>
    %494 = arith.addf %492, %493 : vector<1x128xf32>
    %c4_i32 = arith.constant 4 : i32
    %495 = vector.broadcast %c4_i32 : i32 to vector<8x128xi32>
    %496 = arith.cmpi eq, %318, %495 : vector<8x128xi32>
    %497 = vector.shape_cast %494 : vector<1x128xf32> to vector<1x128xf32>
    %498 = vector.broadcast %497 : vector<1x128xf32> to vector<8x128xf32>
    %499 = arith.select %496, %498, %463 : vector<8x128xi1>, vector<8x128xf32>
    %c0_307 = arith.constant 0 : index
    %c0_308 = arith.constant 0 : index
    %500 = vector.load %arg10[%c0_307, %c0_308] : memref<128x384xf32, #tpu.memory_space<vmem>>, vector<128x384xf32>
    %cst_309 = arith.constant dense<0.000000e+00> : vector<1x384xf32>
    %501 = tpu.matmul %494, %500, %cst_309 {dimension_numbers = #tpu.dot_dimension_numbers<[1], [0], [0], [1], [0, 0, 1, 1], [], []>} : vector<1x128xf32>, vector<128x384xf32>, vector<1x384xf32> -> vector<1x384xf32>
    %c0_310 = arith.constant 0 : index
    %c0_311 = arith.constant 0 : index
    %502 = vector.load %arg11[%c0_310, %c0_311] : memref<1x384xf32, #tpu.memory_space<vmem>>, vector<1x384xf32>
    %503 = arith.addf %501, %502 : vector<1x384xf32>
    %504 = vector.extract_strided_slice %316 {offsets = [5, 0], sizes = [1, 384], strides = [1, 1]} : vector<8x384xf32> to vector<1x384xf32>
    %505 = vector.extract_strided_slice %504 {offsets = [0, 0], sizes = [1, 128], strides = [1, 1]} : vector<1x384xf32> to vector<1x128xf32>
    %506 = vector.extract_strided_slice %503 {offsets = [0, 0], sizes = [1, 128], strides = [1, 1]} : vector<1x384xf32> to vector<1x128xf32>
    %507 = arith.addf %505, %506 : vector<1x128xf32>
    %508 = arith.negf %507 : vector<1x128xf32>
    %509 = math.exp %508 : vector<1x128xf32>
    %cst_312 = arith.constant 1.000000e+00 : f32
    %510 = vector.broadcast %cst_312 : f32 to vector<1x128xf32>
    %511 = arith.addf %510, %509 : vector<1x128xf32>
    %512 = arith.divf %510, %511 : vector<1x128xf32>
    %513 = vector.extract_strided_slice %504 {offsets = [0, 128], sizes = [1, 128], strides = [1, 1]} : vector<1x384xf32> to vector<1x128xf32>
    %514 = vector.extract_strided_slice %503 {offsets = [0, 128], sizes = [1, 128], strides = [1, 1]} : vector<1x384xf32> to vector<1x128xf32>
    %515 = arith.addf %513, %514 : vector<1x128xf32>
    %516 = arith.negf %515 : vector<1x128xf32>
    %517 = math.exp %516 : vector<1x128xf32>
    %cst_313 = arith.constant 1.000000e+00 : f32
    %518 = vector.broadcast %cst_313 : f32 to vector<1x128xf32>
    %519 = arith.addf %518, %517 : vector<1x128xf32>
    %520 = arith.divf %518, %519 : vector<1x128xf32>
    %521 = vector.extract_strided_slice %504 {offsets = [0, 256], sizes = [1, 128], strides = [1, 1]} : vector<1x384xf32> to vector<1x128xf32>
    %522 = vector.extract_strided_slice %503 {offsets = [0, 256], sizes = [1, 128], strides = [1, 1]} : vector<1x384xf32> to vector<1x128xf32>
    %523 = arith.mulf %512, %522 : vector<1x128xf32>
    %524 = arith.addf %521, %523 : vector<1x128xf32>
    %525 = math.tanh %524 : vector<1x128xf32>
    %cst_314 = arith.constant 1.000000e+00 : f32
    %526 = vector.broadcast %cst_314 : f32 to vector<1x128xf32>
    %527 = arith.subf %526, %520 : vector<1x128xf32>
    %528 = arith.mulf %527, %525 : vector<1x128xf32>
    %529 = arith.mulf %520, %494 : vector<1x128xf32>
    %530 = arith.addf %528, %529 : vector<1x128xf32>
    %c5_i32 = arith.constant 5 : i32
    %531 = vector.broadcast %c5_i32 : i32 to vector<8x128xi32>
    %532 = arith.cmpi eq, %318, %531 : vector<8x128xi32>
    %533 = vector.shape_cast %530 : vector<1x128xf32> to vector<1x128xf32>
    %534 = vector.broadcast %533 : vector<1x128xf32> to vector<8x128xf32>
    %535 = arith.select %532, %534, %499 : vector<8x128xi1>, vector<8x128xf32>
    %c0_315 = arith.constant 0 : index
    %c0_316 = arith.constant 0 : index
    %536 = vector.load %arg10[%c0_315, %c0_316] : memref<128x384xf32, #tpu.memory_space<vmem>>, vector<128x384xf32>
    %cst_317 = arith.constant dense<0.000000e+00> : vector<1x384xf32>
    %537 = tpu.matmul %530, %536, %cst_317 {dimension_numbers = #tpu.dot_dimension_numbers<[1], [0], [0], [1], [0, 0, 1, 1], [], []>} : vector<1x128xf32>, vector<128x384xf32>, vector<1x384xf32> -> vector<1x384xf32>
    %c0_318 = arith.constant 0 : index
    %c0_319 = arith.constant 0 : index
    %538 = vector.load %arg11[%c0_318, %c0_319] : memref<1x384xf32, #tpu.memory_space<vmem>>, vector<1x384xf32>
    %539 = arith.addf %537, %538 : vector<1x384xf32>
    %540 = vector.extract_strided_slice %316 {offsets = [6, 0], sizes = [1, 384], strides = [1, 1]} : vector<8x384xf32> to vector<1x384xf32>
    %541 = vector.extract_strided_slice %540 {offsets = [0, 0], sizes = [1, 128], strides = [1, 1]} : vector<1x384xf32> to vector<1x128xf32>
    %542 = vector.extract_strided_slice %539 {offsets = [0, 0], sizes = [1, 128], strides = [1, 1]} : vector<1x384xf32> to vector<1x128xf32>
    %543 = arith.addf %541, %542 : vector<1x128xf32>
    %544 = arith.negf %543 : vector<1x128xf32>
    %545 = math.exp %544 : vector<1x128xf32>
    %cst_320 = arith.constant 1.000000e+00 : f32
    %546 = vector.broadcast %cst_320 : f32 to vector<1x128xf32>
    %547 = arith.addf %546, %545 : vector<1x128xf32>
    %548 = arith.divf %546, %547 : vector<1x128xf32>
    %549 = vector.extract_strided_slice %540 {offsets = [0, 128], sizes = [1, 128], strides = [1, 1]} : vector<1x384xf32> to vector<1x128xf32>
    %550 = vector.extract_strided_slice %539 {offsets = [0, 128], sizes = [1, 128], strides = [1, 1]} : vector<1x384xf32> to vector<1x128xf32>
    %551 = arith.addf %549, %550 : vector<1x128xf32>
    %552 = arith.negf %551 : vector<1x128xf32>
    %553 = math.exp %552 : vector<1x128xf32>
    %cst_321 = arith.constant 1.000000e+00 : f32
    %554 = vector.broadcast %cst_321 : f32 to vector<1x128xf32>
    %555 = arith.addf %554, %553 : vector<1x128xf32>
    %556 = arith.divf %554, %555 : vector<1x128xf32>
    %557 = vector.extract_strided_slice %540 {offsets = [0, 256], sizes = [1, 128], strides = [1, 1]} : vector<1x384xf32> to vector<1x128xf32>
    %558 = vector.extract_strided_slice %539 {offsets = [0, 256], sizes = [1, 128], strides = [1, 1]} : vector<1x384xf32> to vector<1x128xf32>
    %559 = arith.mulf %548, %558 : vector<1x128xf32>
    %560 = arith.addf %557, %559 : vector<1x128xf32>
    %561 = math.tanh %560 : vector<1x128xf32>
    %cst_322 = arith.constant 1.000000e+00 : f32
    %562 = vector.broadcast %cst_322 : f32 to vector<1x128xf32>
    %563 = arith.subf %562, %556 : vector<1x128xf32>
    %564 = arith.mulf %563, %561 : vector<1x128xf32>
    %565 = arith.mulf %556, %530 : vector<1x128xf32>
    %566 = arith.addf %564, %565 : vector<1x128xf32>
    %c6_i32 = arith.constant 6 : i32
    %567 = vector.broadcast %c6_i32 : i32 to vector<8x128xi32>
    %568 = arith.cmpi eq, %318, %567 : vector<8x128xi32>
    %569 = vector.shape_cast %566 : vector<1x128xf32> to vector<1x128xf32>
    %570 = vector.broadcast %569 : vector<1x128xf32> to vector<8x128xf32>
    %571 = arith.select %568, %570, %535 : vector<8x128xi1>, vector<8x128xf32>
    %c0_323 = arith.constant 0 : index
    %c0_324 = arith.constant 0 : index
    %572 = vector.load %arg10[%c0_323, %c0_324] : memref<128x384xf32, #tpu.memory_space<vmem>>, vector<128x384xf32>
    %cst_325 = arith.constant dense<0.000000e+00> : vector<1x384xf32>
    %573 = tpu.matmul %566, %572, %cst_325 {dimension_numbers = #tpu.dot_dimension_numbers<[1], [0], [0], [1], [0, 0, 1, 1], [], []>} : vector<1x128xf32>, vector<128x384xf32>, vector<1x384xf32> -> vector<1x384xf32>
    %c0_326 = arith.constant 0 : index
    %c0_327 = arith.constant 0 : index
    %574 = vector.load %arg11[%c0_326, %c0_327] : memref<1x384xf32, #tpu.memory_space<vmem>>, vector<1x384xf32>
    %575 = arith.addf %573, %574 : vector<1x384xf32>
    %576 = vector.extract_strided_slice %316 {offsets = [7, 0], sizes = [1, 384], strides = [1, 1]} : vector<8x384xf32> to vector<1x384xf32>
    %577 = vector.extract_strided_slice %576 {offsets = [0, 0], sizes = [1, 128], strides = [1, 1]} : vector<1x384xf32> to vector<1x128xf32>
    %578 = vector.extract_strided_slice %575 {offsets = [0, 0], sizes = [1, 128], strides = [1, 1]} : vector<1x384xf32> to vector<1x128xf32>
    %579 = arith.addf %577, %578 : vector<1x128xf32>
    %580 = arith.negf %579 : vector<1x128xf32>
    %581 = math.exp %580 : vector<1x128xf32>
    %cst_328 = arith.constant 1.000000e+00 : f32
    %582 = vector.broadcast %cst_328 : f32 to vector<1x128xf32>
    %583 = arith.addf %582, %581 : vector<1x128xf32>
    %584 = arith.divf %582, %583 : vector<1x128xf32>
    %585 = vector.extract_strided_slice %576 {offsets = [0, 128], sizes = [1, 128], strides = [1, 1]} : vector<1x384xf32> to vector<1x128xf32>
    %586 = vector.extract_strided_slice %575 {offsets = [0, 128], sizes = [1, 128], strides = [1, 1]} : vector<1x384xf32> to vector<1x128xf32>
    %587 = arith.addf %585, %586 : vector<1x128xf32>
    %588 = arith.negf %587 : vector<1x128xf32>
    %589 = math.exp %588 : vector<1x128xf32>
    %cst_329 = arith.constant 1.000000e+00 : f32
    %590 = vector.broadcast %cst_329 : f32 to vector<1x128xf32>
    %591 = arith.addf %590, %589 : vector<1x128xf32>
    %592 = arith.divf %590, %591 : vector<1x128xf32>
    %593 = vector.extract_strided_slice %576 {offsets = [0, 256], sizes = [1, 128], strides = [1, 1]} : vector<1x384xf32> to vector<1x128xf32>
    %594 = vector.extract_strided_slice %575 {offsets = [0, 256], sizes = [1, 128], strides = [1, 1]} : vector<1x384xf32> to vector<1x128xf32>
    %595 = arith.mulf %584, %594 : vector<1x128xf32>
    %596 = arith.addf %593, %595 : vector<1x128xf32>
    %597 = math.tanh %596 : vector<1x128xf32>
    %cst_330 = arith.constant 1.000000e+00 : f32
    %598 = vector.broadcast %cst_330 : f32 to vector<1x128xf32>
    %599 = arith.subf %598, %592 : vector<1x128xf32>
    %600 = arith.mulf %599, %597 : vector<1x128xf32>
    %601 = arith.mulf %592, %566 : vector<1x128xf32>
    %602 = arith.addf %600, %601 : vector<1x128xf32>
    %c7_i32 = arith.constant 7 : i32
    %603 = vector.broadcast %c7_i32 : i32 to vector<8x128xi32>
    %604 = arith.cmpi eq, %318, %603 : vector<8x128xi32>
    %605 = vector.shape_cast %602 : vector<1x128xf32> to vector<1x128xf32>
    %606 = vector.broadcast %605 : vector<1x128xf32> to vector<8x128xf32>
    %607 = arith.select %604, %606, %571 : vector<8x128xi1>, vector<8x128xf32>
    %c0_331 = arith.constant 0 : index
    %c0_332 = arith.constant 0 : index
    %608 = vector.load %arg13[%c0_331, %c0_332] : memref<8x128xf32, #tpu.memory_space<vmem>>, vector<8x128xf32>
    tpu.vector_store %arg13[%c0_331, %c0_332], %607 {strides = array<i32>} : memref<8x128xf32, #tpu.memory_space<vmem>>, vector<8x128xf32>,
    return
  }
}

</mosaic_0001>

<bundles_post_ra>
// kernel: pretrained_cpc_forward.1
= control target key start
LH: loop header
LB: loop body
LE: loop exit
PB: predicated region body
PF: predicated region fallthrough
CT: control target
= control target key end

     0   :  { %vm184_vm0 = vcmask 1041408   ;;  %vm87_vm1 = vcmask 80896   ;;  %vm12236_vm2 = vmmov 1   ;;  %v15602_v35 = vmov 0.0   ;;  %s15559_s1 = inlined_call_operand.vmem [shape: f32[10,128], index: 1, kind: input, shape index: {}]   ;;  %s15560_s0 = inlined_call_operand.vmem [shape: f32[256,10], index: 0, kind: input, shape index: {}]   ;;  %s15561_s3 = inlined_call_operand.vmem [shape: f32[15,128], index: 3, kind: input, shape index: {}]   ;;  %s15562_s2 = inlined_call_operand.vmem [shape: f32[2560,128], index: 2, kind: input, shape index: {}]   ;;  %s15563_s4 = inlined_call_operand.vmem [shape: f32[64,253], index: 4, kind: input, shape index: {}]   ;;  %s15564_s5 = inlined_call_operand.vmem [shape: f32[32,63], index: 5, kind: input, shape index: {}]   ;;  %s15565_s6 = inlined_call_operand.vmem [shape: f32[16,31], index: 6, kind: input, shape index: {}]   ;;  %s15566_s7 = inlined_call_operand.vmem [shape: f32[8,15], index: 7, kind: input, shape index: {}]   ;;  %s15567_s8 = inlined_call_operand.vmem [shape: f32[128,384], index: 8, kind: input, shape index: {}]   ;;  %s15568_s10 = inlined_call_operand.vmem [shape: f32[128,384], index: 10, kind: input, shape index: {}]   ;;  %s15569_s12 = inlined_call_operand.vmem [shape: f32[8,128], index: 12, kind: output, shape index: {0}]   ;;  %s15570_s9 = inlined_call_operand.vmem [shape: f32[1,384], index: 9, kind: input, shape index: {}]   ;;  %s15571_s11 = inlined_call_operand.vmem [shape: f32[1,384], index: 11, kind: input, shape index: {}]   ;;  %s15572_s13 = inlined_call_operand.vmem [shape: f32[8,128], index: 13, kind: output, shape index: {1}]  }
   0x1   :  { %v80_v0 = vld [vmem:[%s15559_s1] sm:$0xff]  ;;  %v81_v1 = vld [vmem:[%s15559_s1 + $0x8] sm:$0x3]  ;;  %vm10491_vm3 = vmpackc.low %vm184_vm0, %vm12236_vm2  ;;  %935 = vst [vmem:[#allocation2] sm:$0xff] %v15602_v35  ;;  %v15573_v36 = vlaneseq  ;;  %vm4037_vm5 = vcmask 1022976   ;;  %vm4062_vm6 = vcmask 1044480  }
   0x2   :  { %v10490_v2 = vpack.c.bf16 %v81_v1, %v80_v0  ;;  %v48_v3 = vld [vmem:[%s15560_s0] sm:$0xff]  ;;  %v49_v4 = vld [vmem:[%s15560_s0 + $0x8] sm:$0xff]  ;;  %v50_v5 = vld [vmem:[%s15560_s0 + $0x10] sm:$0xff]  ;;  %936 = vst [vmem:[#allocation2 + $0x8] sm:$0xff] %v15602_v35  ;;  %vm4963_vm8 = vcmask 515072   ;;  %vm4976_vm9 = vcmask 1046528  }
   0x3   :  { %8979 = vmatprep.mubr.msk.f32.mxu0 %vm87_vm1, %v48_v3  ;;  %v64_v6 = vld [vmem:[%s15560_s0 + $0x80] sm:$0xff]  ;;  %v65_v7 = vld [vmem:[%s15560_s0 + $0x88] sm:$0xff]  ;;  %v66_v8 = vld [vmem:[%s15560_s0 + $0x90] sm:$0xff]  ;;  %937 = vst [vmem:[#allocation2 + $0x10] sm:$0xff] %v15602_v35  ;;  %v44_v37 = vand.u32 127, %v15573_v36  ;;  %vm5631_vm11 = vcmask 252928  }
   0x4   :  { %10492 = vmatprep.subr.msk.bf16.mxu0 %vm10491_vm3, %v10490_v2  ;;  %11705 = vmatprep.subr.msk.bf16.mxu1 %vm10491_vm3, %v10490_v2  ;;  %v51_v9 = vld [vmem:[%s15560_s0 + $0x18] sm:$0xff]  ;;  %v52_v10 = vld [vmem:[%s15560_s0 + $0x20] sm:$0xff]  ;;  %v53_v13 = vld [vmem:[%s15560_s0 + $0x28] sm:$0xff]  ;;  %938 = vst [vmem:[#allocation2 + $0x18] sm:$0xff] %v15602_v35  ;;  %vm12239_vm12 = vmmov 0   ;;  %vm6169_vm13 = vcmask 121856  }
   0x5   :  { %10495 = vmatpush3.bf16.msk.msra.mxu0 %vm10491_vm3, %v10490_v2  ;;  %11706 = vmatpush3.bf16.msk.msra.mxu1 %vm10491_vm3, %v10490_v2  ;;  %v67_v11 = vld [vmem:[%s15560_s0 + $0x98] sm:$0xff]  ;;  %v68_v12 = vld [vmem:[%s15560_s0 + $0xa0] sm:$0xff]  ;;  %v54_v14 = vld [vmem:[%s15560_s0 + $0x30] sm:$0xff]  ;;  %939 = vst [vmem:[#allocation2 + $0x20] sm:$0xff] %v15602_v35  ;;  %vm45_vm4 = vcmp.lt.s32.totalorder %v44_v37, 32 }
   0x6   :  { %9003 = vmatprep.mubr.msk.f32.mxu1 %vm87_vm1, %v64_v6  ;;  %v69_v15 = vld [vmem:[%s15560_s0 + $0xa8] sm:$0xff]  ;;  %v70_v16 = vld [vmem:[%s15560_s0 + $0xb0] sm:$0xff]  ;;  %v55_v17 = vld [vmem:[%s15560_s0 + $0x38] sm:$0xff]  ;;  %940 = vst [vmem:[#allocation2 + $0x28] sm:$0xff] %v15602_v35  ;;  %v12485_v41 = vsel %vm45_vm4, 1.0, %v15602_v35 }
   0x7   :  { %v56_v18 = vld [vmem:[%s15560_s0 + $0x40] sm:$0xff]  ;;  %v71_v19 = vld [vmem:[%s15560_s0 + $0xb8] sm:$0xff]  ;;  %v57_v21 = vld [vmem:[%s15560_s0 + $0x48] sm:$0xff]  ;;  %941 = vst [vmem:[#allocation2 + $0x30] sm:$0xff] %v15602_v35 }
   0x8   :  { %8980 = vmatmul.mubr.msk.f32.vlgmr.msra.gmra.mrb[0].mxu0 %vm87_vm1, %v49_v4  ;;  %9004 = vmatmul.mubr.msk.f32.vlgmr.msra.gmra.mrb[0].mxu1 %vm87_vm1, %v65_v7  ;;  %v72_v20 = vld [vmem:[%s15560_s0 + $0xc0] sm:$0xff]  ;;  %v58_v22 = vld [vmem:[%s15560_s0 + $0x50] sm:$0xff]  ;;  %v73_v23 = vld [vmem:[%s15560_s0 + $0xc8] sm:$0xff]  ;;  %942 = vst [vmem:[#allocation2 + $0x38] sm:$0xff] %v15602_v35 }
   0x9   :  { %8982 = vmatprep.mubr.msk.f32.mxu0 %vm87_vm1, %v50_v5  ;;  %9006 = vmatprep.mubr.msk.f32.mxu1 %vm87_vm1, %v66_v8  ;;  %v74_v24 = vld [vmem:[%s15560_s0 + $0xd0] sm:$0xff]  ;;  %v59_v25 = vld [vmem:[%s15560_s0 + $0x58] sm:$0xff]  ;;  %v60_v26 = vld [vmem:[%s15560_s0 + $0x60] sm:$0xff]  ;;  %943 = vst [vmem:[#allocation2 + $0x40] sm:$0xff] %v15602_v35 }
   0xa   :  { %v75_v27 = vld [vmem:[%s15560_s0 + $0xd8] sm:$0xff]  ;;  %v76_v28 = vld [vmem:[%s15560_s0 + $0xe0] sm:$0xff]  ;;  %v61_v29 = vld [vmem:[%s15560_s0 + $0x68] sm:$0xff]  ;;  %944 = vst [vmem:[#allocation2 + $0x48] sm:$0xff] %v15602_v35 }
   0xb   :  { %v62_v30 = vld [vmem:[%s15560_s0 + $0x70] sm:$0xff]  ;;  %v77_v31 = vld [vmem:[%s15560_s0 + $0xe8] sm:$0xff]  ;;  %v63_v33 = vld [vmem:[%s15560_s0 + $0x78] sm:$0xff]  ;;  %945 = vst [vmem:[#allocation2 + $0x50] sm:$0xff] %v15602_v35 }
   0xc   :  { %8983 = vmatmul.mubr.msk.f32.gmra.mrb[2].mxu0 %vm87_vm1, %v51_v9  ;;  %9007 = vmatmul.mubr.msk.f32.gmra.mrb[2].mxu1 %vm87_vm1, %v67_v11  ;;  %v78_v32 = vld [vmem:[%s15560_s0 + $0xf0] sm:$0xff]  ;;  %v79_v34 = vld [vmem:[%s15560_s0 + $0xf8] sm:$0xff]  ;;  %946 = vst [vmem:[#allocation2 + $0x58] sm:$0xff] %v15602_v35  ;;  %947 = vst [vmem:[#allocation2 + $0x60] sm:$0xff] %v15602_v35 }
   0xd   :  { %8985 = vmatprep.mubr.msk.f32.mxu0 %vm87_vm1, %v52_v10  ;;  %9009 = vmatprep.mubr.msk.f32.mxu1 %vm87_vm1, %v68_v12  ;;  %948 = vst [vmem:[#allocation2 + $0x68] sm:$0xff] %v15602_v35  ;;  %949 = vst [vmem:[#allocation2 + $0x70] sm:$0xff] %v15602_v35  ;;  %v12482_v38 = vld [vmem:[%s15561_s3] ss:$0 sm:$0xff] }
   0xe   :  { %950 = vst [vmem:[#allocation2 + $0x78] sm:$0xff] %v15602_v35  ;;  %951 = vst [vmem:[#allocation2 + $0x80] sm:$0xff] %v15602_v35 }
   0xf   :  { %952 = vst [vmem:[#allocation2 + $0x88] sm:$0xff] %v15602_v35  ;;  %953 = vst [vmem:[#allocation2 + $0x90] sm:$0xff] %v15602_v35 }
  0x10   :  { %8986 = vmatmul.mubr.msk.f32.gmra.mrb[4].mxu0 %vm87_vm1, %v53_v13  ;;  %9010 = vmatmul.mubr.msk.f32.gmra.mrb[4].mxu1 %vm87_vm1, %v69_v15  ;;  %954 = vst [vmem:[#allocation2 + $0x98] sm:$0xff] %v15602_v35  ;;  %955 = vst [vmem:[#allocation2 + $0xa0] sm:$0xff] %v15602_v35 }
  0x11   :  { %8988 = vmatprep.mubr.msk.f32.mxu0 %vm87_vm1, %v54_v14  ;;  %9012 = vmatprep.mubr.msk.f32.mxu1 %vm87_vm1, %v70_v16  ;;  %956 = vst [vmem:[#allocation2 + $0xa8] sm:$0xff] %v15602_v35  ;;  %957 = vst [vmem:[#allocation2 + $0xb0] sm:$0xff] %v15602_v35 }
  0x12   :  { %958 = vst [vmem:[#allocation2 + $0xb8] sm:$0xff] %v15602_v35  ;;  %959 = vst [vmem:[#allocation2 + $0xc0] sm:$0xff] %v15602_v35 }
  0x13   :  { %960 = vst [vmem:[#allocation2 + $0xc8] sm:$0xff] %v15602_v35  ;;  %961 = vst [vmem:[#allocation2 + $0xd0] sm:$0xff] %v15602_v35 }
  0x14   :  { %8989 = vmatmul.mubr.msk.f32.gmra.mrb[6].mxu0 %vm87_vm1, %v55_v17  ;;  %9013 = vmatmul.mubr.msk.f32.gmra.mrb[6].mxu1 %vm87_vm1, %v71_v19  ;;  %962 = vst [vmem:[#allocation2 + $0xd8] sm:$0xff] %v15602_v35  ;;  %963 = vst [vmem:[#allocation2 + $0xe0] sm:$0xff] %v15602_v35 }
  0x15   :  { %8991 = vmatprep.mubr.msk.f32.mxu0 %vm87_vm1, %v56_v18  ;;  %9015 = vmatprep.mubr.msk.f32.mxu1 %vm87_vm1, %v72_v20  ;;  %964 = vst [vmem:[#allocation2 + $0xe8] sm:$0xff] %v15602_v35  ;;  %965 = vst [vmem:[#allocation2 + $0xf0] sm:$0xff] %v15602_v35 }
  0x16   :  { %966 = vst [vmem:[#allocation2 + $0xf8] sm:$0xff] %v15602_v35  ;;  %967 = vst [vmem:[#allocation2 + $0x100] sm:$0xf] %v15602_v35 }
  0x17   :  { %15606 = vst [vmem:[#allocation4_spill] sm:$0xff] %v12485_v41  ;;  %vm10781_vm7 = vmpackc.low %vm4062_vm6, %vm12236_vm2 }
  0x18   :  { %8992 = vmatmul.mubr.msk.f32.gmra.mrb[8].mxu0 %vm87_vm1, %v57_v21  ;;  %9016 = vmatmul.mubr.msk.f32.gmra.mrb[8].mxu1 %vm87_vm1, %v73_v23  ;;  %vm14262_vm10 = vmpackc.low %vm4976_vm9, %vm12236_vm2 }
  0x19   :  { %8994 = vmatprep.mubr.msk.f32.mxu0 %vm87_vm1, %v58_v22  ;;  %9018 = vmatprep.mubr.msk.f32.mxu1 %vm87_vm1, %v74_v24 }
  0x1c   :  { %8995 = vmatmul.mubr.msk.f32.gmra.mrb[10].mxu0 %vm87_vm1, %v59_v25  ;;  %9019 = vmatmul.mubr.msk.f32.gmra.mrb[10].mxu1 %vm87_vm1, %v75_v27 }
  0x1d   :  { %8997 = vmatprep.mubr.msk.f32.mxu0 %vm87_vm1, %v60_v26  ;;  %9021 = vmatprep.mubr.msk.f32.mxu1 %vm87_vm1, %v76_v28 }
  0x20   :  { %8998 = vmatmul.mubr.msk.f32.gmra.mrb[12].mxu0 %vm87_vm1, %v61_v29  ;;  %9022 = vmatmul.mubr.msk.f32.gmra.mrb[12].mxu1 %vm87_vm1, %v77_v31 }
  0x21   :  { %9000 = vmatprep.mubr.msk.f32.mxu0 %vm87_vm1, %v62_v30  ;;  %9024 = vmatprep.mubr.msk.f32.mxu1 %vm87_vm1, %v78_v32 }
  0x24   :  { %9001 = vmatmul.mubr.msk.f32.gmra.mrb[14].mxu0 %vm87_vm1, %v63_v33  ;;  %9025 = vmatmul.mubr.msk.f32.gmra.mrb[14].mxu1 %vm87_vm1, %v79_v34 }
  0xdb   :  { %v8981_v39 = vpop.f32.mrb[0].mxu0  ;;  %v12487_v42 = vpop.f32.mrb[0].mxu1 }
  0xdc   :  { %v254_v40 = vpop.f32.mrb[1].mxu0  ;;  %v12492_v44 = vpop.f32.mrb[1].mxu1  ;;  %v12495_v45 = vadd.f32 %v8981_v39, %v12482_v38 }
  0xdd   :  { %v12490_v43 = vadd.f32 %v12482_v38, %v254_v40  ;;  %v12578_v37 = vadd.f32 %v12482_v38, %v12492_v44 }
  0xde   :  { %v416_v55 = vmul.f32 %v12485_v41, %v12495_v45 }
  0xdf   :  { %v8984_v46 = vpop.f32.mrb[2].mxu0  ;;  %v415_v47 = vmul.f32 %v12485_v41, %v12490_v43  ;;  %v12499_v49 = vpop.f32.mrb[2].mxu1  ;;  %v431_v44 = vmul.f32 %v12485_v41, %v12578_v37 }
  0xe0   :  { %v264_v48 = vpop.f32.mrb[3].mxu0  ;;  %v12504_v51 = vpop.f32.mrb[3].mxu1  ;;  %v12507_v52 = vadd.f32 %v8984_v46, %v12482_v38 }
  0xe1   :  { %v12502_v50 = vadd.f32 %v12482_v38, %v264_v48  ;;  %447 = vadd.xlane.f32.xlu0 %v415_v47 }
  0xe2   :  { %v418_v62 = vmul.f32 %v12485_v41, %v12507_v52 }
  0xe3   :  { %v8987_v53 = vpop.f32.mrb[4].mxu0  ;;  %v417_v54 = vmul.f32 %v12485_v41, %v12502_v50  ;;  %v12513_v57 = vpop.f32.mrb[4].mxu1 }
  0xe4   :  { %v274_v56 = vpop.f32.mrb[5].mxu0  ;;  %v12518_v59 = vpop.f32.mrb[5].mxu1  ;;  %v12521_v60 = vadd.f32 %v8987_v53, %v12482_v38  ;;  %v12592_v53 = vadd.f32 %v12482_v38, %v12504_v51 }
  0xe5   :  { %v12516_v58 = vadd.f32 %v12482_v38, %v274_v56  ;;  %451 = vadd.xlane.f32.xlu1 %v417_v54  ;;  %449 = vadd.xlane.f32.xlu0 %v416_v55  ;;  %v12598_v54 = vadd.f32 %v12487_v42, %v12482_v38  ;;  %v12604_v56 = vadd.f32 %v12482_v38, %v12518_v59 }
  0xe6   :  { %v420_v6 = vmul.f32 %v12485_v41, %v12521_v60  ;;  %v433_v51 = vmul.f32 %v12485_v41, %v12592_v53  ;;  %v12621_v59 = vadd.f32 %v12513_v57, %v12482_v38 }
  0xe7   :  { %v8990_v61 = vpop.f32.mrb[6].mxu0  ;;  %v419_v63 = vmul.f32 %v12485_v41, %v12516_v58  ;;  %v12527_v1 = vpop.f32.mrb[6].mxu1  ;;  %v432_v42 = vmul.f32 %v12485_v41, %v12598_v54 }
  0xe8   :  { %v284_v0 = vpop.f32.mrb[7].mxu0  ;;  %v364_v3 = vpop.f32.mrb[7].mxu1  ;;  %v12533_v4 = vadd.f32 %v8990_v61, %v12482_v38  ;;  %v12610_v61 = vadd.f32 %v12499_v49, %v12482_v38 }
  0xe9   :  { %v12530_v2 = vadd.f32 %v12482_v38, %v284_v0  ;;  %453 = vadd.xlane.f32.xlu1 %v418_v62  ;;  %455 = vadd.xlane.f32.xlu0 %v419_v63  ;;  %v12615_v62 = vadd.f32 %v12482_v38, %v364_v3  ;;  %v435_v63 = vmul.f32 %v12485_v41, %v12604_v56 }
  0xea   :  { %v422_v14 = vmul.f32 %v12485_v41, %v12533_v4  ;;  %v434_v0 = vmul.f32 %v12485_v41, %v12610_v61  ;;  %v12632_v3 = vadd.f32 %v12527_v1, %v12482_v38 }
  0xeb   :  { %v8993_v5 = vpop.f32.mrb[8].mxu0  ;;  %v421_v7 = vmul.f32 %v12485_v41, %v12530_v2  ;;  %v12539_v9 = vpop.f32.mrb[8].mxu1 }
  0xec   :  { %v294_v8 = vpop.f32.mrb[9].mxu0  ;;  %v374_v11 = vpop.f32.mrb[9].mxu1  ;;  %v12545_v12 = vadd.f32 %v8993_v5, %v12482_v38  ;;  %v437_v5 = vmul.f32 %v12485_v41, %v12615_v62 }
  0xed   :  { %v12542_v10 = vadd.f32 %v12482_v38, %v294_v8  ;;  %457 = vadd.xlane.f32.xlu1 %v420_v6  ;;  %459 = vadd.xlane.f32.xlu0 %v421_v7  ;;  %v12626_v49 = vadd.f32 %v12482_v38, %v374_v11  ;;  %v436_v6 = vmul.f32 %v12485_v41, %v12621_v59 }
  0xee   :  { %v424_v22 = vmul.f32 %v12485_v41, %v12545_v12  ;;  %v12643_v8 = vadd.f32 %v12539_v9, %v12482_v38  ;;  %v438_v11 = vmul.f32 %v12485_v41, %v12632_v3 }
  0xef   :  { %v8996_v13 = vpop.f32.mrb[10].mxu0  ;;  %v423_v15 = vmul.f32 %v12485_v41, %v12542_v10  ;;  %v12551_v17 = vpop.f32.mrb[10].mxu1  ;;  %v439_v7 = vmul.f32 %v12485_v41, %v12626_v49 }
  0xf0   :  { %v304_v16 = vpop.f32.mrb[11].mxu0  ;;  %v384_v19 = vpop.f32.mrb[11].mxu1  ;;  %v12557_v20 = vadd.f32 %v8996_v13, %v12482_v38 }
  0xf1   :  { %v12554_v18 = vadd.f32 %v12482_v38, %v304_v16  ;;  %461 = vadd.xlane.f32.xlu1 %v422_v14  ;;  %463 = vadd.xlane.f32.xlu0 %v423_v15  ;;  %v12637_v57 = vadd.f32 %v12482_v38, %v384_v19  ;;  %v12654_v14 = vadd.f32 %v12551_v17, %v12482_v38 }
  0xf2   :  { %v426_v30 = vmul.f32 %v12485_v41, %v12557_v20  ;;  %v440_v15 = vmul.f32 %v12485_v41, %v12643_v8 }
  0xf3   :  { %v8999_v21 = vpop.f32.mrb[12].mxu0  ;;  %v425_v23 = vmul.f32 %v12485_v41, %v12554_v18  ;;  %v9023_v25 = vpop.f32.mrb[12].mxu1  ;;  %v441_v13 = vmul.f32 %v12485_v41, %v12637_v57 }
  0xf4   :  { %v314_v24 = vpop.f32.mrb[13].mxu0  ;;  %v394_v27 = vpop.f32.mrb[13].mxu1  ;;  %v12567_v28 = vadd.f32 %v8999_v21, %v12482_v38  ;;  %v12664_v19 = vadd.f32 %v9023_v25, %v12482_v38  ;;  %v442_v21 = vmul.f32 %v12485_v41, %v12654_v14 }
  0xf5   :  { %v12564_v26 = vadd.f32 %v12482_v38, %v314_v24  ;;  %465 = vadd.xlane.f32.xlu1 %v424_v22  ;;  %467 = vadd.xlane.f32.xlu0 %v425_v23  ;;  %v12648_v1 = vadd.f32 %v12482_v38, %v394_v27 }
  0xf6   :  { %v428_v47 = vmul.f32 %v12485_v41, %v12567_v28  ;;  %v444_v22 = vmul.f32 %v12485_v41, %v12664_v19 }
  0xf7   :  { %v9002_v29 = vpop.f32.mrb[14].mxu0  ;;  %v427_v31 = vmul.f32 %v12485_v41, %v12564_v26  ;;  %v9026_v33 = vpop.f32.mrb[14].mxu1  ;;  %v443_v16 = vmul.f32 %v12485_v41, %v12648_v1 }
  0xf8   :  { %v324_v32 = vpop.f32.mrb[15].mxu0  ;;  %v12581_v39 = vadd.f32 %v9026_v33, %v12482_v38  ;;  %v404_v40 = vpop.f32.mrb[15].mxu1  ;;  %v12584_v46 = vadd.f32 %v9002_v29, %v12482_v38 }
  0xf9   :  { %v12574_v34 = vadd.f32 %v12482_v38, %v324_v32  ;;  %469 = vadd.xlane.f32.xlu1 %v426_v30  ;;  %471 = vadd.xlane.f32.xlu0 %v427_v31  ;;  %v12659_v9 = vadd.f32 %v12482_v38, %v404_v40 }
  0xfa   :  { %v430_v55 = vmul.f32 %v12485_v41, %v12584_v46  ;;  %v446_v23 = vmul.f32 %v12485_v41, %v12581_v39 }
  0xfb   :  { %v429_v48 = vmul.f32 %v12485_v41, %v12574_v34  ;;  %v445_v17 = vmul.f32 %v12485_v41, %v12659_v9 }
  0xfd   :  { %473 = vadd.xlane.f32.xlu1 %v428_v47  ;;  %475 = vadd.xlane.f32.xlu0 %v429_v48 }
 0x101   :  { %477 = vadd.xlane.f32.xlu1 %v430_v55  ;;  %479 = vadd.xlane.f32.xlu0 %v431_v44 }
 0x105   :  { %481 = vadd.xlane.f32.xlu1 %v432_v42  ;;  %483 = vadd.xlane.f32.xlu0 %v433_v51 }
 0x109   :  { %485 = vadd.xlane.f32.xlu1 %v434_v0  ;;  %487 = vadd.xlane.f32.xlu0 %v435_v63 }
 0x10d   :  { %489 = vadd.xlane.f32.xlu1 %v436_v6  ;;  %491 = vadd.xlane.f32.xlu0 %v437_v5 }
 0x111   :  { %493 = vadd.xlane.f32.xlu1 %v438_v11  ;;  %495 = vadd.xlane.f32.xlu0 %v439_v7 }
 0x115   :  { %497 = vadd.xlane.f32.xlu1 %v440_v15  ;;  %499 = vadd.xlane.f32.xlu0 %v441_v13 }
 0x119   :  { %501 = vadd.xlane.f32.xlu1 %v442_v21  ;;  %503 = vadd.xlane.f32.xlu0 %v443_v16 }
 0x11d   :  { %505 = vadd.xlane.f32.xlu1 %v444_v22  ;;  %507 = vadd.xlane.f32.xlu0 %v445_v17 }
 0x121   :  { %509 = vadd.xlane.f32.xlu1 %v446_v23 }
 0x16e   :  { %v448_v24 = vpop.xlane.xlu0 %447 }
 0x16f   :  { %v511_v38 = vmul.f32 0.03125, %v448_v24 }
 0x171   :  { %v543_v25 = vsub.f32 %v12490_v43, %v511_v38 }
 0x172   :  { %v452_v27 = vpop.xlane.xlu1 %451  ;;  %v450_v29 = vpop.xlane.xlu0 %449 }
 0x173   :  { %v513_v30 = vmul.f32 0.03125, %v452_v27  ;;  %v512_v31 = vmul.f32 0.03125, %v450_v29  ;;  %v12676_v32 = vmul.f32 %v12485_v41, %v543_v25 }
 0x175   :  { %v545_v33 = vsub.f32 %v12502_v50, %v513_v30  ;;  %v544_v40 = vsub.f32 %v12495_v45, %v512_v31  ;;  %v607_v47 = vmul.f32 %v12676_v32, %v12676_v32 }
 0x176   :  { %v454_v48 = vpop.xlane.xlu1 %453  ;;  %v456_v44 = vpop.xlane.xlu0 %455 }
 0x177   :  { %v514_v55 = vmul.f32 0.03125, %v454_v48  ;;  %v515_v51 = vmul.f32 0.03125, %v456_v44  ;;  %639 = vadd.xlane.f32.xlu0 %v607_v47  ;;  %v12683_v43 = vmul.f32 %v12485_v41, %v545_v33  ;;  %v12686_v42 = vmul.f32 %v12485_v41, %v544_v40 }
 0x179   :  { %v546_v63 = vsub.f32 %v12507_v52, %v514_v55  ;;  %v547_v50 = vsub.f32 %v12516_v58, %v515_v51  ;;  %v609_v45 = vmul.f32 %v12683_v43, %v12683_v43  ;;  %v608_v0 = vmul.f32 %v12686_v42, %v12686_v42  ;;  %v1069_v51 = vld [vmem:[%s15562_s2] sm:$0xff] }
 0x17a   :  { %v458_v5 = vpop.xlane.xlu1 %457  ;;  %v460_v6 = vpop.xlane.xlu0 %459 }
 0x17b   :  { %v516_v7 = vmul.f32 0.03125, %v458_v5  ;;  %v517_v11 = vmul.f32 0.03125, %v460_v6  ;;  %643 = vadd.xlane.f32.xlu0 %v609_v45  ;;  %641 = vadd.xlane.f32.xlu1 %v608_v0  ;;  %v12695_v13 = vmul.f32 %v12485_v41, %v546_v63  ;;  %v12698_v15 = vmul.f32 %v12485_v41, %v547_v50  ;;  %v1070_v63 = vld [vmem:[%s15562_s2 + $0x8] sm:$0xff] }
 0x17c   :  { %v10496_v0 = vpack.c.bf16 %v1070_v63, %v1069_v51 }
 0x17d   :  { %v548_v52 = vsub.f32 %v12521_v60, %v516_v7  ;;  %v549_v58 = vsub.f32 %v12530_v2, %v517_v11  ;;  %v610_v16 = vmul.f32 %v12695_v13, %v12695_v13  ;;  %v611_v21 = vmul.f32 %v12698_v15, %v12698_v15 }
 0x17e   :  { %v462_v17 = vpop.xlane.xlu1 %461  ;;  %v464_v22 = vpop.xlane.xlu0 %463  ;;  %10497 = vmatprep.subr.bf16.mxu1 %v10496_v0 }
 0x17f   :  { %v518_v23 = vmul.f32 0.03125, %v462_v17  ;;  %v519_v24 = vmul.f32 0.03125, %v464_v22  ;;  %645 = vadd.xlane.f32.xlu1 %v610_v16  ;;  %647 = vadd.xlane.f32.xlu0 %v611_v21  ;;  %v12707_v38 = vmul.f32 %v12485_v41, %v548_v52  ;;  %v12710_v25 = vmul.f32 %v12485_v41, %v549_v58  ;;  %v1071_v17 = vld [vmem:[%s15562_s2 + $0x10] sm:$0xff]  ;;  %v1072_v22 = vld [vmem:[%s15562_s2 + $0x18] sm:$0xff] }
 0x180   :  { %10499 = vmatpush3.bf16.msra.mxu1 %v10496_v0 }
 0x181   :  { %v550_v60 = vsub.f32 %v12533_v4, %v518_v23  ;;  %v551_v2 = vsub.f32 %v12542_v10, %v519_v24  ;;  %v612_v27 = vmul.f32 %v12707_v38, %v12707_v38  ;;  %v613_v29 = vmul.f32 %v12710_v25, %v12710_v25 }
 0x182   :  { %v466_v30 = vpop.xlane.xlu1 %465  ;;  %v468_v31 = vpop.xlane.xlu0 %467 }
 0x183   :  { %v520_v33 = vmul.f32 0.03125, %v466_v30  ;;  %v521_v40 = vmul.f32 0.03125, %v468_v31  ;;  %649 = vadd.xlane.f32.xlu1 %v612_v27  ;;  %651 = vadd.xlane.f32.xlu0 %v613_v29  ;;  %v12719_v47 = vmul.f32 %v12485_v41, %v550_v60  ;;  %v12722_v48 = vmul.f32 %v12485_v41, %v551_v2 }
 0x184   :  { %v10500_v60 = vpack.c.bf16 %v1072_v22, %v1071_v17 }
 0x185   :  { %v552_v4 = vsub.f32 %v12545_v12, %v520_v33  ;;  %v553_v10 = vsub.f32 %v12554_v18, %v521_v40  ;;  %v614_v44 = vmul.f32 %v12719_v47, %v12719_v47  ;;  %v615_v55 = vmul.f32 %v12722_v48, %v12722_v48  ;;  %v1073_v40 = vld [vmem:[%s15562_s2 + $0x20] sm:$0xff] }
 0x186   :  { %v470_v50 = vpop.xlane.xlu1 %469  ;;  %v472_v45 = vpop.xlane.xlu0 %471  ;;  %10501 = vmatprep.subr.bf16.mxu1 %v10500_v60 }
 0x187   :  { %v522_v12 = vmul.f32 0.03125, %v470_v50  ;;  %v523_v5 = vmul.f32 0.03125, %v472_v45  ;;  %653 = vadd.xlane.f32.xlu1 %v614_v44  ;;  %655 = vadd.xlane.f32.xlu0 %v615_v55  ;;  %v12737_v18 = vmul.f32 %v12485_v41, %v552_v4  ;;  %v12740_v6 = vmul.f32 %v12485_v41, %v553_v10  ;;  %v1074_v4 = vld [vmem:[%s15562_s2 + $0x28] sm:$0xff] }
 0x188   :  { %10503 = vmatpush3.bf16.msra.mxu1 %v10500_v60  ;;  %v10504_v55 = vpack.c.bf16 %v1074_v4, %v1073_v40  ;;  %v1077_v60 = vld [vmem:[%s15562_s2 + $0x40] sm:$0xff] }
 0x189   :  { %v554_v7 = vsub.f32 %v12557_v20, %v522_v12  ;;  %v555_v11 = vsub.f32 %v12564_v26, %v523_v5  ;;  %v616_v52 = vmul.f32 %v12737_v18, %v12737_v18  ;;  %v617_v58 = vmul.f32 %v12740_v6, %v12740_v6  ;;  %v1075_v5 = vld [vmem:[%s15562_s2 + $0x30] sm:$0xff] }
 0x18a   :  { %v474_v16 = vpop.xlane.xlu1 %473  ;;  %v476_v21 = vpop.xlane.xlu0 %475  ;;  %10505 = vmatprep.subr.bf16.mxu1 %v10504_v55 }
 0x18b   :  { %v524_v20 = vmul.f32 0.03125, %v474_v16  ;;  %v525_v23 = vmul.f32 0.03125, %v476_v21  ;;  %657 = vadd.xlane.f32.xlu1 %v616_v52  ;;  %659 = vadd.xlane.f32.xlu0 %v617_v58  ;;  %v12755_v26 = vmul.f32 %v12485_v41, %v554_v7  ;;  %v12758_v24 = vmul.f32 %v12485_v41, %v555_v11  ;;  %v1076_v7 = vld [vmem:[%s15562_s2 + $0x38] sm:$0xff] }
 0x18c   :  { %10507 = vmatpush3.bf16.msra.mxu1 %v10504_v55  ;;  %v10508_v58 = vpack.c.bf16 %v1076_v7, %v1075_v5  ;;  %v1079_v55 = vld [vmem:[%s15562_s2 + $0x50] sm:$0xff] }
 0x18d   :  { %v556_v2 = vsub.f32 %v12567_v28, %v524_v20  ;;  %v557_v27 = vsub.f32 %v12574_v34, %v525_v23  ;;  %v618_v29 = vmul.f32 %v12755_v26, %v12755_v26  ;;  %v619_v30 = vmul.f32 %v12758_v24, %v12758_v24 }
 0x18e   :  { %v478_v31 = vpop.xlane.xlu1 %477  ;;  %v480_v33 = vpop.xlane.xlu0 %479  ;;  %10509 = vmatprep.subr.bf16.mxu1 %v10508_v58 }
 0x18f   :  { %v526_v28 = vmul.f32 0.03125, %v478_v31  ;;  %v527_v10 = vmul.f32 0.03125, %v480_v33  ;;  %661 = vadd.xlane.f32.xlu1 %v618_v29  ;;  %663 = vadd.xlane.f32.xlu0 %v619_v30  ;;  %v12773_v34 = vmul.f32 %v12485_v41, %v556_v2  ;;  %v12776_v44 = vmul.f32 %v12485_v41, %v557_v27  ;;  %v1078_v2 = vld [vmem:[%s15562_s2 + $0x48] sm:$0xff] }
 0x190   :  { %10511 = vmatpush3.bf16.msra.mxu1 %v10508_v58  ;;  %v10512_v30 = vpack.c.bf16 %v1078_v2, %v1077_v60  ;;  %v1081_v58 = vld [vmem:[%s15562_s2 + $0x60] sm:$0xff] }
 0x191   :  { %v558_v51 = vsub.f32 %v12584_v46, %v526_v28  ;;  %v559_v63 = vsub.f32 %v12578_v37, %v527_v10  ;;  %v620_v50 = vmul.f32 %v12773_v34, %v12773_v34  ;;  %v621_v45 = vmul.f32 %v12776_v44, %v12776_v44 }
 0x192   :  { %v482_v0 = vpop.xlane.xlu1 %481  ;;  %v484_v12 = vpop.xlane.xlu0 %483  ;;  %10513 = vmatprep.subr.bf16.mxu1 %v10512_v30 }
 0x193   :  { %v528_v46 = vmul.f32 0.03125, %v482_v0  ;;  %v529_v11 = vmul.f32 0.03125, %v484_v12  ;;  %665 = vadd.xlane.f32.xlu1 %v620_v50  ;;  %667 = vadd.xlane.f32.xlu0 %v621_v45  ;;  %v12791_v37 = vmul.f32 %v12485_v41, %v558_v51  ;;  %v12794_v52 = vmul.f32 %v12485_v41, %v559_v63  ;;  %v1080_v51 = vld [vmem:[%s15562_s2 + $0x58] sm:$0xff] }
 0x194   :  { %10515 = vmatpush3.bf16.msra.mxu1 %v10512_v30  ;;  %v10516_v45 = vpack.c.bf16 %v1080_v51, %v1079_v55  ;;  %v1083_v30 = vld [vmem:[%s15562_s2 + $0x70] sm:$0xff] }
 0x195   :  { %v560_v16 = vsub.f32 %v12598_v54, %v528_v46  ;;  %v561_v21 = vsub.f32 %v12592_v53, %v529_v11  ;;  %v622_v17 = vmul.f32 %v12791_v37, %v12791_v37  ;;  %v623_v22 = vmul.f32 %v12794_v52, %v12794_v52 }
 0x196   :  { %v486_v20 = vpop.xlane.xlu1 %485  ;;  %v488_v23 = vpop.xlane.xlu0 %487  ;;  %10517 = vmatprep.subr.bf16.mxu1 %v10516_v45 }
 0x197   :  { %v530_v54 = vmul.f32 0.03125, %v486_v20  ;;  %v531_v27 = vmul.f32 0.03125, %v488_v23  ;;  %669 = vadd.xlane.f32.xlu1 %v622_v17  ;;  %671 = vadd.xlane.f32.xlu0 %v623_v22  ;;  %v12809_v53 = vmul.f32 %v12485_v41, %v560_v16  ;;  %v12812_v29 = vmul.f32 %v12485_v41, %v561_v21  ;;  %v1082_v16 = vld [vmem:[%s15562_s2 + $0x68] sm:$0xff] }
 0x198   :  { %10519 = vmatpush3.bf16.msra.mxu1 %v10516_v45  ;;  %v10520_v22 = vpack.c.bf16 %v1082_v16, %v1081_v58 }
 0x199   :  { %v562_v31 = vsub.f32 %v12610_v61, %v530_v54  ;;  %v563_v33 = vsub.f32 %v12604_v56, %v531_v27  ;;  %v624_v40 = vmul.f32 %v12809_v53, %v12809_v53  ;;  %v625_v4 = vmul.f32 %v12812_v29, %v12812_v29 }
 0x19a   :  { %v490_v28 = vpop.xlane.xlu1 %489  ;;  %v492_v10 = vpop.xlane.xlu0 %491  ;;  %10521 = vmatprep.subr.bf16.mxu1 %v10520_v22 }
 0x19b   :  { %v532_v61 = vmul.f32 0.03125, %v490_v28  ;;  %v533_v63 = vmul.f32 0.03125, %v492_v10  ;;  %673 = vadd.xlane.f32.xlu1 %v624_v40  ;;  %675 = vadd.xlane.f32.xlu0 %v625_v4  ;;  %v12827_v56 = vmul.f32 %v12485_v41, %v562_v31  ;;  %v12830_v50 = vmul.f32 %v12485_v41, %v563_v33  ;;  %v1084_v31 = vld [vmem:[%s15562_s2 + $0x78] sm:$0xff] }
 0x19c   :  { %10523 = vmatpush3.bf16.msra.mxu1 %v10520_v22  ;;  %v10524_v4 = vpack.c.bf16 %v1084_v31, %v1083_v30 }
 0x19d   :  { %v564_v0 = vsub.f32 %v12621_v59, %v532_v61  ;;  %v565_v12 = vsub.f32 %v12615_v62, %v533_v63  ;;  %v626_v5 = vmul.f32 %v12827_v56, %v12827_v56  ;;  %v627_v7 = vmul.f32 %v12830_v50, %v12830_v50 }
 0x19e   :  { %v494_v46 = vpop.xlane.xlu1 %493  ;;  %v496_v11 = vpop.xlane.xlu0 %495  ;;  %10525 = vmatprep.subr.bf16.mxu1 %v10524_v4 }
 0x19f   :  { %v534_v59 = vmul.f32 0.03125, %v494_v46  ;;  %v535_v21 = vmul.f32 0.03125, %v496_v11  ;;  %677 = vadd.xlane.f32.xlu1 %v626_v5  ;;  %679 = vadd.xlane.f32.xlu0 %v627_v7  ;;  %v12845_v62 = vmul.f32 %v12485_v41, %v564_v0  ;;  %v12848_v17 = vmul.f32 %v12485_v41, %v565_v12 }
 0x1a0   :  { %10527 = vmatpush3.bf16.msra.mxu1 %v10524_v4 }
 0x1a1   :  { %v566_v20 = vsub.f32 %v12632_v3, %v534_v59  ;;  %v567_v23 = vsub.f32 %v12626_v49, %v535_v21  ;;  %v628_v60 = vmul.f32 %v12845_v62, %v12845_v62  ;;  %v629_v2 = vmul.f32 %v12848_v17, %v12848_v17 }
 0x1a2   :  { %v498_v54 = vpop.xlane.xlu1 %497  ;;  %v500_v27 = vpop.xlane.xlu0 %499 }
 0x1a3   :  { %v536_v3 = vmul.f32 0.03125, %v498_v54  ;;  %v537_v33 = vmul.f32 0.03125, %v500_v27  ;;  %681 = vadd.xlane.f32.xlu1 %v628_v60  ;;  %683 = vadd.xlane.f32.xlu0 %v629_v2  ;;  %v12863_v49 = vmul.f32 %v12485_v41, %v566_v20  ;;  %v12866_v40 = vmul.f32 %v12485_v41, %v567_v23 }
 0x1a5   :  { %v568_v28 = vsub.f32 %v12643_v8, %v536_v3  ;;  %v569_v10 = vsub.f32 %v12637_v57, %v537_v33  ;;  %v630_v55 = vmul.f32 %v12863_v49, %v12863_v49  ;;  %v631_v51 = vmul.f32 %v12866_v40, %v12866_v40  ;;  %v1438_v33 = vld [vmem:[%s15562_s2 + $0x80] sm:$0xff] }
 0x1a6   :  { %v502_v61 = vpop.xlane.xlu1 %501  ;;  %v504_v63 = vpop.xlane.xlu0 %503 }
 0x1a7   :  { %v538_v45 = vmul.f32 0.03125, %v502_v61  ;;  %v539_v0 = vmul.f32 0.03125, %v504_v63  ;;  %685 = vadd.xlane.f32.xlu1 %v630_v55  ;;  %687 = vadd.xlane.f32.xlu0 %v631_v51  ;;  %v12875_v12 = vmul.f32 %v12485_v41, %v568_v28  ;;  %v12878_v8 = vmul.f32 %v12485_v41, %v569_v10 }
 0x1a9   :  { %v570_v57 = vsub.f32 %v12654_v14, %v538_v45  ;;  %v571_v5 = vsub.f32 %v12648_v1, %v539_v0  ;;  %v632_v7 = vmul.f32 %v12875_v12, %v12875_v12  ;;  %v633_v46 = vmul.f32 %v12878_v8, %v12878_v8 }
 0x1aa   :  { %v506_v11 = vpop.xlane.xlu1 %505  ;;  %v508_v58 = vpop.xlane.xlu0 %507 }
 0x1ab   :  { %v540_v16 = vmul.f32 0.03125, %v506_v11  ;;  %v541_v59 = vmul.f32 0.03125, %v508_v58  ;;  %689 = vadd.xlane.f32.xlu1 %v632_v7  ;;  %691 = vadd.xlane.f32.xlu0 %v633_v46  ;;  %v12887_v21 = vmul.f32 %v12485_v41, %v570_v57  ;;  %v12890_v22 = vmul.f32 %v12485_v41, %v571_v5 }
 0x1ad   :  { %v572_v1 = vsub.f32 %v12664_v19, %v540_v16  ;;  %v573_v14 = vsub.f32 %v12659_v9, %v541_v59  ;;  %v634_v20 = vmul.f32 %v12887_v21, %v12887_v21  ;;  %v635_v23 = vmul.f32 %v12890_v22, %v12890_v22 }
 0x1ae   :  { %v510_v60 = vpop.xlane.xlu1 %509 }
 0x1af   :  { %v542_v2 = vmul.f32 0.03125, %v510_v60  ;;  %693 = vadd.xlane.f32.xlu1 %v634_v20  ;;  %695 = vadd.xlane.f32.xlu0 %v635_v23  ;;  %v12899_v54 = vmul.f32 %v12485_v41, %v572_v1  ;;  %v12902_v27 = vmul.f32 %v12485_v41, %v573_v14  ;;  %v12926_v60 = vld [vmem:[%s15561_s3 + $0x1] ss:$0 sm:$0xff] }
 0x1b1   :  { %v574_v19 = vsub.f32 %v12581_v39, %v542_v2  ;;  %v636_v9 = vmul.f32 %v12899_v54, %v12899_v54  ;;  %v637_v30 = vmul.f32 %v12902_v27, %v12902_v27  ;;  %v1439_v39 = vld [vmem:[%s15562_s2 + $0x88] sm:$0xff] }
 0x1b2   :  { %v12920_v4 = vpack.c.bf16 %v1439_v39, %v1438_v33  ;;  %v12932_v33 = vld [vmem:[%s15561_s3 + $0x2] ss:$0 sm:$0xff] }
 0x1b3   :  { %697 = vadd.xlane.f32.xlu1 %v636_v9  ;;  %699 = vadd.xlane.f32.xlu0 %v637_v30  ;;  %v12910_v31 = vmul.f32 %v12485_v41, %v574_v19 }
 0x1b4   :  { %10529 = vmatprep.subr.bf16.mxu1 %v12920_v4 }
 0x1b5   :  { %v638_v3 = vmul.f32 %v12910_v31, %v12910_v31 }
 0x1b7   :  { %701 = vadd.xlane.f32.xlu1 %v638_v3 }
 0x204   :  { %v640_v28 = vpop.xlane.xlu0 %639 }
 0x205   :  { %v703_v10 = vmul.f32 0.032258064, %v640_v28 }
 0x207   :  { %v735_v55 = vadd.f32 1e-05, %v703_v10 }
 0x208   :  { %v642_v51 = vpop.xlane.xlu1 %641  ;;  %v644_v61 = vpop.xlane.xlu0 %643 }
 0x209   :  { %12059 = vrsqrt.f32 %v735_v55  ;;  %v704_v63 = vmul.f32 0.032258064, %v642_v51  ;;  %v705_v45 = vmul.f32 0.032258064, %v644_v61 }
 0x20b   :  { %v736_v0 = vadd.f32 1e-05, %v704_v63  ;;  %v737_v57 = vadd.f32 1e-05, %v705_v45 }
 0x20c   :  { %v646_v5 = vpop.xlane.xlu1 %645  ;;  %v648_v7 = vpop.xlane.xlu0 %647 }
 0x20d   :  { %12061 = vrsqrt.f32 %v736_v0  ;;  %v706_v46 = vmul.f32 0.032258064, %v646_v5  ;;  %v707_v11 = vmul.f32 0.032258064, %v648_v7 }
 0x20e   :  { %12063 = vrsqrt.f32 %v737_v57 }
 0x20f   :  { %v738_v58 = vadd.f32 1e-05, %v706_v46  ;;  %v739_v16 = vadd.f32 1e-05, %v707_v11 }
 0x210   :  { %v650_v59 = vpop.xlane.xlu1 %649  ;;  %v652_v1 = vpop.xlane.xlu0 %651 }
 0x211   :  { %12065 = vrsqrt.f32 %v738_v58  ;;  %v708_v14 = vmul.f32 0.032258064, %v650_v59  ;;  %v709_v20 = vmul.f32 0.032258064, %v652_v1 }
 0x212   :  { %12067 = vrsqrt.f32 %v739_v16 }
 0x213   :  { %v12060_v23 = vpop.eup %12059  ;;  %v740_v2 = vadd.f32 1e-05, %v708_v14  ;;  %v741_v19 = vadd.f32 1e-05, %v709_v20 }
 0x214   :  { %v799_v9 = vmul.f32 %v12060_v23, %v12676_v32  ;;  %v654_v30 = vpop.xlane.xlu1 %653  ;;  %v656_v3 = vpop.xlane.xlu0 %655 }
 0x215   :  { %12069 = vrsqrt.f32 %v740_v2  ;;  %v710_v39 = vmul.f32 0.032258064, %v654_v30  ;;  %v711_v28 = vmul.f32 0.032258064, %v656_v3 }
 0x216   :  { %v835_v10 = vmul.f32 %v12926_v60, %v799_v9  ;;  %12071 = vrsqrt.f32 %v741_v19 }
 0x217   :  { %v12062_v55 = vpop.eup %12061  ;;  %v742_v51 = vadd.f32 1e-05, %v710_v39  ;;  %v743_v61 = vadd.f32 1e-05, %v711_v28 }
 0x218   :  { %v12064_v63 = vpop.eup %12063  ;;  %v871_v45 = vadd.f32 %v12932_v33, %v835_v10  ;;  %v800_v32 = vmul.f32 %v12062_v55, %v12686_v42  ;;  %v658_v0 = vpop.xlane.xlu1 %657 }
 0x219   :  { %v660_v57 = vpop.xlane.xlu0 %659  ;;  %v801_v5 = vmul.f32 %v12064_v63, %v12683_v43  ;;  %12073 = vrsqrt.f32 %v742_v51  ;;  %v712_v7 = vmul.f32 0.032258064, %v658_v0 }
 0x21a   :  { %v713_v46 = vmul.f32 0.032258064, %v660_v57  ;;  %v903_v11 = vmax.f32 %v871_v45, 0.0  ;;  %v836_v58 = vmul.f32 %v12926_v60, %v800_v32  ;;  %12075 = vrsqrt.f32 %v743_v61 }
 0x21b   :  { %v12066_v16 = vpop.eup %12065  ;;  %v837_v59 = vmul.f32 %v12926_v60, %v801_v5  ;;  %v744_v1 = vadd.f32 1e-05, %v712_v7 }
 0x21c   :  { %v745_v14 = vadd.f32 1e-05, %v713_v46  ;;  %v12068_v20 = vpop.eup %12067  ;;  %968 = vst [vmem:[#allocation2 + $0x2] sm:$0xff] %v903_v11  ;;  %v872_v42 = vadd.f32 %v12932_v33, %v836_v58  ;;  %v802_v23 = vmul.f32 %v12066_v16, %v12695_v13  ;;  %v662_v2 = vpop.xlane.xlu1 %661  ;;  %v1440_v46 = vld [vmem:[%s15562_s2 + $0x90] sm:$0xff]  ;;  %v1441_v11 = vld [vmem:[%s15562_s2 + $0x98] sm:$0xff] }
 0x21d   :  { %v664_v43 = vpop.xlane.xlu0 %663  ;;  %v873_v19 = vadd.f32 %v12932_v33, %v837_v59  ;;  %v803_v9 = vmul.f32 %v12068_v20, %v12698_v15  ;;  %12077 = vrsqrt.f32 %v744_v1  ;;  %v714_v30 = vmul.f32 0.032258064, %v662_v2 }
 0x21e   :  { %v904_v3 = vmax.f32 %v872_v42, 0.0  ;;  %v838_v39 = vmul.f32 %v12926_v60, %v802_v23  ;;  %12079 = vrsqrt.f32 %v745_v14  ;;  %v715_v28 = vmul.f32 0.032258064, %v664_v43 }
 0x21f   :  { %v12070_v10 = vpop.eup %12069  ;;  %v905_v55 = vmax.f32 %v873_v19, 0.0  ;;  %v839_v51 = vmul.f32 %v12926_v60, %v803_v9  ;;  %v746_v61 = vadd.f32 1e-05, %v714_v30  ;;  %v10532_v30 = vpack.c.bf16 %v1441_v11, %v1440_v46 }
 0x220   :  { %v12072_v63 = vpop.eup %12071  ;;  %969 = vst [vmem:[#allocation2 + $0xa] sm:$0xff] %v904_v3  ;;  %v12947_v13 = vadd.f32 %v12932_v33, %v838_v39  ;;  %v804_v45 = vmul.f32 %v12070_v10, %v12707_v38  ;;  %v747_v15 = vadd.f32 1e-05, %v715_v28  ;;  %v666_v32 = vpop.xlane.xlu1 %665  ;;  %v1442_v10 = vld [vmem:[%s15562_s2 + $0xa0] sm:$0xff] }
 0x221   :  { %v668_v0 = vpop.xlane.xlu0 %667  ;;  %970 = vst [vmem:[#allocation2 + $0x12] sm:$0xff] %v905_v55  ;;  %v12951_v57 = vadd.f32 %v12932_v33, %v839_v51  ;;  %v805_v5 = vmul.f32 %v12072_v63, %v12710_v25  ;;  %12081 = vrsqrt.f32 %v746_v61  ;;  %v716_v7 = vmul.f32 0.032258064, %v666_v32 }
 0x222   :  { %v15601_v38 = vmax.f32 %v12947_v13, 0.0  ;;  %v840_v58 = vmul.f32 %v12926_v60, %v804_v45  ;;  %12083 = vrsqrt.f32 %v747_v15  ;;  %v717_v16 = vmul.f32 0.032258064, %v668_v0 }
 0x223   :  { %v12074_v59 = vpop.eup %12073  ;;  %v15600_v1 = vmax.f32 %v12951_v57, 0.0  ;;  %v841_v25 = vmul.f32 %v12926_v60, %v805_v5  ;;  %v748_v14 = vadd.f32 1e-05, %v716_v7  ;;  %v1037_v20 = vld [vmem:[#allocation2] sm:$0xff] }
 0x224   :  { %v12076_v42 = vpop.eup %12075  ;;  %971 = vst [vmem:[#allocation2 + $0x1a] sm:$0xff] %v15601_v38  ;;  %v12967_v23 = vadd.f32 %v12932_v33, %v840_v58  ;;  %v806_v2 = vmul.f32 %v12074_v59, %v12719_v47  ;;  %v749_v43 = vadd.f32 1e-05, %v717_v16  ;;  %v670_v19 = vpop.xlane.xlu1 %669  ;;  %9059 = vmatprep.mubr.f32.mxu1 %v1037_v20  ;;  %v1443_v47 = vld [vmem:[%s15562_s2 + $0xa8] sm:$0xff] }
 0x225   :  { %v672_v9 = vpop.xlane.xlu0 %671  ;;  %972 = vst [vmem:[#allocation2 + $0x22] sm:$0xff] %v15600_v1  ;;  %v12973_v3 = vadd.f32 %v12932_v33, %v841_v25  ;;  %v807_v39 = vmul.f32 %v12076_v42, %v12722_v48  ;;  %12085 = vrsqrt.f32 %v748_v14  ;;  %v718_v28 = vmul.f32 0.032258064, %v670_v19  ;;  %v1445_v42 = vld [vmem:[%s15562_s2 + $0xb8] sm:$0xff]  ;;  %v1815_v1 = vld [vmem:[%s15562_s2 + $0x140] sm:$0xff]  ;;  %v1816_v38 = vld [vmem:[%s15562_s2 + $0x148] sm:$0xff] }
 0x226   :  { %v15599_v55 = vmax.f32 %v12967_v23, 0.0  ;;  %v842_v51 = vmul.f32 %v12926_v60, %v806_v2  ;;  %12087 = vrsqrt.f32 %v749_v43  ;;  %v719_v61 = vmul.f32 0.032258064, %v672_v9 }
 0x227   :  { %v12078_v63 = vpop.eup %12077  ;;  %v15598_v45 = vmax.f32 %v12973_v3, 0.0  ;;  %v843_v48 = vmul.f32 %v12926_v60, %v807_v39  ;;  %v750_v15 = vadd.f32 1e-05, %v718_v28  ;;  %v1038_v32 = vld [vmem:[#allocation2 + $0x8] sm:$0xff]  ;;  %v12992_v59 = vpack.c.bf16 %v1443_v47, %v1442_v10 }
 0x228   :  { %v12080_v0 = vpop.eup %12079  ;;  %973 = vst [vmem:[#allocation2 + $0x2a] sm:$0xff] %v15599_v55  ;;  %v12989_v5 = vadd.f32 %v12932_v33, %v842_v51  ;;  %v808_v7 = vmul.f32 %v12078_v63, %v12737_v18  ;;  %v751_v46 = vadd.f32 1e-05, %v719_v61  ;;  %v674_v11 = vpop.xlane.xlu1 %673  ;;  %9060 = vmatmul.mubr.f32.vlgmr.msra.gmra.mrb[16].mxu1 %v1038_v32  ;;  %v1039_v16 = vld [vmem:[#allocation2 + $0x10] sm:$0xff] }
 0x229   :  { %v676_v58 = vpop.xlane.xlu0 %675  ;;  %974 = vst [vmem:[#allocation2 + $0x32] sm:$0xff] %v15598_v45  ;;  %v12997_v25 = vadd.f32 %v12932_v33, %v843_v48  ;;  %v809_v14 = vmul.f32 %v12080_v0, %v12740_v6  ;;  %12089 = vrsqrt.f32 %v750_v15  ;;  %v720_v20 = vmul.f32 0.032258064, %v674_v11  ;;  %9062 = vmatprep.mubr.f32.mxu1 %v1039_v16  ;;  %10531 = vmatpush3.bf16.msra.mxu1 %v12920_v4  ;;  %v1444_v18 = vld [vmem:[%s15562_s2 + $0xb0] sm:$0xff]  ;;  %v1447_v11 = vld [vmem:[%s15562_s2 + $0xc8] sm:$0xff] }
 0x22a   :  { %v15597_v2 = vmax.f32 %v12989_v5, 0.0  ;;  %v844_v43 = vmul.f32 %v12926_v60, %v808_v7  ;;  %12091 = vrsqrt.f32 %v751_v46  ;;  %v721_v19 = vmul.f32 0.032258064, %v676_v58  ;;  %10533 = vmatprep.subr.bf16.mxu1 %v10532_v30 }
 0x22b   :  { %v12082_v6 = vpop.eup %12081  ;;  %v15596_v9 = vmax.f32 %v12997_v25, 0.0  ;;  %v845_v4 = vmul.f32 %v12926_v60, %v809_v14  ;;  %v752_v39 = vadd.f32 1e-05, %v720_v20  ;;  %v1040_v28 = vld [vmem:[#allocation2 + $0x18] sm:$0xff]  ;;  %v13017_v32 = vpack.c.bf16 %v1445_v42, %v1444_v18 }
 0x22c   :  { %v12084_v10 = vpop.eup %12083  ;;  %975 = vst [vmem:[#allocation2 + $0x3a] sm:$0xff] %v15597_v2  ;;  %v13014_v47 = vadd.f32 %v12932_v33, %v844_v43  ;;  %v810_v51 = vmul.f32 %v12082_v6, %v12755_v26  ;;  %v753_v61 = vadd.f32 1e-05, %v721_v19  ;;  %v678_v63 = vpop.xlane.xlu1 %677  ;;  %9063 = vmatmul.mubr.f32.gmra.mrb[18].mxu1 %v1040_v28  ;;  %v1041_v15 = vld [vmem:[#allocation2 + $0x20] sm:$0xff] }
 0x22d   :  { %v680_v48 = vpop.xlane.xlu0 %679  ;;  %976 = vst [vmem:[#allocation2 + $0x42] sm:$0xff] %v15596_v9  ;;  %v13022_v0 = vadd.f32 %v12932_v33, %v845_v4  ;;  %v811_v7 = vmul.f32 %v12084_v10, %v12758_v24  ;;  %12093 = vrsqrt.f32 %v752_v39  ;;  %v722_v46 = vmul.f32 0.032258064, %v678_v63  ;;  %9065 = vmatprep.mubr.f32.mxu1 %v1041_v15  ;;  %10535 = vmatpush3.bf16.msra.mxu1 %v10532_v30  ;;  %v1446_v26 = vld [vmem:[%s15562_s2 + $0xc0] sm:$0xff]  ;;  %v1449_v15 = vld [vmem:[%s15562_s2 + $0xd8] sm:$0xff] }
 0x22e   :  { %v15595_v58 = vmax.f32 %v13014_v47, 0.0  ;;  %v846_v16 = vmul.f32 %v12926_v60, %v810_v51  ;;  %12095 = vrsqrt.f32 %v753_v61  ;;  %v723_v14 = vmul.f32 0.032258064, %v680_v48  ;;  %10537 = vmatprep.subr.bf16.mxu1 %v12992_v59 }
 0x22f   :  { %v12086_v24 = vpop.eup %12085  ;;  %v15594_v20 = vmax.f32 %v13022_v0, 0.0  ;;  %v847_v30 = vmul.f32 %v12926_v60, %v811_v7  ;;  %v754_v18 = vadd.f32 1e-05, %v722_v46  ;;  %v1042_v42 = vld [vmem:[#allocation2 + $0x28] sm:$0xff]  ;;  %v13042_v51 = vpack.c.bf16 %v1447_v11, %v1446_v26 }
 0x230   :  { %v12088_v43 = vpop.eup %12087  ;;  %977 = vst [vmem:[#allocation2 + $0x4a] sm:$0xff] %v15595_v58  ;;  %v13039_v19 = vadd.f32 %v12932_v33, %v846_v16  ;;  %v812_v6 = vmul.f32 %v12086_v24, %v12773_v34  ;;  %v755_v4 = vadd.f32 1e-05, %v723_v14  ;;  %v682_v39 = vpop.xlane.xlu1 %681  ;;  %9066 = vmatmul.mubr.f32.gmra.mrb[20].mxu1 %v1042_v42  ;;  %v1043_v10 = vld [vmem:[#allocation2 + $0x30] sm:$0xff]  ;;  %v13306_v58 = vld [vmem:[#allocation2 + $0x26] sm:$0xff] }
 0x231   :  { %v684_v28 = vpop.xlane.xlu0 %683  ;;  %978 = vst [vmem:[#allocation2 + $0x52] sm:$0xff] %v15594_v20  ;;  %v13047_v61 = vadd.f32 %v12932_v33, %v847_v30  ;;  %v813_v63 = vmul.f32 %v12088_v43, %v12776_v44  ;;  %12097 = vrsqrt.f32 %v754_v18  ;;  %v724_v48 = vmul.f32 0.032258064, %v682_v39  ;;  %9068 = vmatprep.mubr.f32.mxu1 %v1043_v10  ;;  %10539 = vmatpush3.bf16.msra.mxu1 %v12992_v59  ;;  %v1448_v34 = vld [vmem:[%s15562_s2 + $0xd0] sm:$0xff]  ;;  %v13304_v20 = vld [vmem:[#allocation2 + $0x1e] sm:$0xff] }
 0x232   :  { %v15593_v7 = vmax.f32 %v13039_v19, 0.0  ;;  %v848_v46 = vmul.f32 %v12926_v60, %v812_v6  ;;  %12099 = vrsqrt.f32 %v755_v4  ;;  %v725_v26 = vmul.f32 0.032258064, %v684_v28  ;;  %10541 = vmatprep.subr.bf16.mxu1 %v13017_v32  ;;  %15615 = vst [vmem:[#allocation13_spill] sm:$0xff] %v13304_v20  ;;  %15616 = vst [vmem:[#allocation14_spill] sm:$0xff] %v13306_v58  ;;  %v1411_v9 = vld [vmem:[#allocation2 + $0x29] sm:$0xff] }
 0x233   :  { %v12090_v44 = vpop.eup %12089  ;;  %v15592_v11 = vmax.f32 %v13047_v61, 0.0  ;;  %v849_v59 = vmul.f32 %v12926_v60, %v813_v63  ;;  %v756_v16 = vadd.f32 1e-05, %v724_v48  ;;  %v1044_v14 = vld [vmem:[#allocation2 + $0x38] sm:$0xff]  ;;  %v13068_v39 = vpack.c.bf16 %v1449_v15, %v1448_v34  ;;  %v1451_v48 = vld [vmem:[%s15562_s2 + $0xe8] sm:$0xff] }
 0x234   :  { %v12092_v24 = vpop.eup %12091  ;;  %979 = vst [vmem:[#allocation2 + $0x5a] sm:$0xff] %v15593_v7  ;;  %v13065_v30 = vadd.f32 %v12932_v33, %v848_v46  ;;  %v814_v18 = vmul.f32 %v12090_v44, %v12791_v37  ;;  %v757_v42 = vadd.f32 1e-05, %v725_v26  ;;  %v686_v43 = vpop.xlane.xlu1 %685  ;;  %9069 = vmatmul.mubr.f32.gmra.mrb[22].mxu1 %v1044_v14  ;;  %v1045_v4 = vld [vmem:[#allocation2 + $0x40] sm:$0xff]  ;;  %v1412_v2 = vld [vmem:[#allocation2 + $0x31] sm:$0xff] }
 0x235   :  { %v688_v6 = vpop.xlane.xlu0 %687  ;;  %980 = vst [vmem:[#allocation2 + $0x62] sm:$0xff] %v15592_v11  ;;  %v13073_v28 = vadd.f32 %v12932_v33, %v849_v59  ;;  %v815_v10 = vmul.f32 %v12092_v24, %v12794_v52  ;;  %12101 = vrsqrt.f32 %v756_v16  ;;  %v726_v63 = vmul.f32 0.032258064, %v686_v43  ;;  %9071 = vmatprep.mubr.f32.mxu1 %v1045_v4  ;;  %10543 = vmatpush3.bf16.msra.mxu1 %v13017_v32  ;;  %v1450_v37 = vld [vmem:[%s15562_s2 + $0xe0] sm:$0xff]  ;;  %v13314_v35 = vld [vmem:[#allocation2 + $0x2b] sm:$0xff]  ;;  %v13316_v41 = vld [vmem:[#allocation2 + $0x33] sm:$0xff] }
 0x236   :  { %v15591_v34 = vmax.f32 %v13065_v30, 0.0  ;;  %v850_v15 = vmul.f32 %v12926_v60, %v814_v18  ;;  %12103 = vrsqrt.f32 %v757_v42  ;;  %v727_v46 = vmul.f32 0.032258064, %v688_v6  ;;  %10545 = vmatprep.subr.bf16.mxu1 %v13042_v51  ;;  %v13298_v11 = vld [vmem:[#allocation2 + $0x1d] sm:$0xff]  ;;  %v13300_v7 = vld [vmem:[#allocation2 + $0x25] sm:$0xff]  ;;  %v13322_v58 = vld [vmem:[#allocation2 + $0x34] sm:$0xff] }
 0x237   :  { %v12094_v52 = vpop.eup %12093  ;;  %v15574_v26 = vmax.f32 %v13073_v28, 0.0  ;;  %v851_v32 = vmul.f32 %v12926_v60, %v815_v10  ;;  %v758_v44 = vadd.f32 1e-05, %v726_v63  ;;  %v1046_v59 = vld [vmem:[#allocation2 + $0x48] sm:$0xff]  ;;  %v13094_v4 = vpack.c.bf16 %v1451_v48, %v1450_v37  ;;  %v1453_v37 = vld [vmem:[%s15562_s2 + $0xf8] sm:$0xff]  ;;  %15612 = vst [vmem:[#allocation10_spill] sm:$0xff] %v13298_v11 }
 0x238   :  { %v12096_v16 = vpop.eup %12095  ;;  %981 = vst [vmem:[#allocation2 + $0x6a] sm:$0xff] %v15591_v34  ;;  %v13091_v14 = vadd.f32 %v12932_v33, %v850_v15  ;;  %v816_v24 = vmul.f32 %v12094_v52, %v12809_v53  ;;  %v759_v18 = vadd.f32 1e-05, %v727_v46  ;;  %v690_v42 = vpop.xlane.xlu1 %689  ;;  %9072 = vmatmul.mubr.f32.gmra.mrb[24].mxu1 %v1046_v59  ;;  %v1047_v6 = vld [vmem:[#allocation2 + $0x50] sm:$0xff]  ;;  %15613 = vst [vmem:[#allocation11_spill] sm:$0xff] %v13300_v7  ;;  %v1413_v45 = vld [vmem:[#allocation2 + $0x39] sm:$0xff] }
 0x239   :  { %v692_v43 = vpop.xlane.xlu0 %691  ;;  %982 = vst [vmem:[#allocation2 + $0x72] sm:$0xff] %v15574_v26  ;;  %v13099_v10 = vadd.f32 %v12932_v33, %v851_v32  ;;  %v817_v63 = vmul.f32 %v12096_v16, %v12812_v29  ;;  %12105 = vrsqrt.f32 %v758_v44  ;;  %v728_v15 = vmul.f32 0.032258064, %v690_v42  ;;  %9074 = vmatprep.mubr.f32.mxu1 %v1047_v6  ;;  %10547 = vmatpush3.bf16.msra.mxu1 %v13042_v51  ;;  %v1452_v53 = vld [vmem:[%s15562_s2 + $0xf0] sm:$0xff]  ;;  %v1414_v55 = vld [vmem:[#allocation2 + $0x41] sm:$0xff] }
 0x23a   :  { %v15575_v48 = vmax.f32 %v13091_v14, 0.0  ;;  %v852_v46 = vmul.f32 %v12926_v60, %v816_v24  ;;  %12107 = vrsqrt.f32 %v759_v18  ;;  %v729_v52 = vmul.f32 0.032258064, %v692_v43  ;;  %10549 = vmatprep.subr.bf16.mxu1 %v13068_v39  ;;  %v13296_v34 = vld [vmem:[#allocation2 + $0x15] sm:$0xff]  ;;  %15617 = vst [vmem:[#allocation15_spill] sm:$0xff] %v13322_v58 }
 0x23b   :  { %v12098_v29 = vpop.eup %12097  ;;  %v15576_v32 = vmax.f32 %v13099_v10, 0.0  ;;  %v853_v51 = vmul.f32 %v12926_v60, %v817_v63  ;;  %v760_v44 = vadd.f32 1e-05, %v728_v15  ;;  %v1048_v59 = vld [vmem:[#allocation2 + $0x58] sm:$0xff]  ;;  %v10556_v26 = vpack.c.bf16 %v1453_v37, %v1452_v53  ;;  %v1808_v53 = vld [vmem:[%s15562_s2 + $0x108] sm:$0xff]  ;;  %15611 = vst [vmem:[#allocation9_spill] sm:$0xff] %v13296_v34 }
 0x23c   :  { %v12100_v16 = vpop.eup %12099  ;;  %983 = vst [vmem:[#allocation2 + $0x7a] sm:$0xff] %v15575_v48  ;;  %v13117_v42 = vadd.f32 %v12932_v33, %v852_v46  ;;  %v818_v24 = vmul.f32 %v12098_v29, %v12827_v56  ;;  %v761_v18 = vadd.f32 1e-05, %v729_v52  ;;  %v694_v43 = vpop.xlane.xlu1 %693  ;;  %9075 = vmatmul.mubr.f32.gmra.mrb[26].mxu1 %v1048_v59  ;;  %v1049_v36 = vld [vmem:[#allocation2 + $0x60] sm:$0xff]  ;;  %v13332_v7 = vld [vmem:[#allocation2 + $0x2e] sm:$0xff]  ;;  %v13334_v11 = vld [vmem:[#allocation2 + $0x36] sm:$0xff] }
 0x23d   :  { %v696_v6 = vpop.xlane.xlu0 %695  ;;  %984 = vst [vmem:[#allocation2 + $0x82] sm:$0xff] %v15576_v32  ;;  %v13123_v63 = vadd.f32 %v12932_v33, %v853_v51  ;;  %v819_v15 = vmul.f32 %v12100_v16, %v12830_v50  ;;  %12109 = vrsqrt.f32 %v760_v44  ;;  %v730_v48 = vmul.f32 0.032258064, %v694_v43  ;;  %9077 = vmatprep.mubr.f32.mxu1 %v1049_v36  ;;  %10551 = vmatpush3.bf16.msra.mxu1 %v13068_v39  ;;  %v1807_v56 = vld [vmem:[%s15562_s2 + $0x100] sm:$0xff] }
 0x23e   :  { %v15590_v37 = vmax.f32 %v13117_v42, 0.0  ;;  %v854_v46 = vmul.f32 %v12926_v60, %v818_v24  ;;  %12111 = vrsqrt.f32 %v761_v18  ;;  %v731_v52 = vmul.f32 0.032258064, %v696_v6  ;;  %10553 = vmatprep.subr.bf16.mxu1 %v13094_v4  ;;  %v13318_v20 = vld [vmem:[#allocation2 + $0x3b] sm:$0xff]  ;;  %15621 = vst [vmem:[#allocation19_spill] sm:$0xff] %v13332_v7  ;;  %v13349_v7 = vld [vmem:[#allocation2 + $0x27] sm:$0xff] }
 0x23f   :  { %v12102_v50 = vpop.eup %12101  ;;  %v15577_v36 = vmax.f32 %v13123_v63, 0.0  ;;  %v855_v39 = vmul.f32 %v12926_v60, %v819_v15  ;;  %v762_v29 = vadd.f32 1e-05, %v730_v48  ;;  %v1050_v51 = vld [vmem:[#allocation2 + $0x68] sm:$0xff]  ;;  %v13144_v32 = vpack.c.bf16 %v1808_v53, %v1807_v56  ;;  %v13336_v34 = vld [vmem:[#allocation2 + $0x3e] sm:$0xff] }
 0x240   :  { %v12104_v44 = vpop.eup %12103  ;;  %985 = vst [vmem:[#allocation2 + $0x8a] sm:$0xff] %v15590_v37  ;;  %v13141_v59 = vadd.f32 %v12932_v33, %v854_v46  ;;  %v820_v16 = vmul.f32 %v12102_v50, %v12845_v62  ;;  %v763_v24 = vadd.f32 1e-05, %v731_v52  ;;  %v698_v18 = vpop.xlane.xlu1 %697  ;;  %9078 = vmatmul.mubr.f32.gmra.mrb[28].mxu1 %v1050_v51  ;;  %v1051_v6 = vld [vmem:[#allocation2 + $0x70] sm:$0xff]  ;;  %v13294_v37 = vld [vmem:[#allocation2 + $0x24] sm:$0xff] }
 0x241   :  { %v700_v43 = vpop.xlane.xlu0 %699  ;;  %986 = vst [vmem:[#allocation2 + $0x92] sm:$0xff] %v15577_v36  ;;  %v13149_v48 = vadd.f32 %v12932_v33, %v855_v39  ;;  %v821_v15 = vmul.f32 %v12104_v44, %v12848_v17  ;;  %12113 = vrsqrt.f32 %v762_v29  ;;  %v732_v46 = vmul.f32 0.032258064, %v698_v18  ;;  %9080 = vmatprep.mubr.f32.mxu1 %v1051_v6  ;;  %10555 = vmatpush3.bf16.msra.mxu1 %v13094_v4 }
 0x242   :  { %v15589_v62 = vmax.f32 %v13141_v59, 0.0  ;;  %v856_v52 = vmul.f32 %v12926_v60, %v820_v16  ;;  %12115 = vrsqrt.f32 %v763_v24  ;;  %v733_v56 = vmul.f32 0.032258064, %v700_v43  ;;  %10557 = vmatprep.subr.bf16.mxu1 %v10556_v26 }
 0x243   :  { %v12106_v53 = vpop.eup %12105  ;;  %v15588_v50 = vmax.f32 %v13149_v48, 0.0  ;;  %v857_v39 = vmul.f32 %v12926_v60, %v821_v15  ;;  %v764_v51 = vadd.f32 1e-05, %v732_v46  ;;  %v1052_v36 = vld [vmem:[#allocation2 + $0x78] sm:$0xff] }
 0x244   :  { %v12108_v17 = vpop.eup %12107  ;;  %987 = vst [vmem:[#allocation2 + $0x9a] sm:$0xff] %v15589_v62  ;;  %v13160_v4 = vadd.f32 %v12932_v33, %v856_v52  ;;  %v822_v29 = vmul.f32 %v12106_v53, %v12863_v49  ;;  %v765_v44 = vadd.f32 1e-05, %v733_v56  ;;  %v702_v16 = vpop.xlane.xlu1 %701  ;;  %9081 = vmatmul.mubr.f32.gmra.mrb[30].mxu1 %v1052_v36  ;;  %v1053_v24 = vld [vmem:[#allocation2 + $0x80] sm:$0xff] }
 0x245   :  { %988 = vst [vmem:[#allocation2 + $0xa2] sm:$0xff] %v15588_v50  ;;  %v13166_v18 = vadd.f32 %v12932_v33, %v857_v39  ;;  %v823_v43 = vmul.f32 %v12108_v17, %v12866_v40  ;;  %12117 = vrsqrt.f32 %v764_v51  ;;  %v734_v6 = vmul.f32 0.032258064, %v702_v16  ;;  %9083 = vmatprep.mubr.f32.mxu1 %v1053_v24  ;;  %10559 = vmatpush3.bf16.msra.mxu1 %v10556_v26  ;;  %v13290_v50 = vld [vmem:[#allocation2 + $0x14] sm:$0xff]  ;;  %v13292_v62 = vld [vmem:[#allocation2 + $0x1c] sm:$0xff] }
 0x246   :  { %v15587_v15 = vmax.f32 %v13160_v4, 0.0  ;;  %v858_v49 = vmul.f32 %v12926_v60, %v822_v29  ;;  %12119 = vrsqrt.f32 %v765_v44  ;;  %10561 = vmatprep.subr.bf16.mxu1 %v13144_v32 }
 0x247   :  { %v12110_v36 = vpop.eup %12109  ;;  %v15586_v46 = vmax.f32 %v13166_v18, 0.0  ;;  %v859_v52 = vmul.f32 %v12926_v60, %v823_v43  ;;  %v766_v56 = vadd.f32 1e-05, %v734_v6  ;;  %v1054_v53 = vld [vmem:[#allocation2 + $0x88] sm:$0xff] }
 0x248   :  { %v12112_v39 = vpop.eup %12111  ;;  %989 = vst [vmem:[#allocation2 + $0xaa] sm:$0xff] %v15587_v15  ;;  %v13177_v40 = vadd.f32 %v12932_v33, %v858_v49  ;;  %v824_v26 = vmul.f32 %v12110_v36, %v12875_v12  ;;  %9084 = vmatmul.mubr.f32.gmra.mrb[32].mxu1 %v1054_v53  ;;  %v1055_v51 = vld [vmem:[#allocation2 + $0x90] sm:$0xff]  ;;  %v13288_v15 = vld [vmem:[#allocation2 + $0x23] sm:$0xff] }
 0x249   :  { %990 = vst [vmem:[#allocation2 + $0xb2] sm:$0xff] %v15586_v46  ;;  %v13183_v17 = vadd.f32 %v12932_v33, %v859_v52  ;;  %v825_v29 = vmul.f32 %v12112_v39, %v12878_v8  ;;  %12121 = vrsqrt.f32 %v766_v56  ;;  %9086 = vmatprep.mubr.f32.mxu1 %v1055_v51  ;;  %v13286_v46 = vld [vmem:[#allocation2 + $0x1b] sm:$0xff] }
 0x24a   :  { %v15585_v44 = vmax.f32 %v13177_v40, 0.0  ;;  %v860_v16 = vmul.f32 %v12926_v60, %v824_v26 }
 0x24b   :  { %v12114_v24 = vpop.eup %12113  ;;  %v15584_v43 = vmax.f32 %v13183_v17, 0.0  ;;  %v861_v12 = vmul.f32 %v12926_v60, %v825_v29  ;;  %v1056_v6 = vld [vmem:[#allocation2 + $0x98] sm:$0xff] }
 0x24c   :  { %v12116_v49 = vpop.eup %12115  ;;  %991 = vst [vmem:[#allocation2 + $0xba] sm:$0xff] %v15585_v44  ;;  %v13193_v36 = vadd.f32 %v12932_v33, %v860_v16  ;;  %v826_v8 = vmul.f32 %v12114_v24, %v12887_v21  ;;  %9087 = vmatmul.mubr.f32.gmra.mrb[34].mxu1 %v1056_v6  ;;  %v1057_v52 = vld [vmem:[#allocation2 + $0xa0] sm:$0xff]  ;;  %v13284_v44 = vld [vmem:[#allocation2 + $0x13] sm:$0xff] }
 0x24d   :  { %992 = vst [vmem:[#allocation2 + $0xc2] sm:$0xff] %v15584_v43  ;;  %v13199_v56 = vadd.f32 %v12932_v33, %v861_v12  ;;  %v827_v53 = vmul.f32 %v12116_v49, %v12890_v22  ;;  %9089 = vmatprep.mubr.f32.mxu1 %v1057_v52  ;;  %v13282_v43 = vld [vmem:[#allocation2 + $0x12] sm:$0xff] }
 0x24e   :  { %v15578_v39 = vmax.f32 %v13193_v36, 0.0  ;;  %v862_v26 = vmul.f32 %v12926_v60, %v826_v8 }
 0x24f   :  { %v12118_v51 = vpop.eup %12117  ;;  %v15583_v29 = vmax.f32 %v13199_v56, 0.0  ;;  %v863_v21 = vmul.f32 %v12926_v60, %v827_v53  ;;  %v1058_v16 = vld [vmem:[#allocation2 + $0xa8] sm:$0xff] }
 0x250   :  { %v12120_v24 = vpop.eup %12119  ;;  %993 = vst [vmem:[#allocation2 + $0xca] sm:$0xff] %v15578_v39  ;;  %v13209_v12 = vadd.f32 %v12932_v33, %v862_v26  ;;  %v828_v22 = vmul.f32 %v12118_v51, %v12899_v54  ;;  %9090 = vmatmul.mubr.f32.gmra.mrb[36].mxu1 %v1058_v16  ;;  %v1059_v6 = vld [vmem:[#allocation2 + $0xb0] sm:$0xff] }
 0x251   :  { %994 = vst [vmem:[#allocation2 + $0xd2] sm:$0xff] %v15583_v29  ;;  %v13215_v49 = vadd.f32 %v12932_v33, %v863_v21  ;;  %v829_v8 = vmul.f32 %v12120_v24, %v12902_v27  ;;  %9092 = vmatprep.mubr.f32.mxu1 %v1059_v6  ;;  %v13280_v29 = vld [vmem:[#allocation2 + $0xe] sm:$0xff] }
 0x252   :  { %v15579_v52 = vmax.f32 %v13209_v12, 0.0  ;;  %v864_v53 = vmul.f32 %v12926_v60, %v828_v22  ;;  %15610 = vst [vmem:[#allocation8_spill] sm:$0xff] %v13280_v29  ;;  %v13328_v29 = vld [vmem:[#allocation2 + $0x35] sm:$0xff] }
 0x253   :  { %v12122_v39 = vpop.eup %12121  ;;  %v15582_v26 = vmax.f32 %v13215_v49, 0.0  ;;  %v865_v54 = vmul.f32 %v12926_v60, %v829_v8  ;;  %v1060_v51 = vld [vmem:[#allocation2 + $0xb8] sm:$0xff]  ;;  %15619 = vst [vmem:[#allocation17_spill] sm:$0xff] %v13328_v29 }
 0x254   :  { %995 = vst [vmem:[#allocation2 + $0xda] sm:$0xff] %v15579_v52  ;;  %v13225_v16 = vadd.f32 %v12932_v33, %v864_v53  ;;  %v830_v21 = vmul.f32 %v12122_v39, %v12910_v31  ;;  %9093 = vmatmul.mubr.f32.gmra.mrb[38].mxu1 %v1060_v51  ;;  %v1061_v27 = vld [vmem:[#allocation2 + $0xc0] sm:$0xff]  ;;  %v13345_v29 = vld [vmem:[#allocation2 + $0x17] sm:$0xff] }
 0x255   :  { %996 = vst [vmem:[#allocation2 + $0xe2] sm:$0xff] %v15582_v26  ;;  %v13231_v24 = vadd.f32 %v12932_v33, %v865_v54  ;;  %9095 = vmatprep.mubr.f32.mxu1 %v1061_v27  ;;  %v13274_v26 = vld [vmem:[#allocation2 + $0x5] sm:$0xff] }
 0x256   :  { %v15581_v22 = vmax.f32 %v13225_v16, 0.0  ;;  %v866_v6 = vmul.f32 %v12926_v60, %v830_v21  ;;  %15607 = vst [vmem:[#allocation5_spill] sm:$0xff] %v13274_v26  ;;  %v13340_v26 = vld [vmem:[#allocation2 + $0xf] sm:$0xff] }
 0x257   :  { %v15580_v8 = vmax.f32 %v13231_v24, 0.0  ;;  %v1062_v52 = vld [vmem:[#allocation2 + $0xc8] sm:$0xff]  ;;  %15623 = vst [vmem:[#allocation21_spill] sm:$0xff] %v13340_v26 }
 0x258   :  { %997 = vst [vmem:[#allocation2 + $0xea] sm:$0xff] %v15581_v22  ;;  %v902_v31 = vadd.f32 %v12932_v33, %v866_v6  ;;  %9096 = vmatmul.mubr.f32.gmra.mrb[40].mxu1 %v1062_v52  ;;  %v1063_v39 = vld [vmem:[#allocation2 + $0xd0] sm:$0xff]  ;;  %v1810_v52 = vld [vmem:[%s15562_s2 + $0x118] sm:$0xff]  ;;  %v1406_v6 = vld [vmem:[#allocation2 + $0x1] sm:$0xff] }
 0x259   :  { %998 = vst [vmem:[#allocation2 + $0xf2] sm:$0xff] %v15580_v8  ;;  %9098 = vmatprep.mubr.f32.mxu1 %v1063_v39  ;;  %v1809_v33 = vld [vmem:[%s15562_s2 + $0x110] sm:$0xff]  ;;  %v13270_v8 = vld [vmem:[#allocation2 + $0x4] sm:$0xff] }
 0x25a   :  { %v934_v53 = vmax.f32 %v902_v31, 0.0  ;;  %v10564_v31 = vpack.c.bf16 %v1810_v52, %v1809_v33  ;;  %v1407_v39 = vld [vmem:[#allocation2 + $0x9] sm:$0xff]  ;;  %v1814_v52 = vld [vmem:[%s15562_s2 + $0x138] sm:$0xff] }
 0x25b   :  { %v1064_v54 = vld [vmem:[#allocation2 + $0xd8] sm:$0xff]  ;;  %v13272_v22 = vld [vmem:[#allocation2 + $0xc] sm:$0xff] }
 0x25c   :  { %999 = vst [vmem:[#allocation2 + $0xfa] sm:$0xff] %v934_v53  ;;  %9099 = vmatmul.mubr.f32.gmra.mrb[42].mxu1 %v1064_v54  ;;  %v1065_v51 = vld [vmem:[#allocation2 + $0xe0] sm:$0xff]  ;;  %v1812_v54 = vld [vmem:[%s15562_s2 + $0x128] sm:$0xff] }
 0x25d   :  { %9101 = vmatprep.mubr.f32.mxu1 %v1065_v51  ;;  %v1811_v53 = vld [vmem:[%s15562_s2 + $0x120] sm:$0xff]  ;;  %v1408_v51 = vld [vmem:[#allocation2 + $0x11] sm:$0xff] }
 0x25e   :  { %v13257_v33 = vpack.c.bf16 %v1812_v54, %v1811_v53  ;;  %v13276_v53 = vld [vmem:[#allocation2 + $0xd] sm:$0xff] }
 0x25f   :  { %v1066_v60 = vld [vmem:[#allocation2 + $0xe8] sm:$0xff]  ;;  %15608 = vst [vmem:[#allocation6_spill] sm:$0xff] %v13276_v53 }
 0x260   :  { %9102 = vmatmul.mubr.f32.gmra.mrb[44].mxu1 %v1066_v60  ;;  %v1067_v21 = vld [vmem:[#allocation2 + $0xf0] sm:$0xff]  ;;  %v13278_v54 = vld [vmem:[#allocation2 + $0x6] sm:$0xff] }
 0x261   :  { %9104 = vmatprep.mubr.f32.mxu1 %v1067_v21  ;;  %v1813_v60 = vld [vmem:[%s15562_s2 + $0x130] sm:$0xff]  ;;  %v1409_v21 = vld [vmem:[#allocation2 + $0x19] sm:$0xff]  ;;  %15609 = vst [vmem:[#allocation7_spill] sm:$0xff] %v13278_v54  ;;  %v13338_v53 = vld [vmem:[#allocation2 + $0x7] sm:$0xff] }
 0x262   :  { %v13330_v54 = vld [vmem:[#allocation2 + $0x3d] sm:$0xff]  ;;  %15622 = vst [vmem:[#allocation20_spill] sm:$0xff] %v13338_v53  ;;  %v10572_v58 = vpack.c.bf16 %v1814_v52, %v1813_v60  ;;  %v13354_v26 = vld [vmem:[#allocation2 + $0x2f] sm:$0xff]  ;;  %v10576_v52 = vpack.c.bf16 %v1816_v38, %v1815_v1 }
 0x263   :  { %v1068_v27 = vld [vmem:[#allocation2 + $0xf8] sm:$0x1f]  ;;  %15620 = vst [vmem:[#allocation18_spill] sm:$0xff] %v13330_v54  ;;  %v13347_v54 = vld [vmem:[#allocation2 + $0x1f] sm:$0xff]  ;;  %15625 = vst [vmem:[#allocation22_spill] sm:$0xff] %v13354_v26 }
 0x264   :  { %9105 = vmatmul.mubr.f32.gmra.mrb[46].mxu1 %v1068_v27  ;;  %v1410_v27 = vld [vmem:[#allocation2 + $0x21] sm:$0xff]  ;;  %v13356_v53 = vld [vmem:[#allocation2 + $0x37] sm:$0xff]  ;;  %v1415_v26 = vld [vmem:[#allocation2 + $0x49] sm:$0xff] }
 0x265   :  { %9139 = vmatprep.mubr.f32.mxu1 %v1406_v6  ;;  %v13262_v6 = vld [vmem:[#allocation2 + $0x2] sm:$0xff]  ;;  %15626 = vst [vmem:[#allocation23_spill] sm:$0xff] %v13356_v53  ;;  %v1817_v53 = vld [vmem:[%s15562_s2 + $0x150] sm:$0xff] }
 0x266   :  { %v13358_v60 = vld [vmem:[#allocation2 + $0x3f] sm:$0xff]  ;;  %v1820_v38 = vld [vmem:[%s15562_s2 + $0x168] sm:$0xff]  ;;  %v1416_v1 = vld [vmem:[#allocation2 + $0x51] sm:$0xff] }
 0x267   :  { %15627 = vst [vmem:[#allocation24_spill] sm:$0xff] %v13358_v60 }
 0x268   :  { %9140 = vmatmul.mubr.f32.vlgmr.msra.gmra.mrb[16].mxu1 %v1407_v39  ;;  %v13264_v39 = vld [vmem:[#allocation2 + $0xa] sm:$0xff] }
 0x269   :  { %9142 = vmatprep.mubr.f32.mxu1 %v1408_v51  ;;  %10563 = vmatpush3.bf16.msra.mxu1 %v13144_v32  ;;  %v13266_v51 = vld [vmem:[#allocation2 + $0x3] sm:$0xff]  ;;  %v13268_v32 = vld [vmem:[#allocation2 + $0xb] sm:$0xff] }
 0x26a   :  { %10565 = vmatprep.subr.bf16.mxu1 %v10564_v31 }
 0x26c   :  { %9143 = vmatmul.mubr.f32.gmra.mrb[18].mxu1 %v1409_v21  ;;  %v13302_v21 = vld [vmem:[#allocation2 + $0x16] sm:$0xff] }
 0x26d   :  { %15614 = vst [vmem:[#allocation12_spill] sm:$0xff] %v13302_v21  ;;  %9145 = vmatprep.mubr.f32.mxu1 %v1410_v27  ;;  %10567 = vmatpush3.bf16.msra.mxu1 %v10564_v31  ;;  %v13320_v27 = vld [vmem:[#allocation2 + $0x2c] sm:$0xff]  ;;  %v13324_v31 = vld [vmem:[#allocation2 + $0x3c] sm:$0xff] }
 0x26e   :  { %15618 = vst [vmem:[#allocation16_spill] sm:$0xff] %v13324_v31  ;;  %v13326_v21 = vld [vmem:[#allocation2 + $0x2d] sm:$0xff]  ;;  %10569 = vmatprep.subr.bf16.mxu1 %v13257_v33  ;;  %v15624_v31 = vmov 0.0  }
 0x26f   :  { %4309 = vst [vmem:[#allocation2] sm:$0xff] %v15624_v31  ;;  %4310 = vst [vmem:[#allocation2 + $0x8] sm:$0xff] %v15624_v31 }
 0x270   :  { %4311 = vst [vmem:[#allocation2 + $0x10] sm:$0xff] %v15624_v31  ;;  %4312 = vst [vmem:[#allocation2 + $0x18] sm:$0xff] %v15624_v31  ;;  %9146 = vmatmul.mubr.f32.gmra.mrb[20].mxu1 %v1411_v9  ;;  %v1818_v9 = vld [vmem:[%s15562_s2 + $0x158] sm:$0xff] }
 0x271   :  { %4313 = vst [vmem:[#allocation2 + $0x20] sm:$0xff] %v15624_v31  ;;  %4314 = vst [vmem:[#allocation2 + $0x28] sm:$0xff] %v15624_v31  ;;  %9148 = vmatprep.mubr.f32.mxu1 %v1412_v2  ;;  %10571 = vmatpush3.bf16.msra.mxu1 %v13257_v33  ;;  %v10580_v60 = vpack.c.bf16 %v1818_v9, %v1817_v53  ;;  %v1819_v2 = vld [vmem:[%s15562_s2 + $0x160] sm:$0xff]  ;;  %v2177_v9 = vld [vmem:[%s15562_s2 + $0x188] sm:$0xff] }
 0x272   :  { %4315 = vst [vmem:[#allocation2 + $0x30] sm:$0xff] %v15624_v31  ;;  %4316 = vst [vmem:[#allocation2 + $0x38] sm:$0xff] %v15624_v31  ;;  %10573 = vmatprep.subr.bf16.mxu1 %v10572_v58  ;;  %v10584_v33 = vpack.c.bf16 %v1820_v38, %v1819_v2  ;;  %v1418_v53 = vld [vmem:[#allocation2 + $0x61] sm:$0xff]  ;;  %v1420_v2 = vld [vmem:[#allocation2 + $0x71] sm:$0xff] }
 0x273   :  { %4317 = vst [vmem:[#allocation2 + $0x40] sm:$0x3] %v15624_v31  ;;  %v1419_v31 = vld [vmem:[#allocation2 + $0x69] sm:$0xff] }
 0x274   :  { %9149 = vmatmul.mubr.f32.gmra.mrb[22].mxu1 %v1413_v45  ;;  %v1417_v45 = vld [vmem:[#allocation2 + $0x59] sm:$0xff] }
 0x275   :  { %9151 = vmatprep.mubr.f32.mxu1 %v1414_v55  ;;  %10575 = vmatpush3.bf16.msra.mxu1 %v10572_v58  ;;  %v1821_v55 = vld [vmem:[%s15562_s2 + $0x170] sm:$0xff]  ;;  %v1822_v58 = vld [vmem:[%s15562_s2 + $0x178] sm:$0xff] }
 0x276   :  { %10577 = vmatprep.subr.bf16.mxu1 %v10576_v52 }
 0x278   :  { %9152 = vmatmul.mubr.f32.gmra.mrb[24].mxu1 %v1415_v26  ;;  %v10588_v26 = vpack.c.bf16 %v1822_v58, %v1821_v55  ;;  %v1424_v55 = vld [vmem:[#allocation2 + $0x91] sm:$0xff]  ;;  %v1425_v58 = vld [vmem:[#allocation2 + $0x99] sm:$0xff] }
 0x279   :  { %9154 = vmatprep.mubr.f32.mxu1 %v1416_v1  ;;  %10579 = vmatpush3.bf16.msra.mxu1 %v10576_v52  ;;  %v2176_v52 = vld [vmem:[%s15562_s2 + $0x180] sm:$0xff] }
 0x27a   :  { %10581 = vmatprep.subr.bf16.mxu1 %v10580_v60  ;;  %v10592_v38 = vpack.c.bf16 %v2177_v9, %v2176_v52  ;;  %v1421_v1 = vld [vmem:[#allocation2 + $0x79] sm:$0xff]  ;;  %v1430_v52 = vld [vmem:[#allocation2 + $0xc1] sm:$0xff]  ;;  %v1431_v9 = vld [vmem:[#allocation2 + $0xc9] sm:$0xff] }
 0x27c   :  { %9155 = vmatmul.mubr.f32.gmra.mrb[26].mxu1 %v1417_v45  ;;  %v1423_v45 = vld [vmem:[#allocation2 + $0x89] sm:$0xff] }
 0x27d   :  { %9157 = vmatprep.mubr.f32.mxu1 %v1418_v53  ;;  %10583 = vmatpush3.bf16.msra.mxu1 %v10580_v60  ;;  %v1422_v60 = vld [vmem:[#allocation2 + $0x81] sm:$0xff] }
 0x27e   :  { %10585 = vmatprep.subr.bf16.mxu1 %v10584_v33  ;;  %v1426_v53 = vld [vmem:[#allocation2 + $0xa1] sm:$0xff] }
 0x280   :  { %9158 = vmatmul.mubr.f32.gmra.mrb[28].mxu1 %v1419_v31  ;;  %v1427_v31 = vld [vmem:[#allocation2 + $0xa9] sm:$0xff] }
 0x281   :  { %9160 = vmatprep.mubr.f32.mxu1 %v1420_v2  ;;  %10587 = vmatpush3.bf16.msra.mxu1 %v10584_v33  ;;  %v1428_v2 = vld [vmem:[#allocation2 + $0xb1] sm:$0xff]  ;;  %v1429_v33 = vld [vmem:[#allocation2 + $0xb9] sm:$0xff] }
 0x282   :  { %10589 = vmatprep.subr.bf16.mxu1 %v10588_v26 }
 0x284   :  { %9161 = vmatmul.mubr.f32.gmra.mrb[30].mxu1 %v1421_v1  ;;  %v1433_v1 = vld [vmem:[#allocation2 + $0xd9] sm:$0xff] }
 0x285   :  { %9163 = vmatprep.mubr.f32.mxu1 %v1422_v60  ;;  %10591 = vmatpush3.bf16.msra.mxu1 %v10588_v26  ;;  %v1432_v26 = vld [vmem:[#allocation2 + $0xd1] sm:$0xff]  ;;  %v1434_v60 = vld [vmem:[#allocation2 + $0xe1] sm:$0xff] }
 0x286   :  { %10593 = vmatprep.subr.bf16.mxu1 %v10592_v38 }
 0x288   :  { %9164 = vmatmul.mubr.f32.gmra.mrb[32].mxu1 %v1423_v45  ;;  %v1435_v45 = vld [vmem:[#allocation2 + $0xe9] sm:$0xff] }
 0x289   :  { %9166 = vmatprep.mubr.f32.mxu1 %v1424_v55  ;;  %v1436_v55 = vld [vmem:[#allocation2 + $0xf1] sm:$0xff] }
 0x28c   :  { %9167 = vmatmul.mubr.f32.gmra.mrb[34].mxu1 %v1425_v58  ;;  %v1437_v58 = vld [vmem:[#allocation2 + $0xf9] sm:$0x1f] }
 0x28d   :  { %9169 = vmatprep.mubr.f32.mxu1 %v1426_v53  ;;  %v2178_v53 = vld [vmem:[%s15562_s2 + $0x190] sm:$0xff] }
 0x290   :  { %9170 = vmatmul.mubr.f32.gmra.mrb[36].mxu1 %v1427_v31  ;;  %v2179_v31 = vld [vmem:[%s15562_s2 + $0x198] sm:$0xff] }
 0x291   :  { %9172 = vmatprep.mubr.f32.mxu1 %v1428_v2  ;;  %v10596_v2 = vpack.c.bf16 %v2179_v31, %v2178_v53  ;;  %v15633_v53 = vmax.f32 %v12997_v25, 0.0 }
 0x294   :  { %9173 = vmatmul.mubr.f32.gmra.mrb[38].mxu1 %v1429_v33  ;;  %v2180_v33 = vld [vmem:[%s15562_s2 + $0x1a0] sm:$0xff] }
 0x295   :  { %9175 = vmatprep.mubr.f32.mxu1 %v1430_v52  ;;  %v2181_v52 = vld [vmem:[%s15562_s2 + $0x1a8] sm:$0xff] }
 0x298   :  { %9176 = vmatmul.mubr.f32.gmra.mrb[40].mxu1 %v1431_v9  ;;  %v10600_v9 = vpack.c.bf16 %v2181_v52, %v2180_v33  ;;  %v2189_v33 = vld [vmem:[%s15562_s2 + $0x1e8] sm:$0xff]  ;;  %v15634_v52 = vmax.f32 %v13014_v47, 0.0  ;;  %v15637_v47 = vmax.f32 %v13047_v61, 0.0 }
 0x299   :  { %9178 = vmatprep.mubr.f32.mxu1 %v1432_v26  ;;  %v2183_v26 = vld [vmem:[%s15562_s2 + $0x1b8] sm:$0xff] }
 0x29c   :  { %9179 = vmatmul.mubr.f32.gmra.mrb[42].mxu1 %v1433_v1  ;;  %v15628_v1 = vmax.f32 %v12947_v13, 0.0  ;;  %v15631_v13 = vmax.f32 %v12973_v3, 0.0  ;;  %v15632_v3 = vmax.f32 %v12989_v5, 0.0  ;;  %v15635_v5 = vmax.f32 %v13022_v0, 0.0 }
 0x29d   :  { %9181 = vmatprep.mubr.f32.mxu1 %v1434_v60  ;;  %v15629_v60 = vmax.f32 %v12951_v57, 0.0 }
 0x2a0   :  { %9182 = vmatmul.mubr.f32.gmra.mrb[44].mxu1 %v1435_v45  ;;  %v15630_v45 = vmax.f32 %v12967_v23, 0.0  ;;  %v2187_v23 = vld [vmem:[%s15562_s2 + $0x1d8] sm:$0xff] }
 0x2a1   :  { %9184 = vmatprep.mubr.f32.mxu1 %v1436_v55  ;;  %v13427_v55 = vld [vmem:[%s15561_s3 + $0x3] ss:$0 sm:$0xff] }
 0x2a2   :  { %1036 = vst [vmem:[#allocation3 + $0xf8] sm:$0x1f] %v13427_v55  ;;  %1017 = vst [vmem:[#allocation3 + $0x60] sm:$0xff] %v13427_v55 }
 0x2a3   :  { %1018 = vst [vmem:[#allocation3 + $0x68] sm:$0xff] %v13427_v55  ;;  %1019 = vst [vmem:[#allocation3 + $0x70] sm:$0xff] %v13427_v55 }
 0x2a4   :  { %9185 = vmatmul.mubr.f32.gmra.mrb[48].mxu1 %v1437_v58  ;;  %v2186_v58 = vld [vmem:[%s15562_s2 + $0x1d0] sm:$0xff]  ;;  %1020 = vst [vmem:[#allocation3 + $0x78] sm:$0xff] %v13427_v55  ;;  %1021 = vst [vmem:[#allocation3 + $0x80] sm:$0xff] %v13427_v55 }
 0x2a5   :  { %9219 = vmatprep.mubr.f32.mxu1 %v13262_v6  ;;  %v2182_v6 = vld [vmem:[%s15562_s2 + $0x1b0] sm:$0xff]  ;;  %1022 = vst [vmem:[#allocation3 + $0x88] sm:$0xff] %v13427_v55  ;;  %1023 = vst [vmem:[#allocation3 + $0x90] sm:$0xff] %v13427_v55  ;;  %v10612_v31 = vpack.c.bf16 %v2187_v23, %v2186_v58  ;;  %v2552_v58 = vld [vmem:[%s15562_s2 + $0x238] sm:$0xff] }
 0x2a6   :  { %1024 = vst [vmem:[#allocation3 + $0x98] sm:$0xff] %v13427_v55  ;;  %1025 = vst [vmem:[#allocation3 + $0xa0] sm:$0xff] %v13427_v55  ;;  %v2554_v23 = vld [vmem:[%s15562_s2 + $0x248] sm:$0xff] }
 0x2a7   :  { %1026 = vst [vmem:[#allocation3 + $0xa8] sm:$0xff] %v13427_v55  ;;  %1027 = vst [vmem:[#allocation3 + $0xb0] sm:$0xff] %v13427_v55 }
 0x2a8   :  { %9220 = vmatmul.mubr.f32.vlgmr.msra.gmra.mrb[16].mxu1 %v13264_v39  ;;  %v2184_v39 = vld [vmem:[%s15562_s2 + $0x1c0] sm:$0xff]  ;;  %1028 = vst [vmem:[#allocation3 + $0xb8] sm:$0xff] %v13427_v55  ;;  %1029 = vst [vmem:[#allocation3 + $0xc0] sm:$0xff] %v13427_v55 }
 0x2a9   :  { %9222 = vmatprep.mubr.f32.mxu1 %v13282_v43  ;;  %10595 = vmatpush3.bf16.msra.mxu1 %v10592_v38  ;;  %v10604_v43 = vpack.c.bf16 %v2183_v26, %v2182_v6  ;;  %v2185_v38 = vld [vmem:[%s15562_s2 + $0x1c8] sm:$0xff]  ;;  %1030 = vst [vmem:[#allocation3 + $0xc8] sm:$0xff] %v13427_v55  ;;  %1031 = vst [vmem:[#allocation3 + $0xd0] sm:$0xff] %v13427_v55  ;;  %v2191_v6 = vld [vmem:[%s15562_s2 + $0x1f8] sm:$0xff]  ;;  %v15636_v26 = vmax.f32 %v13039_v19, 0.0  ;;  %v15639_v19 = vmax.f32 %v13073_v28, 0.0 }
 0x2aa   :  { %10597 = vmatprep.subr.bf16.mxu1 %v10596_v2  ;;  %v10608_v57 = vpack.c.bf16 %v2185_v38, %v2184_v39  ;;  %1032 = vst [vmem:[#allocation3 + $0xd8] sm:$0xff] %v13427_v55  ;;  %1033 = vst [vmem:[#allocation3 + $0xe0] sm:$0xff] %v13427_v55  ;;  %v15640_v39 = vmax.f32 %v13091_v14, 0.0  ;;  %v15641_v38 = vmax.f32 %v13099_v10, 0.0  ;;  %v15644_v28 = vmax.f32 %v13141_v59, 0.0 }
 0x2ab   :  { %1034 = vst [vmem:[#allocation3 + $0xe8] sm:$0xff] %v13427_v55  ;;  %v15646_v14 = vmax.f32 %v13160_v4, 0.0  ;;  %v15647_v10 = vmax.f32 %v13166_v18, 0.0  ;;  %v15651_v59 = vmax.f32 %v13199_v56, 0.0  ;;  %v15653_v4 = vmax.f32 %v13215_v49, 0.0  ;;  %v2548_v56 = vld [vmem:[%s15562_s2 + $0x218] sm:$0xff] }
 0x2ac   :  { %9223 = vmatmul.mubr.f32.gmra.mrb[18].mxu1 %v15628_v1  ;;  %v2545_v1 = vld [vmem:[%s15562_s2 + $0x200] sm:$0xff]  ;;  %v15654_v18 = vmax.f32 %v13225_v16, 0.0  ;;  %v2550_v16 = vld [vmem:[%s15562_s2 + $0x228] sm:$0xff] }
 0x2ad   :  { %9225 = vmatprep.mubr.f32.mxu1 %v15629_v60  ;;  %10599 = vmatpush3.bf16.msra.mxu1 %v10596_v2  ;;  %v2188_v2 = vld [vmem:[%s15562_s2 + $0x1e0] sm:$0xff]  ;;  %v2546_v60 = vld [vmem:[%s15562_s2 + $0x208] sm:$0xff] }
 0x2ae   :  { %10601 = vmatprep.subr.bf16.mxu1 %v10600_v9  ;;  %v10616_v25 = vpack.c.bf16 %v2189_v33, %v2188_v2  ;;  %v10624_v61 = vpack.c.bf16 %v2546_v60, %v2545_v1  ;;  %v2549_v49 = vld [vmem:[%s15562_s2 + $0x220] sm:$0xff]  ;;  %v2558_v2 = vld [vmem:[%s15562_s2 + $0x268] sm:$0xff]  ;;  %v2154_v33 = vld [vmem:[#allocation2 + $0x53] sm:$0xff] }
 0x2af   :  { %v2158_v1 = vld [vmem:[#allocation2 + $0x73] sm:$0xff] }
 0x2b0   :  { %9226 = vmatmul.mubr.f32.gmra.mrb[20].mxu1 %v15630_v45  ;;  %v15642_v45 = vmax.f32 %v13117_v42, 0.0  ;;  %v15649_v42 = vmax.f32 %v13183_v17, 0.0  ;;  %v1806_v17 = vld [vmem:[#allocation2 + $0xfa] sm:$0x1f] }
 0x2b1   :  { %9228 = vmatprep.mubr.f32.mxu1 %v15631_v13  ;;  %10603 = vmatpush3.bf16.msra.mxu1 %v10600_v9  ;;  %v2190_v9 = vld [vmem:[%s15562_s2 + $0x1f0] sm:$0xff]  ;;  %v15645_v13 = vmax.f32 %v13149_v48, 0.0  ;;  %v15652_v48 = vmax.f32 %v13209_v12, 0.0 }
 0x2b2   :  { %10605 = vmatprep.subr.bf16.mxu1 %v10604_v43  ;;  %v10620_v0 = vpack.c.bf16 %v2191_v6, %v2190_v9  ;;  %v2156_v9 = vld [vmem:[#allocation2 + $0x63] sm:$0xff] }
 0x2b4   :  { %9229 = vmatmul.mubr.f32.gmra.mrb[22].mxu1 %v15632_v3  ;;  %v2556_v3 = vld [vmem:[%s15562_s2 + $0x258] sm:$0xff] }
 0x2b5   :  { %9231 = vmatprep.mubr.f32.mxu1 %v15633_v53  ;;  %10607 = vmatpush3.bf16.msra.mxu1 %v10604_v43  ;;  %v15638_v43 = vmax.f32 %v13065_v30, 0.0  ;;  %v15643_v30 = vmax.f32 %v13123_v63, 0.0  ;;  %v15650_v63 = vmax.f32 %v13193_v36, 0.0  ;;  %v2547_v36 = vld [vmem:[%s15562_s2 + $0x210] sm:$0xff]  ;;  %v2152_v53 = vld [vmem:[#allocation2 + $0x43] sm:$0xff] }
 0x2b6   :  { %10609 = vmatprep.subr.bf16.mxu1 %v10608_v57  ;;  %v10628_v12 = vpack.c.bf16 %v2548_v56, %v2547_v36  ;;  %v2918_v36 = vld [vmem:[%s15562_s2 + $0x2a0] sm:$0xff]  ;;  %v2919_v56 = vld [vmem:[%s15562_s2 + $0x2a8] sm:$0xff] }
 0x2b8   :  { %9232 = vmatmul.mubr.f32.gmra.mrb[24].mxu1 %v15634_v52  ;;  %v2155_v52 = vld [vmem:[#allocation2 + $0x5b] sm:$0xff] }
 0x2b9   :  { %9234 = vmatprep.mubr.f32.mxu1 %v15635_v5  ;;  %10611 = vmatpush3.bf16.msra.mxu1 %v10608_v57  ;;  %v15648_v57 = vmax.f32 %v13177_v40, 0.0  ;;  %v15655_v40 = vmax.f32 %v13231_v24, 0.0  ;;  %v10632_v24 = vpack.c.bf16 %v2550_v16, %v2549_v49  ;;  %v2559_v5 = vld [vmem:[%s15562_s2 + $0x270] sm:$0xff]  ;;  %v2921_v49 = vld [vmem:[%s15562_s2 + $0x2b8] sm:$0xff]  ;;  %v2923_v16 = vld [vmem:[%s15562_s2 + $0x2c8] sm:$0xff] }
 0x2ba   :  { %10613 = vmatprep.subr.bf16.mxu1 %v10612_v31 }
 0x2bc   :  { %9235 = vmatmul.mubr.f32.gmra.mrb[26].mxu1 %v15636_v26  ;;  %v2157_v26 = vld [vmem:[#allocation2 + $0x6b] sm:$0xff] }
 0x2bd   :  { %9237 = vmatprep.mubr.f32.mxu1 %v15637_v47  ;;  %10615 = vmatpush3.bf16.msra.mxu1 %v10612_v31  ;;  %v2153_v31 = vld [vmem:[#allocation2 + $0x4b] sm:$0xff]  ;;  %v2914_v47 = vld [vmem:[%s15562_s2 + $0x280] sm:$0xff] }
 0x2be   :  { %10617 = vmatprep.subr.bf16.mxu1 %v10616_v25 }
 0x2c0   :  { %9238 = vmatmul.mubr.f32.gmra.mrb[28].mxu1 %v15638_v43  ;;  %v2159_v43 = vld [vmem:[#allocation2 + $0x7b] sm:$0xff] }
 0x2c1   :  { %9240 = vmatprep.mubr.f32.mxu1 %v15639_v19  ;;  %10619 = vmatpush3.bf16.msra.mxu1 %v10616_v25  ;;  %v2560_v25 = vld [vmem:[%s15562_s2 + $0x278] sm:$0xff]  ;;  %v2160_v19 = vld [vmem:[#allocation2 + $0x83] sm:$0xff] }
 0x2c2   :  { %10621 = vmatprep.subr.bf16.mxu1 %v10620_v0  ;;  %v10652_v6 = vpack.c.bf16 %v2560_v25, %v2559_v5  ;;  %v2526_v25 = vld [vmem:[#allocation2 + $0x6c] sm:$0xff] }
 0x2c4   :  { %9241 = vmatmul.mubr.f32.gmra.mrb[30].mxu1 %v15640_v39  ;;  %v2162_v39 = vld [vmem:[#allocation2 + $0x93] sm:$0xff] }
 0x2c5   :  { %9243 = vmatprep.mubr.f32.mxu1 %v15641_v38  ;;  %10623 = vmatpush3.bf16.msra.mxu1 %v10620_v0  ;;  %v2915_v0 = vld [vmem:[%s15562_s2 + $0x288] sm:$0xff]  ;;  %v2163_v38 = vld [vmem:[#allocation2 + $0x9b] sm:$0xff] }
 0x2c6   :  { %10625 = vmatprep.subr.bf16.mxu1 %v10624_v61  ;;  %v10656_v60 = vpack.c.bf16 %v2915_v0, %v2914_v47  ;;  %v2528_v0 = vld [vmem:[#allocation2 + $0x7c] sm:$0xff] }
 0x2c8   :  { %9244 = vmatmul.mubr.f32.gmra.mrb[32].mxu1 %v15642_v45  ;;  %v2164_v45 = vld [vmem:[#allocation2 + $0xa3] sm:$0xff] }
 0x2c9   :  { %9246 = vmatprep.mubr.f32.mxu1 %v15643_v30  ;;  %v2165_v30 = vld [vmem:[#allocation2 + $0xab] sm:$0xff] }
 0x2cc   :  { %9247 = vmatmul.mubr.f32.gmra.mrb[34].mxu1 %v15644_v28  ;;  %v2166_v28 = vld [vmem:[#allocation2 + $0xb3] sm:$0xff] }
 0x2cd   :  { %9249 = vmatprep.mubr.f32.mxu1 %v15645_v13  ;;  %v2167_v13 = vld [vmem:[#allocation2 + $0xbb] sm:$0xff] }
 0x2d0   :  { %9250 = vmatmul.mubr.f32.gmra.mrb[36].mxu1 %v15646_v14  ;;  %v2168_v14 = vld [vmem:[#allocation2 + $0xc3] sm:$0xff] }
 0x2d1   :  { %9252 = vmatprep.mubr.f32.mxu1 %v15647_v10  ;;  %v2169_v10 = vld [vmem:[#allocation2 + $0xcb] sm:$0xff] }
 0x2d4   :  { %9253 = vmatmul.mubr.f32.gmra.mrb[38].mxu1 %v15648_v57  ;;  %v2170_v57 = vld [vmem:[#allocation2 + $0xd3] sm:$0xff] }
 0x2d5   :  { %9255 = vmatprep.mubr.f32.mxu1 %v15649_v42  ;;  %v2171_v42 = vld [vmem:[#allocation2 + $0xdb] sm:$0xff] }
 0x2d8   :  { %9256 = vmatmul.mubr.f32.gmra.mrb[40].mxu1 %v15650_v63  ;;  %v2172_v63 = vld [vmem:[#allocation2 + $0xe3] sm:$0xff] }
 0x2d9   :  { %9258 = vmatprep.mubr.f32.mxu1 %v15651_v59  ;;  %v2173_v59 = vld [vmem:[#allocation2 + $0xeb] sm:$0xff] }
 0x2dc   :  { %9259 = vmatmul.mubr.f32.gmra.mrb[42].mxu1 %v15652_v48  ;;  %v2174_v48 = vld [vmem:[#allocation2 + $0xf3] sm:$0xff] }
 0x2dd   :  { %9261 = vmatprep.mubr.f32.mxu1 %v15653_v4  ;;  %v2175_v4 = vld [vmem:[#allocation2 + $0xfb] sm:$0x1f] }
 0x2e0   :  { %9262 = vmatmul.mubr.f32.gmra.mrb[44].mxu1 %v15654_v18  ;;  %v2916_v18 = vld [vmem:[%s15562_s2 + $0x290] sm:$0xff] }
 0x2e1   :  { %9264 = vmatprep.mubr.f32.mxu1 %v15655_v40  ;;  %v2917_v40 = vld [vmem:[%s15562_s2 + $0x298] sm:$0xff] }
 0x2e4   :  { %9265 = vmatmul.mubr.f32.gmra.mrb[50].mxu1 %v1806_v17  ;;  %v10660_v17 = vpack.c.bf16 %v2917_v40, %v2916_v18  ;;  %v3287_v40 = vld [vmem:[%s15562_s2 + $0x320] sm:$0xff] }
 0x2e5   :  { %9299 = vmatprep.mubr.f32.mxu1 %v13266_v51  ;;  %v2551_v51 = vld [vmem:[%s15562_s2 + $0x230] sm:$0xff] }
 0x2e8   :  { %9300 = vmatmul.mubr.f32.vlgmr.msra.gmra.mrb[16].mxu1 %v13268_v32  ;;  %v10636_v32 = vpack.c.bf16 %v2552_v58, %v2551_v51  ;;  %v2925_v51 = vld [vmem:[%s15562_s2 + $0x2d8] sm:$0xff]  ;;  %v15657_v58 = vld [vmem:[#allocation16_spill] sm:$0xff] }
 0x2e9   :  { %9302 = vmatprep.mubr.f32.mxu1 %v13284_v44  ;;  %10627 = vmatpush3.bf16.msra.mxu1 %v10624_v61  ;;  %v2553_v44 = vld [vmem:[%s15562_s2 + $0x240] sm:$0xff]  ;;  %v2161_v61 = vld [vmem:[#allocation2 + $0x8b] sm:$0xff] }
 0x2ea   :  { %10629 = vmatprep.subr.bf16.mxu1 %v10628_v12 }
 0x2ec   :  { %9303 = vmatmul.mubr.f32.gmra.mrb[18].mxu1 %v13286_v46  ;;  %v10640_v46 = vpack.c.bf16 %v2554_v23, %v2553_v44  ;;  %v1116_v44 = vld [vmem:[#allocation3 + $0xf8] sm:$0x1f] }
 0x2ed   :  { %9305 = vmatprep.mubr.f32.mxu1 %v13288_v15  ;;  %10631 = vmatpush3.bf16.msra.mxu1 %v10628_v12  ;;  %v2555_v15 = vld [vmem:[%s15562_s2 + $0x250] sm:$0xff]  ;;  %v10664_v12 = vpack.c.bf16 %v2919_v56, %v2918_v36  ;;  %v15659_v36 = vld [vmem:[#allocation6_spill] sm:$0xff] }
 0x2ee   :  { %10633 = vmatprep.subr.bf16.mxu1 %v10632_v24  ;;  %v15660_v56 = vld [vmem:[#allocation9_spill] sm:$0xff] }
 0x2f0   :  { %9306 = vmatmul.mubr.f32.gmra.mrb[20].mxu1 %v13314_v35  ;;  %v10644_v35 = vpack.c.bf16 %v2556_v3, %v2555_v15  ;;  %v2926_v15 = vld [vmem:[%s15562_s2 + $0x2e0] sm:$0xff]  ;;  %v2927_v3 = vld [vmem:[%s15562_s2 + $0x2e8] sm:$0xff] }
 0x2f1   :  { %9308 = vmatprep.mubr.f32.mxu1 %v13316_v41  ;;  %10635 = vmatpush3.bf16.msra.mxu1 %v10632_v24  ;;  %v2557_v41 = vld [vmem:[%s15562_s2 + $0x260] sm:$0xff] }
 0x2f2   :  { %10637 = vmatprep.subr.bf16.mxu1 %v10636_v32  ;;  %v15656_v24 = vld [vmem:[#allocation15_spill] sm:$0xff] }
 0x2f4   :  { %9309 = vmatmul.mubr.f32.gmra.mrb[22].mxu1 %v13318_v20  ;;  %v10648_v20 = vpack.c.bf16 %v2558_v2, %v2557_v41  ;;  %v10680_v41 = vpack.c.bf16 %v2927_v3, %v2926_v15  ;;  %v2524_v2 = vld [vmem:[#allocation2 + $0x5c] sm:$0xff] }
 0x2f5   :  { %9311 = vmatprep.mubr.f32.mxu1 %v2152_v53  ;;  %10639 = vmatpush3.bf16.msra.mxu1 %v10636_v32  ;;  %v2521_v32 = vld [vmem:[#allocation2 + $0x44] sm:$0xff] }
 0x2f6   :  { %10641 = vmatprep.subr.bf16.mxu1 %v10640_v46 }
 0x2f8   :  { %9312 = vmatmul.mubr.f32.gmra.mrb[24].mxu1 %v2153_v31  ;;  %v2523_v31 = vld [vmem:[#allocation2 + $0x54] sm:$0xff] }
 0x2f9   :  { %9314 = vmatprep.mubr.f32.mxu1 %v2154_v33  ;;  %10643 = vmatpush3.bf16.msra.mxu1 %v10640_v46  ;;  %v2522_v46 = vld [vmem:[#allocation2 + $0x4c] sm:$0xff] }
 0x2fa   :  { %10645 = vmatprep.subr.bf16.mxu1 %v10644_v35  ;;  %v2928_v33 = vld [vmem:[%s15562_s2 + $0x2f0] sm:$0xff] }
 0x2fc   :  { %9315 = vmatmul.mubr.f32.gmra.mrb[26].mxu1 %v2155_v52  ;;  %v2525_v52 = vld [vmem:[#allocation2 + $0x64] sm:$0xff] }
 0x2fd   :  { %9317 = vmatprep.mubr.f32.mxu1 %v2156_v9  ;;  %10647 = vmatpush3.bf16.msra.mxu1 %v10644_v35  ;;  %v3283_v9 = vld [vmem:[%s15562_s2 + $0x300] sm:$0xff] }
 0x2fe   :  { %10649 = vmatprep.subr.bf16.mxu1 %v10648_v20 }
 0x300   :  { %9318 = vmatmul.mubr.f32.gmra.mrb[28].mxu1 %v2157_v26  ;;  %v2527_v26 = vld [vmem:[#allocation2 + $0x74] sm:$0xff] }
 0x301   :  { %9320 = vmatprep.mubr.f32.mxu1 %v2158_v1  ;;  %10651 = vmatpush3.bf16.msra.mxu1 %v10648_v20  ;;  %v2929_v20 = vld [vmem:[%s15562_s2 + $0x2f8] sm:$0xff]  ;;  %v2529_v1 = vld [vmem:[#allocation2 + $0x84] sm:$0xff] }
 0x302   :  { %10653 = vmatprep.subr.bf16.mxu1 %v10652_v6  ;;  %v10684_v5 = vpack.c.bf16 %v2929_v20, %v2928_v33  ;;  %v2892_v33 = vld [vmem:[#allocation2 + $0x55] sm:$0xff] }
 0x304   :  { %9321 = vmatmul.mubr.f32.gmra.mrb[30].mxu1 %v2159_v43  ;;  %v2531_v43 = vld [vmem:[#allocation2 + $0x94] sm:$0xff] }
 0x305   :  { %9323 = vmatprep.mubr.f32.mxu1 %v2160_v19  ;;  %10655 = vmatpush3.bf16.msra.mxu1 %v10652_v6  ;;  %v3284_v6 = vld [vmem:[%s15562_s2 + $0x308] sm:$0xff]  ;;  %v2532_v19 = vld [vmem:[#allocation2 + $0x9c] sm:$0xff] }
 0x306   :  { %10657 = vmatprep.subr.bf16.mxu1 %v10656_v60  ;;  %v10688_v47 = vpack.c.bf16 %v3284_v6, %v3283_v9  ;;  %v2895_v6 = vld [vmem:[#allocation2 + $0x6d] sm:$0xff] }
 0x308   :  { %9324 = vmatmul.mubr.f32.gmra.mrb[32].mxu1 %v2161_v61  ;;  %v2533_v61 = vld [vmem:[#allocation2 + $0xa4] sm:$0xff] }
 0x309   :  { %9326 = vmatprep.mubr.f32.mxu1 %v2162_v39  ;;  %v2534_v39 = vld [vmem:[#allocation2 + $0xac] sm:$0xff] }
 0x30c   :  { %9327 = vmatmul.mubr.f32.gmra.mrb[34].mxu1 %v2163_v38  ;;  %v2535_v38 = vld [vmem:[#allocation2 + $0xb4] sm:$0xff] }
 0x30d   :  { %9329 = vmatprep.mubr.f32.mxu1 %v2164_v45  ;;  %v2536_v45 = vld [vmem:[#allocation2 + $0xbc] sm:$0xff] }
 0x310   :  { %9330 = vmatmul.mubr.f32.gmra.mrb[36].mxu1 %v2165_v30  ;;  %v2537_v30 = vld [vmem:[#allocation2 + $0xc4] sm:$0xff] }
 0x311   :  { %9332 = vmatprep.mubr.f32.mxu1 %v2166_v28  ;;  %v2538_v28 = vld [vmem:[#allocation2 + $0xcc] sm:$0xff] }
 0x314   :  { %9333 = vmatmul.mubr.f32.gmra.mrb[38].mxu1 %v2167_v13  ;;  %v2539_v13 = vld [vmem:[#allocation2 + $0xd4] sm:$0xff] }
 0x315   :  { %9335 = vmatprep.mubr.f32.mxu1 %v2168_v14  ;;  %v2540_v14 = vld [vmem:[#allocation2 + $0xdc] sm:$0xff] }
 0x318   :  { %9336 = vmatmul.mubr.f32.gmra.mrb[40].mxu1 %v2169_v10  ;;  %v2541_v10 = vld [vmem:[#allocation2 + $0xe4] sm:$0xff] }
 0x319   :  { %9338 = vmatprep.mubr.f32.mxu1 %v2170_v57  ;;  %v2542_v57 = vld [vmem:[#allocation2 + $0xec] sm:$0xff] }
 0x31c   :  { %9339 = vmatmul.mubr.f32.gmra.mrb[42].mxu1 %v2171_v42  ;;  %v2543_v42 = vld [vmem:[#allocation2 + $0xf4] sm:$0xff] }
 0x31d   :  { %9341 = vmatprep.mubr.f32.mxu1 %v2172_v63  ;;  %v2544_v63 = vld [vmem:[#allocation2 + $0xfc] sm:$0x1f] }
 0x320   :  { %9342 = vmatmul.mubr.f32.gmra.mrb[44].mxu1 %v2173_v59  ;;  %v3285_v59 = vld [vmem:[%s15562_s2 + $0x310] sm:$0xff] }
 0x321   :  { %9344 = vmatprep.mubr.f32.mxu1 %v2174_v48  ;;  %v3286_v48 = vld [vmem:[%s15562_s2 + $0x318] sm:$0xff] }
 0x322   :  { %v10692_v18 = vpack.c.bf16 %v3286_v48, %v3285_v59  ;;  %v2912_v59 = vld [vmem:[#allocation2 + $0xf5] sm:$0xff]  ;;  %v2913_v48 = vld [vmem:[#allocation2 + $0xfd] sm:$0x1f] }
 0x324   :  { %9345 = vmatmul.mubr.f32.gmra.mrb[52].mxu1 %v2175_v4  ;;  %v15658_v4 = vld [vmem:[#allocation5_spill] sm:$0xff] }
 0x325   :  { %9379 = vmatprep.mubr.f32.mxu1 %v13270_v8  ;;  %v2920_v8 = vld [vmem:[%s15562_s2 + $0x2b0] sm:$0xff] }
 0x328   :  { %9380 = vmatmul.mubr.f32.vlgmr.msra.gmra.mrb[16].mxu1 %v13272_v22  ;;  %v10668_v22 = vpack.c.bf16 %v2921_v49, %v2920_v8  ;;  %v3289_v8 = vld [vmem:[%s15562_s2 + $0x330] sm:$0xff]  ;;  %v3290_v49 = vld [vmem:[%s15562_s2 + $0x338] sm:$0xff] }
 0x329   :  { %9382 = vmatprep.mubr.f32.mxu1 %v13290_v50  ;;  %10659 = vmatpush3.bf16.msra.mxu1 %v10656_v60  ;;  %v2922_v50 = vld [vmem:[%s15562_s2 + $0x2c0] sm:$0xff]  ;;  %v2530_v60 = vld [vmem:[#allocation2 + $0x8c] sm:$0xff] }
 0x32a   :  { %10661 = vmatprep.subr.bf16.mxu1 %v10660_v17 }
 0x32c   :  { %9383 = vmatmul.mubr.f32.gmra.mrb[18].mxu1 %v13292_v62  ;;  %v10672_v62 = vpack.c.bf16 %v2923_v16, %v2922_v50  ;;  %v15662_v50 = vld [vmem:[#allocation11_spill] sm:$0xff]  ;;  %v10700_v16 = vpack.c.bf16 %v3290_v49, %v3289_v8  ;;  %v15667_v8 = vld [vmem:[#allocation12_spill] sm:$0xff] }
 0x32d   :  { %9385 = vmatprep.mubr.f32.mxu1 %v13294_v37  ;;  %10663 = vmatpush3.bf16.msra.mxu1 %v10660_v17  ;;  %v2924_v37 = vld [vmem:[%s15562_s2 + $0x2d0] sm:$0xff]  ;;  %v3288_v17 = vld [vmem:[%s15562_s2 + $0x328] sm:$0xff] }
 0x32e   :  { %10665 = vmatprep.subr.bf16.mxu1 %v10664_v12 }
 0x330   :  { %9386 = vmatmul.mubr.f32.gmra.mrb[20].mxu1 %v13320_v27  ;;  %v10676_v27 = vpack.c.bf16 %v2925_v51, %v2924_v37  ;;  %v15663_v37 = vld [vmem:[#allocation17_spill] sm:$0xff] }
 0x331   :  { %9388 = vmatprep.mubr.f32.mxu1 %v15656_v24  ;;  %10667 = vmatpush3.bf16.msra.mxu1 %v10664_v12  ;;  %v10696_v12 = vpack.c.bf16 %v3288_v17, %v3287_v40  ;;  %v3291_v24 = vld [vmem:[%s15562_s2 + $0x340] sm:$0xff] }
 0x332   :  { %10669 = vmatprep.subr.bf16.mxu1 %v10668_v22  ;;  %v15665_v40 = vld [vmem:[#allocation7_spill] sm:$0xff] }
 0x334   :  { %9389 = vmatmul.mubr.f32.gmra.mrb[22].mxu1 %v15657_v58  ;;  %v3293_v58 = vld [vmem:[%s15562_s2 + $0x350] sm:$0xff] }
 0x335   :  { %9391 = vmatprep.mubr.f32.mxu1 %v2521_v32  ;;  %10671 = vmatpush3.bf16.msra.mxu1 %v10668_v22  ;;  %v15661_v22 = vld [vmem:[#allocation10_spill] sm:$0xff] }
 0x336   :  { %10673 = vmatprep.subr.bf16.mxu1 %v10672_v62  ;;  %v3294_v32 = vld [vmem:[%s15562_s2 + $0x358] sm:$0xff] }
 0x337   :  { %v9106_v23 = vpop.f32.mrb[46].mxu1 }
 0x338   :  { %v1373_v53 = vadd.f32 %v9106_v23, %v1116_v44  ;;  %v13620_v35 = vpop.f32.mrb[47].mxu1  ;;  %9392 = vmatmul.mubr.f32.gmra.mrb[24].mxu1 %v2522_v46  ;;  %v15664_v44 = vld [vmem:[#allocation18_spill] sm:$0xff]  ;;  %v2891_v23 = vld [vmem:[#allocation2 + $0x4d] sm:$0xff] }
 0x339   :  { %9394 = vmatprep.mubr.f32.mxu1 %v2523_v31  ;;  %10675 = vmatpush3.bf16.msra.mxu1 %v10672_v62  ;;  %v3292_v62 = vld [vmem:[%s15562_s2 + $0x348] sm:$0xff]  ;;  %v1372_v46 = vadd.f32 %v13427_v55, %v13620_v35  ;;  %v2893_v35 = vld [vmem:[#allocation2 + $0x5d] sm:$0xff] }
 0x33a   :  { %1405 = vst [vmem:[#allocation3 + $0xf8] sm:$0x1f] %v1373_v53  ;;  %10677 = vmatprep.subr.bf16.mxu1 %v10676_v27  ;;  %v10704_v51 = vpack.c.bf16 %v3292_v62, %v3291_v24  ;;  %v3295_v53 = vld [vmem:[%s15562_s2 + $0x360] sm:$0xff]  ;;  %v3296_v31 = vld [vmem:[%s15562_s2 + $0x368] sm:$0xff]  ;;  %v15669_v24 = vld [vmem:[#allocation14_spill] sm:$0xff] }
 0x33b   :  { %v10712_v55 = vpack.c.bf16 %v3296_v31, %v3295_v53  ;;  %v3665_v53 = vld [vmem:[%s15562_s2 + $0x3e8] sm:$0xff] }
 0x33c   :  { %9395 = vmatmul.mubr.f32.gmra.mrb[26].mxu1 %v2524_v2 }
 0x33d   :  { %9397 = vmatprep.mubr.f32.mxu1 %v2525_v52  ;;  %10679 = vmatpush3.bf16.msra.mxu1 %v10676_v27  ;;  %v2890_v27 = vld [vmem:[#allocation2 + $0x45] sm:$0xff]  ;;  %v3297_v52 = vld [vmem:[%s15562_s2 + $0x370] sm:$0xff] }
 0x33e   :  { %10681 = vmatprep.subr.bf16.mxu1 %v10680_v41 }
 0x340   :  { %9398 = vmatmul.mubr.f32.gmra.mrb[28].mxu1 %v2526_v25  ;;  %v2894_v25 = vld [vmem:[#allocation2 + $0x65] sm:$0xff] }
 0x341   :  { %9400 = vmatprep.mubr.f32.mxu1 %v2527_v26  ;;  %10683 = vmatpush3.bf16.msra.mxu1 %v10680_v41  ;;  %v1485_v15 = vld [vmem:[#allocation3 + $0xf8] sm:$0x1f] }
 0x342   :  { %10685 = vmatprep.subr.bf16.mxu1 %v10684_v5  ;;  %v3652_v26 = vld [vmem:[%s15562_s2 + $0x380] sm:$0xff] }
 0x344   :  { %9401 = vmatmul.mubr.f32.gmra.mrb[30].mxu1 %v2528_v0  ;;  %v2896_v0 = vld [vmem:[#allocation2 + $0x75] sm:$0xff] }
 0x345   :  { %9403 = vmatprep.mubr.f32.mxu1 %v2529_v1  ;;  %10687 = vmatpush3.bf16.msra.mxu1 %v10684_v5  ;;  %v3298_v5 = vld [vmem:[%s15562_s2 + $0x378] sm:$0xff] }
 0x346   :  { %10689 = vmatprep.subr.bf16.mxu1 %v10688_v47  ;;  %v10716_v9 = vpack.c.bf16 %v3298_v5, %v3297_v52  ;;  %v3667_v52 = vld [vmem:[%s15562_s2 + $0x3f8] sm:$0xff]  ;;  %v3263_v5 = vld [vmem:[#allocation2 + $0x66] sm:$0xff] }
 0x348   :  { %9404 = vmatmul.mubr.f32.gmra.mrb[32].mxu1 %v2530_v60  ;;  %v2897_v60 = vld [vmem:[#allocation2 + $0x7d] sm:$0xff] }
 0x349   :  { %9406 = vmatprep.mubr.f32.mxu1 %v2531_v43  ;;  %v2898_v43 = vld [vmem:[#allocation2 + $0x85] sm:$0xff] }
 0x34c   :  { %9407 = vmatmul.mubr.f32.gmra.mrb[34].mxu1 %v2532_v19  ;;  %v2899_v19 = vld [vmem:[#allocation2 + $0x8d] sm:$0xff] }
 0x34d   :  { %9409 = vmatprep.mubr.f32.mxu1 %v2533_v61  ;;  %v2900_v61 = vld [vmem:[#allocation2 + $0x95] sm:$0xff] }
 0x350   :  { %9410 = vmatmul.mubr.f32.gmra.mrb[36].mxu1 %v2534_v39  ;;  %v2901_v39 = vld [vmem:[#allocation2 + $0x9d] sm:$0xff] }
 0x351   :  { %9412 = vmatprep.mubr.f32.mxu1 %v2535_v38  ;;  %v2902_v38 = vld [vmem:[#allocation2 + $0xa5] sm:$0xff] }
 0x354   :  { %9413 = vmatmul.mubr.f32.gmra.mrb[38].mxu1 %v2536_v45  ;;  %v2903_v45 = vld [vmem:[#allocation2 + $0xad] sm:$0xff] }
 0x355   :  { %9415 = vmatprep.mubr.f32.mxu1 %v2537_v30  ;;  %v2904_v30 = vld [vmem:[#allocation2 + $0xb5] sm:$0xff] }
 0x358   :  { %9416 = vmatmul.mubr.f32.gmra.mrb[40].mxu1 %v2538_v28  ;;  %v2905_v28 = vld [vmem:[#allocation2 + $0xbd] sm:$0xff] }
 0x359   :  { %9418 = vmatprep.mubr.f32.mxu1 %v2539_v13  ;;  %v2906_v13 = vld [vmem:[#allocation2 + $0xc5] sm:$0xff] }
 0x35c   :  { %9419 = vmatmul.mubr.f32.gmra.mrb[42].mxu1 %v2540_v14  ;;  %v2907_v14 = vld [vmem:[#allocation2 + $0xcd] sm:$0xff] }
 0x35d   :  { %9421 = vmatprep.mubr.f32.mxu1 %v2541_v10  ;;  %v2908_v10 = vld [vmem:[#allocation2 + $0xd5] sm:$0xff] }
 0x360   :  { %9422 = vmatmul.mubr.f32.gmra.mrb[44].mxu1 %v2542_v57  ;;  %v2909_v57 = vld [vmem:[#allocation2 + $0xdd] sm:$0xff] }
 0x361   :  { %9424 = vmatprep.mubr.f32.mxu1 %v2543_v42  ;;  %v2910_v42 = vld [vmem:[#allocation2 + $0xe5] sm:$0xff] }
 0x364   :  { %9425 = vmatmul.mubr.f32.gmra.mrb[54].mxu1 %v2544_v63  ;;  %v2911_v63 = vld [vmem:[#allocation2 + $0xed] sm:$0xff] }
 0x365   :  { %9459 = vmatprep.mubr.f32.mxu1 %v15658_v4  ;;  %v3654_v4 = vld [vmem:[%s15562_s2 + $0x390] sm:$0xff] }
 0x368   :  { %9460 = vmatmul.mubr.f32.vlgmr.msra.gmra.mrb[16].mxu1 %v15659_v36  ;;  %v3656_v36 = vld [vmem:[%s15562_s2 + $0x3a0] sm:$0xff] }
 0x369   :  { %9462 = vmatprep.mubr.f32.mxu1 %v15660_v56  ;;  %10691 = vmatpush3.bf16.msra.mxu1 %v10688_v47  ;;  %v3653_v47 = vld [vmem:[%s15562_s2 + $0x388] sm:$0xff] }
 0x36a   :  { %10693 = vmatprep.subr.bf16.mxu1 %v10692_v18  ;;  %v10720_v1 = vpack.c.bf16 %v3653_v47, %v3652_v26  ;;  %v3657_v56 = vld [vmem:[%s15562_s2 + $0x3a8] sm:$0xff] }
 0x36b   :  { %v10728_v49 = vpack.c.bf16 %v3657_v56, %v3656_v36  ;;  %v3267_v26 = vld [vmem:[#allocation2 + $0x86] sm:$0xff]  ;;  %v3268_v47 = vld [vmem:[#allocation2 + $0x8e] sm:$0xff] }
 0x36c   :  { %9463 = vmatmul.mubr.f32.gmra.mrb[18].mxu1 %v15661_v22  ;;  %v3658_v22 = vld [vmem:[%s15562_s2 + $0x3b0] sm:$0xff] }
 0x36d   :  { %9465 = vmatprep.mubr.f32.mxu1 %v15662_v50  ;;  %10695 = vmatpush3.bf16.msra.mxu1 %v10692_v18  ;;  %v3655_v18 = vld [vmem:[%s15562_s2 + $0x398] sm:$0xff] }
 0x36e   :  { %10697 = vmatprep.subr.bf16.mxu1 %v10696_v12  ;;  %v10724_v17 = vpack.c.bf16 %v3655_v18, %v3654_v4  ;;  %v3659_v50 = vld [vmem:[%s15562_s2 + $0x3b8] sm:$0xff]  ;;  %v3628_v4 = vld [vmem:[#allocation2 + $0x47] sm:$0xff] }
 0x36f   :  { %v10732_v62 = vpack.c.bf16 %v3659_v50, %v3658_v22  ;;  %v3635_v22 = vld [vmem:[#allocation2 + $0x7f] sm:$0xff]  ;;  %v3636_v50 = vld [vmem:[#allocation2 + $0x87] sm:$0xff] }
 0x370   :  { %9466 = vmatmul.mubr.f32.gmra.mrb[20].mxu1 %v13326_v21  ;;  %v10708_v21 = vpack.c.bf16 %v3294_v32, %v3293_v58  ;;  %v15670_v58 = vld [vmem:[#allocation19_spill] sm:$0xff] }
 0x371   :  { %9468 = vmatprep.mubr.f32.mxu1 %v15663_v37  ;;  %10699 = vmatpush3.bf16.msra.mxu1 %v10696_v12  ;;  %v15666_v12 = vld [vmem:[#allocation8_spill] sm:$0xff]  ;;  %v3660_v37 = vld [vmem:[%s15562_s2 + $0x3c0] sm:$0xff] }
 0x372   :  { %10701 = vmatprep.subr.bf16.mxu1 %v10700_v16 }
 0x374   :  { %9469 = vmatmul.mubr.f32.gmra.mrb[22].mxu1 %v15664_v44  ;;  %v3662_v44 = vld [vmem:[%s15562_s2 + $0x3d0] sm:$0xff] }
 0x375   :  { %9471 = vmatprep.mubr.f32.mxu1 %v2890_v27  ;;  %10703 = vmatpush3.bf16.msra.mxu1 %v10700_v16  ;;  %v15668_v16 = vld [vmem:[#allocation13_spill] sm:$0xff]  ;;  %v3663_v27 = vld [vmem:[%s15562_s2 + $0x3d8] sm:$0xff] }
 0x376   :  { %10705 = vmatprep.subr.bf16.mxu1 %v10704_v51 }
 0x377   :  { %v9186_v3 = vpop.f32.mrb[48].mxu1 }
 0x378   :  { %v1742_v41 = vadd.f32 %v9186_v3, %v1485_v15  ;;  %v1702_v2 = vpop.f32.mrb[49].mxu1  ;;  %9472 = vmatmul.mubr.f32.gmra.mrb[24].mxu1 %v2891_v23  ;;  %v3259_v23 = vld [vmem:[#allocation2 + $0x46] sm:$0xff] }
 0x379   :  { %v13680_v20 = vadd.f32 %v1702_v2, %v1372_v46  ;;  %9474 = vmatprep.mubr.f32.mxu1 %v2892_v33  ;;  %10707 = vmatpush3.bf16.msra.mxu1 %v10704_v51  ;;  %v3661_v51 = vld [vmem:[%s15562_s2 + $0x3c8] sm:$0xff]  ;;  %v10740_v46 = vpack.c.bf16 %v3663_v27, %v3662_v44  ;;  %v3664_v3 = vld [vmem:[%s15562_s2 + $0x3e0] sm:$0xff] }
 0x37a   :  { %1774 = vst [vmem:[#allocation3 + $0xf8] sm:$0x1f] %v1742_v41  ;;  %10709 = vmatprep.subr.bf16.mxu1 %v10708_v21  ;;  %v10736_v32 = vpack.c.bf16 %v3661_v51, %v3660_v37  ;;  %v10744_v33 = vpack.c.bf16 %v3665_v53, %v3664_v3  ;;  %v3640_v37 = vld [vmem:[#allocation2 + $0xa7] sm:$0xff]  ;;  %v3641_v51 = vld [vmem:[#allocation2 + $0xaf] sm:$0xff]  ;;  %v3651_v3 = vld [vmem:[#allocation2 + $0xff] sm:$0x1f] }
 0x37b   :  { %v3644_v44 = vld [vmem:[#allocation2 + $0xc7] sm:$0xff]  ;;  %v3645_v27 = vld [vmem:[#allocation2 + $0xcf] sm:$0xff] }
 0x37c   :  { %9475 = vmatmul.mubr.f32.gmra.mrb[26].mxu1 %v2893_v35  ;;  %v3666_v35 = vld [vmem:[%s15562_s2 + $0x3f0] sm:$0xff]  ;;  %v13756_v53 = vld [vmem:[#allocation2] sm:$0xff] }
 0x37d   :  { %9477 = vmatprep.mubr.f32.mxu1 %v2894_v25  ;;  %10711 = vmatpush3.bf16.msra.mxu1 %v10708_v21  ;;  %v3260_v21 = vld [vmem:[#allocation2 + $0x4e] sm:$0xff] }
 0x37e   :  { %10713 = vmatprep.subr.bf16.mxu1 %v10712_v55  ;;  %v3264_v25 = vld [vmem:[#allocation2 + $0x6e] sm:$0xff] }
 0x380   :  { %9478 = vmatmul.mubr.f32.gmra.mrb[28].mxu1 %v2895_v6  ;;  %v3266_v6 = vld [vmem:[#allocation2 + $0x7e] sm:$0xff] }
 0x381   :  { %9480 = vmatprep.mubr.f32.mxu1 %v2896_v0  ;;  %10715 = vmatpush3.bf16.msra.mxu1 %v10712_v55  ;;  %v3262_v55 = vld [vmem:[#allocation2 + $0x5e] sm:$0xff]  ;;  %v3269_v0 = vld [vmem:[#allocation2 + $0x96] sm:$0xff] }
 0x382   :  { %10717 = vmatprep.subr.bf16.mxu1 %v10716_v9 }
 0x384   :  { %9481 = vmatmul.mubr.f32.gmra.mrb[30].mxu1 %v2897_v60  ;;  %v3271_v60 = vld [vmem:[#allocation2 + $0xa6] sm:$0xff] }
 0x385   :  { %9483 = vmatprep.mubr.f32.mxu1 %v2898_v43  ;;  %10719 = vmatpush3.bf16.msra.mxu1 %v10716_v9  ;;  %v3265_v9 = vld [vmem:[#allocation2 + $0x76] sm:$0xff]  ;;  %v3272_v43 = vld [vmem:[#allocation2 + $0xae] sm:$0xff] }
 0x386   :  { %10721 = vmatprep.subr.bf16.mxu1 %v10720_v1 }
 0x388   :  { %9484 = vmatmul.mubr.f32.gmra.mrb[32].mxu1 %v2899_v19  ;;  %v3273_v19 = vld [vmem:[#allocation2 + $0xb6] sm:$0xff] }
 0x389   :  { %9486 = vmatprep.mubr.f32.mxu1 %v2900_v61  ;;  %v3274_v61 = vld [vmem:[#allocation2 + $0xbe] sm:$0xff] }
 0x38c   :  { %9487 = vmatmul.mubr.f32.gmra.mrb[34].mxu1 %v2901_v39  ;;  %v3275_v39 = vld [vmem:[#allocation2 + $0xc6] sm:$0xff] }
 0x38d   :  { %9489 = vmatprep.mubr.f32.mxu1 %v2902_v38  ;;  %v3276_v38 = vld [vmem:[#allocation2 + $0xce] sm:$0xff] }
 0x390   :  { %9490 = vmatmul.mubr.f32.gmra.mrb[36].mxu1 %v2903_v45  ;;  %v3277_v45 = vld [vmem:[#allocation2 + $0xd6] sm:$0xff] }
 0x391   :  { %9492 = vmatprep.mubr.f32.mxu1 %v2904_v30  ;;  %v3278_v30 = vld [vmem:[#allocation2 + $0xde] sm:$0xff] }
 0x394   :  { %9493 = vmatmul.mubr.f32.gmra.mrb[38].mxu1 %v2905_v28  ;;  %v3279_v28 = vld [vmem:[#allocation2 + $0xe6] sm:$0xff] }
 0x395   :  { %9495 = vmatprep.mubr.f32.mxu1 %v2906_v13  ;;  %v3280_v13 = vld [vmem:[#allocation2 + $0xee] sm:$0xff] }
 0x398   :  { %9496 = vmatmul.mubr.f32.gmra.mrb[40].mxu1 %v2907_v14  ;;  %v3281_v14 = vld [vmem:[#allocation2 + $0xf6] sm:$0xff] }
 0x399   :  { %9498 = vmatprep.mubr.f32.mxu1 %v2908_v10  ;;  %v3282_v10 = vld [vmem:[#allocation2 + $0xfe] sm:$0x1f] }
 0x39c   :  { %9499 = vmatmul.mubr.f32.gmra.mrb[42].mxu1 %v2909_v57  ;;  %v15671_v57 = vld [vmem:[#allocation20_spill] sm:$0xff] }
 0x39d   :  { %9501 = vmatprep.mubr.f32.mxu1 %v2910_v42  ;;  %v15672_v42 = vld [vmem:[#allocation21_spill] sm:$0xff] }
 0x3a0   :  { %9502 = vmatmul.mubr.f32.gmra.mrb[44].mxu1 %v2911_v63  ;;  %v15673_v63 = vld [vmem:[#allocation22_spill] sm:$0xff] }
 0x3a1   :  { %9504 = vmatprep.mubr.f32.mxu1 %v2912_v59  ;;  %v15674_v59 = vld [vmem:[#allocation23_spill] sm:$0xff] }
 0x3a4   :  { %9505 = vmatmul.mubr.f32.gmra.mrb[56].mxu1 %v2913_v48  ;;  %v15675_v48 = vld [vmem:[#allocation24_spill] sm:$0xff] }
 0x3a5   :  { %9539 = vmatprep.mubr.f32.mxu1 %v15665_v40 }
 0x3a8   :  { %9540 = vmatmul.mubr.f32.vlgmr.msra.gmra.mrb[16].mxu1 %v15666_v12  ;;  %v3630_v12 = vld [vmem:[#allocation2 + $0x57] sm:$0xff] }
 0x3a9   :  { %9542 = vmatprep.mubr.f32.mxu1 %v15667_v8  ;;  %10723 = vmatpush3.bf16.msra.mxu1 %v10720_v1  ;;  %v3270_v1 = vld [vmem:[#allocation2 + $0x9e] sm:$0xff]  ;;  %v3633_v8 = vld [vmem:[#allocation2 + $0x6f] sm:$0xff] }
 0x3aa   :  { %10725 = vmatprep.subr.bf16.mxu1 %v10724_v17 }
 0x3ac   :  { %9543 = vmatmul.mubr.f32.gmra.mrb[18].mxu1 %v15668_v16  ;;  %v3637_v16 = vld [vmem:[#allocation2 + $0x8f] sm:$0xff] }
 0x3ad   :  { %9545 = vmatprep.mubr.f32.mxu1 %v15669_v24  ;;  %10727 = vmatpush3.bf16.msra.mxu1 %v10724_v17  ;;  %v3629_v17 = vld [vmem:[#allocation2 + $0x4f] sm:$0xff]  ;;  %v3638_v24 = vld [vmem:[#allocation2 + $0x97] sm:$0xff] }
 0x3ae   :  { %10729 = vmatprep.subr.bf16.mxu1 %v10728_v49 }
 0x3b0   :  { %9546 = vmatmul.mubr.f32.gmra.mrb[20].mxu1 %v15670_v58  ;;  %v3642_v58 = vld [vmem:[#allocation2 + $0xb7] sm:$0xff] }
 0x3b1   :  { %9548 = vmatprep.mubr.f32.mxu1 %v13334_v11  ;;  %10731 = vmatpush3.bf16.msra.mxu1 %v10728_v49  ;;  %v1854_v11 = vld [vmem:[#allocation3 + $0xf8] sm:$0x1f]  ;;  %v3634_v49 = vld [vmem:[#allocation2 + $0x77] sm:$0xff] }
 0x3b2   :  { %10733 = vmatprep.subr.bf16.mxu1 %v10732_v62 }
 0x3b4   :  { %9549 = vmatmul.mubr.f32.gmra.mrb[22].mxu1 %v13336_v34  ;;  %v3261_v34 = vld [vmem:[#allocation2 + $0x56] sm:$0xff] }
 0x3b5   :  { %9551 = vmatprep.mubr.f32.mxu1 %v3259_v23  ;;  %10735 = vmatpush3.bf16.msra.mxu1 %v10732_v62  ;;  %v3639_v62 = vld [vmem:[#allocation2 + $0x9f] sm:$0xff]  ;;  %v3646_v23 = vld [vmem:[#allocation2 + $0xd7] sm:$0xff] }
 0x3b6   :  { %10737 = vmatprep.subr.bf16.mxu1 %v10736_v32 }
 0x3b7   :  { %v9266_v15 = vpop.f32.mrb[50].mxu1 }
 0x3b8   :  { %v2111_v31 = vadd.f32 %v9266_v15, %v1854_v11  ;;  %v2071_v41 = vpop.f32.mrb[51].mxu1  ;;  %9552 = vmatmul.mubr.f32.gmra.mrb[24].mxu1 %v3260_v21  ;;  %v3647_v21 = vld [vmem:[#allocation2 + $0xdf] sm:$0xff]  ;;  %v3649_v11 = vld [vmem:[#allocation2 + $0xef] sm:$0xff]  ;;  %v3650_v15 = vld [vmem:[#allocation2 + $0xf7] sm:$0xff] }
 0x3b9   :  { %v13739_v2 = vadd.f32 %v2071_v41, %v13680_v20  ;;  %9554 = vmatprep.mubr.f32.mxu1 %v3261_v34  ;;  %10739 = vmatpush3.bf16.msra.mxu1 %v10736_v32  ;;  %v10748_v20 = vpack.c.bf16 %v3667_v52, %v3666_v35  ;;  %v3643_v32 = vld [vmem:[#allocation2 + $0xbf] sm:$0xff] }
 0x3ba   :  { %2143 = vst [vmem:[#allocation3 + $0xf8] sm:$0x1f] %v2111_v31  ;;  %10741 = vmatprep.subr.bf16.mxu1 %v10740_v46 }
 0x3bc   :  { %9555 = vmatmul.mubr.f32.gmra.mrb[26].mxu1 %v3262_v55  ;;  %v8044_v55 = vld [vmem:[%s15561_s3 + $0x6] ss:$0 sm:$0xff] }
 0x3bd   :  { %9557 = vmatprep.mubr.f32.mxu1 %v3263_v5  ;;  %10743 = vmatpush3.bf16.msra.mxu1 %v10740_v46  ;;  %v3648_v46 = vld [vmem:[#allocation2 + $0xe7] sm:$0xff]  ;;  %4332 = vst [vmem:[#allocation3 + $0x8] sm:$0xff] %v8044_v55  ;;  %4331 = vst [vmem:[#allocation3] sm:$0xff] %v8044_v55 }
 0x3be   :  { %10745 = vmatprep.subr.bf16.mxu1 %v10744_v33  ;;  %4334 = vst [vmem:[#allocation3 + $0x18] sm:$0xff] %v8044_v55  ;;  %4333 = vst [vmem:[#allocation3 + $0x10] sm:$0xff] %v8044_v55 }
 0x3bf   :  { %4336 = vst [vmem:[#allocation3 + $0x28] sm:$0xff] %v8044_v55  ;;  %4335 = vst [vmem:[#allocation3 + $0x20] sm:$0xff] %v8044_v55 }
 0x3c0   :  { %9558 = vmatmul.mubr.f32.gmra.mrb[28].mxu1 %v3264_v25 }
 0x3c1   :  { %9560 = vmatprep.mubr.f32.mxu1 %v3265_v9  ;;  %10747 = vmatpush3.bf16.msra.mxu1 %v10744_v33  ;;  %v2223_v18 = vld [vmem:[#allocation3 + $0xf8] sm:$0x1f]  ;;  %v3990_v9 = vld [vmem:[%s15563_s4 + $0x8] sm:$0xff] }
 0x3c2   :  { %10749 = vmatprep.subr.bf16.mxu1 %v10748_v20  ;;  %8034 = vmatprep.mubr.msk.f32.mxu0 %vm4037_vm5, %v3990_v9 }
 0x3c4   :  { %9561 = vmatmul.mubr.f32.gmra.mrb[30].mxu1 %v3266_v6 }
 0x3c5   :  { %9563 = vmatprep.mubr.f32.mxu1 %v3267_v26  ;;  %10751 = vmatpush3.bf16.msra.mxu1 %v10748_v20 }
 0x3c8   :  { %9564 = vmatmul.mubr.f32.gmra.mrb[32].mxu1 %v3268_v47 }
 0x3c9   :  { %9566 = vmatprep.mubr.f32.mxu1 %v3269_v0 }
 0x3cc   :  { %9567 = vmatmul.mubr.f32.gmra.mrb[34].mxu1 %v3270_v1 }
 0x3cd   :  { %9569 = vmatprep.mubr.f32.mxu1 %v3271_v60 }
 0x3d0   :  { %9570 = vmatmul.mubr.f32.gmra.mrb[36].mxu1 %v3272_v43  ;;  %v12234_v43 = vld [vmem:[#allocation3 + $0x60] sm:$0xff] }
 0x3d1   :  { %9572 = vmatprep.mubr.f32.mxu1 %v3273_v19 }
 0x3d4   :  { %9573 = vmatmul.mubr.f32.gmra.mrb[38].mxu1 %v3274_v61 }
 0x3d5   :  { %9575 = vmatprep.mubr.f32.mxu1 %v3275_v39 }
 0x3d8   :  { %9576 = vmatmul.mubr.f32.gmra.mrb[40].mxu1 %v3276_v38 }
 0x3d9   :  { %9578 = vmatprep.mubr.f32.mxu1 %v3277_v45 }
 0x3dc   :  { %9579 = vmatmul.mubr.f32.gmra.mrb[42].mxu1 %v3278_v30 }
 0x3dd   :  { %9581 = vmatprep.mubr.f32.mxu1 %v3279_v28 }
 0x3e0   :  { %9582 = vmatmul.mubr.f32.gmra.mrb[44].mxu1 %v3280_v13 }
 0x3e1   :  { %9584 = vmatprep.mubr.f32.mxu1 %v3281_v14 }
 0x3e4   :  { %9585 = vmatmul.mubr.f32.gmra.mrb[58].mxu1 %v3282_v10 }
 0x3e5   :  { %9619 = vmatprep.mubr.f32.mxu1 %v15671_v57 }
 0x3e8   :  { %9620 = vmatmul.mubr.f32.vlgmr.msra.gmra.mrb[16].mxu1 %v15672_v42 }
 0x3e9   :  { %9622 = vmatprep.mubr.f32.mxu1 %v13345_v29 }
 0x3ec   :  { %9623 = vmatmul.mubr.f32.gmra.mrb[18].mxu1 %v13347_v54  ;;  %v3632_v54 = vld [vmem:[#allocation2 + $0x67] sm:$0xff] }
 0x3ed   :  { %9625 = vmatprep.mubr.f32.mxu1 %v13349_v7  ;;  %v3631_v7 = vld [vmem:[#allocation2 + $0x5f] sm:$0xff] }
 0x3f0   :  { %9626 = vmatmul.mubr.f32.gmra.mrb[20].mxu1 %v15673_v63 }
 0x3f1   :  { %9628 = vmatprep.mubr.f32.mxu1 %v15674_v59 }
 0x3f4   :  { %9629 = vmatmul.mubr.f32.gmra.mrb[22].mxu1 %v15675_v48 }
 0x3f5   :  { %9631 = vmatprep.mubr.f32.mxu1 %v3628_v4 }
 0x3f7   :  { %v9346_v40 = vpop.f32.mrb[52].mxu1 }
 0x3f8   :  { %v2480_v36 = vadd.f32 %v9346_v40, %v2223_v18  ;;  %v2440_v56 = vpop.f32.mrb[53].mxu1  ;;  %9632 = vmatmul.mubr.f32.gmra.mrb[24].mxu1 %v3629_v17 }
 0x3f9   :  { %v2479_v29 = vadd.f32 %v2440_v56, %v13739_v2  ;;  %9634 = vmatprep.mubr.f32.mxu1 %v3630_v12 }
 0x3fa   :  { %2512 = vst [vmem:[#allocation3 + $0xf8] sm:$0x1f] %v2480_v36 }
 0x3fc   :  { %9635 = vmatmul.mubr.f32.gmra.mrb[26].mxu1 %v3631_v7 }
 0x3fd   :  { %9637 = vmatprep.mubr.f32.mxu1 %v3632_v54 }
 0x400   :  { %9638 = vmatmul.mubr.f32.gmra.mrb[28].mxu1 %v3633_v8 }
 0x401   :  { %9640 = vmatprep.mubr.f32.mxu1 %v3634_v49  ;;  %v2592_v31 = vld [vmem:[#allocation3 + $0xf8] sm:$0x1f] }
 0x404   :  { %9641 = vmatmul.mubr.f32.gmra.mrb[30].mxu1 %v3635_v22 }
 0x405   :  { %9643 = vmatprep.mubr.f32.mxu1 %v3636_v50  ;;  %v1098_v50 = vld [vmem:[#allocation3 + $0x68] sm:$0xff] }
 0x408   :  { %9644 = vmatmul.mubr.f32.gmra.mrb[32].mxu1 %v3637_v16  ;;  %v1097_v16 = vld [vmem:[#allocation3 + $0x60] sm:$0xff] }
 0x409   :  { %9646 = vmatprep.mubr.f32.mxu1 %v3638_v24 }
 0x40c   :  { %9647 = vmatmul.mubr.f32.gmra.mrb[34].mxu1 %v3639_v62 }
 0x40d   :  { %9649 = vmatprep.mubr.f32.mxu1 %v3640_v37 }
 0x410   :  { %9650 = vmatmul.mubr.f32.gmra.mrb[36].mxu1 %v3641_v51 }
 0x411   :  { %9652 = vmatprep.mubr.f32.mxu1 %v3642_v58 }
 0x414   :  { %9653 = vmatmul.mubr.f32.gmra.mrb[38].mxu1 %v3643_v32  ;;  %v1100_v32 = vld [vmem:[#allocation3 + $0x78] sm:$0xff] }
 0x415   :  { %9655 = vmatprep.mubr.f32.mxu1 %v3644_v44  ;;  %v1099_v44 = vld [vmem:[#allocation3 + $0x70] sm:$0xff] }
 0x418   :  { %9656 = vmatmul.mubr.f32.gmra.mrb[40].mxu1 %v3645_v27 }
 0x419   :  { %9658 = vmatprep.mubr.f32.mxu1 %v3646_v23 }
 0x41c   :  { %9659 = vmatmul.mubr.f32.gmra.mrb[42].mxu1 %v3647_v21 }
 0x41d   :  { %9661 = vmatprep.mubr.f32.mxu1 %v3648_v46 }
 0x420   :  { %9662 = vmatmul.mubr.f32.gmra.mrb[44].mxu1 %v3649_v11 }
 0x421   :  { %9664 = vmatprep.mubr.f32.mxu1 %v3650_v15  ;;  %v1102_v15 = vld [vmem:[#allocation3 + $0x88] sm:$0xff] }
 0x424   :  { %9665 = vmatmul.mubr.f32.gmra.mrb[60].mxu1 %v3651_v3  ;;  %v1101_v3 = vld [vmem:[#allocation3 + $0x80] sm:$0xff] }
 0x425   :  { %6610 = vmatprep.mubr.f32.mxu1 %v13756_v53 }
 0x437   :  { %v9426_v41 = vpop.f32.mrb[54].mxu1 }
 0x438   :  { %v2849_v34 = vadd.f32 %v9426_v41, %v2592_v31  ;;  %v2809_v2 = vpop.f32.mrb[55].mxu1 }
 0x439   :  { %v2848_v33 = vadd.f32 %v2809_v2, %v2479_v29 }
 0x43a   :  { %2881 = vst [vmem:[#allocation3 + $0xf8] sm:$0x1f] %v2849_v34 }
 0x441   :  { %v2961_v35 = vld [vmem:[#allocation3 + $0xf8] sm:$0x1f] }
 0x477   :  { %v9506_v52 = vpop.f32.mrb[56].mxu1 }
 0x478   :  { %v3218_v5 = vadd.f32 %v9506_v52, %v2961_v35  ;;  %v3178_v20 = vpop.f32.mrb[57].mxu1  ;;  %v1103_v35 = vld [vmem:[#allocation3 + $0x90] sm:$0xff] }
 0x479   :  { %v3217_v25 = vadd.f32 %v3178_v20, %v2848_v33 }
 0x47a   :  { %3250 = vst [vmem:[#allocation3 + $0xf8] sm:$0x1f] %v3218_v5 }
 0x481   :  { %v3330_v6 = vld [vmem:[#allocation3 + $0xf8] sm:$0x1f] }
 0x4b7   :  { %v9586_v26 = vpop.f32.mrb[58].mxu1 }
 0x4b8   :  { %v3587_v47 = vadd.f32 %v9586_v26, %v3330_v6  ;;  %v3547_v0 = vpop.f32.mrb[59].mxu1  ;;  %v1106_v6 = vld [vmem:[#allocation3 + $0xa8] sm:$0xff]  ;;  %v1105_v26 = vld [vmem:[#allocation3 + $0xa0] sm:$0xff] }
 0x4b9   :  { %v13766_v1 = vadd.f32 %v3547_v0, %v3217_v25 }
 0x4ba   :  { %3619 = vst [vmem:[#allocation3 + $0xf8] sm:$0x1f] %v3587_v47 }
 0x4bb   :  { %v9621_v60 = vpop.f32.mrb[16].mxu1 }
 0x4bc   :  { %v13768_v19 = vadd.f32 %v12234_v43, %v9621_v60  ;;  %v3766_v61 = vpop.f32.mrb[17].mxu1 }
 0x4bd   :  { %v13770_v39 = vadd.f32 %v12234_v43, %v3766_v61 }
 0x4bf   :  { %v9624_v38 = vpop.f32.mrb[18].mxu1  ;;  %v10754_v45 = vpack.c.bf16 %v13768_v19, %v13770_v39 }
 0x4c0   :  { %v13774_v30 = vadd.f32 %v12234_v43, %v9624_v38  ;;  %v3776_v28 = vpop.f32.mrb[19].mxu1  ;;  %v1108_v38 = vld [vmem:[#allocation3 + $0xb8] sm:$0xff] }
 0x4c1   :  { %v13776_v13 = vadd.f32 %v12234_v43, %v3776_v28  ;;  %v1107_v28 = vld [vmem:[#allocation3 + $0xb0] sm:$0xff] }
 0x4c3   :  { %v9627_v14 = vpop.f32.mrb[20].mxu1  ;;  %v10758_v10 = vpack.c.bf16 %v13774_v30, %v13776_v13 }
 0x4c4   :  { %v13780_v57 = vadd.f32 %v12234_v43, %v9627_v14  ;;  %v3786_v42 = vpop.f32.mrb[21].mxu1 }
 0x4c5   :  { %v13782_v63 = vadd.f32 %v12234_v43, %v3786_v42 }
 0x4c7   :  { %v9630_v59 = vpop.f32.mrb[22].mxu1  ;;  %v10762_v48 = vpack.c.bf16 %v13780_v57, %v13782_v63 }
 0x4c8   :  { %v13786_v4 = vadd.f32 %v12234_v43, %v9630_v59  ;;  %v3796_v18 = vpop.f32.mrb[23].mxu1 }
 0x4c9   :  { %v13788_v40 = vadd.f32 %v12234_v43, %v3796_v18  ;;  %v1109_v18 = vld [vmem:[#allocation3 + $0xc0] sm:$0xff] }
 0x4ca   :  { %3964 = vst [vmem:[#allocation3 + $0x38] sm:$0xff] %v13786_v4 }
 0x4cb   :  { %4338 = vst [vmem:[#allocation3 + $0x38] sm:$0x7f] %v8044_v55  ;;  %v9633_v17 = vpop.f32.mrb[24].mxu1  ;;  %v10766_v36 = vpack.c.bf16 %v13786_v4, %v13788_v40  ;;  %v1104_v55 = vld [vmem:[#allocation3 + $0x98] sm:$0xff] }
 0x4cc   :  { %v13793_v56 = vadd.f32 %v12234_v43, %v9633_v17  ;;  %v3806_v12 = vpop.f32.mrb[25].mxu1 }
 0x4cd   :  { %v13795_v29 = vadd.f32 %v12234_v43, %v3806_v12 }
 0x4cf   :  { %v9636_v7 = vpop.f32.mrb[26].mxu1  ;;  %v10770_v54 = vpack.c.bf16 %v13793_v56, %v13795_v29 }
 0x4d0   :  { %v13799_v8 = vadd.f32 %v12234_v43, %v9636_v7  ;;  %v3816_v49 = vpop.f32.mrb[27].mxu1 }
 0x4d1   :  { %v13801_v22 = vadd.f32 %v12234_v43, %v3816_v49  ;;  %v1111_v49 = vld [vmem:[#allocation3 + $0xd0] sm:$0xff] }
 0x4d3   :  { %v9639_v24 = vpop.f32.mrb[28].mxu1  ;;  %v10774_v62 = vpack.c.bf16 %v13799_v8, %v13801_v22  ;;  %v3992_v8 = vld [vmem:[%s15563_s4 + $0x18] sm:$0xff]  ;;  %v3991_v22 = vld [vmem:[%s15563_s4 + $0x10] sm:$0xff] }
 0x4d4   :  { %v13805_v37 = vadd.f32 %v9639_v24, %v1098_v50  ;;  %v3826_v51 = vpop.f32.mrb[29].mxu1 }
 0x4d5   :  { %v13807_v58 = vadd.f32 %v3826_v51, %v1097_v16  ;;  %v1113_v51 = vld [vmem:[#allocation3 + $0xe0] sm:$0xff] }
 0x4d6   :  { %3970 = vst [vmem:[#allocation3 + $0x68] sm:$0xff] %v13805_v37 }
 0x4d7   :  { %3969 = vst [vmem:[#allocation3 + $0x60] sm:$0xff] %v13807_v58  ;;  %v9642_v27 = vpop.f32.mrb[30].mxu1  ;;  %v10778_v23 = vpack.c.bf16 %v13805_v37, %v13807_v58  ;;  %v3993_v37 = vld [vmem:[%s15563_s4 + $0x20] sm:$0xff]  ;;  %v3996_v58 = vld [vmem:[%s15563_s4 + $0x38] sm:$0xff] }
 0x4d8   :  { %v13813_v21 = vadd.f32 %v9642_v27, %v1100_v32  ;;  %v3836_v46 = vpop.f32.mrb[31].mxu1 }
 0x4d9   :  { %v13815_v11 = vadd.f32 %v3836_v46, %v1099_v44 }
 0x4da   :  { %3972 = vst [vmem:[#allocation3 + $0x78] sm:$0xff] %v13813_v21 }
 0x4db   :  { %3971 = vst [vmem:[#allocation3 + $0x70] sm:$0xff] %v13815_v11  ;;  %v9645_v31 = vpop.f32.mrb[32].mxu1  ;;  %v10783_v41 = vpack.c.bf16 %v13813_v21, %v13815_v11  ;;  %v3998_v21 = vld [vmem:[%s15563_s4 + $0x48] sm:$0xff]  ;;  %v3997_v11 = vld [vmem:[%s15563_s4 + $0x40] sm:$0xff] }
 0x4dc   :  { %v11757_v34 = vadd.f32 %v9645_v31, %v1102_v15  ;;  %v3846_v2 = vpop.f32.mrb[33].mxu1 }
 0x4dd   :  { %v11760_v33 = vadd.f32 %v3846_v2, %v1101_v3  ;;  %v4002_v2 = vld [vmem:[%s15563_s4 + $0x68] sm:$0xff] }
 0x4de   :  { %3974 = vst [vmem:[#allocation3 + $0x88] sm:$0xff] %v11757_v34 }
 0x4df   :  { %3973 = vst [vmem:[#allocation3 + $0x80] sm:$0xff] %v11760_v33  ;;  %v9648_v52 = vpop.f32.mrb[34].mxu1  ;;  %v10752_v5 = vpack.c.bf16 %v11757_v34, %v11760_v33  ;;  %v3999_v34 = vld [vmem:[%s15563_s4 + $0x50] sm:$0xff]  ;;  %v4001_v33 = vld [vmem:[%s15563_s4 + $0x60] sm:$0xff] }
 0x4e0   :  { %v11763_v20 = vadd.f32 %v9648_v52, %v1104_v55  ;;  %v3856_v25 = vpop.f32.mrb[35].mxu1  ;;  %v4004_v55 = vld [vmem:[%s15563_s4 + $0x78] sm:$0xff] }
 0x4e1   :  { %v11766_v9 = vadd.f32 %v3856_v25, %v1103_v35  ;;  %10753 = vmatprep.subr.bf16.mxu0 %v10752_v5  ;;  %v4003_v35 = vld [vmem:[%s15563_s4 + $0x70] sm:$0xff] }
 0x4e2   :  { %3976 = vst [vmem:[#allocation3 + $0x98] sm:$0xff] %v11763_v20  ;;  %10755 = vmatpush3.bf16.msra.mxu0 %v10754_v45  ;;  %v1110_v45 = vld [vmem:[#allocation3 + $0xc8] sm:$0xff] }
 0x4e3   :  { %3975 = vst [vmem:[#allocation3 + $0x90] sm:$0xff] %v11766_v9  ;;  %v9651_v47 = vpop.f32.mrb[36].mxu1  ;;  %v10756_v0 = vpack.c.bf16 %v11763_v20, %v11766_v9  ;;  %v15676_v9 = vld [vmem:[#allocation4_spill] sm:$0xff] }
 0x4e4   :  { %v11769_v60 = vadd.f32 %v9651_v47, %v1106_v6  ;;  %v3866_v43 = vpop.f32.mrb[37].mxu1 }
 0x4e5   :  { %v11772_v61 = vadd.f32 %v3866_v43, %v1105_v26  ;;  %10757 = vmatprep.subr.bf16.mxu0 %v10756_v0 }
 0x4e6   :  { %3978 = vst [vmem:[#allocation3 + $0xa8] sm:$0xff] %v11769_v60  ;;  %10759 = vmatpush3.bf16.msra.mxu0 %v10758_v10  ;;  %v1112_v10 = vld [vmem:[#allocation3 + $0xd8] sm:$0xff] }
 0x4e7   :  { %3977 = vst [vmem:[#allocation3 + $0xa0] sm:$0xff] %v11772_v61  ;;  %v9654_v14 = vpop.f32.mrb[38].mxu1  ;;  %v10760_v42 = vpack.c.bf16 %v11769_v60, %v11772_v61 }
 0x4e8   :  { %v11775_v59 = vadd.f32 %v9654_v14, %v1108_v38  ;;  %v3876_v19 = vpop.f32.mrb[39].mxu1 }
 0x4e9   :  { %v11778_v39 = vadd.f32 %v3876_v19, %v1107_v28  ;;  %10761 = vmatprep.subr.bf16.mxu0 %v10760_v42 }
 0x4ea   :  { %3980 = vst [vmem:[#allocation3 + $0xb8] sm:$0xff] %v11775_v59  ;;  %10763 = vmatpush3.bf16.msra.mxu0 %v10762_v48  ;;  %v1114_v48 = vld [vmem:[#allocation3 + $0xe8] sm:$0xff] }
 0x4eb   :  { %3979 = vst [vmem:[#allocation3 + $0xb0] sm:$0xff] %v11778_v39  ;;  %v9657_v17 = vpop.f32.mrb[40].mxu1  ;;  %v10764_v12 = vpack.c.bf16 %v11775_v59, %v11778_v39 }
 0x4ec   :  { %v11781_v7 = vadd.f32 %v9657_v17, %v1110_v45  ;;  %v3886_v30 = vpop.f32.mrb[41].mxu1 }
 0x4ed   :  { %v11784_v13 = vadd.f32 %v3886_v30, %v1109_v18  ;;  %10765 = vmatprep.subr.bf16.mxu0 %v10764_v12 }
 0x4ee   :  { %3982 = vst [vmem:[#allocation3 + $0xc8] sm:$0xff] %v11781_v7  ;;  %10767 = vmatpush3.bf16.msra.mxu0 %v10766_v36  ;;  %v3699_v36 = vld [vmem:[#allocation3 + $0xf8] sm:$0x1f] }
 0x4ef   :  { %3981 = vst [vmem:[#allocation3 + $0xc0] sm:$0xff] %v11784_v13  ;;  %v9660_v50 = vpop.f32.mrb[42].mxu1  ;;  %v10768_v16 = vpack.c.bf16 %v11781_v7, %v11784_v13 }
 0x4f0   :  { %v11787_v24 = vadd.f32 %v9660_v50, %v1112_v10  ;;  %v3896_v57 = vpop.f32.mrb[43].mxu1 }
 0x4f1   :  { %v11790_v63 = vadd.f32 %v3896_v57, %v1111_v49  ;;  %10769 = vmatprep.subr.bf16.mxu0 %v10768_v16 }
 0x4f2   :  { %3984 = vst [vmem:[#allocation3 + $0xd8] sm:$0xff] %v11787_v24  ;;  %10771 = vmatpush3.bf16.msra.mxu0 %v10770_v54 }
 0x4f3   :  { %3983 = vst [vmem:[#allocation3 + $0xd0] sm:$0xff] %v11790_v63  ;;  %v9663_v32 = vpop.f32.mrb[44].mxu1  ;;  %v10772_v44 = vpack.c.bf16 %v11787_v24, %v11790_v63 }
 0x4f4   :  { %v11793_v27 = vadd.f32 %v9663_v32, %v1114_v48  ;;  %v3906_v4 = vpop.f32.mrb[45].mxu1 }
 0x4f5   :  { %v11796_v40 = vadd.f32 %v3906_v4, %v1113_v51  ;;  %10773 = vmatprep.subr.bf16.mxu0 %v10772_v44 }
 0x4f6   :  { %3986 = vst [vmem:[#allocation3 + $0xe8] sm:$0xff] %v11793_v27  ;;  %10775 = vmatpush3.bf16.msra.mxu0 %v10774_v62  ;;  %v3994_v62 = vld [vmem:[%s15563_s4 + $0x28] sm:$0xff] }
 0x4f7   :  { %3985 = vst [vmem:[#allocation3 + $0xe0] sm:$0xff] %v11796_v40  ;;  %v9666_v46 = vpop.f32.mrb[60].mxu1  ;;  %v10776_v15 = vpack.c.bf16 %v11793_v27, %v11796_v40 }
 0x4f8   :  { %v3956_v3 = vadd.f32 %v9666_v46, %v3699_v36  ;;  %v3916_v31 = vpop.f32.mrb[61].mxu1 }
 0x4f9   :  { %v3955_v56 = vadd.f32 %v3916_v31, %v13766_v1  ;;  %10777 = vmatprep.subr.bf16.mxu0 %v10776_v15  ;;  %v3989_v1 = vld [vmem:[%s15563_s4] sm:$0xff] }
 0x4fa   :  { %3988 = vst [vmem:[#allocation3 + $0xf8] sm:$0x1f] %v3956_v3  ;;  %10779 = vmatpush3.bf16.msra.mxu0 %v10778_v23  ;;  %v3995_v23 = vld [vmem:[%s15563_s4 + $0x30] sm:$0xff] }
 0x501   :  { %v4036_v29 = vld [vmem:[#allocation3 + $0xf8] sm:$0x1f] }
 0x502   :  { %v10780_v54 = vpack.c.bf16 %v4036_v29, %v3955_v56 }
 0x504   :  { %10782 = vmatprep.subr.msk.bf16.mxu0 %vm10781_vm7, %v10780_v54 }
 0x505   :  { %10784 = vmatpush3.bf16.msra.mxu0 %v10783_v41  ;;  %v4000_v41 = vld [vmem:[%s15563_s4 + $0x58] sm:$0xff] }
 0x508   :  { %4131 = vmatmul.mubr.f32.vlgmr.msra.gmra.mrb[16].mxu0 %v3989_v1 }
 0x509   :  { %8035 = vmatprep.mubr.msk.f32.mxu0 %vm4037_vm5, %v3992_v8 }
 0x50c   :  { %4136 = vmatmul.mubr.f32.gmra.mrb[18].mxu0 %v3991_v22 }
 0x50d   :  { %8036 = vmatprep.mubr.msk.f32.mxu0 %vm4037_vm5, %v3994_v62 }
 0x510   :  { %4141 = vmatmul.mubr.f32.gmra.mrb[20].mxu0 %v3993_v37 }
 0x511   :  { %8037 = vmatprep.mubr.msk.f32.mxu0 %vm4037_vm5, %v3996_v58 }
 0x514   :  { %4146 = vmatmul.mubr.f32.gmra.mrb[22].mxu0 %v3995_v23 }
 0x515   :  { %8038 = vmatprep.mubr.msk.f32.mxu0 %vm4037_vm5, %v3998_v21 }
 0x518   :  { %4151 = vmatmul.mubr.f32.gmra.mrb[24].mxu0 %v3997_v11 }
 0x519   :  { %8039 = vmatprep.mubr.msk.f32.mxu0 %vm4037_vm5, %v4000_v41 }
 0x51c   :  { %4156 = vmatmul.mubr.f32.gmra.mrb[26].mxu0 %v3999_v34 }
 0x51d   :  { %8040 = vmatprep.mubr.msk.f32.mxu0 %vm4037_vm5, %v4002_v2 }
 0x520   :  { %4161 = vmatmul.mubr.f32.gmra.mrb[28].mxu0 %v4001_v33 }
 0x521   :  { %8041 = vmatprep.mubr.msk.f32.mxu0 %vm4037_vm5, %v4004_v55 }
 0x524   :  { %4166 = vmatmul.mubr.f32.gmra.mrb[30].mxu0 %v4003_v35 }
 0x5db   :  { %v8529_v52 = vpop.f32.mrb[16].mxu0 }
 0x5dc   :  { %v8530_v5 = vpop.f32.mrb[17].mxu0 }
 0x5dd   :  { %v8531_v20 = vadd.f32 %v8530_v5, %v8529_v52 }
 0x5df   :  { %v8532_v25 = vpop.f32.mrb[18].mxu0  ;;  %v4173_v6 = vmul.f32 %v8531_v20, %v15676_v9 }
 0x5e0   :  { %v8533_v26 = vpop.f32.mrb[19].mxu0 }
 0x5e1   :  { %v8534_v47 = vadd.f32 %v8533_v26, %v8532_v25  ;;  %4181 = vadd.xlane.f32.xlu0 %v4173_v6 }
 0x5e3   :  { %v8535_v0 = vpop.f32.mrb[20].mxu0  ;;  %v4174_v60 = vmul.f32 %v8534_v47, %v15676_v9 }
 0x5e4   :  { %v8536_v43 = vpop.f32.mrb[21].mxu0 }
 0x5e5   :  { %v8537_v61 = vadd.f32 %v8536_v43, %v8535_v0  ;;  %4183 = vadd.xlane.f32.xlu1 %v4174_v60 }
 0x5e7   :  { %v8538_v38 = vpop.f32.mrb[22].mxu0  ;;  %v4175_v28 = vmul.f32 %v8537_v61, %v15676_v9 }
 0x5e8   :  { %v8539_v14 = vpop.f32.mrb[23].mxu0 }
 0x5e9   :  { %v8540_v42 = vadd.f32 %v8539_v14, %v8538_v38  ;;  %4185 = vadd.xlane.f32.xlu0 %v4175_v28  ;;  %v4348_v38 = vld [vmem:[%s15562_s2 + $0x408] sm:$0xff]  ;;  %v4349_v14 = vld [vmem:[%s15562_s2 + $0x410] sm:$0xff] }
 0x5eb   :  { %v8541_v59 = vpop.f32.mrb[24].mxu0  ;;  %v4176_v19 = vmul.f32 %v8540_v42, %v15676_v9 }
 0x5ec   :  { %v8542_v39 = vpop.f32.mrb[25].mxu0 }
 0x5ed   :  { %v8543_v45 = vadd.f32 %v8542_v39, %v8541_v59  ;;  %4187 = vadd.xlane.f32.xlu1 %v4176_v19  ;;  %v4351_v19 = vld [vmem:[%s15562_s2 + $0x420] sm:$0xff]  ;;  %v4352_v39 = vld [vmem:[%s15562_s2 + $0x428] sm:$0xff] }
 0x5ef   :  { %v8544_v18 = vpop.f32.mrb[26].mxu0  ;;  %v4177_v17 = vmul.f32 %v8543_v45, %v15676_v9 }
 0x5f0   :  { %v8545_v12 = vpop.f32.mrb[27].mxu0 }
 0x5f1   :  { %v8546_v7 = vadd.f32 %v8545_v12, %v8544_v18  ;;  %4189 = vadd.xlane.f32.xlu0 %v4177_v17  ;;  %v4353_v18 = vld [vmem:[%s15562_s2 + $0x430] sm:$0xff]  ;;  %v4354_v17 = vld [vmem:[%s15562_s2 + $0x438] sm:$0xff] }
 0x5f2   :  { %v10797_v12 = vpack.c.bf16 %v4354_v17, %v4353_v18 }
 0x5f3   :  { %v8547_v30 = vpop.f32.mrb[28].mxu0  ;;  %v4178_v13 = vmul.f32 %v8546_v7, %v15676_v9 }
 0x5f4   :  { %v8548_v10 = vpop.f32.mrb[29].mxu0 }
 0x5f5   :  { %v8549_v49 = vadd.f32 %v8548_v10, %v8547_v30  ;;  %4191 = vadd.xlane.f32.xlu1 %v4178_v13  ;;  %v4356_v30 = vld [vmem:[%s15562_s2 + $0x448] sm:$0xff]  ;;  %v4357_v10 = vld [vmem:[%s15562_s2 + $0x450] sm:$0xff] }
 0x5f7   :  { %v8550_v50 = vpop.f32.mrb[30].mxu0  ;;  %v4179_v16 = vmul.f32 %v8549_v49, %v15676_v9 }
 0x5f8   :  { %v8551_v24 = vpop.f32.mrb[31].mxu0 }
 0x5f9   :  { %v8552_v57 = vadd.f32 %v8551_v24, %v8550_v50  ;;  %4193 = vadd.xlane.f32.xlu0 %v4179_v16  ;;  %v4359_v16 = vld [vmem:[%s15562_s2 + $0x460] sm:$0xff]  ;;  %v4360_v24 = vld [vmem:[%s15562_s2 + $0x468] sm:$0xff] }
 0x5fb   :  { %v4180_v63 = vmul.f32 %v8552_v57, %v15676_v9 }
 0x5fd   :  { %4195 = vadd.xlane.f32.xlu1 %v4180_v63  ;;  %v4361_v63 = vld [vmem:[%s15562_s2 + $0x470] sm:$0xff] }
 0x66e   :  { %v4182_v48 = vpop.xlane.xlu0 %4181 }
 0x66f   :  { %v4197_v51 = vmul.f32 0.03125, %v4182_v48  ;;  %v4362_v48 = vld [vmem:[%s15562_s2 + $0x478] sm:$0xff] }
 0x671   :  { %v4205_v32 = vsub.f32 %v8531_v20, %v4197_v51  ;;  %v4500_v51 = vld [vmem:[%s15562_s2 + $0x480] sm:$0xff] }
 0x672   :  { %v4184_v44 = vpop.xlane.xlu1 %4183 }
 0x673   :  { %v4198_v27 = vmul.f32 0.03125, %v4184_v44  ;;  %v13908_v4 = vmul.f32 %v15676_v9, %v4205_v32  ;;  %v10813_v32 = vpack.c.bf16 %v4362_v48, %v4361_v63  ;;  %v4501_v44 = vld [vmem:[%s15562_s2 + $0x488] sm:$0xff]  ;;  %v4504_v48 = vld [vmem:[%s15562_s2 + $0x4a0] sm:$0xff] }
 0x675   :  { %v4206_v40 = vsub.f32 %v8534_v47, %v4198_v27  ;;  %v4221_v36 = vmul.f32 %v13908_v4, %v13908_v4  ;;  %v14001_v27 = vpack.c.bf16 %v4501_v44, %v4500_v51  ;;  %v4505_v51 = vld [vmem:[%s15562_s2 + $0x4a8] sm:$0xff] }
 0x676   :  { %v4186_v46 = vpop.xlane.xlu0 %4185 }
 0x677   :  { %v4199_v15 = vmul.f32 0.03125, %v4186_v46  ;;  %4229 = vadd.xlane.f32.xlu0 %v4221_v36  ;;  %v13913_v3 = vmul.f32 %v15676_v9, %v4206_v40 }
 0x679   :  { %v4207_v31 = vsub.f32 %v8537_v61, %v4199_v15  ;;  %v4222_v56 = vmul.f32 %v13913_v3, %v13913_v3  ;;  %v4347_v61 = vld [vmem:[%s15562_s2 + $0x400] sm:$0xff] }
 0x67a   :  { %v4188_v29 = vpop.xlane.xlu1 %4187  ;;  %v10785_v28 = vpack.c.bf16 %v4348_v38, %v4347_v61 }
 0x67b   :  { %v4200_v54 = vmul.f32 0.03125, %v4188_v29  ;;  %4231 = vadd.xlane.f32.xlu1 %v4222_v56  ;;  %v13918_v1 = vmul.f32 %v15676_v9, %v4207_v31 }
 0x67c   :  { %10786 = vmatprep.subr.bf16.mxu0 %v10785_v28 }
 0x67d   :  { %v4208_v8 = vsub.f32 %v8540_v42, %v4200_v54  ;;  %v4223_v22 = vmul.f32 %v13918_v1, %v13918_v1  ;;  %10788 = vmatpush3.bf16.msra.mxu0 %v10785_v28  ;;  %v4350_v42 = vld [vmem:[%s15562_s2 + $0x418] sm:$0xff] }
 0x67e   :  { %v4190_v62 = vpop.xlane.xlu0 %4189  ;;  %v10789_v59 = vpack.c.bf16 %v4350_v42, %v4349_v14 }
 0x67f   :  { %v4201_v37 = vmul.f32 0.03125, %v4190_v62  ;;  %4233 = vadd.xlane.f32.xlu0 %v4223_v22  ;;  %v13923_v58 = vmul.f32 %v15676_v9, %v4208_v8 }
 0x680   :  { %10790 = vmatprep.subr.bf16.mxu0 %v10789_v59 }
 0x681   :  { %v4209_v23 = vsub.f32 %v8543_v45, %v4201_v37  ;;  %v4224_v21 = vmul.f32 %v13923_v58, %v13923_v58  ;;  %10792 = vmatpush3.bf16.msra.mxu0 %v10789_v59  ;;  %v10793_v45 = vpack.c.bf16 %v4352_v39, %v4351_v19 }
 0x682   :  { %v4192_v11 = vpop.xlane.xlu1 %4191 }
 0x683   :  { %v4202_v41 = vmul.f32 0.03125, %v4192_v11  ;;  %4235 = vadd.xlane.f32.xlu1 %v4224_v21  ;;  %v13928_v34 = vmul.f32 %v15676_v9, %v4209_v23  ;;  %10794 = vmatprep.subr.bf16.mxu0 %v10793_v45  ;;  %v14007_v23 = vld [vmem:[%s15561_s3 + $0x4] ss:$0 sm:$0xff] }
 0x685   :  { %v4210_v2 = vsub.f32 %v8546_v7, %v4202_v41  ;;  %v4225_v33 = vmul.f32 %v13928_v34, %v13928_v34  ;;  %10796 = vmatpush3.bf16.msra.mxu0 %v10793_v45  ;;  %v4355_v7 = vld [vmem:[%s15562_s2 + $0x440] sm:$0xff] }
 0x686   :  { %v4194_v55 = vpop.xlane.xlu0 %4193  ;;  %10798 = vmatprep.subr.bf16.mxu0 %v10797_v12  ;;  %v10801_v13 = vpack.c.bf16 %v4356_v30, %v4355_v7 }
 0x687   :  { %v4203_v35 = vmul.f32 0.03125, %v4194_v55  ;;  %4237 = vadd.xlane.f32.xlu0 %v4225_v33  ;;  %v13933_v52 = vmul.f32 %v15676_v9, %v4210_v2  ;;  %v14013_v2 = vld [vmem:[%s15561_s3 + $0x5] ss:$0 sm:$0xff] }
 0x689   :  { %v4211_v5 = vsub.f32 %v8549_v49, %v4203_v35  ;;  %v4226_v20 = vmul.f32 %v13933_v52, %v13933_v52  ;;  %10800 = vmatpush3.bf16.msra.mxu0 %v10797_v12  ;;  %v4358_v49 = vld [vmem:[%s15562_s2 + $0x458] sm:$0xff] }
 0x68a   :  { %v4196_v25 = vpop.xlane.xlu1 %4195  ;;  %10802 = vmatprep.subr.bf16.mxu0 %v10801_v13  ;;  %v10805_v50 = vpack.c.bf16 %v4358_v49, %v4357_v10  ;;  %v4502_v49 = vld [vmem:[%s15562_s2 + $0x490] sm:$0xff] }
 0x68b   :  { %v4204_v6 = vmul.f32 0.03125, %v4196_v25  ;;  %4239 = vadd.xlane.f32.xlu1 %v4226_v20  ;;  %v13938_v26 = vmul.f32 %v15676_v9, %v4211_v5 }
 0x68d   :  { %v4212_v47 = vsub.f32 %v8552_v57, %v4204_v6  ;;  %v4227_v0 = vmul.f32 %v13938_v26, %v13938_v26  ;;  %10804 = vmatpush3.bf16.msra.mxu0 %v10801_v13  ;;  %v10809_v57 = vpack.c.bf16 %v4360_v24, %v4359_v16 }
 0x68e   :  { %10806 = vmatprep.subr.bf16.mxu0 %v10805_v50 }
 0x68f   :  { %4241 = vadd.xlane.f32.xlu0 %v4227_v0  ;;  %v13943_v60 = vmul.f32 %v15676_v9, %v4212_v47 }
 0x691   :  { %v4228_v43 = vmul.f32 %v13943_v60, %v13943_v60  ;;  %10808 = vmatpush3.bf16.msra.mxu0 %v10805_v50  ;;  %v4503_v50 = vld [vmem:[%s15562_s2 + $0x498] sm:$0xff] }
 0x692   :  { %10810 = vmatprep.subr.bf16.mxu0 %v10809_v57  ;;  %v10821_v63 = vpack.c.bf16 %v4503_v50, %v4502_v49  ;;  %v4653_v50 = vld [vmem:[%s15562_s2 + $0x500] sm:$0xff] }
 0x693   :  { %4243 = vadd.xlane.f32.xlu1 %v4228_v43 }
 0x695   :  { %10812 = vmatpush3.bf16.msra.mxu0 %v10809_v57 }
 0x696   :  { %10814 = vmatprep.subr.bf16.mxu0 %v10813_v32 }
 0x699   :  { %10816 = vmatpush3.bf16.msra.mxu0 %v10813_v32 }
 0x69a   :  { %10818 = vmatprep.subr.bf16.mxu0 %v14001_v27 }
 0x704   :  { %v4230_v40 = vpop.xlane.xlu0 %4229 }
 0x705   :  { %v4245_v36 = vmul.f32 0.032258064, %v4230_v40 }
 0x707   :  { %v4253_v46 = vadd.f32 1e-05, %v4245_v36 }
 0x708   :  { %v4232_v15 = vpop.xlane.xlu1 %4231 }
 0x709   :  { %12123 = vrsqrt.f32 %v4253_v46  ;;  %v4246_v31 = vmul.f32 0.032258064, %v4232_v15 }
 0x70b   :  { %v4254_v56 = vadd.f32 1e-05, %v4246_v31 }
 0x70c   :  { %v4234_v29 = vpop.xlane.xlu0 %4233 }
 0x70d   :  { %12125 = vrsqrt.f32 %v4254_v56  ;;  %v4247_v54 = vmul.f32 0.032258064, %v4234_v29  ;;  %v10825_v56 = vpack.c.bf16 %v4505_v51, %v4504_v48  ;;  %v4506_v29 = vld [vmem:[%s15562_s2 + $0x4b0] sm:$0xff]  ;;  %v4656_v48 = vld [vmem:[%s15562_s2 + $0x518] sm:$0xff] }
 0x70f   :  { %v4255_v8 = vadd.f32 1e-05, %v4247_v54  ;;  %v4507_v54 = vld [vmem:[%s15562_s2 + $0x4b8] sm:$0xff] }
 0x710   :  { %v4236_v22 = vpop.xlane.xlu1 %4235 }
 0x711   :  { %12127 = vrsqrt.f32 %v4255_v8  ;;  %v4248_v62 = vmul.f32 0.032258064, %v4236_v22 }
 0x713   :  { %v12124_v37 = vpop.eup %12123  ;;  %v4256_v21 = vadd.f32 1e-05, %v4248_v62 }
 0x714   :  { %v4269_v11 = vmul.f32 %v12124_v37, %v13908_v4  ;;  %v4238_v41 = vpop.xlane.xlu0 %4237 }
 0x715   :  { %12129 = vrsqrt.f32 %v4256_v21  ;;  %v4249_v33 = vmul.f32 0.032258064, %v4238_v41  ;;  %v10829_v41 = vpack.c.bf16 %v4507_v54, %v4506_v29  ;;  %v4667_v54 = vld [vmem:[%s15562_s2 + $0x570] sm:$0xff] }
 0x716   :  { %v4281_v55 = vmul.f32 %v14007_v23, %v4269_v11 }
 0x717   :  { %v12126_v35 = vpop.eup %12125  ;;  %v4257_v5 = vadd.f32 1e-05, %v4249_v33  ;;  %v4508_v33 = vld [vmem:[%s15562_s2 + $0x4c0] sm:$0xff] }
 0x718   :  { %v14017_v20 = vadd.f32 %v14013_v2, %v4281_v55  ;;  %v4270_v25 = vmul.f32 %v12126_v35, %v13913_v3  ;;  %v4240_v6 = vpop.xlane.xlu1 %4239  ;;  %v4509_v55 = vld [vmem:[%s15562_s2 + $0x4c8] sm:$0xff] }
 0x719   :  { %12131 = vrsqrt.f32 %v4257_v5  ;;  %v4250_v4 = vmul.f32 0.032258064, %v4240_v6 }
 0x71a   :  { %v4301_v47 = vmax.f32 %v14017_v20, 0.0  ;;  %v4282_v0 = vmul.f32 %v14007_v23, %v4270_v25  ;;  %v4658_v20 = vld [vmem:[%s15562_s2 + $0x528] sm:$0xff] }
 0x71b   :  { %v12128_v43 = vpop.eup %12127  ;;  %v4258_v61 = vadd.f32 1e-05, %v4250_v4 }
 0x71c   :  { %4318 = vst [vmem:[#allocation2 + $0x1] sm:$0xff] %v4301_v47  ;;  %v14025_v38 = vadd.f32 %v14013_v2, %v4282_v0  ;;  %v4271_v28 = vmul.f32 %v12128_v43, %v13918_v1  ;;  %v4242_v14 = vpop.xlane.xlu0 %4241 }
 0x71d   :  { %12133 = vrsqrt.f32 %v4258_v61  ;;  %v4251_v3 = vmul.f32 0.032258064, %v4242_v14  ;;  %v10833_v61 = vpack.c.bf16 %v4509_v55, %v4508_v33  ;;  %v4511_v14 = vld [vmem:[%s15562_s2 + $0x4d8] sm:$0xff]  ;;  %v4810_v33 = vld [vmem:[%s15562_s2 + $0x5a0] sm:$0xff]  ;;  %v4811_v55 = vld [vmem:[%s15562_s2 + $0x5a8] sm:$0xff] }
 0x71e   :  { %v4302_v42 = vmax.f32 %v14025_v38, 0.0  ;;  %v4283_v59 = vmul.f32 %v14007_v23, %v4271_v28  ;;  %v4510_v28 = vld [vmem:[%s15562_s2 + $0x4d0] sm:$0xff] }
 0x71f   :  { %v12130_v19 = vpop.eup %12129  ;;  %v4259_v39 = vadd.f32 1e-05, %v4251_v3 }
 0x720   :  { %4319 = vst [vmem:[#allocation2 + $0x9] sm:$0xff] %v4302_v42  ;;  %v14033_v45 = vadd.f32 %v14013_v2, %v4283_v59  ;;  %v4272_v18 = vmul.f32 %v12130_v19, %v13923_v58  ;;  %v4244_v17 = vpop.xlane.xlu1 %4243 }
 0x721   :  { %12135 = vrsqrt.f32 %v4259_v39  ;;  %v4252_v1 = vmul.f32 0.032258064, %v4244_v17  ;;  %v10837_v39 = vpack.c.bf16 %v4511_v14, %v4510_v28  ;;  %v4512_v17 = vld [vmem:[%s15562_s2 + $0x4e0] sm:$0xff] }
 0x722   :  { %v4303_v12 = vmax.f32 %v14033_v45, 0.0  ;;  %v4284_v7 = vmul.f32 %v14007_v23, %v4272_v18  ;;  %v4662_v45 = vld [vmem:[%s15562_s2 + $0x548] sm:$0xff] }
 0x723   :  { %v12132_v30 = vpop.eup %12131  ;;  %v4260_v13 = vadd.f32 1e-05, %v4252_v1  ;;  %v4339_v10 = vld [vmem:[#allocation2] sm:$0xff]  ;;  %v4513_v1 = vld [vmem:[%s15562_s2 + $0x4e8] sm:$0xff] }
 0x724   :  { %4320 = vst [vmem:[#allocation2 + $0x11] sm:$0xff] %v4303_v12  ;;  %v14047_v58 = vadd.f32 %v14013_v2, %v4284_v7  ;;  %v4273_v16 = vmul.f32 %v12132_v30, %v13928_v34  ;;  %9699 = vmatprep.mubr.f32.mxu0 %v4339_v10  ;;  %v4514_v30 = vld [vmem:[%s15562_s2 + $0x4f0] sm:$0xff] }
 0x725   :  { %12137 = vrsqrt.f32 %v4260_v13  ;;  %v4515_v13 = vld [vmem:[%s15562_s2 + $0x4f8] sm:$0xff] }
 0x726   :  { %v4304_v24 = vmax.f32 %v14047_v58, 0.0  ;;  %v4285_v57 = vmul.f32 %v14007_v23, %v4273_v16  ;;  %v10845_v10 = vpack.c.bf16 %v4515_v13, %v4514_v30  ;;  %v4654_v16 = vld [vmem:[%s15562_s2 + $0x508] sm:$0xff] }
 0x727   :  { %v12134_v32 = vpop.eup %12133  ;;  %v4340_v44 = vld [vmem:[#allocation2 + $0x8] sm:$0xff] }
 0x728   :  { %v14058_v40 = vld [vmem:[#allocation2 + $0x2] sm:$0xff]  ;;  %4321 = vst [vmem:[#allocation2 + $0x19] sm:$0xff] %v4304_v24  ;;  %v14065_v36 = vadd.f32 %v14013_v2, %v4285_v57  ;;  %v4274_v46 = vmul.f32 %v12134_v32, %v13933_v52  ;;  %9700 = vmatmul.mubr.f32.vlgmr.msra.gmra.mrb[32].mxu0 %v4340_v44  ;;  %v10849_v57 = vpack.c.bf16 %v4654_v16, %v4653_v50  ;;  %v4659_v44 = vld [vmem:[%s15562_s2 + $0x530] sm:$0xff] }
 0x729   :  { %v14060_v34 = vld [vmem:[#allocation2 + $0x3] sm:$0xff]  ;;  %10820 = vmatpush3.bf16.msra.mxu0 %v14001_v27 }
 0x72a   :  { %5139 = vst [vmem:[#allocation2] sm:$0xff] %v13756_v53  ;;  %v4305_v15 = vmax.f32 %v14065_v36, 0.0  ;;  %v4286_v31 = vmul.f32 %v14007_v23, %v4274_v46  ;;  %10822 = vmatprep.subr.bf16.mxu0 %v10821_v63  ;;  %v4657_v32 = vld [vmem:[%s15562_s2 + $0x520] sm:$0xff]  ;;  %v4660_v46 = vld [vmem:[%s15562_s2 + $0x538] sm:$0xff] }
 0x72b   :  { %v12136_v52 = vpop.eup %12135  ;;  %v4341_v8 = vld [vmem:[#allocation2 + $0x10] sm:$0xff]  ;;  %v10861_v38 = vpack.c.bf16 %v4660_v46, %v4659_v44  ;;  %v4664_v36 = vld [vmem:[%s15562_s2 + $0x558] sm:$0xff] }
 0x72c   :  { %v14078_v22 = vld [vmem:[#allocation2 + $0xa] sm:$0xff]  ;;  %4322 = vst [vmem:[#allocation2 + $0x21] sm:$0xff] %v4305_v15  ;;  %v14085_v27 = vadd.f32 %v14013_v2, %v4286_v31  ;;  %v4275_v37 = vmul.f32 %v12136_v52, %v13938_v26  ;;  %9702 = vmatprep.mubr.f32.mxu0 %v4341_v8  ;;  %v4665_v31 = vld [vmem:[%s15562_s2 + $0x560] sm:$0xff] }
 0x72d   :  { %v14080_v62 = vld [vmem:[#allocation2 + $0xb] sm:$0xff]  ;;  %10824 = vmatpush3.bf16.msra.mxu0 %v10821_v63  ;;  %v4806_v8 = vld [vmem:[%s15562_s2 + $0x580] sm:$0xff] }
 0x72e   :  { %5140 = vst [vmem:[#allocation2 + $0x8] sm:$0xff] %v13756_v53  ;;  %v4306_v21 = vmax.f32 %v14085_v27, 0.0  ;;  %v4287_v11 = vmul.f32 %v14007_v23, %v4275_v37  ;;  %10826 = vmatprep.subr.bf16.mxu0 %v10825_v56  ;;  %v4655_v63 = vld [vmem:[%s15562_s2 + $0x510] sm:$0xff]  ;;  %v4807_v27 = vld [vmem:[%s15562_s2 + $0x588] sm:$0xff] }
 0x72f   :  { %v12138_v35 = vpop.eup %12137  ;;  %v4342_v26 = vld [vmem:[#allocation2 + $0x18] sm:$0xff]  ;;  %v10853_v51 = vpack.c.bf16 %v4656_v48, %v4655_v63  ;;  %v10881_v37 = vpack.c.bf16 %v4807_v27, %v4806_v8  ;;  %v4368_v27 = vld [vmem:[#allocation3 + $0x28] sm:$0xff] }
 0x730   :  { %v14097_v5 = vld [vmem:[#allocation2 + $0x12] sm:$0xff]  ;;  %4323 = vst [vmem:[#allocation2 + $0x29] sm:$0xff] %v4306_v21  ;;  %v14104_v6 = vadd.f32 %v14013_v2, %v4287_v11  ;;  %v4276_v4 = vmul.f32 %v12138_v35, %v13943_v60  ;;  %9703 = vmatmul.mubr.f32.gmra.mrb[34].mxu0 %v4342_v26  ;;  %v10889_v35 = vpack.c.bf16 %v4811_v55, %v4810_v33 }
 0x731   :  { %v14099_v25 = vld [vmem:[#allocation2 + $0x13] sm:$0xff]  ;;  %10828 = vmatpush3.bf16.msra.mxu0 %v10825_v56  ;;  %v4666_v56 = vld [vmem:[%s15562_s2 + $0x568] sm:$0xff] }
 0x732   :  { %5141 = vst [vmem:[#allocation2 + $0x10] sm:$0xff] %v13756_v53  ;;  %v4307_v0 = vmax.f32 %v14104_v6, 0.0  ;;  %v4288_v43 = vmul.f32 %v14007_v23, %v4276_v4  ;;  %10830 = vmatprep.subr.bf16.mxu0 %v10829_v41  ;;  %v10873_v29 = vpack.c.bf16 %v4666_v56, %v4665_v31  ;;  %v4809_v11 = vld [vmem:[%s15562_s2 + $0x598] sm:$0xff]  ;;  %v4812_v26 = vld [vmem:[%s15562_s2 + $0x5b0] sm:$0xff] }
 0x733   :  { %v4343_v3 = vld [vmem:[#allocation2 + $0x20] sm:$0xff]  ;;  %v4813_v6 = vld [vmem:[%s15562_s2 + $0x5b8] sm:$0xff] }
 0x734   :  { %v14116_v60 = vld [vmem:[#allocation2 + $0x1a] sm:$0xff]  ;;  %4324 = vst [vmem:[#allocation2 + $0x31] sm:$0xff] %v4307_v0  ;;  %v4300_v19 = vadd.f32 %v14013_v2, %v4288_v43  ;;  %9705 = vmatprep.mubr.f32.mxu0 %v4343_v3  ;;  %v10841_v2 = vpack.c.bf16 %v4513_v1, %v4512_v17  ;;  %v4815_v43 = vld [vmem:[%s15562_s2 + $0x5c8] sm:$0xff]  ;;  %v4816_v3 = vld [vmem:[%s15562_s2 + $0x5d0] sm:$0xff] }
 0x735   :  { %v14118_v59 = vld [vmem:[#allocation2 + $0x1b] sm:$0xff]  ;;  %10832 = vmatpush3.bf16.msra.mxu0 %v10829_v41  ;;  %v4820_v17 = vld [vmem:[%s15562_s2 + $0x5f0] sm:$0xff] }
 0x736   :  { %5142 = vst [vmem:[#allocation2 + $0x18] sm:$0xff] %v13756_v53  ;;  %5143 = vst [vmem:[#allocation2 + $0x20] sm:$0x3] %v13756_v53  ;;  %v4308_v23 = vmax.f32 %v4300_v19, 0.0  ;;  %10834 = vmatprep.subr.bf16.mxu0 %v10833_v61  ;;  %v4365_v31 = vld [vmem:[#allocation3 + $0x10] sm:$0xff] }
 0x737   :  { %v4344_v18 = vld [vmem:[#allocation2 + $0x28] sm:$0xff] }
 0x738   :  { %4325 = vst [vmem:[#allocation2 + $0x39] sm:$0xff] %v4308_v23  ;;  %9706 = vmatmul.mubr.f32.gmra.mrb[36].mxu0 %v4344_v18  ;;  %v4649_v4 = vld [vmem:[#allocation2 + $0x22] sm:$0xff] }
 0x739   :  { %10836 = vmatpush3.bf16.msra.mxu0 %v10833_v61  ;;  %v4818_v23 = vld [vmem:[%s15562_s2 + $0x5e0] sm:$0xff] }
 0x73a   :  { %10838 = vmatprep.subr.bf16.mxu0 %v10837_v39 }
 0x73b   :  { %v4345_v7 = vld [vmem:[#allocation2 + $0x30] sm:$0xff] }
 0x73c   :  { %9708 = vmatprep.mubr.f32.mxu0 %v4345_v7  ;;  %v4803_v7 = vld [vmem:[#allocation2 + $0x2b] sm:$0xff] }
 0x73d   :  { %10840 = vmatpush3.bf16.msra.mxu0 %v10837_v39  ;;  %v4819_v39 = vld [vmem:[%s15562_s2 + $0x5e8] sm:$0xff] }
 0x73e   :  { %10842 = vmatprep.subr.bf16.mxu0 %v10841_v2  ;;  %v10905_v18 = vpack.c.bf16 %v4819_v39, %v4818_v23 }
 0x73f   :  { %v4346_v49 = vld [vmem:[#allocation2 + $0x38] sm:$0x7f] }
 0x740   :  { %9709 = vmatmul.mubr.f32.gmra.mrb[38].mxu0 %v4346_v49  ;;  %v4499_v58 = vld [vmem:[#allocation2 + $0x39] sm:$0x7f] }
 0x741   :  { %10844 = vmatpush3.bf16.msra.mxu0 %v10841_v2  ;;  %9743 = vmatprep.mubr.f32.mxu0 %v4301_v47  ;;  %v10857_v47 = vpack.c.bf16 %v4658_v20, %v4657_v32  ;;  %v4651_v61 = vld [vmem:[#allocation2 + $0x32] sm:$0xff]  ;;  %v4652_v14 = vld [vmem:[#allocation2 + $0x3a] sm:$0x7f]  ;;  %v4802_v2 = vld [vmem:[#allocation2 + $0x23] sm:$0xff] }
 0x742   :  { %10846 = vmatprep.subr.bf16.mxu0 %v10845_v10  ;;  %v4804_v30 = vld [vmem:[#allocation2 + $0x33] sm:$0xff]  ;;  %v4805_v13 = vld [vmem:[#allocation2 + $0x3b] sm:$0x7f] }
 0x745   :  { %10848 = vmatpush3.bf16.msra.mxu0 %v10845_v10  ;;  %v4951_v10 = vld [vmem:[%s15564_s5] sm:$0xff] }
 0x746   :  { %10850 = vmatprep.subr.bf16.mxu0 %v10849_v57 }
 0x748   :  { %9744 = vmatmul.mubr.f32.vlgmr.msra.gmra.mrb[32].mxu0 %v4302_v42  ;;  %v4661_v42 = vld [vmem:[%s15562_s2 + $0x540] sm:$0xff] }
 0x749   :  { %9746 = vmatprep.mubr.f32.mxu0 %v4303_v12  ;;  %10852 = vmatpush3.bf16.msra.mxu0 %v10849_v57  ;;  %v10865_v12 = vpack.c.bf16 %v4662_v45, %v4661_v42  ;;  %v4364_v42 = vld [vmem:[#allocation3 + $0x8] sm:$0xff]  ;;  %v4363_v45 = vld [vmem:[#allocation3] sm:$0xff] }
 0x74a   :  { %10854 = vmatprep.subr.bf16.mxu0 %v10853_v51 }
 0x74c   :  { %9747 = vmatmul.mubr.f32.gmra.mrb[34].mxu0 %v4304_v24  ;;  %v4663_v24 = vld [vmem:[%s15562_s2 + $0x550] sm:$0xff] }
 0x74d   :  { %9749 = vmatprep.mubr.f32.mxu0 %v4305_v15  ;;  %10856 = vmatpush3.bf16.msra.mxu0 %v10853_v51  ;;  %v10869_v15 = vpack.c.bf16 %v4664_v36, %v4663_v24 }
 0x74e   :  { %10858 = vmatprep.subr.bf16.mxu0 %v10857_v47 }
 0x750   :  { %9750 = vmatmul.mubr.f32.gmra.mrb[36].mxu0 %v4306_v21  ;;  %v4808_v21 = vld [vmem:[%s15562_s2 + $0x590] sm:$0xff] }
 0x751   :  { %9752 = vmatprep.mubr.f32.mxu0 %v4307_v0  ;;  %10860 = vmatpush3.bf16.msra.mxu0 %v10857_v47  ;;  %v10885_v41 = vpack.c.bf16 %v4809_v11, %v4808_v21  ;;  %v4650_v0 = vld [vmem:[#allocation2 + $0x2a] sm:$0xff] }
 0x752   :  { %10862 = vmatprep.subr.bf16.mxu0 %v10861_v38 }
 0x754   :  { %9753 = vmatmul.mubr.f32.gmra.mrb[40].mxu0 %v4499_v58 }
 0x755   :  { %10864 = vmatpush3.bf16.msra.mxu0 %v10861_v38  ;;  %9787 = vmatprep.mubr.f32.mxu0 %v14058_v40  ;;  %v4668_v40 = vld [vmem:[%s15562_s2 + $0x578] sm:$0xff] }
 0x756   :  { %10866 = vmatprep.subr.bf16.mxu0 %v10865_v12  ;;  %v10877_v52 = vpack.c.bf16 %v4668_v40, %v4667_v54  ;;  %v14258_v40 = vld [vmem:[%s15561_s3 + $0x9] ss:$0 sm:$0xff] }
 0x759   :  { %10868 = vmatpush3.bf16.msra.mxu0 %v10865_v12 }
 0x75a   :  { %10870 = vmatprep.subr.bf16.mxu0 %v10869_v15 }
 0x75d   :  { %10872 = vmatpush3.bf16.msra.mxu0 %v10869_v15  ;;  %v4366_v15 = vld [vmem:[#allocation3 + $0x18] sm:$0xff] }
 0x75e   :  { %10874 = vmatprep.subr.bf16.mxu0 %v10873_v29 }
 0x761   :  { %10876 = vmatpush3.bf16.msra.mxu0 %v10873_v29 }
 0x762   :  { %10878 = vmatprep.subr.bf16.mxu0 %v10877_v52 }
 0x765   :  { %10880 = vmatpush3.bf16.msra.mxu0 %v10877_v52 }
 0x766   :  { %10882 = vmatprep.subr.bf16.mxu0 %v10881_v37 }
 0x768   :  { %9788 = vmatmul.mubr.f32.vlgmr.msra.gmra.mrb[32].mxu0 %v14078_v22  ;;  %v10893_v22 = vpack.c.bf16 %v4813_v6, %v4812_v26 }
 0x769   :  { %9790 = vmatprep.mubr.f32.mxu0 %v14097_v5  ;;  %10884 = vmatpush3.bf16.msra.mxu0 %v10881_v37  ;;  %v4814_v5 = vld [vmem:[%s15562_s2 + $0x5c0] sm:$0xff]  ;;  %v4367_v37 = vld [vmem:[#allocation3 + $0x20] sm:$0xff] }
 0x76a   :  { %10886 = vmatprep.subr.bf16.mxu0 %v10885_v41  ;;  %v10897_v28 = vpack.c.bf16 %v4815_v43, %v4814_v5  ;;  %v6277_v43 = vld [vmem:[%s15567_s8 + $0x20] sm:$0xff] }
 0x76c   :  { %9791 = vmatmul.mubr.f32.gmra.mrb[34].mxu0 %v14116_v60  ;;  %v4817_v60 = vld [vmem:[%s15562_s2 + $0x5d8] sm:$0xff] }
 0x76d   :  { %9793 = vmatprep.mubr.f32.mxu0 %v4649_v4  ;;  %10888 = vmatpush3.bf16.msra.mxu0 %v10885_v41  ;;  %v10901_v19 = vpack.c.bf16 %v4817_v60, %v4816_v3  ;;  %v4954_v3 = vld [vmem:[%s15564_s5 + $0x18] sm:$0xff] }
 0x76e   :  { %10890 = vmatprep.subr.bf16.mxu0 %v10889_v35 }
 0x770   :  { %9794 = vmatmul.mubr.f32.gmra.mrb[36].mxu0 %v4650_v0 }
 0x771   :  { %9796 = vmatprep.mubr.f32.mxu0 %v4651_v61  ;;  %10892 = vmatpush3.bf16.msra.mxu0 %v10889_v35 }
 0x772   :  { %10894 = vmatprep.subr.bf16.mxu0 %v10893_v22 }
 0x774   :  { %9797 = vmatmul.mubr.f32.gmra.mrb[42].mxu0 %v4652_v14  ;;  %v4953_v14 = vld [vmem:[%s15564_s5 + $0x10] sm:$0xff] }
 0x775   :  { %10896 = vmatpush3.bf16.msra.mxu0 %v10893_v22  ;;  %9831 = vmatprep.mubr.f32.mxu0 %v14060_v34  ;;  %v4821_v34 = vld [vmem:[%s15562_s2 + $0x5f8] sm:$0xff] }
 0x776   :  { %10898 = vmatprep.subr.bf16.mxu0 %v10897_v28  ;;  %v10909_v1 = vpack.c.bf16 %v4821_v34, %v4820_v17 }
 0x779   :  { %10900 = vmatpush3.bf16.msra.mxu0 %v10897_v28  ;;  %v4952_v28 = vld [vmem:[%s15564_s5 + $0x8] sm:$0xff] }
 0x77a   :  { %10902 = vmatprep.subr.bf16.mxu0 %v10901_v19 }
 0x77d   :  { %10904 = vmatpush3.bf16.msra.mxu0 %v10901_v19 }
 0x77e   :  { %10906 = vmatprep.subr.bf16.mxu0 %v10905_v18 }
 0x781   :  { %10908 = vmatpush3.bf16.msra.mxu0 %v10905_v18 }
 0x782   :  { %10910 = vmatprep.subr.bf16.mxu0 %v10909_v1 }
 0x785   :  { %10912 = vmatpush3.bf16.msra.mxu0 %v10909_v1 }
 0x788   :  { %9832 = vmatmul.mubr.f32.vlgmr.msra.gmra.mrb[32].mxu0 %v14080_v62  ;;  %v4370_v62 = vld [vmem:[#allocation3 + $0x38] sm:$0x7f] }
 0x789   :  { %9834 = vmatprep.mubr.f32.mxu0 %v14099_v25 }
 0x78c   :  { %9835 = vmatmul.mubr.f32.gmra.mrb[34].mxu0 %v14118_v59  ;;  %v12235_v59 = vld [vmem:[#allocation3 + $0x8] sm:$0xff] }
 0x78d   :  { %9837 = vmatprep.mubr.f32.mxu0 %v4802_v2 }
 0x790   :  { %9838 = vmatmul.mubr.f32.gmra.mrb[36].mxu0 %v4803_v7 }
 0x791   :  { %9840 = vmatprep.mubr.f32.mxu0 %v4804_v30 }
 0x794   :  { %9841 = vmatmul.mubr.f32.gmra.mrb[44].mxu0 %v4805_v13 }
 0x795   :  { %9859 = vmatprep.mubr.msk.f32.mxu0 %vm4963_vm8, %v4951_v10 }
 0x813   :  { %v9710_v49 = vpop.f32.mrb[38].mxu0 }
 0x814   :  { %v4483_v25 = vadd.f32 %v9710_v49, %v4370_v62  ;;  %v4467_v50 = vpop.f32.mrb[39].mxu0 }
 0x815   :  { %v4482_v16 = vadd.f32 %v12235_v59, %v4467_v50 }
 0x816   :  { %4491 = vst [vmem:[#allocation3 + $0x38] sm:$0x7f] %v4483_v25 }
 0x81d   :  { %v4523_v57 = vld [vmem:[#allocation3 + $0x38] sm:$0x7f] }
 0x827   :  { %v9754_v63 = vpop.f32.mrb[40].mxu0 }
 0x828   :  { %v4636_v48 = vadd.f32 %v9754_v63, %v4523_v57  ;;  %v4620_v51 = vpop.f32.mrb[41].mxu0 }
 0x829   :  { %v4635_v32 = vadd.f32 %v4620_v51, %v4482_v16 }
 0x82a   :  { %4644 = vst [vmem:[#allocation3 + $0x38] sm:$0x7f] %v4636_v48 }
 0x831   :  { %v4676_v20 = vld [vmem:[#allocation3 + $0x38] sm:$0x7f] }
 0x847   :  { %v9798_v47 = vpop.f32.mrb[42].mxu0 }
 0x848   :  { %v4789_v44 = vadd.f32 %v9798_v47, %v4676_v20  ;;  %v4773_v46 = vpop.f32.mrb[43].mxu0 }
 0x849   :  { %v4788_v38 = vadd.f32 %v4773_v46, %v4635_v32 }
 0x84a   :  { %4797 = vst [vmem:[#allocation3 + $0x38] sm:$0x7f] %v4789_v44 }
 0x851   :  { %v4829_v35 = vld [vmem:[#allocation3 + $0x38] sm:$0x7f] }
 0x85b   :  { %v9833_v12 = vpop.f32.mrb[32].mxu0 }
 0x85c   :  { %v11799_v58 = vadd.f32 %v9833_v12, %v4364_v42  ;;  %v4896_v24 = vpop.f32.mrb[33].mxu0  ;;  %v5162_v42 = vld [vmem:[%s15562_s2 + $0x608] sm:$0xff]  ;;  %v5163_v12 = vld [vmem:[%s15562_s2 + $0x610] sm:$0xff] }
 0x85d   :  { %v11802_v36 = vadd.f32 %v4896_v24, %v4363_v45 }
 0x85f   :  { %v9836_v56 = vpop.f32.mrb[34].mxu0  ;;  %v10913_v29 = vpack.c.bf16 %v11799_v58, %v11802_v36  ;;  %v5164_v58 = vld [vmem:[%s15562_s2 + $0x618] sm:$0xff]  ;;  %v5165_v36 = vld [vmem:[%s15562_s2 + $0x620] sm:$0xff] }
 0x860   :  { %v11805_v54 = vadd.f32 %v9836_v56, %v4366_v15  ;;  %v4906_v52 = vpop.f32.mrb[35].mxu0  ;;  %v10935_v24 = vpack.c.bf16 %v5164_v58, %v5163_v12  ;;  %v5166_v15 = vld [vmem:[%s15562_s2 + $0x628] sm:$0xff]  ;;  %v5167_v56 = vld [vmem:[%s15562_s2 + $0x630] sm:$0xff] }
 0x861   :  { %v11808_v8 = vadd.f32 %v4906_v52, %v4365_v31  ;;  %10914 = vmatprep.subr.bf16.mxu0 %v10913_v29  ;;  %v10939_v31 = vpack.c.bf16 %v5166_v15, %v5165_v36  ;;  %v5169_v52 = vld [vmem:[%s15562_s2 + $0x640] sm:$0xff]  ;;  %v5283_v15 = vld [vmem:[%s15562_s2 + $0x6a8] sm:$0xff] }
 0x862   :  { %4946 = vst [vmem:[#allocation3 + $0x18] sm:$0xff] %v11805_v54  ;;  %10916 = vmatpush3.bf16.msra.mxu0 %v10913_v29  ;;  %v5168_v29 = vld [vmem:[%s15562_s2 + $0x638] sm:$0xff]  ;;  %v5282_v36 = vld [vmem:[%s15562_s2 + $0x6a0] sm:$0xff] }
 0x863   :  { %5156 = vst [vmem:[#allocation3 + $0x18] sm:$0x7f] %v14258_v40  ;;  %v9839_v21 = vpop.f32.mrb[36].mxu0  ;;  %v10917_v11 = vpack.c.bf16 %v11805_v54, %v11808_v8  ;;  %v10943_v54 = vpack.c.bf16 %v5168_v29, %v5167_v56  ;;  %v5170_v8 = vld [vmem:[%s15562_s2 + $0x648] sm:$0xff] }
 0x864   :  { %v11811_v41 = vadd.f32 %v9839_v21, %v4368_v27  ;;  %v4916_v33 = vpop.f32.mrb[37].mxu0  ;;  %v10947_v27 = vpack.c.bf16 %v5170_v8, %v5169_v52  ;;  %v5172_v21 = vld [vmem:[%s15562_s2 + $0x658] sm:$0xff]  ;;  %v10971_v52 = vpack.c.bf16 %v5283_v15, %v5282_v36  ;;  %v5284_v8 = vld [vmem:[%s15562_s2 + $0x6b0] sm:$0xff] }
 0x865   :  { %v11814_v55 = vadd.f32 %v4916_v33, %v4367_v37  ;;  %10918 = vmatprep.subr.bf16.mxu0 %v10917_v11  ;;  %v5171_v37 = vld [vmem:[%s15562_s2 + $0x650] sm:$0xff]  ;;  %v5174_v33 = vld [vmem:[%s15562_s2 + $0x668] sm:$0xff]  ;;  %v5519_v15 = vld [vmem:[%s15562_s2 + $0x7b8] sm:$0xff] }
 0x866   :  { %4948 = vst [vmem:[#allocation3 + $0x28] sm:$0xff] %v11811_v41  ;;  %10920 = vmatpush3.bf16.msra.mxu0 %v10917_v11  ;;  %v10951_v11 = vpack.c.bf16 %v5172_v21, %v5171_v37  ;;  %v5518_v36 = vld [vmem:[%s15562_s2 + $0x7b0] sm:$0xff] }
 0x867   :  { %4947 = vst [vmem:[#allocation3 + $0x20] sm:$0xff] %v11814_v55  ;;  %v9842_v26 = vpop.f32.mrb[44].mxu0  ;;  %v10921_v6 = vpack.c.bf16 %v11811_v41, %v11814_v55  ;;  %v5173_v41 = vld [vmem:[%s15562_s2 + $0x660] sm:$0xff] }
 0x868   :  { %v4942_v4 = vadd.f32 %v9842_v26, %v4829_v35  ;;  %v4926_v22 = vpop.f32.mrb[45].mxu0  ;;  %v10955_v55 = vpack.c.bf16 %v5174_v33, %v5173_v41  ;;  %v5175_v35 = vld [vmem:[%s15562_s2 + $0x670] sm:$0xff]  ;;  %v5176_v26 = vld [vmem:[%s15562_s2 + $0x678] sm:$0xff]  ;;  %v5286_v41 = vld [vmem:[%s15562_s2 + $0x6c0] sm:$0xff] }
 0x869   :  { %v4941_v0 = vadd.f32 %v4926_v22, %v4788_v38  ;;  %10922 = vmatprep.subr.bf16.mxu0 %v10921_v6  ;;  %v5161_v38 = vld [vmem:[%s15562_s2 + $0x600] sm:$0xff]  ;;  %v5279_v22 = vld [vmem:[%s15562_s2 + $0x688] sm:$0xff] }
 0x86a   :  { %4950 = vst [vmem:[#allocation3 + $0x38] sm:$0x7f] %v4942_v4  ;;  %10924 = vmatpush3.bf16.msra.mxu0 %v10921_v6  ;;  %v10931_v45 = vpack.c.bf16 %v5162_v42, %v5161_v38  ;;  %v10959_v6 = vpack.c.bf16 %v5176_v26, %v5175_v35  ;;  %v5278_v4 = vld [vmem:[%s15562_s2 + $0x680] sm:$0xff]  ;;  %v5287_v33 = vld [vmem:[%s15562_s2 + $0x6c8] sm:$0xff]  ;;  %v5288_v35 = vld [vmem:[%s15562_s2 + $0x6d0] sm:$0xff] }
 0x86b   :  { %v5289_v26 = vld [vmem:[%s15562_s2 + $0x6d8] sm:$0xff] }
 0x871   :  { %v4962_v5 = vld [vmem:[#allocation3 + $0x38] sm:$0x7f] }
 0x872   :  { %v10925_v61 = vpack.c.bf16 %v4962_v5, %v4941_v0  ;;  %v10963_v0 = vpack.c.bf16 %v5279_v22, %v5278_v4  ;;  %v5290_v4 = vld [vmem:[%s15562_s2 + $0x6e0] sm:$0xff]  ;;  %v5291_v22 = vld [vmem:[%s15562_s2 + $0x6e8] sm:$0xff] }
 0x874   :  { %10927 = vmatprep.subr.msk.bf16.mxu0 %vm14262_vm10, %v10925_v61 }
 0x875   :  { %10930 = vmatpush3.bf16.msk.msra.mxu0 %vm14262_vm10, %v10925_v61 }
 0x876   :  { %10932 = vmatprep.subr.bf16.mxu0 %v10931_v45 }
 0x878   :  { %9860 = vmatmul.mubr.msk.f32.vlgmr.msra.gmra.mrb[46].mxu0 %vm4963_vm8, %v4952_v28 }
 0x879   :  { %9862 = vmatprep.mubr.msk.f32.mxu0 %vm4963_vm8, %v4953_v14  ;;  %10934 = vmatpush3.bf16.msra.mxu0 %v10931_v45 }
 0x87a   :  { %10936 = vmatprep.subr.bf16.mxu0 %v10935_v24 }
 0x87c   :  { %9863 = vmatmul.mubr.msk.f32.gmra.mrb[48].mxu0 %vm4963_vm8, %v4954_v3 }
 0x87d   :  { %10938 = vmatpush3.bf16.msra.mxu0 %v10935_v24 }
 0x87e   :  { %10940 = vmatprep.subr.bf16.mxu0 %v10939_v31 }
 0x881   :  { %10942 = vmatpush3.bf16.msra.mxu0 %v10939_v31 }
 0x882   :  { %10944 = vmatprep.subr.bf16.mxu0 %v10943_v54 }
 0x885   :  { %10946 = vmatpush3.bf16.msra.mxu0 %v10943_v54 }
 0x886   :  { %10948 = vmatprep.subr.bf16.mxu0 %v10947_v27 }
 0x889   :  { %10950 = vmatpush3.bf16.msra.mxu0 %v10947_v27  ;;  %v5285_v27 = vld [vmem:[%s15562_s2 + $0x6b8] sm:$0xff] }
 0x88a   :  { %10952 = vmatprep.subr.bf16.mxu0 %v10951_v11 }
 0x88d   :  { %10954 = vmatpush3.bf16.msra.mxu0 %v10951_v11  ;;  %v10975_v11 = vpack.c.bf16 %v5285_v27, %v5284_v8  ;;  %v5522_v8 = vld [vmem:[%s15562_s2 + $0x7d0] sm:$0xff] }
 0x88e   :  { %10956 = vmatprep.subr.bf16.mxu0 %v10955_v55 }
 0x891   :  { %10958 = vmatpush3.bf16.msra.mxu0 %v10955_v55  ;;  %v10979_v55 = vpack.c.bf16 %v5287_v33, %v5286_v41  ;;  %v5526_v33 = vld [vmem:[%s15562_s2 + $0x7f0] sm:$0xff] }
 0x892   :  { %10960 = vmatprep.subr.bf16.mxu0 %v10959_v6 }
 0x895   :  { %10962 = vmatpush3.bf16.msra.mxu0 %v10959_v6  ;;  %v10983_v6 = vpack.c.bf16 %v5289_v26, %v5288_v35 }
 0x896   :  { %10964 = vmatprep.subr.bf16.mxu0 %v10963_v0 }
 0x94b   :  { %v9861_v60 = vpop.f32.mrb[46].mxu0 }
 0x94c   :  { %v5046_v19 = vpop.f32.mrb[47].mxu0  ;;  %v5068_v23 = vmul.f32 %v9861_v60, %v15676_v9 }
 0x94d   :  { %v5067_v39 = vmul.f32 %v15676_v9, %v5046_v19 }
 0x94e   :  { %5073 = vadd.xlane.f32.xlu1 %v5068_v23 }
 0x94f   :  { %5071 = vadd.xlane.f32.xlu0 %v5067_v39  ;;  %v9864_v18 = vpop.f32.mrb[48].mxu0 }
 0x950   :  { %v5056_v17 = vpop.f32.mrb[49].mxu0  ;;  %v5070_v34 = vmul.f32 %v9864_v18, %v15676_v9 }
 0x951   :  { %v5069_v1 = vmul.f32 %v15676_v9, %v5056_v17 }
 0x952   :  { %5077 = vadd.xlane.f32.xlu1 %v5070_v34 }
 0x953   :  { %5075 = vadd.xlane.f32.xlu0 %v5069_v1 }
 0x9db   :  { %v5074_v2 = vpop.xlane.xlu1 %5073 }
 0x9dc   :  { %v5080_v7 = vmul.f32 0.03125, %v5074_v2  ;;  %v5072_v30 = vpop.xlane.xlu0 %5071  ;;  %v8050_v2 = vld [vmem:[%s15561_s3 + $0x7] ss:$0 sm:$0xff] }
 0x9dd   :  { %v5079_v13 = vmul.f32 0.03125, %v5072_v30 }
 0x9de   :  { %v5084_v10 = vsub.f32 %v9861_v60, %v5080_v7 }
 0x9df   :  { %v5083_v62 = vsub.f32 %v5046_v19, %v5079_v13  ;;  %v5078_v49 = vpop.xlane.xlu1 %5077  ;;  %v8051_v13 = vld [vmem:[%s15561_s3 + $0x8] ss:$0 sm:$0xff] }
 0x9e0   :  { %v5082_v25 = vmul.f32 0.03125, %v5078_v49  ;;  %v5076_v50 = vpop.xlane.xlu0 %5075  ;;  %v14287_v59 = vmul.f32 %v15676_v9, %v5084_v10 }
 0x9e1   :  { %v5081_v16 = vmul.f32 0.03125, %v5076_v50  ;;  %v14290_v57 = vmul.f32 %v15676_v9, %v5083_v62 }
 0x9e2   :  { %v5086_v63 = vsub.f32 %v9864_v18, %v5082_v25  ;;  %v5092_v48 = vmul.f32 %v14287_v59, %v14287_v59 }
 0x9e3   :  { %v5085_v51 = vsub.f32 %v5056_v17, %v5081_v16  ;;  %v5091_v32 = vmul.f32 %v14290_v57, %v14290_v57 }
 0x9e4   :  { %5097 = vadd.xlane.f32.xlu1 %v5092_v48  ;;  %v14297_v20 = vmul.f32 %v15676_v9, %v5086_v63 }
 0x9e5   :  { %5095 = vadd.xlane.f32.xlu0 %v5091_v32  ;;  %v14300_v47 = vmul.f32 %v15676_v9, %v5085_v51 }
 0x9e6   :  { %v5094_v44 = vmul.f32 %v14297_v20, %v14297_v20 }
 0x9e7   :  { %v5093_v46 = vmul.f32 %v14300_v47, %v14300_v47 }
 0x9e8   :  { %5101 = vadd.xlane.f32.xlu1 %v5094_v44 }
 0x9e9   :  { %5099 = vadd.xlane.f32.xlu0 %v5093_v46 }
 0xa71   :  { %v5098_v5 = vpop.xlane.xlu1 %5097 }
 0xa72   :  { %v5104_v61 = vmul.f32 0.032258064, %v5098_v5  ;;  %v5096_v28 = vpop.xlane.xlu0 %5095  ;;  %v5292_v5 = vld [vmem:[%s15562_s2 + $0x6f0] sm:$0xff] }
 0xa73   :  { %v5103_v14 = vmul.f32 0.032258064, %v5096_v28 }
 0xa74   :  { %v5108_v3 = vadd.f32 1e-05, %v5104_v61  ;;  %v5293_v61 = vld [vmem:[%s15562_s2 + $0x6f8] sm:$0xff] }
 0xa75   :  { %v5107_v60 = vadd.f32 1e-05, %v5103_v14  ;;  %v5102_v19 = vpop.xlane.xlu1 %5101  ;;  %v10991_v28 = vpack.c.bf16 %v5293_v61, %v5292_v5  ;;  %v5395_v14 = vld [vmem:[%s15562_s2 + $0x700] sm:$0xff] }
 0xa76   :  { %12139 = vrsqrt.f32 %v5108_v3  ;;  %v5106_v23 = vmul.f32 0.032258064, %v5102_v19  ;;  %v5100_v39 = vpop.xlane.xlu0 %5099  ;;  %v5396_v3 = vld [vmem:[%s15562_s2 + $0x708] sm:$0xff]  ;;  %v5397_v19 = vld [vmem:[%s15562_s2 + $0x710] sm:$0xff] }
 0xa77   :  { %12141 = vrsqrt.f32 %v5107_v60  ;;  %v5105_v18 = vmul.f32 0.032258064, %v5100_v39  ;;  %v10995_v60 = vpack.c.bf16 %v5396_v3, %v5395_v14 }
 0xa78   :  { %v5110_v17 = vadd.f32 1e-05, %v5106_v23  ;;  %v5398_v23 = vld [vmem:[%s15562_s2 + $0x718] sm:$0xff] }
 0xa79   :  { %v5109_v34 = vadd.f32 1e-05, %v5105_v18  ;;  %v10999_v39 = vpack.c.bf16 %v5398_v23, %v5397_v19  ;;  %v5399_v18 = vld [vmem:[%s15562_s2 + $0x720] sm:$0xff] }
 0xa7a   :  { %12143 = vrsqrt.f32 %v5110_v17  ;;  %v5400_v17 = vld [vmem:[%s15562_s2 + $0x728] sm:$0xff] }
 0xa7b   :  { %12145 = vrsqrt.f32 %v5109_v34  ;;  %v11003_v34 = vpack.c.bf16 %v5400_v17, %v5399_v18 }
 0xa80   :  { %v12140_v1 = vpop.eup %12139 }
 0xa81   :  { %v12142_v7 = vpop.eup %12141  ;;  %v5116_v30 = vmul.f32 %v12140_v1, %v14287_v59 }
 0xa82   :  { %v5115_v10 = vmul.f32 %v12142_v7, %v14290_v57  ;;  %v5402_v7 = vld [vmem:[%s15562_s2 + $0x738] sm:$0xff] }
 0xa83   :  { %v5124_v62 = vmul.f32 %v8050_v2, %v5116_v30 }
 0xa84   :  { %v12144_v49 = vpop.eup %12143  ;;  %v5123_v25 = vmul.f32 %v8050_v2, %v5115_v10  ;;  %v5404_v10 = vld [vmem:[%s15562_s2 + $0x748] sm:$0xff] }
 0xa85   :  { %v12146_v50 = vpop.eup %12145  ;;  %v14368_v16 = vadd.f32 %v8051_v13, %v5124_v62  ;;  %v5118_v63 = vmul.f32 %v12144_v49, %v14297_v20  ;;  %v5280_v20 = vld [vmem:[%s15562_s2 + $0x690] sm:$0xff] }
 0xa86   :  { %v5131_v48 = vadd.f32 %v8051_v13, %v5123_v25  ;;  %v5117_v51 = vmul.f32 %v12146_v50, %v14300_v47  ;;  %v5281_v47 = vld [vmem:[%s15562_s2 + $0x698] sm:$0xff]  ;;  %v5405_v49 = vld [vmem:[%s15562_s2 + $0x750] sm:$0xff] }
 0xa87   :  { %v5136_v32 = vmax.f32 %v14368_v16, 0.0  ;;  %v5126_v59 = vmul.f32 %v8050_v2, %v5118_v63  ;;  %v10967_v24 = vpack.c.bf16 %v5281_v47, %v5280_v20  ;;  %v5406_v25 = vld [vmem:[%s15562_s2 + $0x758] sm:$0xff]  ;;  %v5407_v16 = vld [vmem:[%s15562_s2 + $0x760] sm:$0xff]  ;;  %v5408_v63 = vld [vmem:[%s15562_s2 + $0x768] sm:$0xff] }
 0xa88   :  { %v5135_v44 = vmax.f32 %v5131_v48, 0.0  ;;  %v5125_v46 = vmul.f32 %v8050_v2, %v5117_v51  ;;  %v5401_v2 = vld [vmem:[%s15562_s2 + $0x730] sm:$0xff]  ;;  %v11015_v50 = vpack.c.bf16 %v5406_v25, %v5405_v49  ;;  %v11019_v48 = vpack.c.bf16 %v5408_v63, %v5407_v16  ;;  %v5516_v20 = vld [vmem:[%s15562_s2 + $0x7a0] sm:$0xff]  ;;  %v5517_v47 = vld [vmem:[%s15562_s2 + $0x7a8] sm:$0xff] }
 0xa89   :  { %5145 = vst [vmem:[#allocation2 + $0x9] sm:$0xff] %v5136_v32  ;;  %v5134_v57 = vadd.f32 %v8051_v13, %v5126_v59  ;;  %v11007_v30 = vpack.c.bf16 %v5402_v7, %v5401_v2  ;;  %v5409_v51 = vld [vmem:[%s15562_s2 + $0x770] sm:$0xff]  ;;  %v14543_v7 = vld [vmem:[%s15561_s3 + $0xc] ss:$0 sm:$0xff] }
 0xa8a   :  { %5144 = vst [vmem:[#allocation2 + $0x1] sm:$0xff] %v5135_v44  ;;  %v14375_v38 = vadd.f32 %v8051_v13, %v5125_v46  ;;  %v5403_v13 = vld [vmem:[%s15562_s2 + $0x740] sm:$0xff]  ;;  %v5513_v46 = vld [vmem:[%s15562_s2 + $0x788] sm:$0xff] }
 0xa8b   :  { %v5138_v42 = vmax.f32 %v5134_v57, 0.0  ;;  %v11011_v62 = vpack.c.bf16 %v5404_v10, %v5403_v13 }
 0xa8c   :  { %v5137_v45 = vmax.f32 %v14375_v38, 0.0  ;;  %v5514_v38 = vld [vmem:[%s15562_s2 + $0x790] sm:$0xff] }
 0xa8d   :  { %5147 = vst [vmem:[#allocation2 + $0x19] sm:$0xff] %v5138_v42  ;;  %v5515_v42 = vld [vmem:[%s15562_s2 + $0x798] sm:$0xff] }
 0xa8e   :  { %5146 = vst [vmem:[#allocation2 + $0x11] sm:$0xff] %v5137_v45 }
 0xa91   :  { %v5157_v12 = vld [vmem:[#allocation2] sm:$0xff]  ;;  %v5158_v58 = vld [vmem:[#allocation2 + $0x8] sm:$0xff] }
 0xa92   :  { %9897 = vmatprep.mubr.f32.mxu0 %v5157_v12  ;;  %v5391_v31 = vld [vmem:[#allocation2 + $0x2] sm:$0xff] }
 0xa93   :  { %v14392_v56 = vld [vmem:[#allocation2 + $0x3] sm:$0xff]  ;;  %9898 = vmatmul.mubr.f32.vlgmr.msra.gmra.mrb[50].mxu0 %v5158_v58  ;;  %v11035_v58 = vpack.c.bf16 %v5517_v47, %v5516_v20 }
 0xa94   :  { %5758 = vst [vmem:[#allocation2] sm:$0xff] %v13756_v53  ;;  %10966 = vmatpush3.bf16.msra.mxu0 %v10963_v0  ;;  %v10987_v0 = vpack.c.bf16 %v5291_v22, %v5290_v4  ;;  %v5277_v1 = vld [vmem:[#allocation2 + $0x19] sm:$0x7f]  ;;  %v5625_v4 = vld [vmem:[%s15565_s6] sm:$0xff] }
 0xa95   :  { %v5159_v29 = vld [vmem:[#allocation2 + $0x10] sm:$0xff]  ;;  %10968 = vmatprep.subr.bf16.mxu0 %v10967_v24  ;;  %v5160_v54 = vld [vmem:[#allocation2 + $0x18] sm:$0x7f]  ;;  %v5180_v22 = vld [vmem:[#allocation3 + $0x18] sm:$0x7f] }
 0xa96   :  { %9900 = vmatprep.mubr.f32.mxu0 %v5159_v29  ;;  %v14401_v37 = vld [vmem:[#allocation2 + $0xa] sm:$0xff]  ;;  %v5393_v12 = vld [vmem:[#allocation2 + $0x12] sm:$0xff]  ;;  %v5520_v29 = vld [vmem:[%s15562_s2 + $0x7c0] sm:$0xff] }
 0xa97   :  { %v14403_v21 = vld [vmem:[#allocation2 + $0xb] sm:$0xff]  ;;  %9901 = vmatmul.mubr.f32.gmra.mrb[52].mxu0 %v5160_v54  ;;  %v5510_v26 = vld [vmem:[#allocation2 + $0x13] sm:$0xff] }
 0xa98   :  { %5760 = vst [vmem:[#allocation2 + $0x10] sm:$0x3] %v13756_v53  ;;  %5759 = vst [vmem:[#allocation2 + $0x8] sm:$0xff] %v13756_v53  ;;  %10970 = vmatpush3.bf16.msra.mxu0 %v10967_v24  ;;  %9935 = vmatprep.mubr.f32.mxu0 %v5135_v44  ;;  %v5512_v44 = vld [vmem:[%s15562_s2 + $0x780] sm:$0xff]  ;;  %v5521_v54 = vld [vmem:[%s15562_s2 + $0x7c8] sm:$0xff] }
 0xa99   :  { %10972 = vmatprep.subr.bf16.mxu0 %v10971_v52  ;;  %v11027_v57 = vpack.c.bf16 %v5513_v46, %v5512_v44  ;;  %v5394_v24 = vld [vmem:[#allocation2 + $0x1a] sm:$0x7f] }
 0xa9c   :  { %10974 = vmatpush3.bf16.msra.mxu0 %v10971_v52  ;;  %v11043_v52 = vpack.c.bf16 %v5521_v54, %v5520_v29  ;;  %v5774_v29 = vld [vmem:[%s15562_s2 + $0x810] sm:$0xff]  ;;  %v5775_v54 = vld [vmem:[%s15562_s2 + $0x818] sm:$0xff] }
 0xa9d   :  { %10976 = vmatprep.subr.bf16.mxu0 %v10975_v11 }
 0xaa0   :  { %10978 = vmatpush3.bf16.msra.mxu0 %v10975_v11  ;;  %v5525_v11 = vld [vmem:[%s15562_s2 + $0x7e8] sm:$0xff] }
 0xaa1   :  { %10980 = vmatprep.subr.bf16.mxu0 %v10979_v55 }
 0xaa4   :  { %10982 = vmatpush3.bf16.msra.mxu0 %v10979_v55  ;;  %v5527_v55 = vld [vmem:[%s15562_s2 + $0x7f8] sm:$0xff] }
 0xaa5   :  { %10984 = vmatprep.subr.bf16.mxu0 %v10983_v6  ;;  %v11055_v35 = vpack.c.bf16 %v5527_v55, %v5526_v33  ;;  %v5780_v33 = vld [vmem:[%s15562_s2 + $0x840] sm:$0xff]  ;;  %v5781_v55 = vld [vmem:[%s15562_s2 + $0x848] sm:$0xff] }
 0xaa8   :  { %10986 = vmatpush3.bf16.msra.mxu0 %v10983_v6  ;;  %v5511_v6 = vld [vmem:[#allocation2 + $0x1b] sm:$0x7f] }
 0xaa9   :  { %10988 = vmatprep.subr.bf16.mxu0 %v10987_v0 }
 0xaac   :  { %10990 = vmatpush3.bf16.msra.mxu0 %v10987_v0 }
 0xaad   :  { %10992 = vmatprep.subr.bf16.mxu0 %v10991_v28 }
 0xab0   :  { %10994 = vmatpush3.bf16.msra.mxu0 %v10991_v28 }
 0xab1   :  { %10996 = vmatprep.subr.bf16.mxu0 %v10995_v60 }
 0xab3   :  { %9936 = vmatmul.mubr.f32.vlgmr.msra.gmra.mrb[50].mxu0 %v5136_v32  ;;  %v5410_v32 = vld [vmem:[%s15562_s2 + $0x778] sm:$0xff] }
 0xab4   :  { %9938 = vmatprep.mubr.f32.mxu0 %v5137_v45  ;;  %10998 = vmatpush3.bf16.msra.mxu0 %v10995_v60  ;;  %v11023_v59 = vpack.c.bf16 %v5410_v32, %v5409_v51  ;;  %v11031_v45 = vpack.c.bf16 %v5515_v42, %v5514_v38 }
 0xab5   :  { %11000 = vmatprep.subr.bf16.mxu0 %v10999_v39 }
 0xab7   :  { %9939 = vmatmul.mubr.f32.gmra.mrb[54].mxu0 %v5277_v1 }
 0xab8   :  { %11002 = vmatpush3.bf16.msra.mxu0 %v10999_v39  ;;  %9973 = vmatprep.mubr.f32.mxu0 %v5391_v31  ;;  %v11039_v31 = vpack.c.bf16 %v5519_v15, %v5518_v36  ;;  %v5772_v36 = vld [vmem:[%s15562_s2 + $0x800] sm:$0xff]  ;;  %v5773_v15 = vld [vmem:[%s15562_s2 + $0x808] sm:$0xff] }
 0xab9   :  { %11004 = vmatprep.subr.bf16.mxu0 %v11003_v34 }
 0xabc   :  { %11006 = vmatpush3.bf16.msra.mxu0 %v11003_v34 }
 0xabd   :  { %11008 = vmatprep.subr.bf16.mxu0 %v11007_v30 }
 0xac0   :  { %11010 = vmatpush3.bf16.msra.mxu0 %v11007_v30 }
 0xac1   :  { %11012 = vmatprep.subr.bf16.mxu0 %v11011_v62 }
 0xac4   :  { %11014 = vmatpush3.bf16.msra.mxu0 %v11011_v62 }
 0xac5   :  { %11016 = vmatprep.subr.bf16.mxu0 %v11015_v50 }
 0xac8   :  { %11018 = vmatpush3.bf16.msra.mxu0 %v11015_v50 }
 0xac9   :  { %11020 = vmatprep.subr.bf16.mxu0 %v11019_v48 }
 0xacc   :  { %11022 = vmatpush3.bf16.msra.mxu0 %v11019_v48 }
 0xacd   :  { %11024 = vmatprep.subr.bf16.mxu0 %v11023_v59 }
 0xad0   :  { %11026 = vmatpush3.bf16.msra.mxu0 %v11023_v59 }
 0xad1   :  { %11028 = vmatprep.subr.bf16.mxu0 %v11027_v57 }
 0xad3   :  { %9974 = vmatmul.mubr.f32.vlgmr.msra.gmra.mrb[50].mxu0 %v14401_v37  ;;  %v5524_v37 = vld [vmem:[%s15562_s2 + $0x7e0] sm:$0xff] }
 0xad4   :  { %9976 = vmatprep.mubr.f32.mxu0 %v5393_v12  ;;  %11030 = vmatpush3.bf16.msra.mxu0 %v11027_v57  ;;  %v11051_v41 = vpack.c.bf16 %v5525_v11, %v5524_v37  ;;  %v5778_v37 = vld [vmem:[%s15562_s2 + $0x830] sm:$0xff]  ;;  %v5779_v11 = vld [vmem:[%s15562_s2 + $0x838] sm:$0xff] }
 0xad5   :  { %11032 = vmatprep.subr.bf16.mxu0 %v11031_v45 }
 0xad7   :  { %9977 = vmatmul.mubr.f32.gmra.mrb[56].mxu0 %v5394_v24 }
 0xad8   :  { %11034 = vmatpush3.bf16.msra.mxu0 %v11031_v45  ;;  %10011 = vmatprep.mubr.f32.mxu0 %v14392_v56  ;;  %v5523_v56 = vld [vmem:[%s15562_s2 + $0x7d8] sm:$0xff] }
 0xad9   :  { %11036 = vmatprep.subr.bf16.mxu0 %v11035_v58  ;;  %v11047_v27 = vpack.c.bf16 %v5523_v56, %v5522_v8  ;;  %v5776_v8 = vld [vmem:[%s15562_s2 + $0x820] sm:$0xff]  ;;  %v5777_v56 = vld [vmem:[%s15562_s2 + $0x828] sm:$0xff] }
 0xadc   :  { %11038 = vmatpush3.bf16.msra.mxu0 %v11035_v58 }
 0xadd   :  { %11040 = vmatprep.subr.bf16.mxu0 %v11039_v31 }
 0xae0   :  { %11042 = vmatpush3.bf16.msra.mxu0 %v11039_v31  ;;  %v11069_v31 = vpack.c.bf16 %v5773_v15, %v5772_v36  ;;  %v5882_v36 = vld [vmem:[%s15562_s2 + $0x8d8] sm:$0xff] }
 0xae1   :  { %11044 = vmatprep.subr.bf16.mxu0 %v11043_v52 }
 0xae4   :  { %11046 = vmatpush3.bf16.msra.mxu0 %v11043_v52  ;;  %v11073_v52 = vpack.c.bf16 %v5775_v54, %v5774_v29  ;;  %v5884_v29 = vld [vmem:[%s15562_s2 + $0x8e8] sm:$0xff] }
 0xae5   :  { %11048 = vmatprep.subr.bf16.mxu0 %v11047_v27 }
 0xae8   :  { %11050 = vmatpush3.bf16.msra.mxu0 %v11047_v27  ;;  %v11077_v27 = vpack.c.bf16 %v5777_v56, %v5776_v8  ;;  %v5886_v8 = vld [vmem:[%s15562_s2 + $0x8f8] sm:$0xff] }
 0xae9   :  { %11052 = vmatprep.subr.bf16.mxu0 %v11051_v41 }
 0xaec   :  { %11054 = vmatpush3.bf16.msra.mxu0 %v11051_v41  ;;  %v11081_v41 = vpack.c.bf16 %v5779_v11, %v5778_v37  ;;  %v5971_v37 = vld [vmem:[%s15562_s2 + $0x908] sm:$0xff] }
 0xaed   :  { %11056 = vmatprep.subr.bf16.mxu0 %v11055_v35 }
 0xaf0   :  { %11058 = vmatpush3.bf16.msra.mxu0 %v11055_v35  ;;  %v11085_v35 = vpack.c.bf16 %v5781_v55, %v5780_v33  ;;  %v5973_v33 = vld [vmem:[%s15562_s2 + $0x918] sm:$0xff] }
 0xaf3   :  { %10012 = vmatmul.mubr.f32.vlgmr.msra.gmra.mrb[50].mxu0 %v14403_v21 }
 0xaf4   :  { %10014 = vmatprep.mubr.f32.mxu0 %v5510_v26  ;;  %v5782_v26 = vld [vmem:[%s15562_s2 + $0x850] sm:$0xff] }
 0xaf7   :  { %10015 = vmatmul.mubr.f32.gmra.mrb[58].mxu0 %v5511_v6  ;;  %v5783_v6 = vld [vmem:[%s15562_s2 + $0x858] sm:$0xff] }
 0xaf8   :  { %10025 = vmatprep.mubr.msk.f32.mxu0 %vm5631_vm11, %v5625_v4  ;;  %v11089_v4 = vpack.c.bf16 %v5783_v6, %v5782_v26  ;;  %v5974_v26 = vld [vmem:[%s15562_s2 + $0x920] sm:$0xff]  ;;  %v5975_v6 = vld [vmem:[%s15562_s2 + $0x928] sm:$0xff] }
 0xb6a   :  { %v9902_v0 = vpop.f32.mrb[52].mxu0 }
 0xb6b   :  { %v5269_v5 = vadd.f32 %v9902_v0, %v5180_v22  ;;  %v5257_v61 = vpop.f32.mrb[53].mxu0  ;;  %v5784_v22 = vld [vmem:[%s15562_s2 + $0x860] sm:$0xff]  ;;  %v5785_v0 = vld [vmem:[%s15562_s2 + $0x868] sm:$0xff] }
 0xb6c   :  { %v5268_v28 = vadd.f32 %v14258_v40, %v5257_v61  ;;  %v5786_v61 = vld [vmem:[%s15562_s2 + $0x870] sm:$0xff] }
 0xb6d   :  { %5273 = vst [vmem:[#allocation3 + $0x18] sm:$0x7f] %v5269_v5  ;;  %v11093_v5 = vpack.c.bf16 %v5785_v0, %v5784_v22  ;;  %v11141_v22 = vpack.c.bf16 %v5975_v6, %v5974_v26  ;;  %v5976_v0 = vld [vmem:[%s15562_s2 + $0x930] sm:$0xff] }
 0xb74   :  { %v5297_v14 = vld [vmem:[#allocation3 + $0x18] sm:$0x7f] }
 0xb8a   :  { %v9940_v21 = vpop.f32.mrb[54].mxu0 }
 0xb8b   :  { %v5386_v3 = vadd.f32 %v9940_v21, %v5297_v14  ;;  %v5374_v60 = vpop.f32.mrb[55].mxu0  ;;  %v5871_v21 = vld [vmem:[%s15562_s2 + $0x880] sm:$0xff] }
 0xb8c   :  { %v5385_v19 = vadd.f32 %v5374_v60, %v5268_v28  ;;  %v5787_v28 = vld [vmem:[%s15562_s2 + $0x878] sm:$0xff] }
 0xb8d   :  { %5390 = vst [vmem:[#allocation3 + $0x18] sm:$0x7f] %v5386_v3  ;;  %v11097_v14 = vpack.c.bf16 %v5787_v28, %v5786_v61  ;;  %v5872_v3 = vld [vmem:[%s15562_s2 + $0x888] sm:$0xff]  ;;  %v5978_v28 = vld [vmem:[%s15562_s2 + $0x940] sm:$0xff] }
 0xb8e   :  { %v11101_v60 = vpack.c.bf16 %v5872_v3, %v5871_v21  ;;  %v5980_v3 = vld [vmem:[%s15562_s2 + $0x950] sm:$0xff] }
 0xb94   :  { %v5414_v23 = vld [vmem:[#allocation3 + $0x18] sm:$0x7f] }
 0xbaa   :  { %v9978_v39 = vpop.f32.mrb[56].mxu0 }
 0xbab   :  { %v5503_v18 = vadd.f32 %v9978_v39, %v5414_v23  ;;  %v5491_v17 = vpop.f32.mrb[57].mxu0 }
 0xbac   :  { %v5502_v34 = vadd.f32 %v5491_v17, %v5385_v19 }
 0xbad   :  { %5507 = vst [vmem:[#allocation3 + $0x18] sm:$0x7f] %v5503_v18 }
 0xbb4   :  { %v5531_v10 = vld [vmem:[#allocation3 + $0x18] sm:$0x7f] }
 0xbc6   :  { %v10013_v1 = vpop.f32.mrb[50].mxu0 }
 0xbc7   :  { %v11817_v2 = vadd.f32 %v10013_v1, %v14258_v40  ;;  %v5598_v30 = vpop.f32.mrb[51].mxu0 }
 0xbc8   :  { %v11820_v13 = vadd.f32 %v14258_v40, %v5598_v30  ;;  %v5626_v40 = vld [vmem:[%s15565_s6 + $0x8] sm:$0xff] }
 0xbc9   :  { %5622 = vst [vmem:[#allocation3 + $0x8] sm:$0xff] %v11817_v2 }
 0xbca   :  { %5769 = vst [vmem:[#allocation3 + $0x8] sm:$0x7f] %v14543_v7  ;;  %v10016_v62 = vpop.f32.mrb[58].mxu0  ;;  %v11059_v49 = vpack.c.bf16 %v11817_v2, %v11820_v13  ;;  %v8056_v2 = vld [vmem:[%s15561_s3 + $0xa] ss:$0 sm:$0xff] }
 0xbcb   :  { %v5620_v25 = vadd.f32 %v10016_v62, %v5531_v10  ;;  %v5608_v50 = vpop.f32.mrb[59].mxu0  ;;  %v8057_v10 = vld [vmem:[%s15561_s3 + $0xb] ss:$0 sm:$0xff] }
 0xbcc   :  { %v5619_v16 = vadd.f32 %v5608_v50, %v5502_v34  ;;  %11060 = vmatprep.subr.bf16.mxu0 %v11059_v49 }
 0xbcd   :  { %5624 = vst [vmem:[#allocation3 + $0x18] sm:$0x7f] %v5620_v25  ;;  %11062 = vmatpush3.bf16.msra.mxu0 %v11059_v49 }
 0xbce   :  { %5623 = vst [vmem:[#allocation3 + $0x10] sm:$0xff] %v5619_v16 }
 0xbd4   :  { %v5630_v63 = vld [vmem:[#allocation3 + $0x18] sm:$0x7f] }
 0xbd5   :  { %v11063_v48 = vpack.c.bf16 %v5630_v63, %v5619_v16 }
 0xbd7   :  { %11065 = vmatprep.subr.msk.bf16.mxu0 %vm14262_vm10, %v11063_v48 }
 0xbd8   :  { %11068 = vmatpush3.bf16.msk.msra.mxu0 %vm14262_vm10, %v11063_v48 }
 0xbd9   :  { %11070 = vmatprep.subr.bf16.mxu0 %v11069_v31 }
 0xbdb   :  { %10026 = vmatmul.mubr.msk.f32.vlgmr.msra.gmra.mrb[60].mxu0 %vm5631_vm11, %v5626_v40  ;;  %v5873_v40 = vld [vmem:[%s15562_s2 + $0x890] sm:$0xff] }
 0xbdc   :  { %11072 = vmatpush3.bf16.msra.mxu0 %v11069_v31  ;;  %v5883_v31 = vld [vmem:[%s15562_s2 + $0x8e0] sm:$0xff] }
 0xbdd   :  { %11074 = vmatprep.subr.bf16.mxu0 %v11073_v52  ;;  %v11125_v54 = vpack.c.bf16 %v5884_v29, %v5883_v31  ;;  %v5789_v31 = vld [vmem:[#allocation3 + $0x8] sm:$0x7f] }
 0xbe0   :  { %11076 = vmatpush3.bf16.msra.mxu0 %v11073_v52  ;;  %v5885_v52 = vld [vmem:[%s15562_s2 + $0x8f0] sm:$0xff] }
 0xbe1   :  { %11078 = vmatprep.subr.bf16.mxu0 %v11077_v27  ;;  %v11129_v56 = vpack.c.bf16 %v5886_v8, %v5885_v52 }
 0xbe4   :  { %11080 = vmatpush3.bf16.msra.mxu0 %v11077_v27  ;;  %v5970_v27 = vld [vmem:[%s15562_s2 + $0x900] sm:$0xff] }
 0xbe5   :  { %11082 = vmatprep.subr.bf16.mxu0 %v11081_v41  ;;  %v11133_v11 = vpack.c.bf16 %v5971_v37, %v5970_v27 }
 0xbe8   :  { %11084 = vmatpush3.bf16.msra.mxu0 %v11081_v41  ;;  %v5972_v41 = vld [vmem:[%s15562_s2 + $0x910] sm:$0xff] }
 0xbe9   :  { %11086 = vmatprep.subr.bf16.mxu0 %v11085_v35  ;;  %v11137_v55 = vpack.c.bf16 %v5973_v33, %v5972_v41 }
 0xbec   :  { %11088 = vmatpush3.bf16.msra.mxu0 %v11085_v35 }
 0xbed   :  { %11090 = vmatprep.subr.bf16.mxu0 %v11089_v4 }
 0xbf0   :  { %11092 = vmatpush3.bf16.msra.mxu0 %v11089_v4 }
 0xbf1   :  { %11094 = vmatprep.subr.bf16.mxu0 %v11093_v5 }
 0xbf4   :  { %11096 = vmatpush3.bf16.msra.mxu0 %v11093_v5  ;;  %v5977_v5 = vld [vmem:[%s15562_s2 + $0x938] sm:$0xff] }
 0xbf5   :  { %11098 = vmatprep.subr.bf16.mxu0 %v11097_v14  ;;  %v11145_v61 = vpack.c.bf16 %v5977_v5, %v5976_v0 }
 0xbf8   :  { %11100 = vmatpush3.bf16.msra.mxu0 %v11097_v14  ;;  %v5979_v14 = vld [vmem:[%s15562_s2 + $0x948] sm:$0xff] }
 0xbf9   :  { %11102 = vmatprep.subr.bf16.mxu0 %v11101_v60  ;;  %v11149_v21 = vpack.c.bf16 %v5979_v14, %v5978_v28  ;;  %v6166_v14 = vld [vmem:[%s15566_s7] sm:$0xff] }
 0xcae   :  { %v10027_v51 = vpop.f32.mrb[60].mxu0 }
 0xcaf   :  { %v5707_v32 = vpop.f32.mrb[61].mxu0  ;;  %v5719_v59 = vmul.f32 %v10027_v51, %v15676_v9 }
 0xcb0   :  { %v5718_v44 = vmul.f32 %v15676_v9, %v5707_v32 }
 0xcb1   :  { %5722 = vadd.xlane.f32.xlu1 %v5719_v59 }
 0xcb2   :  { %5720 = vadd.xlane.f32.xlu0 %v5718_v44 }
 0xd3e   :  { %v5723_v46 = vpop.xlane.xlu1 %5722 }
 0xd3f   :  { %v5725_v57 = vmul.f32 0.03125, %v5723_v46  ;;  %v5721_v38 = vpop.xlane.xlu0 %5720  ;;  %v5875_v46 = vld [vmem:[%s15562_s2 + $0x8a0] sm:$0xff] }
 0xd40   :  { %v5724_v42 = vmul.f32 0.03125, %v5721_v38 }
 0xd41   :  { %v5727_v45 = vsub.f32 %v10027_v51, %v5725_v57  ;;  %v5874_v51 = vld [vmem:[%s15562_s2 + $0x898] sm:$0xff]  ;;  %v5876_v57 = vld [vmem:[%s15562_s2 + $0x8a8] sm:$0xff] }
 0xd42   :  { %v5726_v20 = vsub.f32 %v5707_v32, %v5724_v42  ;;  %v11105_v44 = vpack.c.bf16 %v5874_v51, %v5873_v40  ;;  %v11109_v38 = vpack.c.bf16 %v5876_v57, %v5875_v46  ;;  %v5877_v42 = vld [vmem:[%s15562_s2 + $0x8b0] sm:$0xff]  ;;  %v6076_v51 = vld [vmem:[%s15562_s2 + $0x9b8] sm:$0xff] }
 0xd43   :  { %v5729_v47 = vmul.f32 %v15676_v9, %v5727_v45  ;;  %v5878_v45 = vld [vmem:[%s15562_s2 + $0x8b8] sm:$0xff]  ;;  %v6075_v40 = vld [vmem:[%s15562_s2 + $0x9b0] sm:$0xff] }
 0xd44   :  { %v5728_v12 = vmul.f32 %v15676_v9, %v5726_v20  ;;  %v11113_v20 = vpack.c.bf16 %v5878_v45, %v5877_v42  ;;  %v6079_v57 = vld [vmem:[%s15562_s2 + $0x9d0] sm:$0xff]  ;;  %v6081_v45 = vld [vmem:[%s15562_s2 + $0x9e0] sm:$0xff] }
 0xd45   :  { %v5731_v58 = vmul.f32 %v5729_v47, %v5729_v47 }
 0xd46   :  { %v5730_v24 = vmul.f32 %v5728_v12, %v5728_v12 }
 0xd47   :  { %5734 = vadd.xlane.f32.xlu1 %v5731_v58 }
 0xd48   :  { %5732 = vadd.xlane.f32.xlu0 %v5730_v24  ;;  %v5881_v24 = vld [vmem:[%s15562_s2 + $0x8d0] sm:$0xff] }
 0xd49   :  { %v11121_v15 = vpack.c.bf16 %v5882_v36, %v5881_v24 }
 0xdd4   :  { %v5735_v19 = vpop.xlane.xlu1 %5734 }
 0xdd5   :  { %v5737_v23 = vmul.f32 0.032258064, %v5735_v19  ;;  %v5733_v39 = vpop.xlane.xlu0 %5732 }
 0xdd6   :  { %v5736_v18 = vmul.f32 0.032258064, %v5733_v39  ;;  %v5983_v39 = vld [vmem:[%s15562_s2 + $0x968] sm:$0xff] }
 0xdd7   :  { %v5739_v17 = vadd.f32 1e-05, %v5737_v23  ;;  %v5982_v23 = vld [vmem:[%s15562_s2 + $0x960] sm:$0xff] }
 0xdd8   :  { %v5738_v34 = vadd.f32 1e-05, %v5736_v18  ;;  %v11157_v18 = vpack.c.bf16 %v5983_v39, %v5982_v23  ;;  %v6273_v23 = vld [vmem:[%s15567_s8] sm:$0xff] }
 0xdd9   :  { %12147 = vrsqrt.f32 %v5739_v17  ;;  %v5984_v17 = vld [vmem:[%s15562_s2 + $0x970] sm:$0xff] }
 0xdda   :  { %12149 = vrsqrt.f32 %v5738_v34  ;;  %v5985_v34 = vld [vmem:[%s15562_s2 + $0x978] sm:$0xff] }
 0xde3   :  { %v12148_v1 = vpop.eup %12147 }
 0xde4   :  { %v12150_v30 = vpop.eup %12149  ;;  %v5743_v13 = vmul.f32 %v12148_v1, %v5729_v47  ;;  %v5879_v47 = vld [vmem:[%s15562_s2 + $0x8c0] sm:$0xff]  ;;  %v11161_v1 = vpack.c.bf16 %v5985_v34, %v5984_v17  ;;  %v6482_v17 = vld [vmem:[%s15568_s10 + $0x8] sm:$0xff] }
 0xde5   :  { %v5742_v62 = vmul.f32 %v12150_v30, %v5728_v12  ;;  %v5880_v12 = vld [vmem:[%s15562_s2 + $0x8c8] sm:$0xff]  ;;  %v6485_v34 = vld [vmem:[%s15568_s10 + $0x20] sm:$0xff] }
 0xde6   :  { %v5749_v49 = vmul.f32 %v8056_v2, %v5743_v13  ;;  %v11117_v58 = vpack.c.bf16 %v5880_v12, %v5879_v47  ;;  %v6070_v30 = vld [vmem:[%s15562_s2 + $0x988] sm:$0xff]  ;;  %v6083_v12 = vld [vmem:[%s15562_s2 + $0x9f0] sm:$0xff] }
 0xde7   :  { %v5748_v25 = vmul.f32 %v8056_v2, %v5742_v62  ;;  %v6069_v2 = vld [vmem:[%s15562_s2 + $0x980] sm:$0xff]  ;;  %v6072_v62 = vld [vmem:[%s15562_s2 + $0x998] sm:$0xff] }
 0xde8   :  { %v5755_v50 = vadd.f32 %v8057_v10, %v5749_v49  ;;  %v11165_v13 = vpack.c.bf16 %v6070_v30, %v6069_v2  ;;  %v14786_v2 = vpack.c.bf16 %v6485_v34, %v6482_v17  ;;  %v6481_v30 = vld [vmem:[%s15568_s10] sm:$0xff] }
 0xde9   :  { %v5754_v16 = vadd.f32 %v8057_v10, %v5748_v25  ;;  %v6071_v10 = vld [vmem:[%s15562_s2 + $0x990] sm:$0xff] }
 0xdea   :  { %v5757_v63 = vmax.f32 %v5755_v50, 0.0  ;;  %v11169_v49 = vpack.c.bf16 %v6072_v62, %v6071_v10  ;;  %v6073_v50 = vld [vmem:[%s15562_s2 + $0x9a0] sm:$0xff]  ;;  %v6280_v10 = vld [vmem:[%s15567_s8 + $0x38] sm:$0xff]  ;;  %11258 = vmatprep.subr.bf16.mxu1 %v14786_v2 }
 0xdeb   :  { %v5756_v48 = vmax.f32 %v5754_v16, 0.0  ;;  %v6074_v16 = vld [vmem:[%s15562_s2 + $0x9a8] sm:$0xff] }
 0xdec   :  { %5762 = vst [vmem:[#allocation2 + $0x9] sm:$0xff] %v5757_v63 }
 0xded   :  { %5761 = vst [vmem:[#allocation2 + $0x1] sm:$0xff] %v5756_v48 }
 0xdf3   :  { %v5870_v35 = vld [vmem:[#allocation2 + $0x9] sm:$0x7f] }
 0xdf4   :  { %v5770_v32 = vld [vmem:[#allocation2] sm:$0xff]  ;;  %v5771_v59 = vld [vmem:[#allocation2 + $0x8] sm:$0x7f] }
 0xdf5   :  { %10060 = vmatprep.mubr.f32.mxu0 %v5770_v32  ;;  %v5968_v4 = vld [vmem:[#allocation2 + $0x2] sm:$0xff]  ;;  %v5969_v25 = vld [vmem:[#allocation2 + $0xa] sm:$0x7f]  ;;  %v11177_v32 = vpack.c.bf16 %v6076_v51, %v6075_v40 }
 0xdf6   :  { %10061 = vmatmul.mubr.f32.vlgmr.msra.gmra.mrb[62].mxu0 %v5771_v59  ;;  %v6067_v63 = vld [vmem:[#allocation2 + $0x3] sm:$0xff]  ;;  %v6068_v36 = vld [vmem:[#allocation2 + $0xb] sm:$0x7f] }
 0xdf7   :  { %11104 = vmatpush3.bf16.msra.mxu0 %v11101_v60  ;;  %10095 = vmatprep.mubr.f32.mxu0 %v5756_v48  ;;  %v5981_v60 = vld [vmem:[%s15562_s2 + $0x958] sm:$0xff]  ;;  %v11173_v48 = vpack.c.bf16 %v6074_v16, %v6073_v50  ;;  %v6077_v59 = vld [vmem:[%s15562_s2 + $0x9c0] sm:$0xff]  ;;  %v6282_v50 = vld [vmem:[%s15567_s8 + $0x48] sm:$0xff] }
 0xdf8   :  { %11106 = vmatprep.subr.bf16.mxu0 %v11105_v44  ;;  %v11153_v19 = vpack.c.bf16 %v5981_v60, %v5980_v3  ;;  %v6491_v40 = vld [vmem:[%s15568_s10 + $0x50] sm:$0xff] }
 0xdf9   :  { %v6487_v51 = vld [vmem:[%s15568_s10 + $0x30] sm:$0xff] }
 0xdfb   :  { %11108 = vmatpush3.bf16.msra.mxu0 %v11105_v44  ;;  %v6078_v44 = vld [vmem:[%s15562_s2 + $0x9c8] sm:$0xff] }
 0xdfc   :  { %11110 = vmatprep.subr.bf16.mxu0 %v11109_v38  ;;  %v11181_v46 = vpack.c.bf16 %v6078_v44, %v6077_v59  ;;  %v6490_v59 = vld [vmem:[%s15568_s10 + $0x48] sm:$0xff] }
 0xdfd   :  { %v6286_v44 = vld [vmem:[%s15567_s8 + $0x68] sm:$0xff] }
 0xdff   :  { %11112 = vmatpush3.bf16.msra.mxu0 %v11109_v38  ;;  %v6080_v38 = vld [vmem:[%s15562_s2 + $0x9d8] sm:$0xff] }
 0xe00   :  { %11114 = vmatprep.subr.bf16.mxu0 %v11113_v20  ;;  %v11185_v42 = vpack.c.bf16 %v6080_v38, %v6079_v57  ;;  %v14830_v57 = vpack.c.bf16 %v6490_v59, %v6487_v51  ;;  %v6312_v51 = vld [vmem:[%s15567_s8 + $0x138] sm:$0xff]  ;;  %v6518_v59 = vld [vmem:[%s15568_s10 + $0x128] sm:$0xff] }
 0xe03   :  { %11116 = vmatpush3.bf16.msra.mxu0 %v11113_v20  ;;  %v6082_v20 = vld [vmem:[%s15562_s2 + $0x9e8] sm:$0xff] }
 0xe04   :  { %11118 = vmatprep.subr.bf16.mxu0 %v11117_v58  ;;  %v11189_v47 = vpack.c.bf16 %v6082_v20, %v6081_v45  ;;  %v6288_v45 = vld [vmem:[%s15567_s8 + $0x78] sm:$0xff]  ;;  %v6494_v20 = vld [vmem:[%s15568_s10 + $0x68] sm:$0xff] }
 0xe07   :  { %11120 = vmatpush3.bf16.msra.mxu0 %v11117_v58  ;;  %v6084_v58 = vld [vmem:[%s15562_s2 + $0x9f8] sm:$0xff] }
 0xe08   :  { %11122 = vmatprep.subr.bf16.mxu0 %v11121_v15  ;;  %v11193_v24 = vpack.c.bf16 %v6084_v58, %v6083_v12 }
 0xe0b   :  { %11124 = vmatpush3.bf16.msra.mxu0 %v11121_v15  ;;  %v12238_v15 = vmov 0.0|0.0  }
 0xe0c   :  { %11126 = vmatprep.subr.bf16.mxu0 %v11125_v54 }
 0xe0f   :  { %11128 = vmatpush3.bf16.msra.mxu0 %v11125_v54 }
 0xe10   :  { %11130 = vmatprep.subr.bf16.mxu0 %v11129_v56 }
 0xe13   :  { %11132 = vmatpush3.bf16.msra.mxu0 %v11129_v56 }
 0xe14   :  { %11134 = vmatprep.subr.bf16.mxu0 %v11133_v11 }
 0xe16   :  { %10096 = vmatmul.mubr.f32.vlgmr.msra.gmra.mrb[64].mxu0 %v5870_v35 }
 0xe17   :  { %11136 = vmatpush3.bf16.msra.mxu0 %v11133_v11  ;;  %10130 = vmatprep.mubr.f32.mxu0 %v5968_v4 }
 0xe18   :  { %11138 = vmatprep.subr.bf16.mxu0 %v11137_v55 }
 0xe1b   :  { %11140 = vmatpush3.bf16.msra.mxu0 %v11137_v55 }
 0xe1c   :  { %11142 = vmatprep.subr.bf16.mxu0 %v11141_v22 }
 0xe1f   :  { %11144 = vmatpush3.bf16.msra.mxu0 %v11141_v22 }
 0xe20   :  { %11146 = vmatprep.subr.bf16.mxu0 %v11145_v61 }
 0xe23   :  { %11148 = vmatpush3.bf16.msra.mxu0 %v11145_v61 }
 0xe24   :  { %11150 = vmatprep.subr.bf16.mxu0 %v11149_v21 }
 0xe27   :  { %11152 = vmatpush3.bf16.msra.mxu0 %v11149_v21 }
 0xe28   :  { %11154 = vmatprep.subr.bf16.mxu0 %v11153_v19 }
 0xe2b   :  { %11156 = vmatpush3.bf16.msra.mxu0 %v11153_v19  ;;  %v6274_v19 = vld [vmem:[%s15567_s8 + $0x8] sm:$0xff] }
 0xe2c   :  { %11158 = vmatprep.subr.bf16.mxu0 %v11157_v18  ;;  %v11201_v39 = vpack.c.bf16 %v6277_v43, %v6274_v19  ;;  %v6508_v19 = vld [vmem:[%s15568_s10 + $0xd8] sm:$0xff] }
 0xe2f   :  { %11160 = vmatpush3.bf16.msra.mxu0 %v11157_v18  ;;  %v6276_v18 = vld [vmem:[%s15567_s8 + $0x18] sm:$0xff] }
 0xe30   :  { %11162 = vmatprep.subr.bf16.mxu0 %v11161_v1 }
 0xe33   :  { %11164 = vmatpush3.bf16.msra.mxu0 %v11161_v1  ;;  %v11203_v1 = vpack.c.bf16 %v6276_v18, %v6273_v23  ;;  %v6304_v23 = vld [vmem:[%s15567_s8 + $0xf8] sm:$0xff]  ;;  %v6303_v18 = vld [vmem:[%s15567_s8 + $0xf0] sm:$0xff] }
 0xe34   :  { %11166 = vmatprep.subr.bf16.mxu0 %v11165_v13 }
 0xe36   :  { %10131 = vmatmul.mubr.f32.vlgmr.msra.gmra.mrb[66].mxu0 %v5969_v25  ;;  %v6279_v25 = vld [vmem:[%s15567_s8 + $0x30] sm:$0xff] }
 0xe37   :  { %11168 = vmatpush3.bf16.msra.mxu0 %v11165_v13  ;;  %10165 = vmatprep.mubr.f32.mxu0 %v6067_v63  ;;  %v6484_v13 = vld [vmem:[%s15568_s10 + $0x18] sm:$0xff]  ;;  %v11207_v63 = vpack.c.bf16 %v6282_v50, %v6279_v25  ;;  %v6514_v25 = vld [vmem:[%s15568_s10 + $0x108] sm:$0xff] }
 0xe38   :  { %11170 = vmatprep.subr.bf16.mxu0 %v11169_v49  ;;  %v14797_v62 = vpack.c.bf16 %v6484_v13, %v6481_v30  ;;  %v6512_v30 = vld [vmem:[%s15568_s10 + $0xf8] sm:$0xff]  ;;  %v6515_v13 = vld [vmem:[%s15568_s10 + $0x110] sm:$0xff]  ;;  %v6310_v50 = vld [vmem:[%s15567_s8 + $0x128] sm:$0xff] }
 0xe3a   :  { %11260 = vmatpush1.bf16.msra.mxu1 %v14797_v62 }
 0xe3b   :  { %11172 = vmatpush3.bf16.msra.mxu0 %v11169_v49  ;;  %v6283_v49 = vld [vmem:[%s15567_s8 + $0x50] sm:$0xff] }
 0xe3c   :  { %11174 = vmatprep.subr.bf16.mxu0 %v11173_v48  ;;  %v11205_v16 = vpack.c.bf16 %v6283_v49, %v6280_v10  ;;  %v14940_v10 = vpack.c.bf16 %v6515_v13, %v6512_v30  ;;  %v6511_v49 = vld [vmem:[%s15568_s10 + $0xf0] sm:$0xff] }
 0xe3d   :  { %v6299_v13 = vld [vmem:[%s15567_s8 + $0xd0] sm:$0xff] }
 0xe3f   :  { %11176 = vmatpush3.bf16.msra.mxu0 %v11173_v48  ;;  %v6488_v48 = vld [vmem:[%s15568_s10 + $0x38] sm:$0xff] }
 0xe40   :  { %11178 = vmatprep.subr.bf16.mxu0 %v11177_v32 }
 0xe43   :  { %11180 = vmatpush3.bf16.msra.mxu0 %v11177_v32  ;;  %v14819_v32 = vpack.c.bf16 %v6491_v40, %v6488_v48  ;;  %v6309_v48 = vld [vmem:[%s15567_s8 + $0x120] sm:$0xff] }
 0xe44   :  { %11182 = vmatprep.subr.bf16.mxu0 %v11181_v46 }
 0xe45   :  { %11262 = vmatprep.subr.bf16.mxu1 %v14819_v32 }
 0xe46   :  { %11264 = vmatpush1.bf16.msra.mxu1 %v14830_v57 }
 0xe47   :  { %11184 = vmatpush3.bf16.msra.mxu0 %v11181_v46  ;;  %v6289_v46 = vld [vmem:[%s15567_s8 + $0x80] sm:$0xff] }
 0xe48   :  { %11186 = vmatprep.subr.bf16.mxu0 %v11185_v42  ;;  %v11209_v38 = vpack.c.bf16 %v6289_v46, %v6286_v44  ;;  %v6521_v44 = vld [vmem:[%s15568_s10 + $0x140] sm:$0xff]  ;;  %v14967_v46 = vpack.c.bf16 %v6514_v25, %v6511_v49  ;;  %v6302_v49 = vld [vmem:[%s15567_s8 + $0xe8] sm:$0xff] }
 0xe49   :  { %v11246_v25 = vpack.c.bf16 %v6302_v49, %v6299_v13 }
 0xe4b   :  { %11188 = vmatpush3.bf16.msra.mxu0 %v11185_v42  ;;  %v6285_v42 = vld [vmem:[%s15567_s8 + $0x60] sm:$0xff] }
 0xe4c   :  { %11190 = vmatprep.subr.bf16.mxu0 %v11189_v47  ;;  %v11211_v12 = vpack.c.bf16 %v6288_v45, %v6285_v42  ;;  %v6319_v42 = vld [vmem:[%s15567_s8 + $0x170] sm:$0xff]  ;;  %v14976_v45 = vpack.c.bf16 %v6521_v44, %v6518_v59  ;;  %v6317_v59 = vld [vmem:[%s15567_s8 + $0x160] sm:$0xff]  ;;  %v6320_v44 = vld [vmem:[%s15567_s8 + $0x178] sm:$0xff] }
 0xe4f   :  { %11192 = vmatpush3.bf16.msra.mxu0 %v11189_v47  ;;  %v6497_v47 = vld [vmem:[%s15568_s10 + $0x80] sm:$0xff] }
 0xe50   :  { %11194 = vmatprep.subr.bf16.mxu0 %v11193_v24  ;;  %v14845_v58 = vpack.c.bf16 %v6497_v47, %v6494_v20  ;;  %v6517_v20 = vld [vmem:[%s15568_s10 + $0x120] sm:$0xff]  ;;  %v6520_v47 = vld [vmem:[%s15568_s10 + $0x138] sm:$0xff] }
 0xe52   :  { %11266 = vmatprep.subr.bf16.mxu1 %v14845_v58 }
 0xe53   :  { %11196 = vmatpush3.bf16.msra.mxu0 %v11193_v24 }
 0xe54   :  { %11197 = vmatprep.subr.bf16.mxu0 %v12238_v15 }
 0xe56   :  { %10166 = vmatmul.mubr.f32.vlgmr.msra.gmra.mrb[68].mxu0 %v6068_v36 }
 0xe57   :  { %10172 = vmatprep.mubr.msk.f32.mxu0 %vm12239_vm12, %v13756_v53 }
 0xec9   :  { %v10062_v29 = vpop.f32.mrb[62].mxu0 }
 0xeca   :  { %v5866_v54 = vadd.f32 %v10062_v29, %v5789_v31  ;;  %v5856_v52 = vpop.f32.mrb[63].mxu0 }
 0xecb   :  { %v5865_v8 = vadd.f32 %v14543_v7, %v5856_v52  ;;  %v6493_v52 = vld [vmem:[%s15568_s10 + $0x60] sm:$0xff] }
 0xecc   :  { %5868 = vst [vmem:[#allocation3 + $0x8] sm:$0x7f] %v5866_v54 }
 0xed3   :  { %v5888_v56 = vld [vmem:[#allocation3 + $0x8] sm:$0x7f] }
 0xee9   :  { %v10097_v27 = vpop.f32.mrb[64].mxu0 }
 0xeea   :  { %v5965_v37 = vadd.f32 %v10097_v27, %v5888_v56  ;;  %v5955_v11 = vpop.f32.mrb[65].mxu0  ;;  %v6292_v56 = vld [vmem:[%s15567_s8 + $0x98] sm:$0xff] }
 0xeeb   :  { %v5964_v41 = vadd.f32 %v5955_v11, %v5865_v8  ;;  %v6496_v8 = vld [vmem:[%s15568_s10 + $0x78] sm:$0xff]  ;;  %v6294_v11 = vld [vmem:[%s15567_s8 + $0xa8] sm:$0xff] }
 0xeec   :  { %5967 = vst [vmem:[#allocation3 + $0x8] sm:$0x7f] %v5965_v37  ;;  %v14863_v27 = vpack.c.bf16 %v6496_v8, %v6493_v52  ;;  %v6291_v37 = vld [vmem:[%s15567_s8 + $0x90] sm:$0xff]  ;;  %v6318_v52 = vld [vmem:[%s15567_s8 + $0x168] sm:$0xff]  ;;  %v14997_v8 = vpack.c.bf16 %v6520_v47, %v6517_v20 }
 0xeed   :  { %v6486_v20 = vld [vmem:[%s15568_s10 + $0x28] sm:$0xff] }
 0xeee   :  { %11268 = vmatpush1.bf16.msra.mxu1 %v14863_v27 }
 0xef3   :  { %v5987_v33 = vld [vmem:[#allocation3 + $0x8] sm:$0x7f] }
 0xf09   :  { %v10132_v55 = vpop.f32.mrb[66].mxu0 }
 0xf0a   :  { %v6064_v35 = vadd.f32 %v10132_v55, %v5987_v33  ;;  %v6054_v26 = vpop.f32.mrb[67].mxu0  ;;  %v11215_v33 = vpack.c.bf16 %v6294_v11, %v6291_v37  ;;  %v6500_v55 = vld [vmem:[%s15568_s10 + $0x98] sm:$0xff]  ;;  %v6526_v37 = vld [vmem:[%s15568_s10 + $0x168] sm:$0xff] }
 0xf0b   :  { %v6063_v6 = vadd.f32 %v6054_v26, %v5964_v41  ;;  %v6499_v26 = vld [vmem:[%s15568_s10 + $0x90] sm:$0xff] }
 0xf0c   :  { %6066 = vst [vmem:[#allocation3 + $0x8] sm:$0x7f] %v6064_v35  ;;  %v6503_v35 = vld [vmem:[%s15568_s10 + $0xb0] sm:$0xff] }
 0xf13   :  { %v6086_v4 = vld [vmem:[#allocation3 + $0x8] sm:$0x7f] }
 0xf29   :  { %v10167_v22 = vpop.f32.mrb[68].mxu0 }
 0xf2a   :  { %v6163_v0 = vadd.f32 %v10167_v22, %v6086_v4  ;;  %v6153_v5 = vpop.f32.mrb[69].mxu0  ;;  %v6502_v4 = vld [vmem:[%s15568_s10 + $0xa8] sm:$0xff] }
 0xf2b   :  { %v6162_v61 = vadd.f32 %v6153_v5, %v6063_v6  ;;  %v14884_v6 = vpack.c.bf16 %v6503_v35, %v6500_v55  ;;  %v6298_v22 = vld [vmem:[%s15567_s8 + $0xc8] sm:$0xff]  ;;  %v14895_v5 = vpack.c.bf16 %v6502_v4, %v6499_v26 }
 0xf2c   :  { %6165 = vst [vmem:[#allocation3 + $0x8] sm:$0x7f] %v6163_v0  ;;  %v6301_v0 = vld [vmem:[%s15567_s8 + $0xe0] sm:$0xff]  ;;  %v8061_v4 = vld [vmem:[%s15561_s3 + $0xd] ss:$0 sm:$0xff] }
 0xf2d   :  { %6164 = vst [vmem:[#allocation3] sm:$0xff] %v6162_v61  ;;  %11270 = vmatprep.subr.bf16.mxu1 %v14884_v6 }
 0xf2e   :  { %11272 = vmatpush1.bf16.msra.mxu1 %v14895_v5 }
 0xf33   :  { %v6168_v7 = vld [vmem:[#allocation3 + $0x8] sm:$0x7f] }
 0xf34   :  { %v11198_v28 = vpack.c.bf16 %v6168_v7, %v6162_v61  ;;  %v11217_v61 = vpack.c.bf16 %v6301_v0, %v6298_v22  ;;  %v6297_v7 = vld [vmem:[%s15567_s8 + $0xc0] sm:$0xff]  ;;  %v8062_v0 = vld [vmem:[%s15561_s3 + $0xe] ss:$0 sm:$0xff] }
 0xf36   :  { %11200 = vmatpush3.bf16.msk.msra.mxu0 %vm14262_vm10, %v11198_v28  ;;  %v6300_v28 = vld [vmem:[%s15567_s8 + $0xd8] sm:$0xff] }
 0xf37   :  { %11202 = vmatprep.subr.bf16.mxu0 %v11201_v39  ;;  %v6307_v39 = vld [vmem:[%s15567_s8 + $0x110] sm:$0xff] }
 0xf38   :  { %v11221_v34 = vpack.c.bf16 %v6307_v39, %v6304_v23  ;;  %v6287_v23 = vld [vmem:[%s15567_s8 + $0x70] sm:$0xff]  ;;  %v6290_v39 = vld [vmem:[%s15567_s8 + $0x88] sm:$0xff] }
 0xf39   :  { %10173 = vmatmul.mubr.msk.f32.vlgmr.msra.gmra.mrb[70].mxu0 %vm6169_vm13, %v6166_v14  ;;  %v6506_v14 = vld [vmem:[%s15568_s10 + $0xc8] sm:$0xff] }
 0xf3a   :  { %6402 = vmatprep.mubr.f32.mxu0 %v13756_v53  ;;  %11204 = vmatpush1.bf16.msra.mxu0 %v11203_v1  ;;  %v6306_v1 = vld [vmem:[%s15567_s8 + $0x108] sm:$0xff] }
 0xf3b   :  { %11206 = vmatprep.subr.bf16.mxu0 %v11205_v16  ;;  %v11223_v16 = vpack.c.bf16 %v6306_v1, %v6303_v18  ;;  %v11240_v18 = vpack.c.bf16 %v6290_v39, %v6287_v23  ;;  %v6296_v1 = vld [vmem:[%s15567_s8 + $0xb8] sm:$0xff]  ;;  %v15679_v23 = vlaneseq }
 0xf3d   :  { %v15203_v39 = vshrl.u32 %v15679_v23, 7 }
 0xf3e   :  { %11208 = vmatpush1.bf16.msra.mxu0 %v11207_v63  ;;  %v6313_v63 = vld [vmem:[%s15567_s8 + $0x140] sm:$0xff] }
 0xf3f   :  { %11210 = vmatprep.subr.bf16.mxu0 %v11209_v38  ;;  %v11225_v40 = vpack.c.bf16 %v6313_v63, %v6310_v50  ;;  %v6316_v38 = vld [vmem:[%s15567_s8 + $0x158] sm:$0xff]  ;;  %v6305_v50 = vld [vmem:[%s15567_s8 + $0x100] sm:$0xff]  ;;  %vm6708_vm14 = vcmp.eq.s32.totalorder %v15203_v39, 0  ;;  %vm6888_vm15 = vcmp.eq.s32.totalorder %v15203_v39, 1  ;;  %vm7070_vm0 = vcmp.eq.s32.totalorder %v15203_v39, 2 }
 0xf40   :  { %vm7252_vm1 = vcmp.eq.s32.totalorder %v15203_v39, 3  ;;  %vm7434_vm2 = vcmp.eq.s32.totalorder %v15203_v39, 4  ;;  %vm7616_vm3 = vcmp.eq.s32.totalorder %v15203_v39, 5  ;;  %vm7798_vm4 = vcmp.eq.s32.totalorder %v15203_v39, 6 }
 0xf41   :  { %vm7980_vm5 = vcmp.eq.s32.totalorder %v15203_v39, 7 }
 0xf42   :  { %11212 = vmatpush1.bf16.msra.mxu0 %v11211_v12  ;;  %v11227_v12 = vpack.c.bf16 %v6312_v51, %v6309_v48  ;;  %v6311_v48 = vld [vmem:[%s15567_s8 + $0x130] sm:$0xff] }
0x100c   :  { %v6242_v21 = vpop.f32.mrb[70].mxu0 }
0x100d   :  { %v10174_v3 = vpop.f32.mrb[71].mxu0  ;;  %v6248_v60 = vmul.f32 %v15676_v9, %v6242_v21 }
0x100e   :  { %v6509_v3 = vld [vmem:[%s15568_s10 + $0xe0] sm:$0xff] }
0x100f   :  { %6249 = vadd.xlane.f32.xlu0 %v6248_v60  ;;  %v6505_v60 = vld [vmem:[%s15568_s10 + $0xc0] sm:$0xff]  ;;  %v14916_v43 = vpack.c.bf16 %v6509_v3, %v6506_v14 }
0x1010   :  { %v14928_v17 = vpack.c.bf16 %v6508_v19, %v6505_v60  ;;  %v6284_v60 = vld [vmem:[%s15567_s8 + $0x58] sm:$0xff] }
0x1011   :  { %11274 = vmatprep.subr.bf16.mxu1 %v14916_v43 }
0x1012   :  { %11276 = vmatpush1.bf16.msra.mxu1 %v14928_v17 }
0x1013   :  { %11278 = vmatprep.subr.bf16.mxu1 %v14940_v10 }
0x1016   :  { %11280 = vmatpush1.bf16.msra.mxu1 %v14967_v46 }
0x1017   :  { %11282 = vmatprep.subr.bf16.mxu1 %v14976_v45 }
0x101a   :  { %11284 = vmatpush1.bf16.msra.mxu1 %v14997_v8 }
0x109c   :  { %v6250_v24 = vpop.xlane.xlu0 %6249 }
0x109d   :  { %v6251_v36 = vmul.f32 0.03125, %v6250_v24  ;;  %v6524_v24 = vld [vmem:[%s15568_s10 + $0x158] sm:$0xff] }
0x109f   :  { %v6252_v31 = vsub.f32 %v6242_v21, %v6251_v36  ;;  %v11219_v21 = vpack.c.bf16 %v6300_v28, %v6297_v7  ;;  %v6527_v36 = vld [vmem:[%s15568_s10 + $0x170] sm:$0xff]  ;;  %v6278_v28 = vld [vmem:[%s15567_s8 + $0x28] sm:$0xff] }
0x10a0   :  { %v6275_v7 = vld [vmem:[%s15567_s8 + $0x10] sm:$0xff] }
0x10a1   :  { %v14850_v29 = vmul.f32 %v15676_v9, %v6252_v31  ;;  %v6295_v9 = vld [vmem:[%s15567_s8 + $0xb0] sm:$0xff]  ;;  %v11229_v31 = vpack.c.bf16 %v6319_v42, %v6316_v38  ;;  %v11255_v38 = vpack.c.bf16 %v6320_v44, %v6317_v59 }
0x10a2   :  { %v11213_v41 = vpack.c.bf16 %v6295_v9, %v6292_v56  ;;  %v15000_v56 = vpack.c.bf16 %v6527_v36, %v6524_v24  ;;  %v6523_v9 = vld [vmem:[%s15568_s10 + $0x150] sm:$0xff]  ;;  %v6492_v24 = vld [vmem:[%s15568_s10 + $0x58] sm:$0xff] }
0x10a3   :  { %v6254_v54 = vmul.f32 %v14850_v29, %v14850_v29  ;;  %v6483_v42 = vld [vmem:[%s15568_s10 + $0x10] sm:$0xff] }
0x10a4   :  { %11214 = vmatprep.subr.bf16.mxu0 %v11213_v41  ;;  %v15009_v41 = vpack.c.bf16 %v6526_v37, %v6523_v9  ;;  %11286 = vmatprep.subr.bf16.mxu1 %v15000_v56  ;;  %v15106_v47 = vpack.c.bf16 %v6486_v20, %v6483_v42  ;;  %v6501_v9 = vld [vmem:[%s15568_s10 + $0xa0] sm:$0xff]  ;;  %v6504_v37 = vld [vmem:[%s15568_s10 + $0xb8] sm:$0xff] }
0x10a5   :  { %6255 = vadd.xlane.f32.xlu1 %v6254_v54  ;;  %11216 = vmatpush1.bf16.msra.mxu0 %v11215_v33  ;;  %v6315_v54 = vld [vmem:[%s15567_s8 + $0x150] sm:$0xff] }
0x10a6   :  { %11218 = vmatprep.subr.bf16.mxu0 %v11217_v61  ;;  %v11231_v11 = vpack.c.bf16 %v6318_v52, %v6315_v54  ;;  %11288 = vmatpush1.bf16.msra.mxu1 %v15009_v41  ;;  %v6498_v54 = vld [vmem:[%s15568_s10 + $0x88] sm:$0xff] }
0x10a7   :  { %11314 = vmatprep.subr.bf16.mxu1 %v14786_v2 }
0x10a9   :  { %11220 = vmatpush1.bf16.msra.mxu0 %v11219_v21  ;;  %6611 = vmatmul.mubr.f32.vlgmr.msra.gmra.mrb[62].mxu1 %v13756_v53  ;;  %v11234_v21 = vpack.c.bf16 %v6278_v28, %v6275_v7  ;;  %v6525_v28 = vld [vmem:[%s15568_s10 + $0x160] sm:$0xff] }
0x10aa   :  { %11222 = vmatprep.subr.bf16.mxu0 %v11221_v34  ;;  %11316 = vmatpush1.bf16.msra.mxu1 %v14797_v62  ;;  %v6293_v34 = vld [vmem:[%s15567_s8 + $0xa0] sm:$0xff] }
0x10ab   :  { %6778 = vmatprep.mubr.f32.mxu1 %v13756_v53  ;;  %11318 = vmatprep.subr.bf16.mxu1 %v14819_v32  ;;  %v11243_v30 = vpack.c.bf16 %v6296_v1, %v6293_v34  ;;  %v6321_v34 = vld [vmem:[%s15570_s9] sm:$0x7] }
0x10ac   :  { %v6529_v1 = vld [vmem:[%s15571_s11] sm:$0x7] }
0x10ad   :  { %11224 = vmatpush1.bf16.msra.mxu0 %v11223_v16  ;;  %v6308_v16 = vld [vmem:[%s15567_s8 + $0x118] sm:$0xff] }
0x10ae   :  { %11226 = vmatprep.subr.bf16.mxu0 %v11225_v40  ;;  %11320 = vmatpush1.bf16.msra.mxu1 %v14830_v57  ;;  %v11249_v63 = vpack.c.bf16 %v6308_v16, %v6305_v50  ;;  %v6314_v40 = vld [vmem:[%s15567_s8 + $0x148] sm:$0xff]  ;;  %v15222_v50 = vsub.s32 1, %v15203_v39 }
0x10af   :  { %11322 = vmatprep.subr.bf16.mxu1 %v14845_v58  ;;  %v11252_v51 = vpack.c.bf16 %v6314_v40, %v6311_v48 }
0x10b0   :  { %v6330_v40 = vrot.slane %v6321_v34, %v15222_v50 }
0x10b1   :  { %11228 = vmatpush1.bf16.msra.mxu0 %v11227_v12  ;;  %v6489_v12 = vld [vmem:[%s15568_s10 + $0x40] sm:$0xff] }
0x10b2   :  { %11230 = vmatprep.subr.bf16.mxu0 %v11229_v31  ;;  %11324 = vmatpush1.bf16.msra.mxu1 %v14863_v27  ;;  %v15116_v36 = vpack.c.bf16 %v6492_v24, %v6489_v12  ;;  %v6495_v31 = vld [vmem:[%s15568_s10 + $0x70] sm:$0xff] }
0x10b3   :  { %11326 = vmatprep.subr.bf16.mxu1 %v14884_v6  ;;  %v15128_v52 = vpack.c.bf16 %v6498_v54, %v6495_v31  ;;  %v15234_v31 = vsub.s32 2, %v15203_v39 }
0x10b5   :  { %11232 = vmatpush1.bf16.msra.mxu0 %v11231_v11  ;;  %v15138_v11 = vpack.c.bf16 %v6504_v37, %v6501_v9  ;;  %v15237_v9 = vrot.slane %v6529_v1, %v15234_v31 }
0x10b6   :  { %11233 = vmatprep.subr.bf16.mxu0 %v12238_v15  ;;  %11328 = vmatpush1.bf16.msra.mxu1 %v14895_v5 }
0x10b7   :  { %11330 = vmatprep.subr.bf16.mxu1 %v14916_v43 }
0x10ba   :  { %11332 = vmatpush1.bf16.msra.mxu1 %v14928_v17 }
0x10bb   :  { %11334 = vmatprep.subr.bf16.mxu1 %v14940_v10 }
0x10be   :  { %11336 = vmatpush1.bf16.msra.mxu1 %v14967_v46 }
0x10bf   :  { %11338 = vmatprep.subr.bf16.mxu1 %v14976_v45 }
0x10c2   :  { %11340 = vmatpush1.bf16.msra.mxu1 %v14997_v8 }
0x10c3   :  { %11342 = vmatprep.subr.bf16.mxu1 %v15000_v56 }
0x10c6   :  { %11344 = vmatpush1.bf16.msra.mxu1 %v15009_v41 }
0x10c7   :  { %11370 = vmatprep.subr.bf16.mxu1 %v14786_v2 }
0x1132   :  { %v6256_v33 = vpop.xlane.xlu1 %6255 }
0x1133   :  { %v6257_v55 = vmul.f32 0.032258064, %v6256_v33  ;;  %v6507_v33 = vld [vmem:[%s15568_s10 + $0xd0] sm:$0xff] }
0x1135   :  { %v6258_v35 = vadd.f32 1e-05, %v6257_v55  ;;  %v6510_v55 = vld [vmem:[%s15568_s10 + $0xe8] sm:$0xff] }
0x1137   :  { %12151 = vrsqrt.f32 %v6258_v35  ;;  %v15148_v35 = vpack.c.bf16 %v6510_v55, %v6507_v33  ;;  %v6334_v33 = vrot.slane %v6321_v34, %v15234_v31 }
0x1141   :  { %v12152_v26 = vpop.eup %12151 }
0x1142   :  { %v6260_v22 = vmul.f32 %v12152_v26, %v14850_v29  ;;  %v6281_v29 = vld [vmem:[%s15567_s8 + $0x40] sm:$0xff] }
0x1143   :  { %v11237_v19 = vpack.c.bf16 %v6284_v60, %v6281_v29  ;;  %v6513_v26 = vld [vmem:[%s15568_s10 + $0x100] sm:$0xff] }
0x1144   :  { %v6265_v61 = vmul.f32 %v8061_v4, %v6260_v22  ;;  %v6516_v4 = vld [vmem:[%s15568_s10 + $0x118] sm:$0xff] }
0x1145   :  { %v15158_v22 = vpack.c.bf16 %v6516_v4, %v6513_v26 }
0x1146   :  { %v6270_v14 = vadd.f32 %v8062_v0, %v6265_v61  ;;  %v6519_v0 = vld [vmem:[%s15568_s10 + $0x130] sm:$0xff]  ;;  %v6522_v61 = vld [vmem:[%s15568_s10 + $0x148] sm:$0xff] }
0x1147   :  { %v15168_v7 = vpack.c.bf16 %v6522_v61, %v6519_v0 }
0x1148   :  { %v6271_v3 = vmax.f32 %v6270_v14, 0.0  ;;  %v6528_v14 = vld [vmem:[%s15568_s10 + $0x178] sm:$0xff] }
0x114a   :  { %6272 = vst [vmem:[%s15569_s12] sm:$0xff] %v6271_v3  ;;  %6403 = vmatmul.mubr.f32.vlgmr.msra.gmra.mrb[72].mxu0 %v6271_v3 }
0x114b   :  { %11235 = vmatpush3.bf16.msra.mxu0 %v11234_v21  ;;  %10207 = vmatprep.mubr.msk.f32.mxu0 %vm12239_vm12, %v13756_v53  ;;  %v15178_v21 = vpack.c.bf16 %v6528_v14, %v6525_v28 }
0x114c   :  { %11236 = vmatprep.subr.bf16.mxu0 %v12238_v15 }
0x114f   :  { %11238 = vmatpush3.bf16.msra.mxu0 %v11237_v19 }
0x1150   :  { %11239 = vmatprep.subr.bf16.mxu0 %v12238_v15 }
0x1153   :  { %11241 = vmatpush3.bf16.msra.mxu0 %v11240_v18  ;;  %v15206_v18 = vsub.s32 0, %v15203_v39 }
0x1154   :  { %11242 = vmatprep.subr.bf16.mxu0 %v12238_v15 }
0x1155   :  { %v15216_v13 = vrot.slane %v6529_v1, %v15206_v18 }
0x1157   :  { %11244 = vmatpush3.bf16.msra.mxu0 %v11243_v30  ;;  %v6326_v30 = vrot.slane %v6321_v34, %v15206_v18 }
0x1158   :  { %11245 = vmatprep.subr.bf16.mxu0 %v12238_v15 }
0x115b   :  { %11247 = vmatpush3.bf16.msra.mxu0 %v11246_v25 }
0x115c   :  { %11248 = vmatprep.subr.bf16.mxu0 %v12238_v15 }
0x115f   :  { %11250 = vmatpush3.bf16.msra.mxu0 %v11249_v63 }
0x1160   :  { %11251 = vmatprep.subr.bf16.mxu0 %v12238_v15 }
0x1163   :  { %11253 = vmatpush3.bf16.msra.mxu0 %v11252_v51  ;;  %v15227_v51 = vrot.slane %v6529_v1, %v15222_v50 }
0x1164   :  { %11254 = vmatprep.subr.bf16.mxu0 %v12238_v15 }
0x1167   :  { %11256 = vmatpush3.bf16.msra.mxu0 %v11255_v38 }
0x1168   :  { %11289 = vmatprep.subr.bf16.mxu0 %v12238_v15 }
0x116a   :  { %10208 = vmatmul.mubr.f32.vlgmr.msra.gmra.mrb[74].mxu0 %v6271_v3 }
0x116b   :  { %11291 = vmatpush3.bf16.msra.mxu0 %v15106_v47  ;;  %10242 = vmatprep.mubr.msk.f32.mxu0 %vm12239_vm12, %v13756_v53 }
0x116c   :  { %11292 = vmatprep.subr.bf16.mxu0 %v12238_v15 }
0x116f   :  { %11294 = vmatpush3.bf16.msra.mxu0 %v15116_v36 }
0x1170   :  { %11295 = vmatprep.subr.bf16.mxu0 %v12238_v15 }
0x1173   :  { %11297 = vmatpush3.bf16.msra.mxu0 %v15128_v52 }
0x1174   :  { %11298 = vmatprep.subr.bf16.mxu0 %v12238_v15 }
0x1177   :  { %11300 = vmatpush3.bf16.msra.mxu0 %v15138_v11 }
0x1178   :  { %11301 = vmatprep.subr.bf16.mxu0 %v12238_v15 }
0x117b   :  { %11303 = vmatpush3.bf16.msra.mxu0 %v15148_v35 }
0x117c   :  { %11304 = vmatprep.subr.bf16.mxu0 %v12238_v15  ;;  %v6612_v3 = vpop.f32.mrb[62].mxu1 }
0x117d   :  { %v6614_v29 = vpop.f32.mrb[63].mxu1  ;;  %v6613_v25 = vadd.f32 %v6612_v3, %v15216_v13 }
0x117e   :  { %v6615_v38 = vadd.f32 %v6614_v29, %v15227_v51 }
0x117f   :  { %11306 = vmatpush3.bf16.msra.mxu0 %v15158_v22 }
0x1180   :  { %11307 = vmatprep.subr.bf16.mxu0 %v12238_v15 }
0x1183   :  { %11309 = vmatpush3.bf16.msra.mxu0 %v15168_v7 }
0x1184   :  { %11310 = vmatprep.subr.bf16.mxu0 %v12238_v15 }
0x1187   :  { %11312 = vmatpush3.bf16.msra.mxu0 %v15178_v21 }
0x1188   :  { %11345 = vmatprep.subr.bf16.mxu0 %v12238_v15 }
0x118a   :  { %10243 = vmatmul.mubr.f32.vlgmr.msra.gmra.mrb[76].mxu0 %v13756_v53 }
0x118b   :  { %11347 = vmatpush3.bf16.msra.mxu0 %v15106_v47  ;;  %10277 = vmatprep.mubr.msk.f32.mxu0 %vm12239_vm12, %v13756_v53 }
0x118c   :  { %11348 = vmatprep.subr.bf16.mxu0 %v12238_v15 }
0x118f   :  { %11350 = vmatpush3.bf16.msra.mxu0 %v15116_v36 }
0x1190   :  { %11351 = vmatprep.subr.bf16.mxu0 %v12238_v15 }
0x1193   :  { %11353 = vmatpush3.bf16.msra.mxu0 %v15128_v52 }
0x1194   :  { %11354 = vmatprep.subr.bf16.mxu0 %v12238_v15 }
0x1197   :  { %11356 = vmatpush3.bf16.msra.mxu0 %v15138_v11 }
0x1198   :  { %11357 = vmatprep.subr.bf16.mxu0 %v12238_v15 }
0x119b   :  { %11359 = vmatpush3.bf16.msra.mxu0 %v15148_v35 }
0x119c   :  { %11360 = vmatprep.subr.bf16.mxu0 %v12238_v15 }
0x119f   :  { %11362 = vmatpush3.bf16.msra.mxu0 %v15158_v22 }
0x11a0   :  { %11363 = vmatprep.subr.bf16.mxu0 %v12238_v15 }
0x11a3   :  { %11365 = vmatpush3.bf16.msra.mxu0 %v15168_v7 }
0x11a4   :  { %11366 = vmatprep.subr.bf16.mxu0 %v12238_v15 }
0x11a7   :  { %11368 = vmatpush3.bf16.msra.mxu0 %v15178_v21 }
0x11a8   :  { %11401 = vmatprep.subr.bf16.mxu0 %v12238_v15 }
0x121d   :  { %v6404_v60 = vpop.f32.mrb[72].mxu0 }
0x121e   :  { %v6406_v19 = vpop.f32.mrb[73].mxu0  ;;  %v15218_v49 = vadd.f32 %v6404_v60, %v6326_v30 }
0x121f   :  { %v15229_v44 = vadd.f32 %v6406_v19, %v6330_v40 }
0x1220   :  { %v6687_v16 = vadd.f32 %v6613_v25, %v15218_v49 }
0x1221   :  { %v6694_v42 = vadd.f32 %v6615_v38, %v15229_v44 }
0x1222   :  { %v8063_v59 = vmul.f32 -1.442695, %v6687_v16 }
0x1223   :  { %v8064_v20 = vmul.f32 -1.442695, %v6694_v42 }
0x1224   :  { %12153 = vpow2.f32 %v8063_v59 }
0x1225   :  { %12155 = vpow2.f32 %v8064_v20 }
0x122e   :  { %v12154_v12 = vpop.eup %12153 }
0x122f   :  { %v6691_v24 = vadd.f32 1.0, %v12154_v12  ;;  %v12156_v54 = vpop.eup %12155 }
0x1230   :  { %v6698_v37 = vadd.f32 1.0, %v12156_v54 }
0x1231   :  { %12157 = vrcp.f32 %v6691_v24 }
0x1232   :  { %12159 = vrcp.f32 %v6698_v37 }
0x123b   :  { %v12158_v0 = vpop.eup %12157 }
0x123c   :  { %v12160_v3 = vpop.eup %12159 }
0x123d   :  { %v6475_v63 = vpop.f32.mrb[74].mxu0  ;;  %v6704_v29 = vsub.f32 1.0, %v12160_v3  ;;  %v6706_v23 = vmul.f32 0.0, %v12160_v3 }
0x123e   :  { %v10209_v48 = vpop.f32.mrb[75].mxu0  ;;  %v15241_v61 = vadd.f32 %v6475_v63, %v6334_v33 }
0x125d   :  { %v6683_v55 = vpop.f32.mrb[76].mxu0 }
0x125e   :  { %v6684_v26 = vadd.f32 %v6683_v55, %v15237_v9  ;;  %v10244_v4 = vpop.f32.mrb[77].mxu0 }
0x1260   :  { %v6701_v28 = vmul.f32 %v12158_v0, %v6684_v26 }
0x1262   :  { %v6702_v14 = vadd.f32 %v6701_v28, %v15241_v61 }
0x1264   :  { %12161 = vtanh.f32 %v6702_v14 }
0x126e   :  { %v12162_v60 = vpop.eup %12161 }
0x126f   :  { %v6705_v19 = vmul.f32 %v12162_v60, %v6704_v29 }
0x1271   :  { %v15244_v1 = vadd.f32 %v6706_v23, %v6705_v19 }
0x1273   :  { %6779 = vmatmul.mubr.f32.vlgmr.msra.gmra.mrb[64].mxu1 %v15244_v1  ;;  %10278 = vmatmul.mubr.f32.vlgmr.msra.gmra.mrb[78].mxu0 %v15244_v1  ;;  %v6884_v0 = vrot.slane %v15244_v1, 7 }
0x1274   :  { %11372 = vmatpush1.bf16.msra.mxu1 %v14797_v62  ;;  %11403 = vmatpush3.bf16.msra.mxu0 %v15106_v47 }
0x1275   :  { %11374 = vmatprep.subr.bf16.mxu1 %v14819_v32  ;;  %11404 = vmatprep.subr.bf16.mxu0 %v12238_v15 }
0x1276   :  { %6961 = vmatprep.mubr.f32.mxu1 %v13756_v53  ;;  %10312 = vmatprep.mubr.msk.f32.mxu0 %vm12239_vm12, %v13756_v53 }
0x1278   :  { %11376 = vmatpush1.bf16.msra.mxu1 %v14830_v57  ;;  %11406 = vmatpush3.bf16.msra.mxu0 %v15116_v36 }
0x1279   :  { %11378 = vmatprep.subr.bf16.mxu1 %v14845_v58  ;;  %11407 = vmatprep.subr.bf16.mxu0 %v12238_v15 }
0x127c   :  { %11380 = vmatpush1.bf16.msra.mxu1 %v14863_v27  ;;  %11409 = vmatpush3.bf16.msra.mxu0 %v15128_v52 }
0x127d   :  { %11382 = vmatprep.subr.bf16.mxu1 %v14884_v6  ;;  %11410 = vmatprep.subr.bf16.mxu0 %v12238_v15 }
0x1280   :  { %11384 = vmatpush1.bf16.msra.mxu1 %v14895_v5  ;;  %11412 = vmatpush3.bf16.msra.mxu0 %v15138_v11 }
0x1281   :  { %11386 = vmatprep.subr.bf16.mxu1 %v14916_v43  ;;  %11413 = vmatprep.subr.bf16.mxu0 %v12238_v15 }
0x1284   :  { %11388 = vmatpush1.bf16.msra.mxu1 %v14928_v17  ;;  %11415 = vmatpush3.bf16.msra.mxu0 %v15148_v35 }
0x1285   :  { %11390 = vmatprep.subr.bf16.mxu1 %v14940_v10  ;;  %11416 = vmatprep.subr.bf16.mxu0 %v12238_v15 }
0x1288   :  { %11392 = vmatpush1.bf16.msra.mxu1 %v14967_v46  ;;  %11418 = vmatpush3.bf16.msra.mxu0 %v15158_v22 }
0x1289   :  { %11394 = vmatprep.subr.bf16.mxu1 %v14976_v45  ;;  %11419 = vmatprep.subr.bf16.mxu0 %v12238_v15 }
0x128c   :  { %11396 = vmatpush1.bf16.msra.mxu1 %v14997_v8  ;;  %11421 = vmatpush3.bf16.msra.mxu0 %v15168_v7 }
0x128d   :  { %11398 = vmatprep.subr.bf16.mxu1 %v15000_v56  ;;  %11422 = vmatprep.subr.bf16.mxu0 %v12238_v15 }
0x1290   :  { %11400 = vmatpush1.bf16.msra.mxu1 %v15009_v41  ;;  %11424 = vmatpush3.bf16.msra.mxu0 %v15178_v21 }
0x1291   :  { %11426 = vmatprep.subr.bf16.mxu1 %v14786_v2  ;;  %11457 = vmatprep.subr.bf16.mxu0 %v12238_v15 }
0x1346   :  { %v6780_v34 = vpop.f32.mrb[64].mxu1  ;;  %v6851_v30 = vpop.f32.mrb[78].mxu0 }
0x1347   :  { %v6781_v25 = vadd.f32 %v6780_v34, %v15216_v13  ;;  %v6782_v16 = vpop.f32.mrb[65].mxu1  ;;  %v10279_v63 = vpop.f32.mrb[79].mxu0  ;;  %v6852_v55 = vadd.f32 %v6851_v30, %v15237_v9  ;;  %v6712_v34 = vrot.slane %v15244_v1, %v15206_v18 }
0x1348   :  { %v6783_v48 = vadd.f32 %v6782_v16, %v15227_v51 }
0x1349   :  { %v6856_v40 = vrot.slane %v6781_v25, 7  ;;  %v6876_v26 = vrot.slane %v6852_v55, 7  ;;  %v6713_v63 = vsel %vm6708_vm14, %v6712_v34, 0.0 }
0x134a   :  { %v6866_v59 = vrot.slane %v6783_v48, 7 }
0x134b   :  { %v6858_v38 = vadd.f32 %v6856_v40, %v15218_v49 }
0x134c   :  { %v6868_v42 = vadd.f32 %v6866_v59, %v15229_v44 }
0x134d   :  { %v8065_v20 = vmul.f32 -1.442695, %v6858_v38 }
0x134e   :  { %v8066_v12 = vmul.f32 -1.442695, %v6868_v42 }
0x134f   :  { %12163 = vpow2.f32 %v8065_v20 }
0x1350   :  { %12165 = vpow2.f32 %v8066_v12 }
0x1359   :  { %v12164_v24 = vpop.eup %12163 }
0x135a   :  { %v12166_v54 = vpop.eup %12165  ;;  %v6862_v37 = vadd.f32 1.0, %v12164_v24 }
0x135b   :  { %v6872_v33 = vadd.f32 1.0, %v12166_v54 }
0x135c   :  { %12167 = vrcp.f32 %v6862_v37 }
0x135d   :  { %12169 = vrcp.f32 %v6872_v33 }
0x1366   :  { %v12168_v4 = vpop.eup %12167 }
0x1367   :  { %v12170_v28 = vpop.eup %12169  ;;  %v6878_v14 = vmul.f32 %v12168_v4, %v6876_v26 }
0x1368   :  { %v6886_v3 = vmul.f32 %v12170_v28, %v6884_v0  ;;  %v6881_v60 = vsub.f32 1.0, %v12170_v28 }
0x1369   :  { %v6879_v29 = vadd.f32 %v6878_v14, %v15241_v61 }
0x136b   :  { %12171 = vtanh.f32 %v6879_v29 }
0x1375   :  { %v12172_v19 = vpop.eup %12171 }
0x1376   :  { %v6882_v23 = vmul.f32 %v12172_v19, %v6881_v60 }
0x1378   :  { %v15293_v25 = vadd.f32 %v6886_v3, %v6882_v23 }
0x137a   :  { %v6892_v30 = vrot.slane %v15293_v25, %v15222_v50  ;;  %v6895_v16 = vrot.slane %v15293_v25, 1  ;;  %v7066_v3 = vrot.slane %v15293_v25, 7 }
0x137c   :  { %v15299_v48 = vsel %vm6888_vm15, %v6892_v30, %v6713_v63  ;;  %6962 = vmatmul.mubr.f32.vlgmr.msra.gmra.mrb[66].mxu1 %v6895_v16  ;;  %10313 = vmatmul.mubr.f32.vlgmr.msra.gmra.mrb[80].mxu0 %v6895_v16 }
0x137d   :  { %11428 = vmatpush1.bf16.msra.mxu1 %v14797_v62  ;;  %11459 = vmatpush3.bf16.msra.mxu0 %v15106_v47 }
0x137e   :  { %11430 = vmatprep.subr.bf16.mxu1 %v14819_v32  ;;  %11460 = vmatprep.subr.bf16.mxu0 %v12238_v15 }
0x137f   :  { %7143 = vmatprep.mubr.f32.mxu1 %v13756_v53  ;;  %10347 = vmatprep.mubr.msk.f32.mxu0 %vm12239_vm12, %v13756_v53 }
0x1381   :  { %11432 = vmatpush1.bf16.msra.mxu1 %v14830_v57  ;;  %11462 = vmatpush3.bf16.msra.mxu0 %v15116_v36 }
0x1382   :  { %11434 = vmatprep.subr.bf16.mxu1 %v14845_v58  ;;  %11463 = vmatprep.subr.bf16.mxu0 %v12238_v15 }
0x1385   :  { %11436 = vmatpush1.bf16.msra.mxu1 %v14863_v27  ;;  %11465 = vmatpush3.bf16.msra.mxu0 %v15128_v52 }
0x1386   :  { %11438 = vmatprep.subr.bf16.mxu1 %v14884_v6  ;;  %11466 = vmatprep.subr.bf16.mxu0 %v12238_v15 }
0x1389   :  { %11440 = vmatpush1.bf16.msra.mxu1 %v14895_v5  ;;  %11468 = vmatpush3.bf16.msra.mxu0 %v15138_v11 }
0x138a   :  { %11442 = vmatprep.subr.bf16.mxu1 %v14916_v43  ;;  %11469 = vmatprep.subr.bf16.mxu0 %v12238_v15 }
0x138d   :  { %11444 = vmatpush1.bf16.msra.mxu1 %v14928_v17  ;;  %11471 = vmatpush3.bf16.msra.mxu0 %v15148_v35 }
0x138e   :  { %11446 = vmatprep.subr.bf16.mxu1 %v14940_v10  ;;  %11472 = vmatprep.subr.bf16.mxu0 %v12238_v15 }
0x1391   :  { %11448 = vmatpush1.bf16.msra.mxu1 %v14967_v46  ;;  %11474 = vmatpush3.bf16.msra.mxu0 %v15158_v22 }
0x1392   :  { %11450 = vmatprep.subr.bf16.mxu1 %v14976_v45  ;;  %11475 = vmatprep.subr.bf16.mxu0 %v12238_v15 }
0x1395   :  { %11452 = vmatpush1.bf16.msra.mxu1 %v14997_v8  ;;  %11477 = vmatpush3.bf16.msra.mxu0 %v15168_v7 }
0x1396   :  { %11454 = vmatprep.subr.bf16.mxu1 %v15000_v56  ;;  %11478 = vmatprep.subr.bf16.mxu0 %v12238_v15 }
0x1399   :  { %11456 = vmatpush1.bf16.msra.mxu1 %v15009_v41  ;;  %11480 = vmatpush3.bf16.msra.mxu0 %v15178_v21 }
0x139a   :  { %11482 = vmatprep.subr.bf16.mxu1 %v14786_v2  ;;  %11513 = vmatprep.subr.bf16.mxu0 %v12238_v15 }
0x144f   :  { %v6963_v18 = vpop.f32.mrb[66].mxu1  ;;  %v7034_v50 = vpop.f32.mrb[80].mxu0 }
0x1450   :  { %v6964_v1 = vadd.f32 %v6963_v18, %v15216_v13  ;;  %v6965_v40 = vpop.f32.mrb[67].mxu1  ;;  %v10314_v59 = vpop.f32.mrb[81].mxu0  ;;  %v7035_v0 = vadd.f32 %v7034_v50, %v15237_v9 }
0x1451   :  { %v6966_v38 = vadd.f32 %v6965_v40, %v15227_v51 }
0x1452   :  { %v7039_v42 = vrot.slane %v6964_v1, 6  ;;  %v7059_v28 = vrot.slane %v7035_v0, 6 }
0x1453   :  { %v7049_v20 = vrot.slane %v6966_v38, 6 }
0x1454   :  { %v7041_v12 = vadd.f32 %v7039_v42, %v15218_v49 }
0x1455   :  { %v7051_v24 = vadd.f32 %v7049_v20, %v15229_v44 }
0x1456   :  { %v8067_v54 = vmul.f32 -1.442695, %v7041_v12 }
0x1457   :  { %v8068_v37 = vmul.f32 -1.442695, %v7051_v24 }
0x1458   :  { %12173 = vpow2.f32 %v8067_v54 }
0x1459   :  { %12175 = vpow2.f32 %v8068_v37 }
0x1462   :  { %v12174_v33 = vpop.eup %12173 }
0x1463   :  { %v12176_v55 = vpop.eup %12175  ;;  %v7045_v26 = vadd.f32 1.0, %v12174_v33 }
0x1464   :  { %v7055_v4 = vadd.f32 1.0, %v12176_v55 }
0x1465   :  { %12177 = vrcp.f32 %v7045_v26 }
0x1466   :  { %12179 = vrcp.f32 %v7055_v4 }
0x146f   :  { %v12178_v14 = vpop.eup %12177 }
0x1470   :  { %v12180_v29 = vpop.eup %12179  ;;  %v7061_v60 = vmul.f32 %v12178_v14, %v7059_v28 }
0x1471   :  { %v7068_v19 = vmul.f32 %v12180_v29, %v7066_v3  ;;  %v7064_v34 = vsub.f32 1.0, %v12180_v29 }
0x1472   :  { %v7062_v23 = vadd.f32 %v7061_v60, %v15241_v61 }
0x1474   :  { %12181 = vtanh.f32 %v7062_v23 }
0x147e   :  { %v12182_v30 = vpop.eup %12181 }
0x147f   :  { %v7065_v16 = vmul.f32 %v12182_v30, %v7064_v34 }
0x1481   :  { %v15343_v63 = vadd.f32 %v7068_v19, %v7065_v16 }
0x1483   :  { %v7074_v18 = vrot.slane %v15343_v63, %v15234_v31  ;;  %v7077_v50 = vrot.slane %v15343_v63, 2  ;;  %v7248_v3 = vrot.slane %v15343_v63, 7 }
0x1485   :  { %v15350_v25 = vsel %vm7070_vm0, %v7074_v18, %v15299_v48  ;;  %7144 = vmatmul.mubr.f32.vlgmr.msra.gmra.mrb[68].mxu1 %v7077_v50  ;;  %10348 = vmatmul.mubr.f32.vlgmr.msra.gmra.mrb[82].mxu0 %v7077_v50  ;;  %v7255_v18 = vsub.s32 3, %v15203_v39 }
0x1486   :  { %11484 = vmatpush1.bf16.msra.mxu1 %v14797_v62  ;;  %11515 = vmatpush3.bf16.msra.mxu0 %v15106_v47 }
0x1487   :  { %11486 = vmatprep.subr.bf16.mxu1 %v14819_v32  ;;  %11516 = vmatprep.subr.bf16.mxu0 %v12238_v15 }
0x1488   :  { %7325 = vmatprep.mubr.f32.mxu1 %v13756_v53  ;;  %10382 = vmatprep.mubr.msk.f32.mxu0 %vm12239_vm12, %v13756_v53 }
0x148a   :  { %11488 = vmatpush1.bf16.msra.mxu1 %v14830_v57  ;;  %11518 = vmatpush3.bf16.msra.mxu0 %v15116_v36 }
0x148b   :  { %11490 = vmatprep.subr.bf16.mxu1 %v14845_v58  ;;  %11519 = vmatprep.subr.bf16.mxu0 %v12238_v15 }
0x148e   :  { %11492 = vmatpush1.bf16.msra.mxu1 %v14863_v27  ;;  %11521 = vmatpush3.bf16.msra.mxu0 %v15128_v52 }
0x148f   :  { %11494 = vmatprep.subr.bf16.mxu1 %v14884_v6  ;;  %11522 = vmatprep.subr.bf16.mxu0 %v12238_v15 }
0x1492   :  { %11496 = vmatpush1.bf16.msra.mxu1 %v14895_v5  ;;  %11524 = vmatpush3.bf16.msra.mxu0 %v15138_v11 }
0x1493   :  { %11498 = vmatprep.subr.bf16.mxu1 %v14916_v43  ;;  %11525 = vmatprep.subr.bf16.mxu0 %v12238_v15 }
0x1496   :  { %11500 = vmatpush1.bf16.msra.mxu1 %v14928_v17  ;;  %11527 = vmatpush3.bf16.msra.mxu0 %v15148_v35 }
0x1497   :  { %11502 = vmatprep.subr.bf16.mxu1 %v14940_v10  ;;  %11528 = vmatprep.subr.bf16.mxu0 %v12238_v15 }
0x149a   :  { %11504 = vmatpush1.bf16.msra.mxu1 %v14967_v46  ;;  %11530 = vmatpush3.bf16.msra.mxu0 %v15158_v22 }
0x149b   :  { %11506 = vmatprep.subr.bf16.mxu1 %v14976_v45  ;;  %11531 = vmatprep.subr.bf16.mxu0 %v12238_v15 }
0x149e   :  { %11508 = vmatpush1.bf16.msra.mxu1 %v14997_v8  ;;  %11533 = vmatpush3.bf16.msra.mxu0 %v15168_v7 }
0x149f   :  { %11510 = vmatprep.subr.bf16.mxu1 %v15000_v56  ;;  %11534 = vmatprep.subr.bf16.mxu0 %v12238_v15 }
0x14a2   :  { %11512 = vmatpush1.bf16.msra.mxu1 %v15009_v41  ;;  %11536 = vmatpush3.bf16.msra.mxu0 %v15178_v21 }
0x14a3   :  { %11538 = vmatprep.subr.bf16.mxu1 %v14786_v2  ;;  %11569 = vmatprep.subr.bf16.mxu0 %v12238_v15 }
0x1558   :  { %v7145_v31 = vpop.f32.mrb[68].mxu1  ;;  %v7216_v48 = vpop.f32.mrb[82].mxu0 }
0x1559   :  { %v7146_v1 = vadd.f32 %v7145_v31, %v15216_v13  ;;  %v7147_v40 = vpop.f32.mrb[69].mxu1  ;;  %v10349_v59 = vpop.f32.mrb[83].mxu0  ;;  %v7217_v0 = vadd.f32 %v7216_v48, %v15237_v9 }
0x155a   :  { %v7148_v38 = vadd.f32 %v7147_v40, %v15227_v51 }
0x155b   :  { %v7221_v42 = vrot.slane %v7146_v1, 5  ;;  %v7241_v28 = vrot.slane %v7217_v0, 5 }
0x155c   :  { %v7231_v20 = vrot.slane %v7148_v38, 5 }
0x155d   :  { %v7223_v12 = vadd.f32 %v7221_v42, %v15218_v49 }
0x155e   :  { %v7233_v24 = vadd.f32 %v7231_v20, %v15229_v44 }
0x155f   :  { %v8069_v54 = vmul.f32 -1.442695, %v7223_v12 }
0x1560   :  { %v8070_v37 = vmul.f32 -1.442695, %v7233_v24 }
0x1561   :  { %12183 = vpow2.f32 %v8069_v54 }
0x1562   :  { %12185 = vpow2.f32 %v8070_v37 }
0x156b   :  { %v12184_v33 = vpop.eup %12183 }
0x156c   :  { %v12186_v55 = vpop.eup %12185  ;;  %v7227_v26 = vadd.f32 1.0, %v12184_v33 }
0x156d   :  { %v7237_v4 = vadd.f32 1.0, %v12186_v55 }
0x156e   :  { %12187 = vrcp.f32 %v7227_v26 }
0x156f   :  { %12189 = vrcp.f32 %v7237_v4 }
0x1578   :  { %v12188_v14 = vpop.eup %12187 }
0x1579   :  { %v12190_v29 = vpop.eup %12189  ;;  %v7243_v60 = vmul.f32 %v12188_v14, %v7241_v28 }
0x157a   :  { %v7250_v19 = vmul.f32 %v12190_v29, %v7248_v3  ;;  %v7246_v34 = vsub.f32 1.0, %v12190_v29 }
0x157b   :  { %v7244_v23 = vadd.f32 %v7243_v60, %v15241_v61 }
0x157d   :  { %12191 = vtanh.f32 %v7244_v23 }
0x1587   :  { %v12192_v30 = vpop.eup %12191 }
0x1588   :  { %v7247_v16 = vmul.f32 %v12192_v30, %v7246_v34 }
0x158a   :  { %v15395_v50 = vadd.f32 %v7250_v19, %v7247_v16 }
0x158c   :  { %v7256_v31 = vrot.slane %v15395_v50, %v7255_v18  ;;  %v7259_v48 = vrot.slane %v15395_v50, 3  ;;  %v7430_v29 = vrot.slane %v15395_v50, 7 }
0x158e   :  { %v15401_v63 = vsel %vm7252_vm1, %v7256_v31, %v15350_v25  ;;  %7326 = vmatmul.mubr.f32.vlgmr.msra.gmra.mrb[70].mxu1 %v7259_v48  ;;  %10383 = vmatmul.mubr.f32.vlgmr.msra.gmra.mrb[84].mxu0 %v7259_v48  ;;  %v7437_v31 = vsub.s32 4, %v15203_v39 }
0x158f   :  { %11540 = vmatpush1.bf16.msra.mxu1 %v14797_v62  ;;  %11571 = vmatpush3.bf16.msra.mxu0 %v15106_v47 }
0x1590   :  { %11542 = vmatprep.subr.bf16.mxu1 %v14819_v32  ;;  %11572 = vmatprep.subr.bf16.mxu0 %v12238_v15 }
0x1591   :  { %7507 = vmatprep.mubr.f32.mxu1 %v13756_v53  ;;  %10417 = vmatprep.mubr.msk.f32.mxu0 %vm12239_vm12, %v13756_v53 }
0x1593   :  { %11544 = vmatpush1.bf16.msra.mxu1 %v14830_v57  ;;  %11574 = vmatpush3.bf16.msra.mxu0 %v15116_v36 }
0x1594   :  { %11546 = vmatprep.subr.bf16.mxu1 %v14845_v58  ;;  %11575 = vmatprep.subr.bf16.mxu0 %v12238_v15 }
0x1597   :  { %11548 = vmatpush1.bf16.msra.mxu1 %v14863_v27  ;;  %11577 = vmatpush3.bf16.msra.mxu0 %v15128_v52 }
0x1598   :  { %11550 = vmatprep.subr.bf16.mxu1 %v14884_v6  ;;  %11578 = vmatprep.subr.bf16.mxu0 %v12238_v15 }
0x159b   :  { %11552 = vmatpush1.bf16.msra.mxu1 %v14895_v5  ;;  %11580 = vmatpush3.bf16.msra.mxu0 %v15138_v11 }
0x159c   :  { %11554 = vmatprep.subr.bf16.mxu1 %v14916_v43  ;;  %11581 = vmatprep.subr.bf16.mxu0 %v12238_v15 }
0x159f   :  { %11556 = vmatpush1.bf16.msra.mxu1 %v14928_v17  ;;  %11583 = vmatpush3.bf16.msra.mxu0 %v15148_v35 }
0x15a0   :  { %11558 = vmatprep.subr.bf16.mxu1 %v14940_v10  ;;  %11584 = vmatprep.subr.bf16.mxu0 %v12238_v15 }
0x15a3   :  { %11560 = vmatpush1.bf16.msra.mxu1 %v14967_v46  ;;  %11586 = vmatpush3.bf16.msra.mxu0 %v15158_v22 }
0x15a4   :  { %11562 = vmatprep.subr.bf16.mxu1 %v14976_v45  ;;  %11587 = vmatprep.subr.bf16.mxu0 %v12238_v15 }
0x15a7   :  { %11564 = vmatpush1.bf16.msra.mxu1 %v14997_v8  ;;  %11589 = vmatpush3.bf16.msra.mxu0 %v15168_v7 }
0x15a8   :  { %11566 = vmatprep.subr.bf16.mxu1 %v15000_v56  ;;  %11590 = vmatprep.subr.bf16.mxu0 %v12238_v15 }
0x15ab   :  { %11568 = vmatpush1.bf16.msra.mxu1 %v15009_v41  ;;  %11592 = vmatpush3.bf16.msra.mxu0 %v15178_v21 }
0x15ac   :  { %11594 = vmatprep.subr.bf16.mxu1 %v14786_v2  ;;  %11625 = vmatprep.subr.bf16.mxu0 %v12238_v15 }
0x1661   :  { %v7327_v25 = vpop.f32.mrb[70].mxu1  ;;  %v7398_v1 = vpop.f32.mrb[84].mxu0 }
0x1662   :  { %v7328_v40 = vadd.f32 %v7327_v25, %v15216_v13  ;;  %v7329_v59 = vpop.f32.mrb[71].mxu1  ;;  %v10384_v38 = vpop.f32.mrb[85].mxu0  ;;  %v7399_v28 = vadd.f32 %v7398_v1, %v15237_v9 }
0x1663   :  { %v7330_v42 = vadd.f32 %v7329_v59, %v15227_v51 }
0x1664   :  { %v7403_v20 = vrot.slane %v7328_v40, 4  ;;  %v7423_v14 = vrot.slane %v7399_v28, 4 }
0x1665   :  { %v7413_v12 = vrot.slane %v7330_v42, 4 }
0x1666   :  { %v7405_v24 = vadd.f32 %v7403_v20, %v15218_v49 }
0x1667   :  { %v7415_v54 = vadd.f32 %v7413_v12, %v15229_v44 }
0x1668   :  { %v8071_v37 = vmul.f32 -1.442695, %v7405_v24 }
0x1669   :  { %v8072_v33 = vmul.f32 -1.442695, %v7415_v54 }
0x166a   :  { %12193 = vpow2.f32 %v8071_v37 }
0x166b   :  { %12195 = vpow2.f32 %v8072_v33 }
0x1674   :  { %v12194_v55 = vpop.eup %12193 }
0x1675   :  { %v12196_v26 = vpop.eup %12195  ;;  %v7409_v4 = vadd.f32 1.0, %v12194_v55 }
0x1676   :  { %v7419_v0 = vadd.f32 1.0, %v12196_v26 }
0x1677   :  { %12197 = vrcp.f32 %v7409_v4 }
0x1678   :  { %12199 = vrcp.f32 %v7419_v0 }
0x1681   :  { %v12198_v3 = vpop.eup %12197 }
0x1682   :  { %v12200_v60 = vpop.eup %12199  ;;  %v7425_v19 = vmul.f32 %v12198_v3, %v7423_v14 }
0x1683   :  { %v7432_v23 = vmul.f32 %v12200_v60, %v7430_v29  ;;  %v7428_v30 = vsub.f32 1.0, %v12200_v60 }
0x1684   :  { %v7426_v34 = vadd.f32 %v7425_v19, %v15241_v61 }
0x1686   :  { %12201 = vtanh.f32 %v7426_v34 }
0x1690   :  { %v12202_v16 = vpop.eup %12201 }
0x1691   :  { %v7429_v18 = vmul.f32 %v12202_v16, %v7428_v30 }
0x1693   :  { %v15446_v48 = vadd.f32 %v7432_v23, %v7429_v18 }
0x1695   :  { %v7438_v25 = vrot.slane %v15446_v48, %v7437_v31  ;;  %v7441_v1 = vrot.slane %v15446_v48, 4  ;;  %v7612_v29 = vrot.slane %v15446_v48, 7  ;;  %v7619_v31 = vsub.s32 5, %v15203_v39 }
0x1697   :  { %v15452_v50 = vsel %vm7434_vm2, %v7438_v25, %v15401_v63  ;;  %7508 = vmatmul.mubr.f32.vlgmr.msra.gmra.mrb[72].mxu1 %v7441_v1  ;;  %10418 = vmatmul.mubr.f32.vlgmr.msra.gmra.mrb[86].mxu0 %v7441_v1 }
0x1698   :  { %11596 = vmatpush1.bf16.msra.mxu1 %v14797_v62  ;;  %11627 = vmatpush3.bf16.msra.mxu0 %v15106_v47 }
0x1699   :  { %11598 = vmatprep.subr.bf16.mxu1 %v14819_v32  ;;  %11628 = vmatprep.subr.bf16.mxu0 %v12238_v15 }
0x169a   :  { %7689 = vmatprep.mubr.f32.mxu1 %v13756_v53  ;;  %10452 = vmatprep.mubr.msk.f32.mxu0 %vm12239_vm12, %v13756_v53 }
0x169c   :  { %11600 = vmatpush1.bf16.msra.mxu1 %v14830_v57  ;;  %11630 = vmatpush3.bf16.msra.mxu0 %v15116_v36 }
0x169d   :  { %11602 = vmatprep.subr.bf16.mxu1 %v14845_v58  ;;  %11631 = vmatprep.subr.bf16.mxu0 %v12238_v15 }
0x16a0   :  { %11604 = vmatpush1.bf16.msra.mxu1 %v14863_v27  ;;  %11633 = vmatpush3.bf16.msra.mxu0 %v15128_v52 }
0x16a1   :  { %11606 = vmatprep.subr.bf16.mxu1 %v14884_v6  ;;  %11634 = vmatprep.subr.bf16.mxu0 %v12238_v15 }
0x16a4   :  { %11608 = vmatpush1.bf16.msra.mxu1 %v14895_v5  ;;  %11636 = vmatpush3.bf16.msra.mxu0 %v15138_v11 }
0x16a5   :  { %11610 = vmatprep.subr.bf16.mxu1 %v14916_v43  ;;  %11637 = vmatprep.subr.bf16.mxu0 %v12238_v15 }
0x16a8   :  { %11612 = vmatpush1.bf16.msra.mxu1 %v14928_v17  ;;  %11639 = vmatpush3.bf16.msra.mxu0 %v15148_v35 }
0x16a9   :  { %11614 = vmatprep.subr.bf16.mxu1 %v14940_v10  ;;  %11640 = vmatprep.subr.bf16.mxu0 %v12238_v15 }
0x16ac   :  { %11616 = vmatpush1.bf16.msra.mxu1 %v14967_v46  ;;  %11642 = vmatpush3.bf16.msra.mxu0 %v15158_v22 }
0x16ad   :  { %11618 = vmatprep.subr.bf16.mxu1 %v14976_v45  ;;  %11643 = vmatprep.subr.bf16.mxu0 %v12238_v15 }
0x16b0   :  { %11620 = vmatpush1.bf16.msra.mxu1 %v14997_v8  ;;  %11645 = vmatpush3.bf16.msra.mxu0 %v15168_v7 }
0x16b1   :  { %11622 = vmatprep.subr.bf16.mxu1 %v15000_v56  ;;  %11646 = vmatprep.subr.bf16.mxu0 %v12238_v15 }
0x16b4   :  { %11624 = vmatpush1.bf16.msra.mxu1 %v15009_v41  ;;  %11648 = vmatpush3.bf16.msra.mxu0 %v15178_v21 }
0x16b5   :  { %11650 = vmatprep.subr.bf16.mxu1 %v14786_v2  ;;  %11681 = vmatprep.subr.bf16.mxu0 %v12238_v15 }
0x176a   :  { %v7509_v63 = vpop.f32.mrb[72].mxu1  ;;  %v7580_v40 = vpop.f32.mrb[86].mxu0 }
0x176b   :  { %v7510_v59 = vadd.f32 %v7509_v63, %v15216_v13  ;;  %v7511_v38 = vpop.f32.mrb[73].mxu1  ;;  %v10419_v42 = vpop.f32.mrb[87].mxu0  ;;  %v7581_v28 = vadd.f32 %v7580_v40, %v15237_v9 }
0x176c   :  { %v7512_v20 = vadd.f32 %v7511_v38, %v15227_v51 }
0x176d   :  { %v7585_v12 = vrot.slane %v7510_v59, 3  ;;  %v7605_v14 = vrot.slane %v7581_v28, 3  ;;  %v7801_v59 = vsub.s32 6, %v15203_v39 }
0x176e   :  { %v7595_v24 = vrot.slane %v7512_v20, 3 }
0x176f   :  { %v7587_v54 = vadd.f32 %v7585_v12, %v15218_v49 }
0x1770   :  { %v7597_v37 = vadd.f32 %v7595_v24, %v15229_v44 }
0x1771   :  { %v8073_v33 = vmul.f32 -1.442695, %v7587_v54 }
0x1772   :  { %v8074_v55 = vmul.f32 -1.442695, %v7597_v37 }
0x1773   :  { %12203 = vpow2.f32 %v8073_v33 }
0x1774   :  { %12205 = vpow2.f32 %v8074_v55 }
0x177d   :  { %v12204_v2 = vpop.eup %12203 }
0x177e   :  { %v12206_v26 = vpop.eup %12205  ;;  %v7591_v4 = vadd.f32 1.0, %v12204_v2 }
0x177f   :  { %v7601_v0 = vadd.f32 1.0, %v12206_v26 }
0x1780   :  { %12207 = vrcp.f32 %v7591_v4 }
0x1781   :  { %12209 = vrcp.f32 %v7601_v0 }
0x178a   :  { %v12208_v3 = vpop.eup %12207 }
0x178b   :  { %v12210_v60 = vpop.eup %12209  ;;  %v7607_v19 = vmul.f32 %v12208_v3, %v7605_v14 }
0x178c   :  { %v7614_v23 = vmul.f32 %v12210_v60, %v7612_v29  ;;  %v7610_v30 = vsub.f32 1.0, %v12210_v60 }
0x178d   :  { %v7608_v34 = vadd.f32 %v7607_v19, %v15241_v61 }
0x178f   :  { %12211 = vtanh.f32 %v7608_v34 }
0x1799   :  { %v12212_v16 = vpop.eup %12211 }
0x179a   :  { %v7611_v18 = vmul.f32 %v12212_v16, %v7610_v30 }
0x179c   :  { %v15497_v25 = vadd.f32 %v7614_v23, %v7611_v18 }
0x179e   :  { %v7620_v1 = vrot.slane %v15497_v25, %v7619_v31  ;;  %v7623_v63 = vrot.slane %v15497_v25, 5 }
0x17a0   :  { %v15503_v48 = vsel %vm7616_vm3, %v7620_v1, %v15452_v50  ;;  %7690 = vmatmul.mubr.f32.vlgmr.msra.gmra.mrb[74].mxu1 %v7623_v63  ;;  %10453 = vmatmul.mubr.f32.vlgmr.msra.gmra.mrb[88].mxu0 %v7623_v63  ;;  %v7983_v63 = vsub.s32 7, %v15203_v39 }
0x17a1   :  { %11652 = vmatpush1.bf16.msra.mxu1 %v14797_v62  ;;  %11683 = vmatpush3.bf16.msra.mxu0 %v15106_v47 }
0x17a2   :  { %11654 = vmatprep.subr.bf16.mxu1 %v14819_v32  ;;  %11684 = vmatprep.subr.bf16.mxu0 %v12238_v15 }
0x17a3   :  { %7871 = vmatprep.mubr.f32.mxu1 %v13756_v53  ;;  %10487 = vmatprep.mubr.msk.f32.mxu0 %vm12239_vm12, %v13756_v53 }
0x17a5   :  { %11656 = vmatpush1.bf16.msra.mxu1 %v14830_v57  ;;  %11686 = vmatpush3.bf16.msra.mxu0 %v15116_v36 }
0x17a6   :  { %11658 = vmatprep.subr.bf16.mxu1 %v14845_v58  ;;  %11687 = vmatprep.subr.bf16.mxu0 %v12238_v15 }
0x17a9   :  { %11660 = vmatpush1.bf16.msra.mxu1 %v14863_v27  ;;  %11689 = vmatpush3.bf16.msra.mxu0 %v15128_v52  ;;  %v7794_v52 = vrot.slane %v15497_v25, 7 }
0x17aa   :  { %11662 = vmatprep.subr.bf16.mxu1 %v14884_v6  ;;  %11690 = vmatprep.subr.bf16.mxu0 %v12238_v15 }
0x17ad   :  { %11664 = vmatpush1.bf16.msra.mxu1 %v14895_v5  ;;  %11692 = vmatpush3.bf16.msra.mxu0 %v15138_v11 }
0x17ae   :  { %11666 = vmatprep.subr.bf16.mxu1 %v14916_v43  ;;  %11693 = vmatprep.subr.bf16.mxu0 %v12238_v15 }
0x17b1   :  { %11668 = vmatpush1.bf16.msra.mxu1 %v14928_v17  ;;  %11695 = vmatpush3.bf16.msra.mxu0 %v15148_v35 }
0x17b2   :  { %11670 = vmatprep.subr.bf16.mxu1 %v14940_v10  ;;  %11696 = vmatprep.subr.bf16.mxu0 %v12238_v15 }
0x17b5   :  { %11672 = vmatpush1.bf16.msra.mxu1 %v14967_v46  ;;  %11698 = vmatpush3.bf16.msra.mxu0 %v15158_v22 }
0x17b6   :  { %11674 = vmatprep.subr.bf16.mxu1 %v14976_v45  ;;  %11699 = vmatprep.subr.bf16.mxu0 %v12238_v15 }
0x17b9   :  { %11676 = vmatpush1.bf16.msra.mxu1 %v14997_v8  ;;  %11701 = vmatpush3.bf16.msra.mxu0 %v15168_v7 }
0x17ba   :  { %11678 = vmatprep.subr.bf16.mxu1 %v15000_v56  ;;  %11702 = vmatprep.subr.bf16.mxu0 %v12238_v15 }
0x17bd   :  { %11680 = vmatpush1.bf16.msra.mxu1 %v15009_v41  ;;  %11704 = vmatpush3.bf16.msra.mxu0 %v15178_v21 }
0x1873   :  { %v7691_v53 = vpop.f32.mrb[74].mxu1  ;;  %v7762_v62 = vpop.f32.mrb[88].mxu0 }
0x1874   :  { %v7692_v32 = vadd.f32 %v7691_v53, %v15216_v13  ;;  %v7693_v57 = vpop.f32.mrb[75].mxu1  ;;  %v10454_v58 = vpop.f32.mrb[89].mxu0  ;;  %v7763_v41 = vadd.f32 %v7762_v62, %v15237_v9 }
0x1875   :  { %v7694_v27 = vadd.f32 %v7693_v57, %v15227_v51 }
0x1876   :  { %v7767_v6 = vrot.slane %v7692_v32, 2  ;;  %v7787_v47 = vrot.slane %v7763_v41, 2 }
0x1877   :  { %v7777_v5 = vrot.slane %v7694_v27, 2 }
0x1878   :  { %v7769_v43 = vadd.f32 %v7767_v6, %v15218_v49 }
0x1879   :  { %v7779_v17 = vadd.f32 %v7777_v5, %v15229_v44 }
0x187a   :  { %v8075_v10 = vmul.f32 -1.442695, %v7769_v43 }
0x187b   :  { %v8076_v15 = vmul.f32 -1.442695, %v7779_v17 }
0x187c   :  { %12213 = vpow2.f32 %v8075_v10 }
0x187d   :  { %12215 = vpow2.f32 %v8076_v15 }
0x1886   :  { %v12214_v46 = vpop.eup %12213 }
0x1887   :  { %v12216_v45 = vpop.eup %12215  ;;  %v7773_v8 = vadd.f32 1.0, %v12214_v46 }
0x1888   :  { %v7783_v56 = vadd.f32 1.0, %v12216_v45 }
0x1889   :  { %12217 = vrcp.f32 %v7773_v8 }
0x188a   :  { %12219 = vrcp.f32 %v7783_v56 }
0x1893   :  { %v12218_v36 = vpop.eup %12217 }
0x1894   :  { %v12220_v11 = vpop.eup %12219  ;;  %v7789_v35 = vmul.f32 %v12218_v36, %v7787_v47 }
0x1895   :  { %v7796_v22 = vmul.f32 %v12220_v11, %v7794_v52  ;;  %v7792_v21 = vsub.f32 1.0, %v12220_v11 }
0x1896   :  { %v7790_v7 = vadd.f32 %v7789_v35, %v15241_v61 }
0x1898   :  { %12221 = vtanh.f32 %v7790_v7 }
0x18a2   :  { %v12222_v50 = vpop.eup %12221 }
0x18a3   :  { %v7793_v40 = vmul.f32 %v12222_v50, %v7792_v21 }
0x18a5   :  { %v7797_v38 = vadd.f32 %v7796_v22, %v7793_v40 }
0x18a7   :  { %v7802_v42 = vrot.slane %v7797_v38, %v7801_v59  ;;  %v7805_v20 = vrot.slane %v7797_v38, 6  ;;  %v7976_v30 = vrot.slane %v7797_v38, 7 }
0x18a9   :  { %v7803_v12 = vsel %vm7798_vm4, %v7802_v42, %v15503_v48  ;;  %7872 = vmatmul.mubr.f32.vlgmr.msra.gmra.mrb[76].mxu1 %v7805_v20  ;;  %10488 = vmatmul.mubr.f32.vlgmr.msra.gmra.mrb[90].mxu0 %v7805_v20 }
0x197c   :  { %v7873_v24 = vpop.f32.mrb[76].mxu1  ;;  %v7944_v54 = vpop.f32.mrb[90].mxu0 }
0x197d   :  { %v7874_v37 = vadd.f32 %v7873_v24, %v15216_v13  ;;  %v7875_v33 = vpop.f32.mrb[77].mxu1  ;;  %v10489_v55 = vpop.f32.mrb[91].mxu0  ;;  %v7945_v13 = vadd.f32 %v7944_v54, %v15237_v9 }
0x197e   :  { %v7876_v2 = vadd.f32 %v7875_v33, %v15227_v51 }
0x197f   :  { %v7949_v26 = vrot.slane %v7874_v37, 1  ;;  %v7969_v34 = vrot.slane %v7945_v13, 1 }
0x1980   :  { %v7959_v4 = vrot.slane %v7876_v2, 1 }
0x1981   :  { %v7951_v0 = vadd.f32 %v7949_v26, %v15218_v49 }
0x1982   :  { %v7961_v28 = vadd.f32 %v7959_v4, %v15229_v44 }
0x1983   :  { %v8077_v14 = vmul.f32 -1.442695, %v7951_v0 }
0x1984   :  { %v8078_v3 = vmul.f32 -1.442695, %v7961_v28 }
0x1985   :  { %12223 = vpow2.f32 %v8077_v14 }
0x1986   :  { %12225 = vpow2.f32 %v8078_v3 }
0x198f   :  { %v12224_v29 = vpop.eup %12223 }
0x1990   :  { %v12226_v60 = vpop.eup %12225  ;;  %v7955_v19 = vadd.f32 1.0, %v12224_v29 }
0x1991   :  { %v7965_v23 = vadd.f32 1.0, %v12226_v60 }
0x1992   :  { %12227 = vrcp.f32 %v7955_v19 }
0x1993   :  { %12229 = vrcp.f32 %v7965_v23 }
0x199c   :  { %v12228_v51 = vpop.eup %12227 }
0x199d   :  { %v12230_v16 = vpop.eup %12229  ;;  %v7971_v18 = vmul.f32 %v12228_v51, %v7969_v34 }
0x199e   :  { %v7978_v49 = vmul.f32 %v12230_v16, %v7976_v30  ;;  %v7974_v31 = vsub.f32 1.0, %v12230_v16 }
0x199f   :  { %v7972_v44 = vadd.f32 %v7971_v18, %v15241_v61 }
0x19a1   :  { %12231 = vtanh.f32 %v7972_v44 }
0x19ab   :  { %v12232_v25 = vpop.eup %12231 }
0x19ac   :  { %v7975_v1 = vmul.f32 %v12232_v25, %v7974_v31 }
0x19ae   :  { %v7979_v48 = vadd.f32 %v7978_v49, %v7975_v1 }
0x19b0   :  { %v7984_v53 = vrot.slane %v7979_v48, %v7983_v63 }
0x19b2   :  { %v7985_v62 = vsel %vm7980_vm5, %v7984_v53, %v7803_v12 }
0x19b3   :  { %7986 = vst [vmem:[%s15572_s13] sm:$0xff] %v7985_v62 }

</bundles_post_ra>
